<compile_context>
chip_gen: v5e
topology: v5e:2x2
jax: 0.10.0
libtpu: 0.0.40
codegen_flags: <defaults>
</compile_context>

<pallas_src>
import functools

import jax
import jax.numpy as jnp
from jax.experimental import pallas as pl
from jax.experimental.pallas import tpu as pltpu

L = 512          # hidden dim of feature extractor (self.L)
D = 128          # attention dim (self.D)
K = 1            # number of attention heads (self.K)
NUM_CLASSES = 2  # cfgs['num_classes'] -- chosen deterministically in-script


def gated_attention_kernel(n_valid, x_ref, wfe_ref, bfe_ref, wvu_ref, bvu_ref,
                           wa_ref, ba_ref, wc_ref, bc_ref, y_ref, attn_ref):
    n_pad = x_ref.shape[1]

    # x arrives f32 from HBM; the bf16 cast happens in-kernel (free VPU slot).
    x = x_ref[0].astype(jnp.bfloat16)                                     # (Np, 512)

    # feature_extractor_part: Linear(512, L) + ReLU (bf16 MXU, f32 accumulate).
    h = jnp.dot(x, wfe_ref[...], preferred_element_type=jnp.float32) + bfe_ref[...]
    h = jnp.maximum(h, 0.0)                                               # (Np, L) f32
    h_bf = h.astype(jnp.bfloat16)

    # Fused attention_V / attention_U: one Linear(L, 2D); lanes [0:D] -> tanh,
    # [D:2D] -> sigmoid.  One MXU pass instead of two.
    vu = jnp.dot(h_bf, wvu_ref[...], preferred_element_type=jnp.float32) + bvu_ref[...]
    gated = (jnp.tanh(vu[:, :D]) * jax.nn.sigmoid(vu[:, D:])).astype(jnp.bfloat16)

    # attention_weights: Linear(D, K) computed directly in row form (K, Np) via
    # an NT-form contraction against the PyTorch-native (K, D) weight, so the
    # softmax and the attn store are lane-dense and no transpose is needed.
    scores = jnp.einsum('kd,nd->kn', wa_ref[...], gated,
                        preferred_element_type=jnp.float32) + ba_ref[...]  # (K, Np)
    if n_valid < n_pad:  # mask padded instances out of the softmax
        col = jax.lax.broadcasted_iota(jnp.int32, scores.shape, 1)
        scores = jnp.where(col < n_valid, scores, -jnp.inf)

    # softmax over instances; exact division (one scalar per head, ~free).
    s_max = jnp.max(scores, axis=-1, keepdims=True)
    e = jnp.exp(scores - s_max)
    attn = e / jnp.sum(e, axis=-1, keepdims=True)                         # (K, Np) f32
    attn_ref[0] = attn

    # Bag pooling m = attn @ h -> (K, L); bf16 MXU, f32 accumulate.
    m = jnp.dot(attn.astype(jnp.bfloat16), h_bf,
                preferred_element_type=jnp.float32)                       # (K, L)

    # classifier: Linear(L*K, C) + Softmax.  w_c stored (C, L) so its VMEM block
    # is lane-dense ((8, 512) after padding instead of a (512, 128)-padded slab).
    logits = jnp.einsum('kl,cl->kc', m, wc_ref[...],
                        preferred_element_type=jnp.float32) + bc_ref[...]  # (K, C)
    l_max = jnp.max(logits, axis=-1, keepdims=True)
    el = jnp.exp(logits - l_max)
    y_ref[0] = el / jnp.sum(el, axis=-1, keepdims=True)


def _round_up(v, m):
    return (v + m - 1) // m * m


_SINGLE_BUFFER_WEIGHTS = True  # flipped off automatically if pl.Buffered(1) is rejected


@functools.lru_cache(maxsize=None)
def _build_call(batch, n_pad, n_valid, single_buffer_weights):
    def wspec(shape):
        nd = len(shape)
        idx = lambda b, _nd=nd: (0,) * _nd   # constant -> VMEM-resident across bags
        if single_buffer_weights:
            # Constant index_map: the block never changes across the bag grid, so
            # single-buffering just halves its VMEM footprint (no overlap to lose).
            return pl.BlockSpec(shape, idx, pipeline_mode=pl.Buffered(1))
        return pl.BlockSpec(shape, idx)

    in_specs = [
        pl.BlockSpec((1, n_pad, 512), lambda b: (b, 0, 0)),        # per-bag x tile
        wspec((512, L)),          wspec((1, L)),                   # w_fe (bf16), b_fe
        wspec((L, 2 * D)),        wspec((1, 2 * D)),               # fused w_vu (bf16), b_vu
        wspec((K, D)),            wspec((K, 1)),                   # w_a (bf16), b_a
        wspec((NUM_CLASSES, L)),  wspec((1, NUM_CLASSES)),         # w_c^T (lane-dense), b_c
    ]
    out_specs = (
        pl.BlockSpec((1, K, NUM_CLASSES), lambda b: (b, 0, 0)),
        pl.BlockSpec((1, K, n_pad), lambda b: (b, 0, 0)),          # lane-dense attn row
    )
    return pl.pallas_call(
        functools.partial(gated_attention_kernel, n_valid),
        grid=(batch,),
        in_specs=in_specs,
        out_specs=out_specs,
        out_shape=(
            jax.ShapeDtypeStruct((batch, K, NUM_CLASSES), jnp.float32),
            jax.ShapeDtypeStruct((batch, K, n_pad), jnp.float32),
        ),
        compiler_params=pltpu.CompilerParams(
            # Bag axis is embarrassingly parallel -> megacore/TC sharding on v7x.
            dimension_semantics=("parallel",)),
    )


def _run_pallas(batch, n_pad, n_valid, args):
    global _SINGLE_BUFFER_WEIGHTS
    if _SINGLE_BUFFER_WEIGHTS:
        try:
            return _build_call(batch, n_pad, n_valid, True)(*args)
        except Exception:
            # TODO(synk): this jax build rejected pl.Buffered(1); weights fall
            # back to default double-buffering (identical results, more VMEM).
            _SINGLE_BUFFER_WEIGHTS = False
    return _build_call(batch, n_pad, n_valid, False)(*args)


def init_params(key):
    """f32 parameters matching the PyTorch module ((in, out) layout: y = x @ W + b)."""
    ks = jax.random.split(key, 10)
    scale = 0.02
    return {
        "w_fe": jax.random.normal(ks[0], (512, L), jnp.float32) * scale,
        "b_fe": jax.random.normal(ks[1], (1, L), jnp.float32) * scale,
        "w_v":  jax.random.normal(ks[2], (L, D), jnp.float32) * scale,
        "b_v":  jax.random.normal(ks[3], (1, D), jnp.float32) * scale,
        "w_u":  jax.random.normal(ks[4], (L, D), jnp.float32) * scale,
        "b_u":  jax.random.normal(ks[5], (1, D), jnp.float32) * scale,
        # attention_weights kept in PyTorch-native (out, in) = (K, D) layout.
        "w_a":  jax.random.normal(ks[6], (K, D), jnp.float32) * scale,
        "b_a":  jax.random.normal(ks[7], (1, K), jnp.float32) * scale,
        "w_c":  jax.random.normal(ks[8], (L * K, NUM_CLASSES), jnp.float32) * scale,
        "b_c":  jax.random.normal(ks[9], (1, NUM_CLASSES), jnp.float32) * scale,
    }


def prepare_params(params):
    """One-time (per model) conversion into kernel-ready operands.

    Hoisted out of the per-call path: V/U weight fusion, bf16 casts of the large
    matmul weights, lane-dense (C, L) classifier layout, and (K, 1) score bias.
    """
    return {
        "w_fe": params["w_fe"].astype(jnp.bfloat16),                       # (512, L) bf16
        "b_fe": params["b_fe"],                                            # (1, L)   f32
        "w_vu": jnp.concatenate([params["w_v"], params["w_u"]],
                                axis=1).astype(jnp.bfloat16),              # (L, 2D)  bf16
        "b_vu": jnp.concatenate([params["b_v"], params["b_u"]], axis=1),   # (1, 2D)  f32
        "w_a":  params["w_a"].astype(jnp.bfloat16),                        # (K, D)   bf16
        "b_a":  params["b_a"].reshape(K, 1),                               # (K, 1)   f32
        "w_cT": jnp.asarray(params["w_c"].T),                              # (C, L)   f32
        "b_c":  params["b_c"],                                             # (1, C)   f32
    }


def _batched_forward(x, prepared, n_valid):
    batch = x.shape[0]
    n_pad = max(_round_up(n_valid, 128), 128)
    if n_pad != x.shape[1]:
        x = jnp.pad(x, ((0, 0), (0, n_pad - x.shape[1]), (0, 0)))
    args = (x,
            prepared["w_fe"], prepared["b_fe"],
            prepared["w_vu"], prepared["b_vu"],
            prepared["w_a"], prepared["b_a"],
            prepared["w_cT"], prepared["b_c"])
    y, attn = _run_pallas(batch, n_pad, n_valid, args)
    return y, attn[:, :, :n_valid]


def gated_attention_forward(x, prepared):
    """Single-bag forward mirroring GatedAttention.forward (x.view(-1, 512))."""
    x = x.reshape(-1, 512)
    n = x.shape[0]
    y, attn = _batched_forward(x[None], prepared, n)
    return y[0], attn[0]


def gated_attention_forward_batched(x, prepared):
    """B equal-sized bags, x: (B, N, 512).  The bag axis becomes a parallel grid
    axis with VMEM-resident weights (amortizes weight DMA / launch overhead and
    uses both v7x TensorCores)."""
    return _batched_forward(x, prepared, x.shape[1])


def _reference_forward(x, p):
    # Pure f32 reference mirroring the PyTorch module.
    x = x.reshape(-1, 512).astype(jnp.float32)
    h = jax.nn.relu(x @ p["w_fe"] + p["b_fe"])
    v = jnp.tanh(h @ p["w_v"] + p["b_v"])
    u = jax.nn.sigmoid(h @ p["w_u"] + p["b_u"])
    scores = (v * u) @ p["w_a"].T + p["b_a"]          # (N, K)
    attn = jax.nn.softmax(scores.T, axis=1)           # (K, N)
    m = attn @ h
    y = jax.nn.softmax(m @ p["w_c"] + p["b_c"], axis=-1)
    return y, attn


if __name__ == "__main__":
    key = jax.random.PRNGKey(0)
    k_param, k_x, k_xb = jax.random.split(key, 3)
    params = init_params(k_param)
    prepared = prepare_params(params)   # one-time weight prep, not per-call

    # Single bag, N = 64 instances (padded to 128 inside the wrapper).
    N = 64
    x = jax.random.normal(k_x, (N, 512), jnp.float32)
    y, attn = gated_attention_forward(x, prepared)
    jax.block_until_ready((y, attn))

    y_ref, attn_ref = _reference_forward(x, params)
    assert y.shape == (K, NUM_CLASSES) and attn.shape == (K, N)
    # Tolerances account for bf16 matmul operands (f32 accumulation everywhere).
    assert jnp.allclose(y, y_ref, atol=5e-3, rtol=2e-2)
    assert jnp.allclose(attn, attn_ref, atol=5e-4, rtol=2e-2)

    # Batched bags: bag axis runs as a parallel grid axis with resident weights;
    # N = 200 pads to 256 and exercises the -inf masking path.
    B, NB = 4, 200
    xb = jax.random.normal(k_xb, (B, NB, 512), jnp.float32)
    yb, attnb = gated_attention_forward_batched(xb, prepared)
    jax.block_until_ready((yb, attnb))
    assert yb.shape == (B, K, NUM_CLASSES) and attnb.shape == (B, K, NB)
    for i in range(B):
        yr, ar = _reference_forward(xb[i], params)
        assert jnp.allclose(yb[i], yr, atol=5e-3, rtol=2e-2)
        assert jnp.allclose(attnb[i], ar, atol=5e-4, rtol=2e-2)

    print("KERNEL_OK")
</pallas_src>

<mosaic_0001>
module attributes {stable_mosaic.version = 11 : i64} {
  func.func @gated_attention_kernel(%arg0: i32, %arg1: memref<1x128x512xf32, #tpu.memory_space<vmem>>, %arg2: memref<512x512xbf16, #tpu.memory_space<vmem>>, %arg3: memref<1x512xf32, #tpu.memory_space<vmem>>, %arg4: memref<512x256xbf16, #tpu.memory_space<vmem>>, %arg5: memref<1x256xf32, #tpu.memory_space<vmem>>, %arg6: memref<1x128xbf16, #tpu.memory_space<vmem>>, %arg7: memref<1x1xf32, #tpu.memory_space<vmem>>, %arg8: memref<2x512xf32, #tpu.memory_space<vmem>>, %arg9: memref<1x2xf32, #tpu.memory_space<vmem>>, %arg10: memref<1x1x2xf32, #tpu.memory_space<vmem>>, %arg11: memref<1x1x128xf32, #tpu.memory_space<vmem>>) attributes {dimension_semantics = [#tpu.dimension_semantics<parallel>], iteration_bounds = array<i64: 1>, scalar_prefetch = 0 : i64, scratch_operands = 0 : i64, tpu.core_type = #tpu.core_type<tc>, window_params = [{transform_indices = @transform_0, window_bounds = array<i64: 1, 128, 512>}, {pipeline_mode = #tpu.pipeline_mode<synchronous>, transform_indices = @transform_1, window_bounds = array<i64: 512, 512>}, {pipeline_mode = #tpu.pipeline_mode<synchronous>, transform_indices = @transform_2, window_bounds = array<i64: 1, 512>}, {pipeline_mode = #tpu.pipeline_mode<synchronous>, transform_indices = @transform_3, window_bounds = array<i64: 512, 256>}, {pipeline_mode = #tpu.pipeline_mode<synchronous>, transform_indices = @transform_4, window_bounds = array<i64: 1, 256>}, {pipeline_mode = #tpu.pipeline_mode<synchronous>, transform_indices = @transform_5, window_bounds = array<i64: 1, 128>}, {pipeline_mode = #tpu.pipeline_mode<synchronous>, transform_indices = @transform_6, window_bounds = array<i64: 1, 1>}, {pipeline_mode = #tpu.pipeline_mode<synchronous>, transform_indices = @transform_7, window_bounds = array<i64: 2, 512>}, {pipeline_mode = #tpu.pipeline_mode<synchronous>, transform_indices = @transform_8, window_bounds = array<i64: 1, 2>}, {transform_indices = @transform_9, window_bounds = array<i64: 1, 1, 2>}, {transform_indices = @transform_10, window_bounds = array<i64: 1, 1, 128>}]} {
    %c0 = arith.constant 0 : index
    %c0_0 = arith.constant 0 : index
    %c0_1 = arith.constant 0 : index
    %0 = vector.load %arg1[%c0, %c0_0, %c0_1] : memref<1x128x512xf32, #tpu.memory_space<vmem>>, vector<1x128x512xf32>
    %1 = vector.shape_cast %0 : vector<1x128x512xf32> to vector<128x512xf32>
    %2 = arith.truncf %1 : vector<128x512xf32> to vector<128x512xbf16>
    %c0_2 = arith.constant 0 : index
    %c0_3 = arith.constant 0 : index
    %3 = vector.load %arg2[%c0_2, %c0_3] : memref<512x512xbf16, #tpu.memory_space<vmem>>, vector<512x512xbf16>
    %cst = arith.constant dense<0.000000e+00> : vector<128x512xf32>
    %4 = tpu.matmul %2, %3, %cst {dimension_numbers = #tpu.dot_dimension_numbers<[1], [0], [0], [1], [0, 0, 1, 1], [], []>} : vector<128x512xbf16>, vector<512x512xbf16>, vector<128x512xf32> -> vector<128x512xf32>
    %c0_4 = arith.constant 0 : index
    %c0_5 = arith.constant 0 : index
    %5 = vector.load %arg3[%c0_4, %c0_5] : memref<1x512xf32, #tpu.memory_space<vmem>>, vector<1x512xf32>
    %6 = vector.broadcast %5 : vector<1x512xf32> to vector<128x512xf32>
    %7 = arith.addf %4, %6 : vector<128x512xf32>
    %cst_6 = arith.constant 0.000000e+00 : f32
    %8 = vector.broadcast %cst_6 : f32 to vector<128x512xf32>
    %9 = arith.maximumf %7, %8 : vector<128x512xf32>
    %10 = arith.truncf %9 : vector<128x512xf32> to vector<128x512xbf16>
    %c0_7 = arith.constant 0 : index
    %c0_8 = arith.constant 0 : index
    %11 = vector.load %arg4[%c0_7, %c0_8] : memref<512x256xbf16, #tpu.memory_space<vmem>>, vector<512x256xbf16>
    %cst_9 = arith.constant dense<0.000000e+00> : vector<128x256xf32>
    %12 = tpu.matmul %10, %11, %cst_9 {dimension_numbers = #tpu.dot_dimension_numbers<[1], [0], [0], [1], [0, 0, 1, 1], [], []>} : vector<128x512xbf16>, vector<512x256xbf16>, vector<128x256xf32> -> vector<128x256xf32>
    %c0_10 = arith.constant 0 : index
    %c0_11 = arith.constant 0 : index
    %13 = vector.load %arg5[%c0_10, %c0_11] : memref<1x256xf32, #tpu.memory_space<vmem>>, vector<1x256xf32>
    %14 = vector.broadcast %13 : vector<1x256xf32> to vector<128x256xf32>
    %15 = arith.addf %12, %14 : vector<128x256xf32>
    %16 = vector.extract_strided_slice %15 {offsets = [0, 0], sizes = [128, 128], strides = [1, 1]} : vector<128x256xf32> to vector<128x128xf32>
    %17 = math.tanh %16 : vector<128x128xf32>
    %18 = vector.extract_strided_slice %15 {offsets = [0, 128], sizes = [128, 128], strides = [1, 1]} : vector<128x256xf32> to vector<128x128xf32>
    %19 = arith.negf %18 : vector<128x128xf32>
    %20 = math.exp %19 : vector<128x128xf32>
    %cst_12 = arith.constant 1.000000e+00 : f32
    %21 = vector.broadcast %cst_12 : f32 to vector<128x128xf32>
    %22 = arith.addf %21, %20 : vector<128x128xf32>
    %23 = arith.divf %21, %22 : vector<128x128xf32>
    %24 = arith.mulf %17, %23 : vector<128x128xf32>
    %25 = arith.truncf %24 : vector<128x128xf32> to vector<128x128xbf16>
    %c0_13 = arith.constant 0 : index
    %c0_14 = arith.constant 0 : index
    %26 = vector.load %arg6[%c0_13, %c0_14] : memref<1x128xbf16, #tpu.memory_space<vmem>>, vector<1x128xbf16>
    "tpu.trace_start"() <{level = 10 : i32, message = "kd,nd->kn"}> : () -> ()
    %cst_15 = arith.constant dense<0.000000e+00> : vector<1x128xf32>
    %27 = tpu.matmul %26, %25, %cst_15 {dimension_numbers = #tpu.dot_dimension_numbers<[1], [1], [0], [0], [0, 0, 1, 0], [], []>} : vector<1x128xbf16>, vector<128x128xbf16>, vector<1x128xf32> -> vector<1x128xf32>
    "tpu.trace_stop"() : () -> ()
    %c0_16 = arith.constant 0 : index
    %c0_17 = arith.constant 0 : index
    %28 = vector.load %arg7[%c0_16, %c0_17] : memref<1x1xf32, #tpu.memory_space<vmem>>, vector<1x1xf32>
    %29 = vector.broadcast %28 : vector<1x1xf32> to vector<1x128xf32>
    %30 = arith.addf %27, %29 : vector<1x128xf32>
    %31 = tpu.iota {dimensions = array<i32: 1>} : vector<1x128xi32>
    %c64_i32 = arith.constant 64 : i32
    %32 = vector.broadcast %c64_i32 : i32 to vector<1x128xi32>
    %33 = arith.cmpi slt, %31, %32 : vector<1x128xi32>
    %cst_18 = arith.constant 0xFF800000 : f32
    %34 = vector.broadcast %cst_18 : f32 to vector<1x128xf32>
    %35 = arith.select %33, %30, %34 : vector<1x128xi1>, vector<1x128xf32>
    %cst_19 = arith.constant dense<0xFF800000> : vector<1xf32>
    %36 = vector.multi_reduction <maximumf>, %35, %cst_19 [1] : vector<1x128xf32> to vector<1xf32>
    %37 = vector.shape_cast %36 : vector<1xf32> to vector<1x1xf32>
    %38 = vector.broadcast %37 : vector<1x1xf32> to vector<1x128xf32>
    %39 = arith.subf %35, %38 : vector<1x128xf32>
    %40 = math.exp %39 : vector<1x128xf32>
    %cst_20 = arith.constant dense<0.000000e+00> : vector<1xf32>
    %41 = vector.multi_reduction <add>, %40, %cst_20 [1] : vector<1x128xf32> to vector<1xf32>
    %42 = vector.shape_cast %41 : vector<1xf32> to vector<1x1xf32>
    %43 = vector.broadcast %42 : vector<1x1xf32> to vector<1x128xf32>
    %44 = arith.divf %40, %43 : vector<1x128xf32>
    %c0_21 = arith.constant 0 : index
    %c0_22 = arith.constant 0 : index
    %c0_23 = arith.constant 0 : index
    %45 = vector.load %arg11[%c0_21, %c0_22, %c0_23] : memref<1x1x128xf32, #tpu.memory_space<vmem>>, vector<1x1x128xf32>
    %46 = vector.shape_cast %45 : vector<1x1x128xf32> to vector<1x128xf32>
    %47 = vector.shape_cast %44 : vector<1x128xf32> to vector<1x1x128xf32>
    tpu.vector_store %arg11[%c0_21, %c0_22, %c0_23], %47 {strides = array<i32>} : memref<1x1x128xf32, #tpu.memory_space<vmem>>, vector<1x1x128xf32>,
    %48 = arith.truncf %44 : vector<1x128xf32> to vector<1x128xbf16>
    %cst_24 = arith.constant dense<0.000000e+00> : vector<1x512xf32>
    %49 = tpu.matmul %48, %10, %cst_24 {dimension_numbers = #tpu.dot_dimension_numbers<[1], [0], [0], [1], [0, 0, 1, 1], [], []>} : vector<1x128xbf16>, vector<128x512xbf16>, vector<1x512xf32> -> vector<1x512xf32>
    %c0_25 = arith.constant 0 : index
    %c0_26 = arith.constant 0 : index
    %50 = vector.load %arg8[%c0_25, %c0_26] : memref<2x512xf32, #tpu.memory_space<vmem>>, vector<2x512xf32>
    "tpu.trace_start"() <{level = 10 : i32, message = "kl,cl->kc"}> : () -> ()
    %cst_27 = arith.constant dense<0.000000e+00> : vector<1x2xf32>
    %51 = tpu.matmul %49, %50, %cst_27 {dimension_numbers = #tpu.dot_dimension_numbers<[1], [1], [0], [0], [0, 0, 1, 0], [], []>} : vector<1x512xf32>, vector<2x512xf32>, vector<1x2xf32> -> vector<1x2xf32>
    "tpu.trace_stop"() : () -> ()
    %c0_28 = arith.constant 0 : index
    %c0_29 = arith.constant 0 : index
    %52 = vector.load %arg9[%c0_28, %c0_29] : memref<1x2xf32, #tpu.memory_space<vmem>>, vector<1x2xf32>
    %53 = arith.addf %51, %52 : vector<1x2xf32>
    %cst_30 = arith.constant dense<0xFF800000> : vector<1xf32>
    %54 = vector.multi_reduction <maximumf>, %53, %cst_30 [1] : vector<1x2xf32> to vector<1xf32>
    %55 = vector.shape_cast %54 : vector<1xf32> to vector<1x1xf32>
    %56 = vector.broadcast %55 : vector<1x1xf32> to vector<1x2xf32>
    %57 = arith.subf %53, %56 : vector<1x2xf32>
    %58 = math.exp %57 : vector<1x2xf32>
    %cst_31 = arith.constant dense<0.000000e+00> : vector<1xf32>
    %59 = vector.multi_reduction <add>, %58, %cst_31 [1] : vector<1x2xf32> to vector<1xf32>
    %60 = vector.shape_cast %59 : vector<1xf32> to vector<1x1xf32>
    %61 = vector.broadcast %60 : vector<1x1xf32> to vector<1x2xf32>
    %62 = arith.divf %58, %61 : vector<1x2xf32>
    %c0_32 = arith.constant 0 : index
    %c0_33 = arith.constant 0 : index
    %c0_34 = arith.constant 0 : index
    %63 = vector.load %arg10[%c0_32, %c0_33, %c0_34] : memref<1x1x2xf32, #tpu.memory_space<vmem>>, vector<1x1x2xf32>
    %64 = vector.shape_cast %63 : vector<1x1x2xf32> to vector<1x2xf32>
    %65 = vector.shape_cast %62 : vector<1x2xf32> to vector<1x1x2xf32>
    tpu.vector_store %arg10[%c0_32, %c0_33, %c0_34], %65 {strides = array<i32>} : memref<1x1x2xf32, #tpu.memory_space<vmem>>, vector<1x1x2xf32>,
    return
  }
  func.func @transform_0(%arg0: i32) -> (i32, i32, i32) {
    %c0_i32 = arith.constant 0 : i32
    %c0_i32_0 = arith.constant 0 : i32
    %c0_i32_1 = arith.constant 0 : i32
    return %arg0, %c0_i32, %c0_i32_0 : i32, i32, i32
  }
  func.func @transform_1(%arg0: i32) -> (i32, i32) {
    %c0_i32 = arith.constant 0 : i32
    %c0_i32_0 = arith.constant 0 : i32
    %c0_i32_1 = arith.constant 0 : i32
    return %c0_i32, %c0_i32_0 : i32, i32
  }
  func.func @transform_2(%arg0: i32) -> (i32, i32) {
    %c0_i32 = arith.constant 0 : i32
    %c0_i32_0 = arith.constant 0 : i32
    %c0_i32_1 = arith.constant 0 : i32
    return %c0_i32, %c0_i32_0 : i32, i32
  }
  func.func @transform_3(%arg0: i32) -> (i32, i32) {
    %c0_i32 = arith.constant 0 : i32
    %c0_i32_0 = arith.constant 0 : i32
    %c0_i32_1 = arith.constant 0 : i32
    return %c0_i32, %c0_i32_0 : i32, i32
  }
  func.func @transform_4(%arg0: i32) -> (i32, i32) {
    %c0_i32 = arith.constant 0 : i32
    %c0_i32_0 = arith.constant 0 : i32
    %c0_i32_1 = arith.constant 0 : i32
    return %c0_i32, %c0_i32_0 : i32, i32
  }
  func.func @transform_5(%arg0: i32) -> (i32, i32) {
    %c0_i32 = arith.constant 0 : i32
    %c0_i32_0 = arith.constant 0 : i32
    %c0_i32_1 = arith.constant 0 : i32
    return %c0_i32, %c0_i32_0 : i32, i32
  }
  func.func @transform_6(%arg0: i32) -> (i32, i32) {
    %c0_i32 = arith.constant 0 : i32
    %c0_i32_0 = arith.constant 0 : i32
    %c0_i32_1 = arith.constant 0 : i32
    return %c0_i32, %c0_i32_0 : i32, i32
  }
  func.func @transform_7(%arg0: i32) -> (i32, i32) {
    %c0_i32 = arith.constant 0 : i32
    %c0_i32_0 = arith.constant 0 : i32
    %c0_i32_1 = arith.constant 0 : i32
    return %c0_i32, %c0_i32_0 : i32, i32
  }
  func.func @transform_8(%arg0: i32) -> (i32, i32) {
    %c0_i32 = arith.constant 0 : i32
    %c0_i32_0 = arith.constant 0 : i32
    %c0_i32_1 = arith.constant 0 : i32
    return %c0_i32, %c0_i32_0 : i32, i32
  }
  func.func @transform_9(%arg0: i32) -> (i32, i32, i32) {
    %c0_i32 = arith.constant 0 : i32
    %c0_i32_0 = arith.constant 0 : i32
    %c0_i32_1 = arith.constant 0 : i32
    return %arg0, %c0_i32, %c0_i32_0 : i32, i32, i32
  }
  func.func @transform_10(%arg0: i32) -> (i32, i32, i32) {
    %c0_i32 = arith.constant 0 : i32
    %c0_i32_0 = arith.constant 0 : i32
    %c0_i32_1 = arith.constant 0 : i32
    return %arg0, %c0_i32, %c0_i32_0 : i32, i32, i32
  }
}

module attributes {stable_mosaic.version = 11 : i64} {
  func.func @gated_attention_kernel(%arg0: i32, %arg1: memref<1x128x512xf32, #tpu.memory_space<vmem>>, %arg2: memref<512x512xbf16, #tpu.memory_space<vmem>>, %arg3: memref<1x512xf32, #tpu.memory_space<vmem>>, %arg4: memref<512x256xbf16, #tpu.memory_space<vmem>>, %arg5: memref<1x256xf32, #tpu.memory_space<vmem>>, %arg6: memref<1x128xbf16, #tpu.memory_space<vmem>>, %arg7: memref<1x1xf32, #tpu.memory_space<vmem>>, %arg8: memref<2x512xf32, #tpu.memory_space<vmem>>, %arg9: memref<1x2xf32, #tpu.memory_space<vmem>>, %arg10: memref<1x1x2xf32, #tpu.memory_space<vmem>>, %arg11: memref<1x1x128xf32, #tpu.memory_space<vmem>>) attributes {dimension_semantics = [#tpu.dimension_semantics<parallel>], iteration_bounds = array<i64: 1>, scalar_prefetch = 0 : i64, scratch_operands = 0 : i64, tpu.core_type = #tpu.core_type<tc>, window_params = [{transform_indices = @transform_0, window_bounds = array<i64: 1, 128, 512>}, {pipeline_mode = #tpu.pipeline_mode<synchronous>, transform_indices = @transform_1, window_bounds = array<i64: 512, 512>}, {pipeline_mode = #tpu.pipeline_mode<synchronous>, transform_indices = @transform_2, window_bounds = array<i64: 1, 512>}, {pipeline_mode = #tpu.pipeline_mode<synchronous>, transform_indices = @transform_3, window_bounds = array<i64: 512, 256>}, {pipeline_mode = #tpu.pipeline_mode<synchronous>, transform_indices = @transform_4, window_bounds = array<i64: 1, 256>}, {pipeline_mode = #tpu.pipeline_mode<synchronous>, transform_indices = @transform_5, window_bounds = array<i64: 1, 128>}, {pipeline_mode = #tpu.pipeline_mode<synchronous>, transform_indices = @transform_6, window_bounds = array<i64: 1, 1>}, {pipeline_mode = #tpu.pipeline_mode<synchronous>, transform_indices = @transform_7, window_bounds = array<i64: 2, 512>}, {pipeline_mode = #tpu.pipeline_mode<synchronous>, transform_indices = @transform_8, window_bounds = array<i64: 1, 2>}, {transform_indices = @transform_9, window_bounds = array<i64: 1, 1, 2>}, {transform_indices = @transform_10, window_bounds = array<i64: 1, 1, 128>}]} {
    %c0 = arith.constant 0 : index
    %c0_0 = arith.constant 0 : index
    %c0_1 = arith.constant 0 : index
    %0 = vector.load %arg1[%c0, %c0_0, %c0_1] : memref<1x128x512xf32, #tpu.memory_space<vmem>>, vector<1x128x512xf32>
    %1 = vector.shape_cast %0 : vector<1x128x512xf32> to vector<128x512xf32>
    %2 = arith.truncf %1 : vector<128x512xf32> to vector<128x512xbf16>
    %c0_2 = arith.constant 0 : index
    %c0_3 = arith.constant 0 : index
    %3 = vector.load %arg2[%c0_2, %c0_3] : memref<512x512xbf16, #tpu.memory_space<vmem>>, vector<512x512xbf16>
    %cst = arith.constant dense<0.000000e+00> : vector<128x512xf32>
    %4 = tpu.matmul %2, %3, %cst {dimension_numbers = #tpu.dot_dimension_numbers<[1], [0], [0], [1], [0, 0, 1, 1], [], []>} : vector<128x512xbf16>, vector<512x512xbf16>, vector<128x512xf32> -> vector<128x512xf32>
    %c0_4 = arith.constant 0 : index
    %c0_5 = arith.constant 0 : index
    %5 = vector.load %arg3[%c0_4, %c0_5] : memref<1x512xf32, #tpu.memory_space<vmem>>, vector<1x512xf32>
    %6 = vector.broadcast %5 : vector<1x512xf32> to vector<128x512xf32>
    %7 = arith.addf %4, %6 : vector<128x512xf32>
    %cst_6 = arith.constant 0.000000e+00 : f32
    %8 = vector.broadcast %cst_6 : f32 to vector<128x512xf32>
    %9 = arith.maximumf %7, %8 : vector<128x512xf32>
    %10 = arith.truncf %9 : vector<128x512xf32> to vector<128x512xbf16>
    %c0_7 = arith.constant 0 : index
    %c0_8 = arith.constant 0 : index
    %11 = vector.load %arg4[%c0_7, %c0_8] : memref<512x256xbf16, #tpu.memory_space<vmem>>, vector<512x256xbf16>
    %cst_9 = arith.constant dense<0.000000e+00> : vector<128x256xf32>
    %12 = tpu.matmul %10, %11, %cst_9 {dimension_numbers = #tpu.dot_dimension_numbers<[1], [0], [0], [1], [0, 0, 1, 1], [], []>} : vector<128x512xbf16>, vector<512x256xbf16>, vector<128x256xf32> -> vector<128x256xf32>
    %c0_10 = arith.constant 0 : index
    %c0_11 = arith.constant 0 : index
    %13 = vector.load %arg5[%c0_10, %c0_11] : memref<1x256xf32, #tpu.memory_space<vmem>>, vector<1x256xf32>
    %14 = vector.broadcast %13 : vector<1x256xf32> to vector<128x256xf32>
    %15 = arith.addf %12, %14 : vector<128x256xf32>
    %16 = vector.extract_strided_slice %15 {offsets = [0, 0], sizes = [128, 128], strides = [1, 1]} : vector<128x256xf32> to vector<128x128xf32>
    %17 = math.tanh %16 : vector<128x128xf32>
    %18 = vector.extract_strided_slice %15 {offsets = [0, 128], sizes = [128, 128], strides = [1, 1]} : vector<128x256xf32> to vector<128x128xf32>
    %19 = arith.negf %18 : vector<128x128xf32>
    %20 = math.exp %19 : vector<128x128xf32>
    %cst_12 = arith.constant 1.000000e+00 : f32
    %21 = vector.broadcast %cst_12 : f32 to vector<128x128xf32>
    %22 = arith.addf %21, %20 : vector<128x128xf32>
    %23 = arith.divf %21, %22 : vector<128x128xf32>
    %24 = arith.mulf %17, %23 : vector<128x128xf32>
    %25 = arith.truncf %24 : vector<128x128xf32> to vector<128x128xbf16>
    %c0_13 = arith.constant 0 : index
    %c0_14 = arith.constant 0 : index
    %26 = vector.load %arg6[%c0_13, %c0_14] : memref<1x128xbf16, #tpu.memory_space<vmem>>, vector<1x128xbf16>
    "tpu.trace_start"() <{level = 10 : i32, message = "kd,nd->kn"}> : () -> ()
    %cst_15 = arith.constant dense<0.000000e+00> : vector<1x128xf32>
    %27 = tpu.matmul %26, %25, %cst_15 {dimension_numbers = #tpu.dot_dimension_numbers<[1], [1], [0], [0], [0, 0, 1, 0], [], []>} : vector<1x128xbf16>, vector<128x128xbf16>, vector<1x128xf32> -> vector<1x128xf32>
    "tpu.trace_stop"() : () -> ()
    %c0_16 = arith.constant 0 : index
    %c0_17 = arith.constant 0 : index
    %28 = vector.load %arg7[%c0_16, %c0_17] : memref<1x1xf32, #tpu.memory_space<vmem>>, vector<1x1xf32>
    %29 = vector.broadcast %28 : vector<1x1xf32> to vector<1x128xf32>
    %30 = arith.addf %27, %29 : vector<1x128xf32>
    %31 = tpu.iota {dimensions = array<i32: 1>} : vector<1x128xi32>
    %c64_i32 = arith.constant 64 : i32
    %32 = vector.broadcast %c64_i32 : i32 to vector<1x128xi32>
    %33 = arith.cmpi slt, %31, %32 : vector<1x128xi32>
    %cst_18 = arith.constant 0xFF800000 : f32
    %34 = vector.broadcast %cst_18 : f32 to vector<1x128xf32>
    %35 = arith.select %33, %30, %34 : vector<1x128xi1>, vector<1x128xf32>
    %cst_19 = arith.constant dense<0xFF800000> : vector<1xf32>
    %36 = vector.multi_reduction <maximumf>, %35, %cst_19 [1] : vector<1x128xf32> to vector<1xf32>
    %37 = vector.shape_cast %36 : vector<1xf32> to vector<1x1xf32>
    %38 = vector.broadcast %37 : vector<1x1xf32> to vector<1x128xf32>
    %39 = arith.subf %35, %38 : vector<1x128xf32>
    %40 = math.exp %39 : vector<1x128xf32>
    %cst_20 = arith.constant dense<0.000000e+00> : vector<1xf32>
    %41 = vector.multi_reduction <add>, %40, %cst_20 [1] : vector<1x128xf32> to vector<1xf32>
    %42 = vector.shape_cast %41 : vector<1xf32> to vector<1x1xf32>
    %43 = vector.broadcast %42 : vector<1x1xf32> to vector<1x128xf32>
    %44 = arith.divf %40, %43 : vector<1x128xf32>
    %c0_21 = arith.constant 0 : index
    %c0_22 = arith.constant 0 : index
    %c0_23 = arith.constant 0 : index
    %45 = vector.load %arg11[%c0_21, %c0_22, %c0_23] : memref<1x1x128xf32, #tpu.memory_space<vmem>>, vector<1x1x128xf32>
    %46 = vector.shape_cast %45 : vector<1x1x128xf32> to vector<1x128xf32>
    %47 = vector.shape_cast %44 : vector<1x128xf32> to vector<1x1x128xf32>
    tpu.vector_store %arg11[%c0_21, %c0_22, %c0_23], %47 {strides = array<i32>} : memref<1x1x128xf32, #tpu.memory_space<vmem>>, vector<1x1x128xf32>,
    %48 = arith.truncf %44 : vector<1x128xf32> to vector<1x128xbf16>
    %cst_24 = arith.constant dense<0.000000e+00> : vector<1x512xf32>
    %49 = tpu.matmul %48, %10, %cst_24 {dimension_numbers = #tpu.dot_dimension_numbers<[1], [0], [0], [1], [0, 0, 1, 1], [], []>} : vector<1x128xbf16>, vector<128x512xbf16>, vector<1x512xf32> -> vector<1x512xf32>
    %c0_25 = arith.constant 0 : index
    %c0_26 = arith.constant 0 : index
    %50 = vector.load %arg8[%c0_25, %c0_26] : memref<2x512xf32, #tpu.memory_space<vmem>>, vector<2x512xf32>
    "tpu.trace_start"() <{level = 10 : i32, message = "kl,cl->kc"}> : () -> ()
    %cst_27 = arith.constant dense<0.000000e+00> : vector<1x2xf32>
    %51 = tpu.matmul %49, %50, %cst_27 {dimension_numbers = #tpu.dot_dimension_numbers<[1], [1], [0], [0], [0, 0, 1, 0], [], []>} : vector<1x512xf32>, vector<2x512xf32>, vector<1x2xf32> -> vector<1x2xf32>
    "tpu.trace_stop"() : () -> ()
    %c0_28 = arith.constant 0 : index
    %c0_29 = arith.constant 0 : index
    %52 = vector.load %arg9[%c0_28, %c0_29] : memref<1x2xf32, #tpu.memory_space<vmem>>, vector<1x2xf32>
    %53 = arith.addf %51, %52 : vector<1x2xf32>
    %cst_30 = arith.constant dense<0xFF800000> : vector<1xf32>
    %54 = vector.multi_reduction <maximumf>, %53, %cst_30 [1] : vector<1x2xf32> to vector<1xf32>
    %55 = vector.shape_cast %54 : vector<1xf32> to vector<1x1xf32>
    %56 = vector.broadcast %55 : vector<1x1xf32> to vector<1x2xf32>
    %57 = arith.subf %53, %56 : vector<1x2xf32>
    %58 = math.exp %57 : vector<1x2xf32>
    %cst_31 = arith.constant dense<0.000000e+00> : vector<1xf32>
    %59 = vector.multi_reduction <add>, %58, %cst_31 [1] : vector<1x2xf32> to vector<1xf32>
    %60 = vector.shape_cast %59 : vector<1xf32> to vector<1x1xf32>
    %61 = vector.broadcast %60 : vector<1x1xf32> to vector<1x2xf32>
    %62 = arith.divf %58, %61 : vector<1x2xf32>
    %c0_32 = arith.constant 0 : index
    %c0_33 = arith.constant 0 : index
    %c0_34 = arith.constant 0 : index
    %63 = vector.load %arg10[%c0_32, %c0_33, %c0_34] : memref<1x1x2xf32, #tpu.memory_space<vmem>>, vector<1x1x2xf32>
    %64 = vector.shape_cast %63 : vector<1x1x2xf32> to vector<1x2xf32>
    %65 = vector.shape_cast %62 : vector<1x2xf32> to vector<1x1x2xf32>
    tpu.vector_store %arg10[%c0_32, %c0_33, %c0_34], %65 {strides = array<i32>} : memref<1x1x2xf32, #tpu.memory_space<vmem>>, vector<1x1x2xf32>,
    return
  }
  func.func @transform_0(%arg0: i32) -> (i32, i32, i32) {
    %c0_i32 = arith.constant 0 : i32
    %c0_i32_0 = arith.constant 0 : i32
    %c0_i32_1 = arith.constant 0 : i32
    return %arg0, %c0_i32, %c0_i32_0 : i32, i32, i32
  }
  func.func @transform_1(%arg0: i32) -> (i32, i32) {
    %c0_i32 = arith.constant 0 : i32
    %c0_i32_0 = arith.constant 0 : i32
    %c0_i32_1 = arith.constant 0 : i32
    return %c0_i32, %c0_i32_0 : i32, i32
  }
  func.func @transform_2(%arg0: i32) -> (i32, i32) {
    %c0_i32 = arith.constant 0 : i32
    %c0_i32_0 = arith.constant 0 : i32
    %c0_i32_1 = arith.constant 0 : i32
    return %c0_i32, %c0_i32_0 : i32, i32
  }
  func.func @transform_3(%arg0: i32) -> (i32, i32) {
    %c0_i32 = arith.constant 0 : i32
    %c0_i32_0 = arith.constant 0 : i32
    %c0_i32_1 = arith.constant 0 : i32
    return %c0_i32, %c0_i32_0 : i32, i32
  }
  func.func @transform_4(%arg0: i32) -> (i32, i32) {
    %c0_i32 = arith.constant 0 : i32
    %c0_i32_0 = arith.constant 0 : i32
    %c0_i32_1 = arith.constant 0 : i32
    return %c0_i32, %c0_i32_0 : i32, i32
  }
  func.func @transform_5(%arg0: i32) -> (i32, i32) {
    %c0_i32 = arith.constant 0 : i32
    %c0_i32_0 = arith.constant 0 : i32
    %c0_i32_1 = arith.constant 0 : i32
    return %c0_i32, %c0_i32_0 : i32, i32
  }
  func.func @transform_6(%arg0: i32) -> (i32, i32) {
    %c0_i32 = arith.constant 0 : i32
    %c0_i32_0 = arith.constant 0 : i32
    %c0_i32_1 = arith.constant 0 : i32
    return %c0_i32, %c0_i32_0 : i32, i32
  }
  func.func @transform_7(%arg0: i32) -> (i32, i32) {
    %c0_i32 = arith.constant 0 : i32
    %c0_i32_0 = arith.constant 0 : i32
    %c0_i32_1 = arith.constant 0 : i32
    return %c0_i32, %c0_i32_0 : i32, i32
  }
  func.func @transform_8(%arg0: i32) -> (i32, i32) {
    %c0_i32 = arith.constant 0 : i32
    %c0_i32_0 = arith.constant 0 : i32
    %c0_i32_1 = arith.constant 0 : i32
    return %c0_i32, %c0_i32_0 : i32, i32
  }
  func.func @transform_9(%arg0: i32) -> (i32, i32, i32) {
    %c0_i32 = arith.constant 0 : i32
    %c0_i32_0 = arith.constant 0 : i32
    %c0_i32_1 = arith.constant 0 : i32
    return %arg0, %c0_i32, %c0_i32_0 : i32, i32, i32
  }
  func.func @transform_10(%arg0: i32) -> (i32, i32, i32) {
    %c0_i32 = arith.constant 0 : i32
    %c0_i32_0 = arith.constant 0 : i32
    %c0_i32_1 = arith.constant 0 : i32
    return %arg0, %c0_i32, %c0_i32_0 : i32, i32, i32
  }
}

</mosaic_0001>

<bundles_post_ra>
// kernel: tpu_custom_call.1
= control target key start
LH: loop header
LB: loop body
LE: loop exit
PB: predicated region body
PF: predicated region fallthrough
CT: control target
= control target key end

     0   :  { %s5371_s0 = inlined_call_operand.hbm [shape: f32[1,128,512], index: 0, kind: input, shape index: {}]   ;;  %s5372_s1 = inlined_call_operand.hbm [shape: bf16[512,512], index: 1, kind: input, shape index: {}]   ;;  %s5373_s2 = inlined_call_operand.hbm [shape: f32[1,512], index: 2, kind: input, shape index: {}]   ;;  %s5374_s3 = inlined_call_operand.hbm [shape: bf16[512,256], index: 3, kind: input, shape index: {}]   ;;  %s5375_s4 = inlined_call_operand.vmem [shape: f32[1,256], index: 4, kind: input, shape index: {}]   ;;  %s5376_s5 = inlined_call_operand.vmem [shape: bf16[1,128], index: 5, kind: input, shape index: {}]   ;;  %s5377_s6 = inlined_call_operand.<no memory space> [shape: f32[1,1], index: 6, kind: input, shape index: {}]   ;;  %s5378_s7 = inlined_call_operand.hbm [shape: f32[2,512], index: 7, kind: input, shape index: {}]   ;;  %s5379_s8 = inlined_call_operand.vmem [shape: f32[1,2], index: 8, kind: input, shape index: {}]   ;;  %s5380_s9 = inlined_call_operand.hbm [shape: f32[1,1,2], index: 9, kind: output, shape index: {0}]   ;;  %s5381_s10 = inlined_call_operand.hbm [shape: f32[1,1,128], index: 10, kind: output, shape index: {1}]  }
   0x1   :  { %v16_v0 = vstv %s5377_s6 }
   0x2   :  { %17 = vst [vmem:[#allocation2] sm:$0x1] %v16_v0 }
   0x3   :  { %18 = vsyncpa [#allocation4], 0 }
   0x4   :  { %19 = vsyncpa [#allocation7], 0 }
   0x5   :  { %20 = vsyncpa [#allocation10], 0 }
   0x6   :  { %21 = vsyncpa [#allocation5], 0  ;;  %s40_s17 = sshll.u32 %s5372_s1, 4  ;;  %s41_s17 = int_to_ptr.hbm [resolvable:$true] %s40_s17 }
   0x7   :  { %22 = vsyncpa [#allocation14], 0  ;;  %s4523_s18 = smov [#allocation6]   ;;  %s64_s22 = sshll.u32 %s5374_s3, 4  ;;  %s65_s22 = int_to_ptr.hbm [resolvable:$true] %s64_s22 }
   0x8   :  { %s42_s19 = sshll.u32 %s4523_s18, 4  ;;  %s4524_s23 = smov 256   ;;  %s43_s19 = int_to_ptr.vmem [resolvable:$true] %s42_s19 }
   0x9   :  { %s4525_s6 = smov 16   ;;  %s4526_s24 = smov [#allocation9]  }
   0xa   :  { %48 = dma.hbm_to_vmem [thread:$0]  %s41_s17, 16384, %s43_s19, [#allocation7], %s4524_s23, %s4524_s23, %s4525_s6  }
   0xb   :  { %s66_s25 = sshll.u32 %s4526_s24, 4  ;;  %s4527_s26 = smov 128   ;;  %s67_s25 = int_to_ptr.vmem [resolvable:$true] %s66_s25 }
   0xc   :  { %s4528_s27 = smov 8   ;;  %s27_s29 = sshll.u32 %s5371_s0, 4  ;;  %s28_s29 = int_to_ptr.hbm [resolvable:$true] %s27_s29 }
   0xd   :  { %72 = dma.hbm_to_vmem [thread:$0]  %s65_s22, 8192, %s67_s25, [#allocation10], %s4527_s26, %s4527_s26, %s4528_s27  }
   0xe   :  { %s4529_s30 = smov [#allocation3]   ;;  %s54_s13 = sshll.u32 %s5373_s2, 4  ;;  %s55_s13 = int_to_ptr.hbm [resolvable:$true] %s54_s13 }
   0xf   :  { %s29_s11 = sshll.u32 %s4529_s30, 4  ;;  %s4530_s14 = smov 512   ;;  %s30_s11 = int_to_ptr.vmem [resolvable:$true] %s29_s11 }
  0x10   :  { %s4531_s15 = smov 32   ;;  %s4532_s16 = smov [#allocation8]  }
  0x11   :  { %35 = dma.hbm_to_vmem [thread:$0]  %s28_s29, 8192, %s30_s11, [#allocation4], %s4530_s14, %s4530_s14, %s4531_s15  }
  0x12   :  { %s56_s17 = sshll.u32 %s4532_s16, 4  ;;  %s84_s20 = sshll.u32 %s5378_s7, 4  ;;  %s57_s17 = int_to_ptr.vmem [resolvable:$true] %s56_s17  ;;  %s85_s20 = int_to_ptr.hbm [resolvable:$true] %s84_s20 }
  0x13   :  { %59 = dma.hbm_to_vmem [thread:$0]  %s55_s13, 64, %s57_s17, [#allocation7]  }
  0x14   :  { %s4533_s0 = smov [#allocation11]  }
  0x15   :  { %s86_s21 = sshll.u32 %s4533_s0, 4  ;;  %s87_s21 = int_to_ptr.vmem [resolvable:$true] %s86_s21 }
  0x16   :  { %89 = dma.hbm_to_vmem [thread:$0]  %s85_s20, 128, %s87_s21, [#allocation10]  }
  0x17   :  { %4513 = dma.done.wait [#allocation4], 8192  }
  0x18   :  { %4514 = vsyncadd [#allocation4], 4294959104 }
  0x19   :  { %4515 = dma.done.wait [#allocation7], 16448  }
  0x1a   :  { %4516 = vsyncadd [#allocation7], 4294950848 }
  0x1b   :  { %4517 = dma.done.wait [#allocation10], 8320  }
  0x1c   :  { %4518 = vsyncadd [#allocation10], 4294958976  ;;  %v3363_v1 = vld [vmem:[#allocation6 + $0xe0] sm:$0xf]  ;;  %v4063_v2 = vld [vmem:[#allocation6 + $0xec] sm:$0xf0] }
  0x1d   :  { %v3491_v3 = vld [vmem:[#allocation6 + $0x1e0] sm:$0xf]  ;;  %v3364_v4 = vor.u32 %v4063_v2, %v3363_v1  ;;  %v4095_v5 = vld [vmem:[#allocation6 + $0x1ec] sm:$0xf0]  ;;  %s3232_s26 = sshll.u32 %s5381_s10, 4  ;;  %s4536_s27 = smov [#allocation12]   ;;  %s3233_s26 = int_to_ptr.hbm [resolvable:$true] %s3232_s26 }
  0x1e   :  { %v3619_v6 = vld [vmem:[#allocation6 + $0x2e0] sm:$0xf]  ;;  %v4127_v7 = vld [vmem:[#allocation6 + $0x2ec] sm:$0xf0]  ;;  %v3492_v8 = vor.u32 %v4095_v5, %v3491_v3  ;;  %s3219_s1 = sshll.u32 %s4536_s27, 4  ;;  %s3221_s29 = sshll.u32 %s5380_s9, 4  ;;  %s3220_s1 = int_to_ptr.vmem [resolvable:$true] %s3219_s1  ;;  %s3222_s29 = int_to_ptr.hbm [resolvable:$true] %s3221_s29 }
  0x1f   :  { %v3620_v9 = vor.u32 %v4127_v7, %v3619_v6  ;;  %v3747_v10 = vld [vmem:[#allocation6 + $0x3e0] sm:$0xf]  ;;  %v4159_v11 = vld [vmem:[#allocation6 + $0x3ec] sm:$0xf0]  ;;  %986 = vmatpush.bf16.msra.mxu0 %v3364_v4 }
  0x20   :  { %v3347_v12 = vld [vmem:[#allocation6 + $0xc0] sm:$0xf]  ;;  %v3748_v13 = vor.u32 %v4159_v11, %v3747_v10  ;;  %v4059_v14 = vld [vmem:[#allocation6 + $0xcc] sm:$0xf0]  ;;  %1035 = vmatpush.bf16.msra.mxu1 %v3492_v8 }
  0x21   :  { %v3475_v15 = vld [vmem:[#allocation6 + $0x1c0] sm:$0xf]  ;;  %v4091_v16 = vld [vmem:[#allocation6 + $0x1cc] sm:$0xf0]  ;;  %1084 = vmatpush.bf16.msra.mxu2 %v3620_v9  ;;  %v3348_v17 = vor.u32 %v4059_v14, %v3347_v12 }
  0x22   :  { %v3476_v18 = vor.u32 %v4091_v16, %v3475_v15  ;;  %v3603_v19 = vld [vmem:[#allocation6 + $0x2c0] sm:$0xf]  ;;  %v4123_v20 = vld [vmem:[#allocation6 + $0x2cc] sm:$0xf0]  ;;  %1133 = vmatpush.bf16.msra.mxu3 %v3748_v13 }
  0x23   :  { %v3731_v21 = vld [vmem:[#allocation6 + $0x3c0] sm:$0xf]  ;;  %v3604_v22 = vor.u32 %v4123_v20, %v3603_v19  ;;  %v4155_v23 = vld [vmem:[#allocation6 + $0x3cc] sm:$0xf0]  ;;  %987 = vmatpush.bf16.msra.mxu0 %v3348_v17 }
  0x24   :  { %v3331_v24 = vld [vmem:[#allocation6 + $0xa0] sm:$0xf]  ;;  %v4055_v25 = vld [vmem:[#allocation6 + $0xac] sm:$0xf0]  ;;  %v3732_v26 = vor.u32 %v4155_v23, %v3731_v21  ;;  %1036 = vmatpush.bf16.msra.mxu1 %v3476_v18 }
  0x25   :  { %v3459_v27 = vld [vmem:[#allocation6 + $0x1a0] sm:$0xf]  ;;  %v4087_v28 = vld [vmem:[#allocation6 + $0x1ac] sm:$0xf0]  ;;  %v3332_v30 = vor.u32 %v4055_v25, %v3331_v24  ;;  %1085 = vmatpush.bf16.msra.mxu2 %v3604_v22 }
  0x26   :  { %v3587_v29 = vld [vmem:[#allocation6 + $0x2a0] sm:$0xf]  ;;  %v4119_v31 = vld [vmem:[#allocation6 + $0x2ac] sm:$0xf0]  ;;  %v3460_v34 = vor.u32 %v4087_v28, %v3459_v27  ;;  %1134 = vmatpush.bf16.msra.mxu3 %v3732_v26 }
  0x27   :  { %v3715_v32 = vld [vmem:[#allocation6 + $0x3a0] sm:$0xf]  ;;  %v4151_v33 = vld [vmem:[#allocation6 + $0x3ac] sm:$0xf0]  ;;  %v3588_v35 = vor.u32 %v4119_v31, %v3587_v29  ;;  %988 = vmatpush.bf16.msra.mxu0 %v3332_v30 }
  0x28   :  { %v3315_v36 = vld [vmem:[#allocation6 + $0x80] sm:$0xf]  ;;  %v4051_v37 = vld [vmem:[#allocation6 + $0x8c] sm:$0xf0]  ;;  %v3716_v39 = vor.u32 %v4151_v33, %v3715_v32  ;;  %1037 = vmatpush.bf16.msra.mxu1 %v3460_v34  ;;  %v113_v32 = vld [vmem:[#allocation3 + $0x8] sm:$0xff] }
  0x29   :  { %v3443_v38 = vld [vmem:[#allocation6 + $0x180] sm:$0xf]  ;;  %v4083_v40 = vld [vmem:[#allocation6 + $0x18c] sm:$0xf0]  ;;  %v3316_v45 = vor.u32 %v4051_v37, %v3315_v36  ;;  %1086 = vmatpush.bf16.msra.mxu2 %v3588_v35  ;;  %v117_v35 = vld [vmem:[#allocation3 + $0x28] sm:$0xff] }
  0x2a   :  { %v3571_v41 = vld [vmem:[#allocation6 + $0x280] sm:$0xf]  ;;  %v4115_v42 = vld [vmem:[#allocation6 + $0x28c] sm:$0xf0]  ;;  %v3444_v46 = vor.u32 %v4083_v40, %v3443_v38  ;;  %1135 = vmatpush.bf16.msra.mxu3 %v3716_v39  ;;  %v115_v39 = vld [vmem:[#allocation3 + $0x18] sm:$0xff] }
  0x2b   :  { %v3699_v43 = vld [vmem:[#allocation6 + $0x380] sm:$0xf]  ;;  %v4147_v44 = vld [vmem:[#allocation6 + $0x38c] sm:$0xf0]  ;;  %v3572_v47 = vor.u32 %v4115_v42, %v3571_v41  ;;  %989 = vmatpush.bf16.msra.mxu0 %v3316_v45  ;;  %v119_v40 = vld [vmem:[#allocation3 + $0x38] sm:$0xff]  ;;  %v4612_v42 = vpack.c.bf16 %v117_v35, %v113_v32 }
  0x2c   :  { %v3299_v48 = vld [vmem:[#allocation6 + $0x60] sm:$0xf]  ;;  %v4047_v49 = vld [vmem:[#allocation6 + $0x6c] sm:$0xf0]  ;;  %v3700_v51 = vor.u32 %v4147_v44, %v3699_v43  ;;  %1038 = vmatpush.bf16.msra.mxu1 %v3444_v46  ;;  %v4616_v44 = vpack.c.bf16 %v119_v40, %v115_v39  ;;  %v3733_v35 = vld [vmem:[#allocation6 + $0x3d0] sm:$0xf0] }
  0x2d   :  { %v3427_v50 = vld [vmem:[#allocation6 + $0x160] sm:$0xf]  ;;  %v4079_v52 = vld [vmem:[#allocation6 + $0x16c] sm:$0xf0]  ;;  %v3300_v57 = vor.u32 %v4047_v49, %v3299_v48  ;;  %1087 = vmatpush.bf16.msra.mxu2 %v3572_v47  ;;  %v121_v47 = vld [vmem:[#allocation3 + $0x48] sm:$0xff] }
  0x2e   :  { %v3555_v53 = vld [vmem:[#allocation6 + $0x260] sm:$0xf]  ;;  %v4111_v54 = vld [vmem:[#allocation6 + $0x26c] sm:$0xf0]  ;;  %v3428_v58 = vor.u32 %v4079_v52, %v3427_v50  ;;  %1136 = vmatpush.bf16.msra.mxu3 %v3700_v51  ;;  %v125_v48 = vld [vmem:[#allocation3 + $0x68] sm:$0xff] }
  0x2f   :  { %v3683_v55 = vld [vmem:[#allocation6 + $0x360] sm:$0xf]  ;;  %v4143_v56 = vld [vmem:[#allocation6 + $0x36c] sm:$0xf0]  ;;  %v3556_v59 = vor.u32 %v4111_v54, %v3555_v53  ;;  %990 = vmatpush.bf16.msra.mxu0 %v3300_v57  ;;  %v123_v51 = vld [vmem:[#allocation3 + $0x58] sm:$0xff]  ;;  %v4624_v54 = vpack.c.bf16 %v125_v48, %v121_v47 }
  0x30   :  { %v3283_v60 = vld [vmem:[#allocation6 + $0x40] sm:$0xf]  ;;  %v4043_v61 = vld [vmem:[#allocation6 + $0x4c] sm:$0xf0]  ;;  %v3684_v63 = vor.u32 %v4143_v56, %v3683_v55  ;;  %1039 = vmatpush.bf16.msra.mxu1 %v3428_v58  ;;  %v127_v52 = vld [vmem:[#allocation3 + $0x78] sm:$0xff] }
  0x31   :  { %v3411_v62 = vld [vmem:[#allocation6 + $0x140] sm:$0xf]  ;;  %v4075_v0 = vld [vmem:[#allocation6 + $0x14c] sm:$0xf0]  ;;  %v3284_v5 = vor.u32 %v4043_v61, %v3283_v60  ;;  %1088 = vmatpush.bf16.msra.mxu2 %v3556_v59  ;;  %v4628_v56 = vpack.c.bf16 %v127_v52, %v123_v51  ;;  %v129_v59 = vld [vmem:[#allocation3 + $0x88] sm:$0xff] }
  0x32   :  { %v3539_v1 = vld [vmem:[#allocation6 + $0x240] sm:$0xf]  ;;  %v4107_v2 = vld [vmem:[#allocation6 + $0x24c] sm:$0xf0]  ;;  %v3412_v6 = vor.u32 %v4075_v0, %v3411_v62  ;;  %1137 = vmatpush.bf16.msra.mxu3 %v3684_v63  ;;  %v133_v60 = vld [vmem:[#allocation3 + $0xa8] sm:$0xff] }
  0x33   :  { %v3667_v3 = vld [vmem:[#allocation6 + $0x340] sm:$0xf]  ;;  %v4139_v4 = vld [vmem:[#allocation6 + $0x34c] sm:$0xf0]  ;;  %v3540_v7 = vor.u32 %v4107_v2, %v3539_v1  ;;  %991 = vmatpush.bf16.msra.mxu0 %v3284_v5  ;;  %v131_v63 = vld [vmem:[#allocation3 + $0x98] sm:$0xff]  ;;  %v4636_v2 = vpack.c.bf16 %v133_v60, %v129_v59 }
  0x34   :  { %v3267_v8 = vld [vmem:[#allocation6 + $0x20] sm:$0xf]  ;;  %v4039_v9 = vld [vmem:[#allocation6 + $0x2c] sm:$0xf0]  ;;  %v3668_v11 = vor.u32 %v4139_v4, %v3667_v3  ;;  %1040 = vmatpush.bf16.msra.mxu1 %v3412_v6  ;;  %v135_v0 = vld [vmem:[#allocation3 + $0xb8] sm:$0xff] }
  0x35   :  { %v3395_v10 = vld [vmem:[#allocation6 + $0x120] sm:$0xf]  ;;  %v4071_v12 = vld [vmem:[#allocation6 + $0x12c] sm:$0xf0]  ;;  %v3268_v17 = vor.u32 %v4039_v9, %v3267_v8  ;;  %1089 = vmatpush.bf16.msra.mxu2 %v3540_v7  ;;  %v4640_v4 = vpack.c.bf16 %v135_v0, %v131_v63  ;;  %v4125_v5 = vld [vmem:[#allocation6 + $0x2e4] sm:$0xf] }
  0x36   :  { %v3523_v13 = vld [vmem:[#allocation6 + $0x220] sm:$0xf]  ;;  %v4103_v14 = vld [vmem:[#allocation6 + $0x22c] sm:$0xf0]  ;;  %v3396_v18 = vor.u32 %v4071_v12, %v3395_v10  ;;  %1138 = vmatpush.bf16.msra.mxu3 %v3668_v11  ;;  %v3621_v6 = vld [vmem:[#allocation6 + $0x2f0] sm:$0xf0] }
  0x37   :  { %v3651_v15 = vld [vmem:[#allocation6 + $0x320] sm:$0xf]  ;;  %v4135_v16 = vld [vmem:[#allocation6 + $0x32c] sm:$0xf0]  ;;  %v3524_v19 = vor.u32 %v4103_v14, %v3523_v13  ;;  %992 = vmatpush.bf16.msra.mxu0 %v3268_v17  ;;  %v4061_v7 = vld [vmem:[#allocation6 + $0xe4] sm:$0xf]  ;;  %v3624_v8 = vor.u32 %v4125_v5, %v3621_v6 }
  0x38   :  { %v3251_v20 = vld [vmem:[#allocation6] sm:$0xf]  ;;  %v4035_v21 = vld [vmem:[#allocation6 + $0xc] sm:$0xf0]  ;;  %v3652_v23 = vor.u32 %v4135_v16, %v3651_v15  ;;  %1041 = vmatpush.bf16.msra.mxu1 %v3396_v18  ;;  %v3365_v9 = vld [vmem:[#allocation6 + $0xf0] sm:$0xf0] }
  0x39   :  { %v3379_v22 = vld [vmem:[#allocation6 + $0x100] sm:$0xf]  ;;  %v4067_v24 = vld [vmem:[#allocation6 + $0x10c] sm:$0xf0]  ;;  %v3252_v29 = vor.u32 %v4035_v21, %v3251_v20  ;;  %1090 = vmatpush.bf16.msra.mxu2 %v3524_v19  ;;  %v4157_v10 = vld [vmem:[#allocation6 + $0x3e4] sm:$0xf]  ;;  %v3368_v12 = vor.u32 %v4061_v7, %v3365_v9 }
  0x3a   :  { %v3507_v25 = vld [vmem:[#allocation6 + $0x200] sm:$0xf]  ;;  %v4099_v26 = vld [vmem:[#allocation6 + $0x20c] sm:$0xf0]  ;;  %v3380_v33 = vor.u32 %v4067_v24, %v3379_v22  ;;  %1139 = vmatpush.bf16.msra.mxu3 %v3652_v23  ;;  %v3749_v11 = vld [vmem:[#allocation6 + $0x3f0] sm:$0xf0] }
  0x3b   :  { %v3635_v27 = vld [vmem:[#allocation6 + $0x300] sm:$0xf]  ;;  %v4131_v28 = vld [vmem:[#allocation6 + $0x30c] sm:$0xf0]  ;;  %v3508_v34 = vor.u32 %v4099_v26, %v3507_v25  ;;  %993 = vmatpush.bf16.msra.mxu0 %v3252_v29  ;;  %v3752_v13 = vor.u32 %v4157_v10, %v3749_v11  ;;  %v4093_v14 = vld [vmem:[#allocation6 + $0x1e4] sm:$0xf] }
  0x3c   :  { %v112_v30 = vld [vmem:[#allocation3] sm:$0xff]  ;;  %v114_v36 = vld [vmem:[#allocation3 + $0x10] sm:$0xff]  ;;  %v3636_v38 = vor.u32 %v4131_v28, %v3635_v27  ;;  %1042 = vmatpush.bf16.msra.mxu1 %v3380_v33  ;;  %v137_v19 = vld [vmem:[#allocation3 + $0xc8] sm:$0xff] }
  0x3d   :  { %v116_v31 = vld [vmem:[#allocation3 + $0x20] sm:$0xff]  ;;  %v118_v37 = vld [vmem:[#allocation3 + $0x30] sm:$0xff]  ;;  %1091 = vmatpush.bf16.msra.mxu2 %v3508_v34  ;;  %v141_v20 = vld [vmem:[#allocation3 + $0xe8] sm:$0xff] }
  0x3e   :  { %v4610_v41 = vpack.c.bf16 %v116_v31, %v112_v30  ;;  %v4614_v43 = vpack.c.bf16 %v118_v37, %v114_v36  ;;  %1140 = vmatpush.bf16.msra.mxu3 %v3636_v38  ;;  %v120_v45 = vld [vmem:[#allocation3 + $0x40] sm:$0xff]  ;;  %v122_v49 = vld [vmem:[#allocation3 + $0x50] sm:$0xff]  ;;  %v139_v23 = vld [vmem:[#allocation3 + $0xd8] sm:$0xff]  ;;  %v4648_v26 = vpack.c.bf16 %v141_v20, %v137_v19 }
  0x3f   :  { %1043 = vmatmul.bf16.vlgmr.msra.gmra.mxu1 %v4612_v42  ;;  %v124_v46 = vld [vmem:[#allocation3 + $0x60] sm:$0xff]  ;;  %v126_v50 = vld [vmem:[#allocation3 + $0x70] sm:$0xff]  ;;  %1182 = vmatpush.bf16.msrb.mxu0 %v3368_v12  ;;  %v143_v24 = vld [vmem:[#allocation3 + $0xf8] sm:$0xff] }
  0x40   :  { %994 = vmatmul.bf16.vlgmr.msra.gmra.mxu0 %v4610_v41  ;;  %1092 = vmatmul.bf16.vlgmr.msra.gmra.mxu2 %v4614_v43  ;;  %v4622_v53 = vpack.c.bf16 %v124_v46, %v120_v45  ;;  %v4626_v55 = vpack.c.bf16 %v126_v50, %v122_v49  ;;  %v128_v57 = vld [vmem:[#allocation3 + $0x80] sm:$0xff]  ;;  %v130_v61 = vld [vmem:[#allocation3 + $0x90] sm:$0xff]  ;;  %v4652_v28 = vpack.c.bf16 %v143_v24, %v139_v23  ;;  %v145_v47 = vld [vmem:[#allocation3 + $0x108] sm:$0xff] }
  0x41   :  { %1141 = vmatmul.bf16.vlgmr.msra.gmra.mxu3 %v4616_v44  ;;  %v132_v58 = vld [vmem:[#allocation3 + $0xa0] sm:$0xff]  ;;  %v134_v62 = vld [vmem:[#allocation3 + $0xb0] sm:$0xff]  ;;  %1280 = vmatpush.bf16.msrb.mxu2 %v3624_v8  ;;  %v149_v48 = vld [vmem:[#allocation3 + $0x128] sm:$0xff] }
  0x42   :  { %v4634_v1 = vpack.c.bf16 %v132_v58, %v128_v57  ;;  %v4638_v3 = vpack.c.bf16 %v134_v62, %v130_v61  ;;  %v3493_v15 = vld [vmem:[#allocation6 + $0x1f0] sm:$0xf0]  ;;  %1329 = vmatpush.bf16.msrb.mxu3 %v3752_v13  ;;  %v136_v17 = vld [vmem:[#allocation3 + $0xc0] sm:$0xff]  ;;  %v147_v51 = vld [vmem:[#allocation3 + $0x118] sm:$0xff]  ;;  %v4660_v58 = vpack.c.bf16 %v149_v48, %v145_v47 }
  0x43   :  { %v3496_v16 = vor.u32 %v4093_v14, %v3493_v15  ;;  %v140_v18 = vld [vmem:[#allocation3 + $0xe0] sm:$0xff]  ;;  %v138_v21 = vld [vmem:[#allocation3 + $0xd0] sm:$0xff]  ;;  %v151_v52 = vld [vmem:[#allocation3 + $0x138] sm:$0xff] }
  0x44   :  { %v142_v22 = vld [vmem:[#allocation3 + $0xf0] sm:$0xff]  ;;  %v4646_v25 = vpack.c.bf16 %v140_v18, %v136_v17  ;;  %v4121_v29 = vld [vmem:[#allocation6 + $0x2c4] sm:$0xf]  ;;  %v4664_v60 = vpack.c.bf16 %v151_v52, %v147_v51 }
  0x45   :  { %1231 = vmatpush.bf16.msrb.mxu1 %v3496_v16  ;;  %v4650_v27 = vpack.c.bf16 %v142_v22, %v138_v21  ;;  %v3605_v30 = vld [vmem:[#allocation6 + $0x2d0] sm:$0xf0]  ;;  %v4057_v31 = vld [vmem:[#allocation6 + $0xc4] sm:$0xf] }
  0x46   :  { %v3608_v32 = vor.u32 %v4121_v29, %v3605_v30  ;;  %v3349_v33 = vld [vmem:[#allocation6 + $0xd0] sm:$0xf0]  ;;  %v4153_v34 = vld [vmem:[#allocation6 + $0x3c4] sm:$0xf] }
  0x47   :  { %v3352_v36 = vor.u32 %v4057_v31, %v3349_v33  ;;  %v3736_v37 = vor.u32 %v4153_v34, %v3733_v35  ;;  %v4089_v38 = vld [vmem:[#allocation6 + $0x1c4] sm:$0xf]  ;;  %v3477_v39 = vld [vmem:[#allocation6 + $0x1d0] sm:$0xf0]  ;;  %v153_v31 = vld [vmem:[#allocation3 + $0x148] sm:$0xff] }
  0x48   :  { %1281 = vmatpush.bf16.msrb.mxu2 %v3608_v32  ;;  %v3480_v40 = vor.u32 %v4089_v38, %v3477_v39  ;;  %v144_v45 = vld [vmem:[#allocation3 + $0x100] sm:$0xff]  ;;  %v146_v49 = vld [vmem:[#allocation3 + $0x110] sm:$0xff]  ;;  %v157_v32 = vld [vmem:[#allocation3 + $0x168] sm:$0xff] }
  0x49   :  { %1183 = vmatpush.bf16.msrb.mxu0 %v3352_v36  ;;  %1330 = vmatpush.bf16.msrb.mxu3 %v3736_v37  ;;  %v148_v46 = vld [vmem:[#allocation3 + $0x120] sm:$0xff]  ;;  %v150_v50 = vld [vmem:[#allocation3 + $0x130] sm:$0xff]  ;;  %v155_v35 = vld [vmem:[#allocation3 + $0x158] sm:$0xff]  ;;  %v4672_v38 = vpack.c.bf16 %v157_v32, %v153_v31 }
  0x4a   :  { %1232 = vmatpush.bf16.msrb.mxu1 %v3480_v40  ;;  %v4658_v57 = vpack.c.bf16 %v148_v46, %v144_v45  ;;  %v4662_v59 = vpack.c.bf16 %v150_v50, %v146_v49  ;;  %v4117_v61 = vld [vmem:[#allocation6 + $0x2a4] sm:$0xf]  ;;  %v3589_v62 = vld [vmem:[#allocation6 + $0x2b0] sm:$0xf0]  ;;  %v159_v36 = vld [vmem:[#allocation3 + $0x178] sm:$0xff] }
  0x4b   :  { %v4053_v63 = vld [vmem:[#allocation6 + $0xa4] sm:$0xf]  ;;  %v3592_v0 = vor.u32 %v4117_v61, %v3589_v62  ;;  %v3333_v5 = vld [vmem:[#allocation6 + $0xb0] sm:$0xf0]  ;;  %v4676_v40 = vpack.c.bf16 %v159_v36, %v155_v35  ;;  %v161_v32 = vld [vmem:[#allocation3 + $0x188] sm:$0xff] }
  0x4c   :  { %v4149_v6 = vld [vmem:[#allocation6 + $0x3a4] sm:$0xf]  ;;  %v3717_v7 = vld [vmem:[#allocation6 + $0x3b0] sm:$0xf0]  ;;  %v3336_v8 = vor.u32 %v4053_v63, %v3333_v5  ;;  %v165_v35 = vld [vmem:[#allocation3 + $0x1a8] sm:$0xff] }
  0x4d   :  { %v3720_v9 = vor.u32 %v4149_v6, %v3717_v7  ;;  %v4085_v10 = vld [vmem:[#allocation6 + $0x1a4] sm:$0xf]  ;;  %v3461_v11 = vld [vmem:[#allocation6 + $0x1b0] sm:$0xf0]  ;;  %1282 = vmatpush.bf16.msrb.mxu2 %v3592_v0 }
  0x4e   :  { %v4049_v12 = vld [vmem:[#allocation6 + $0x84] sm:$0xf]  ;;  %v3464_v13 = vor.u32 %v4085_v10, %v3461_v11  ;;  %v3317_v14 = vld [vmem:[#allocation6 + $0x90] sm:$0xf0]  ;;  %1184 = vmatpush.bf16.msrb.mxu0 %v3336_v8 }
  0x4f   :  { %1048 = vmatmul.bf16.gmra.mxu1 %v4624_v54  ;;  %v4081_v15 = vld [vmem:[#allocation6 + $0x184] sm:$0xf]  ;;  %v3445_v16 = vld [vmem:[#allocation6 + $0x190] sm:$0xf0]  ;;  %1331 = vmatpush.bf16.msrb.mxu3 %v3720_v9  ;;  %v3320_v17 = vor.u32 %v4049_v12, %v3317_v14 }
  0x50   :  { %999 = vmatmul.bf16.gmra.mxu0 %v4622_v53  ;;  %1097 = vmatmul.bf16.gmra.mxu2 %v4626_v55  ;;  %v4113_v18 = vld [vmem:[#allocation6 + $0x284] sm:$0xf]  ;;  %v3573_v19 = vld [vmem:[#allocation6 + $0x290] sm:$0xf0]  ;;  %v3448_v21 = vor.u32 %v4081_v15, %v3445_v16 }
  0x51   :  { %1146 = vmatmul.bf16.gmra.mxu3 %v4628_v56  ;;  %v4145_v20 = vld [vmem:[#allocation6 + $0x384] sm:$0xf]  ;;  %1233 = vmatpush.bf16.msrb.mxu1 %v3464_v13  ;;  %v3576_v22 = vor.u32 %v4113_v18, %v3573_v19  ;;  %v3701_v23 = vld [vmem:[#allocation6 + $0x390] sm:$0xf0] }
  0x52   :  { %v3704_v24 = vor.u32 %v4145_v20, %v3701_v23  ;;  %v152_v29 = vld [vmem:[#allocation3 + $0x140] sm:$0xff]  ;;  %v154_v33 = vld [vmem:[#allocation3 + $0x150] sm:$0xff]  ;;  %1185 = vmatpush.bf16.msrb.mxu0 %v3320_v17 }
  0x53   :  { %v156_v30 = vld [vmem:[#allocation3 + $0x160] sm:$0xff]  ;;  %1283 = vmatpush.bf16.msrb.mxu2 %v3576_v22  ;;  %v158_v34 = vld [vmem:[#allocation3 + $0x170] sm:$0xff] }
  0x54   :  { %1332 = vmatpush.bf16.msrb.mxu3 %v3704_v24  ;;  %v4670_v37 = vpack.c.bf16 %v156_v30, %v152_v29  ;;  %v4674_v39 = vpack.c.bf16 %v158_v34, %v154_v33  ;;  %v4045_v45 = vld [vmem:[#allocation6 + $0x64] sm:$0xf]  ;;  %v3301_v46 = vld [vmem:[#allocation6 + $0x70] sm:$0xf0] }
  0x55   :  { %1234 = vmatpush.bf16.msrb.mxu1 %v3448_v21  ;;  %v4077_v47 = vld [vmem:[#allocation6 + $0x164] sm:$0xf]  ;;  %v3304_v48 = vor.u32 %v4045_v45, %v3301_v46  ;;  %v3429_v49 = vld [vmem:[#allocation6 + $0x170] sm:$0xf0] }
  0x56   :  { %v4109_v50 = vld [vmem:[#allocation6 + $0x264] sm:$0xf]  ;;  %v3557_v51 = vld [vmem:[#allocation6 + $0x270] sm:$0xf0]  ;;  %v3432_v52 = vor.u32 %v4077_v47, %v3429_v49  ;;  %v163_v47 = vld [vmem:[#allocation3 + $0x198] sm:$0xff] }
  0x57   :  { %v3560_v61 = vor.u32 %v4109_v50, %v3557_v51  ;;  %v4141_v62 = vld [vmem:[#allocation6 + $0x364] sm:$0xf]  ;;  %v3685_v63 = vld [vmem:[#allocation6 + $0x370] sm:$0xf0]  ;;  %1186 = vmatpush.bf16.msrb.mxu0 %v3304_v48  ;;  %v167_v48 = vld [vmem:[#allocation3 + $0x1b8] sm:$0xff] }
  0x58   :  { %v4041_v0 = vld [vmem:[#allocation6 + $0x44] sm:$0xf]  ;;  %v3688_v5 = vor.u32 %v4141_v62, %v3685_v63  ;;  %v3285_v6 = vld [vmem:[#allocation6 + $0x50] sm:$0xf0] }
  0x59   :  { %v4073_v7 = vld [vmem:[#allocation6 + $0x144] sm:$0xf]  ;;  %v3413_v8 = vld [vmem:[#allocation6 + $0x150] sm:$0xf0]  ;;  %1235 = vmatpush.bf16.msrb.mxu1 %v3432_v52  ;;  %1284 = vmatpush.bf16.msrb.mxu2 %v3560_v61  ;;  %v3288_v9 = vor.u32 %v4041_v0, %v3285_v6  ;;  %v4684_v61 = vpack.c.bf16 %v165_v35, %v161_v32  ;;  %v4688_v6 = vpack.c.bf16 %v167_v48, %v163_v47 }
  0x5a   :  { %v3416_v10 = vor.u32 %v4073_v7, %v3413_v8  ;;  %v4105_v11 = vld [vmem:[#allocation6 + $0x244] sm:$0xf]  ;;  %v3541_v12 = vld [vmem:[#allocation6 + $0x250] sm:$0xf0]  ;;  %1333 = vmatpush.bf16.msrb.mxu3 %v3688_v5 }
  0x5b   :  { %v4137_v13 = vld [vmem:[#allocation6 + $0x344] sm:$0xf]  ;;  %v3544_v14 = vor.u32 %v4105_v11, %v3541_v12  ;;  %v3669_v15 = vld [vmem:[#allocation6 + $0x350] sm:$0xf0]  ;;  %1187 = vmatpush.bf16.msrb.mxu0 %v3288_v9 }
  0x5c   :  { %v4037_v16 = vld [vmem:[#allocation6 + $0x24] sm:$0xf]  ;;  %v3269_v17 = vld [vmem:[#allocation6 + $0x30] sm:$0xf0]  ;;  %v3672_v18 = vor.u32 %v4137_v13, %v3669_v15  ;;  %v169_v15 = vld [vmem:[#allocation3 + $0x1c8] sm:$0xff] }
  0x5d   :  { %v4069_v19 = vld [vmem:[#allocation6 + $0x124] sm:$0xf]  ;;  %v3397_v20 = vld [vmem:[#allocation6 + $0x130] sm:$0xf0]  ;;  %v3272_v22 = vor.u32 %v4037_v16, %v3269_v17  ;;  %1236 = vmatpush.bf16.msrb.mxu1 %v3416_v10  ;;  %1285 = vmatpush.bf16.msrb.mxu2 %v3544_v14  ;;  %v173_v16 = vld [vmem:[#allocation3 + $0x1e8] sm:$0xff] }
  0x5e   :  { %v4101_v21 = vld [vmem:[#allocation6 + $0x224] sm:$0xf]  ;;  %v3525_v23 = vld [vmem:[#allocation6 + $0x230] sm:$0xf0]  ;;  %v3400_v33 = vor.u32 %v4069_v19, %v3397_v20  ;;  %1334 = vmatpush.bf16.msrb.mxu3 %v3672_v18  ;;  %v171_v19 = vld [vmem:[#allocation3 + $0x1d8] sm:$0xff] }
  0x5f   :  { %1053 = vmatmul.bf16.gmra.mxu1 %v4636_v2  ;;  %v4133_v24 = vld [vmem:[#allocation6 + $0x324] sm:$0xf]  ;;  %v3653_v29 = vld [vmem:[#allocation6 + $0x330] sm:$0xf0]  ;;  %v3528_v34 = vor.u32 %v4101_v21, %v3525_v23  ;;  %1188 = vmatpush.bf16.msrb.mxu0 %v3272_v22  ;;  %v175_v20 = vld [vmem:[#allocation3 + $0x1f8] sm:$0xff]  ;;  %v4696_v22 = vpack.c.bf16 %v173_v16, %v169_v15 }
  0x60   :  { %1004 = vmatmul.bf16.gmra.mxu0 %v4634_v1  ;;  %1102 = vmatmul.bf16.gmra.mxu2 %v4638_v3  ;;  %v160_v30 = vld [vmem:[#allocation3 + $0x180] sm:$0xff]  ;;  %v162_v36 = vld [vmem:[#allocation3 + $0x190] sm:$0xff]  ;;  %v3656_v46 = vor.u32 %v4133_v24, %v3653_v29  ;;  %v4700_v24 = vpack.c.bf16 %v175_v20, %v171_v19 }
  0x61   :  { %1151 = vmatmul.bf16.gmra.mxu3 %v4640_v4  ;;  %v164_v31 = vld [vmem:[#allocation3 + $0x1a0] sm:$0xff]  ;;  %v166_v45 = vld [vmem:[#allocation3 + $0x1b0] sm:$0xff]  ;;  %1237 = vmatpush.bf16.msrb.mxu1 %v3400_v33 }
  0x62   :  { %v4682_v49 = vpack.c.bf16 %v164_v31, %v160_v30  ;;  %v4033_v50 = vld [vmem:[#allocation6 + $0x4] sm:$0xf]  ;;  %v3253_v51 = vld [vmem:[#allocation6 + $0x10] sm:$0xf0]  ;;  %v4686_v62 = vpack.c.bf16 %v166_v45, %v162_v36  ;;  %1286 = vmatpush.bf16.msrb.mxu2 %v3528_v34  ;;  %1335 = vmatpush.bf16.msrb.mxu3 %v3656_v46  ;;  %v4706_v29 = vld [vmem:[#allocation8] sm:$0xf] }
  0x63   :  { %v4065_v52 = vld [vmem:[#allocation6 + $0x104] sm:$0xf]  ;;  %v3381_v63 = vld [vmem:[#allocation6 + $0x110] sm:$0xf0]  ;;  %v3256_v7 = vor.u32 %v4033_v50, %v3253_v51  ;;  %v4709_v30 = vperm.slane %v4706_v29, 0 }
  0x64   :  { %v4097_v0 = vld [vmem:[#allocation6 + $0x204] sm:$0xf]  ;;  %v3509_v5 = vld [vmem:[#allocation6 + $0x210] sm:$0xf0]  ;;  %v3384_v10 = vor.u32 %v4065_v52, %v3381_v63 }
  0x65   :  { %v4129_v8 = vld [vmem:[#allocation6 + $0x304] sm:$0xf]  ;;  %v3637_v9 = vld [vmem:[#allocation6 + $0x310] sm:$0xf0]  ;;  %v3512_v11 = vor.u32 %v4097_v0, %v3509_v5  ;;  %1189 = vmatpush.bf16.msrb.mxu0 %v3256_v7 }
  0x66   :  { %v3640_v12 = vor.u32 %v4129_v8, %v3637_v9  ;;  %1238 = vmatpush.bf16.msrb.mxu1 %v3384_v10  ;;  %v168_v13 = vld [vmem:[#allocation3 + $0x1c0] sm:$0xff]  ;;  %v170_v17 = vld [vmem:[#allocation3 + $0x1d0] sm:$0xff] }
  0x67   :  { %1287 = vmatpush.bf16.msrb.mxu2 %v3512_v11  ;;  %v172_v14 = vld [vmem:[#allocation3 + $0x1e0] sm:$0xff]  ;;  %v174_v18 = vld [vmem:[#allocation3 + $0x1f0] sm:$0xff] }
  0x68   :  { %1336 = vmatpush.bf16.msrb.mxu3 %v3640_v12  ;;  %v4694_v21 = vpack.c.bf16 %v172_v14, %v168_v13  ;;  %v4698_v23 = vpack.c.bf16 %v174_v18, %v170_v17 }
  0x6f   :  { %1058 = vmatmul.bf16.gmra.mxu1 %v4648_v26 }
  0x70   :  { %1009 = vmatmul.bf16.gmra.mxu0 %v4646_v25  ;;  %1107 = vmatmul.bf16.gmra.mxu2 %v4650_v27 }
  0x71   :  { %1156 = vmatmul.bf16.gmra.mxu3 %v4652_v28 }
  0x7f   :  { %1063 = vmatmul.bf16.gmra.mxu1 %v4660_v58 }
  0x80   :  { %1014 = vmatmul.bf16.gmra.mxu0 %v4658_v57  ;;  %1112 = vmatmul.bf16.gmra.mxu2 %v4662_v59 }
  0x81   :  { %1161 = vmatmul.bf16.gmra.mxu3 %v4664_v60 }
  0x8f   :  { %1068 = vmatmul.bf16.gmra.mxu1 %v4672_v38 }
  0x90   :  { %1019 = vmatmul.bf16.gmra.mxu0 %v4670_v37  ;;  %1117 = vmatmul.bf16.gmra.mxu2 %v4674_v39 }
  0x91   :  { %1166 = vmatmul.bf16.gmra.mxu3 %v4676_v40 }
  0x9f   :  { %1073 = vmatmul.bf16.gmra.mxu1 %v4684_v61 }
  0xa0   :  { %1024 = vmatmul.bf16.gmra.mxu0 %v4682_v49  ;;  %1122 = vmatmul.bf16.gmra.mxu2 %v4686_v62 }
  0xa1   :  { %1171 = vmatmul.bf16.gmra.mxu3 %v4688_v6 }
  0xaf   :  { %1078 = vmatmul.bf16.gmra.mxu1 %v4696_v22 }
  0xb0   :  { %1029 = vmatmul.bf16.gmra.mxu0 %v4694_v21  ;;  %1127 = vmatmul.bf16.gmra.mxu2 %v4698_v23 }
  0xb1   :  { %1176 = vmatmul.bf16.gmra.mxu3 %v4700_v24 }
  0xbc   :  { %v1044_v33 = vpop.f32.mrf.mxu1 }
  0xbd   :  { %v995_v31 = vpop.f32.mrf.mxu0 }
  0xbe   :  { %v996_v32 = vadd.f32 %v995_v31, %v4709_v30 }
  0xbf   :  { %1239 = vmatmul.bf16.vlgmr.msrb.gmra.mxu1 %v4612_v42 }
  0xc0   :  { %v1045_v34 = vadd.f32 %v1044_v33, %v996_v32  ;;  %1190 = vmatmul.bf16.vlgmr.msrb.gmra.mxu0 %v4610_v41  ;;  %1288 = vmatmul.bf16.vlgmr.msrb.gmra.mxu2 %v4614_v43 }
  0xc1   :  { %1337 = vmatmul.bf16.vlgmr.msrb.gmra.mxu3 %v4616_v44 }
  0xc3   :  { %v1093_v35 = vpop.f32.mrf.mxu2 }
  0xc4   :  { %v1094_v36 = vadd.f32 %v1093_v35, %v1045_v34  ;;  %v1142_v45 = vpop.f32.mrf.mxu3  ;;  %v1046_v48 = vpop.f32.mrf.mxu1 }
  0xc5   :  { %v997_v46 = vpop.f32.mrf.mxu0 }
  0xc6   :  { %v998_v47 = vadd.f32 %v997_v46, %v4709_v30  ;;  %v1143_v50 = vadd.f32 %v1142_v45, %v1094_v36 }
  0xc8   :  { %v1047_v51 = vadd.f32 %v1046_v48, %v998_v47  ;;  %v1770_v11 = vmax.f32 %v1143_v50, 0.0 }
  0xcb   :  { %v1095_v52 = vpop.f32.mrf.mxu2 }
  0xcc   :  { %v1096_v63 = vadd.f32 %v1095_v52, %v1047_v51  ;;  %v1144_v0 = vpop.f32.mrf.mxu3  ;;  %v1049_v8 = vpop.f32.mrf.mxu1  ;;  %v3627_v51 = vld [vmem:[#allocation6 + $0x2e8] sm:$0xf]  ;;  %v4128_v52 = vld [vmem:[#allocation6 + $0x2f4] sm:$0xf0] }
  0xcd   :  { %v1000_v5 = vpop.f32.mrf.mxu0 }
  0xce   :  { %v1001_v7 = vadd.f32 %v1000_v5, %v4709_v30  ;;  %v1145_v9 = vadd.f32 %v1144_v0, %v1096_v63  ;;  %v3628_v63 = vor.u32 %v4128_v52, %v3627_v51 }
  0xcf   :  { %1244 = vmatmul.bf16.gmra.mxu1 %v4624_v54 }
  0xd0   :  { %v1050_v10 = vadd.f32 %v1049_v8, %v1001_v7  ;;  %1195 = vmatmul.bf16.gmra.mxu0 %v4622_v53  ;;  %v1774_v12 = vmax.f32 %v1145_v9, 0.0  ;;  %1293 = vmatmul.bf16.gmra.mxu2 %v4626_v55 }
  0xd1   :  { %1342 = vmatmul.bf16.gmra.mxu3 %v4628_v56  ;;  %1476 = vmatpush.bf16.msra.mxu2 %v3628_v63  ;;  %v3611_v63 = vld [vmem:[#allocation6 + $0x2c8] sm:$0xf] }
  0xd2   :  { %v4722_v13 = vpack.c.bf16 %v1774_v12, %v1770_v11 }
  0xd3   :  { %v1098_v14 = vpop.f32.mrf.mxu2 }
  0xd4   :  { %v1099_v15 = vadd.f32 %v1098_v14, %v1050_v10  ;;  %v1147_v16 = vpop.f32.mrf.mxu3  ;;  %v1051_v19 = vpop.f32.mrf.mxu1 }
  0xd5   :  { %v1002_v17 = vpop.f32.mrf.mxu0 }
  0xd6   :  { %v1003_v18 = vadd.f32 %v1002_v17, %v4709_v30  ;;  %v1148_v20 = vadd.f32 %v1147_v16, %v1099_v15  ;;  %v3371_v15 = vld [vmem:[#allocation6 + $0xe8] sm:$0xf]  ;;  %v4064_v16 = vld [vmem:[#allocation6 + $0xf4] sm:$0xf0] }
  0xd7   :  { %v3372_v17 = vor.u32 %v4064_v16, %v3371_v15 }
  0xd8   :  { %v1052_v31 = vadd.f32 %v1051_v19, %v1003_v18  ;;  %v1778_v48 = vmax.f32 %v1148_v20, 0.0  ;;  %v3755_v18 = vld [vmem:[#allocation6 + $0x3e8] sm:$0xf]  ;;  %v4160_v19 = vld [vmem:[#allocation6 + $0x3f4] sm:$0xf0] }
  0xd9   :  { %v3499_v20 = vld [vmem:[#allocation6 + $0x1e8] sm:$0xf]  ;;  %1378 = vmatpush.bf16.msra.mxu0 %v3372_v17 }
  0xdb   :  { %v1100_v32 = vpop.f32.mrf.mxu2 }
  0xdc   :  { %v1101_v33 = vadd.f32 %v1100_v32, %v1052_v31  ;;  %v1149_v34 = vpop.f32.mrf.mxu3  ;;  %v1054_v45 = vpop.f32.mrf.mxu1  ;;  %v3756_v31 = vor.u32 %v4160_v19, %v3755_v18  ;;  %v4096_v32 = vld [vmem:[#allocation6 + $0x1f4] sm:$0xf0]  ;;  %v3355_v18 = vld [vmem:[#allocation6 + $0xc8] sm:$0xf] }
  0xdd   :  { %v1005_v35 = vpop.f32.mrf.mxu0  ;;  %v4060_v19 = vld [vmem:[#allocation6 + $0xd4] sm:$0xf0] }
  0xde   :  { %v1006_v36 = vadd.f32 %v1005_v35, %v4709_v30  ;;  %v1150_v46 = vadd.f32 %v1149_v34, %v1101_v33  ;;  %v3500_v34 = vor.u32 %v4096_v32, %v3499_v20  ;;  %1525 = vmatpush.bf16.msra.mxu3 %v3756_v31  ;;  %v3356_v20 = vor.u32 %v4060_v19, %v3355_v18  ;;  %v3739_v31 = vld [vmem:[#allocation6 + $0x3c8] sm:$0xf]  ;;  %v4156_v32 = vld [vmem:[#allocation6 + $0x3d4] sm:$0xf0] }
  0xdf   :  { %1249 = vmatmul.bf16.gmra.mxu1 %v4636_v2 }
  0xe0   :  { %v1055_v47 = vadd.f32 %v1054_v45, %v1006_v36  ;;  %1200 = vmatmul.bf16.gmra.mxu0 %v4634_v1  ;;  %v1782_v50 = vmax.f32 %v1150_v46, 0.0  ;;  %1298 = vmatmul.bf16.gmra.mxu2 %v4638_v3 }
  0xe1   :  { %1347 = vmatmul.bf16.gmra.mxu3 %v4640_v4  ;;  %1427 = vmatpush.bf16.msra.mxu1 %v3500_v34  ;;  %v3740_v34 = vor.u32 %v4156_v32, %v3739_v31  ;;  %v3339_v32 = vld [vmem:[#allocation6 + $0xa8] sm:$0xf] }
  0xe2   :  { %v4730_v0 = vpack.c.bf16 %v1782_v50, %v1778_v48  ;;  %1379 = vmatpush.bf16.msra.mxu0 %v3356_v20 }
  0xe3   :  { %v1103_v5 = vpop.f32.mrf.mxu2  ;;  %1526 = vmatpush.bf16.msra.mxu3 %v3740_v34  ;;  %v3723_v34 = vld [vmem:[#allocation6 + $0x3a8] sm:$0xf] }
  0xe4   :  { %5390 = vst [vmem:[#allocation20_spill] sm:$0xff] %v4730_v0  ;;  %v1104_v7 = vadd.f32 %v1103_v5, %v1055_v47  ;;  %v1152_v8 = vpop.f32.mrf.mxu3  ;;  %v1056_v11 = vpop.f32.mrf.mxu1  ;;  %v4124_v5 = vld [vmem:[#allocation6 + $0x2d4] sm:$0xf0] }
  0xe5   :  { %v1007_v9 = vpop.f32.mrf.mxu0 }
  0xe6   :  { %v1008_v10 = vadd.f32 %v1007_v9, %v4709_v30  ;;  %v1153_v12 = vadd.f32 %v1152_v8, %v1104_v7  ;;  %v3612_v7 = vor.u32 %v4124_v5, %v3611_v63 }
  0xe8   :  { %v1057_v14 = vadd.f32 %v1056_v11, %v1008_v10  ;;  %v1786_v51 = vmax.f32 %v1153_v12, 0.0  ;;  %1477 = vmatpush.bf16.msra.mxu2 %v3612_v7 }
  0xeb   :  { %v1105_v33 = vpop.f32.mrf.mxu2 }
  0xec   :  { %v1106_v35 = vadd.f32 %v1105_v33, %v1057_v14  ;;  %v1154_v36 = vpop.f32.mrf.mxu3  ;;  %v1059_v47 = vpop.f32.mrf.mxu1  ;;  %v3483_v33 = vld [vmem:[#allocation6 + $0x1c8] sm:$0xf] }
  0xed   :  { %v1010_v45 = vpop.f32.mrf.mxu0 }
  0xee   :  { %v1011_v46 = vadd.f32 %v1010_v45, %v4709_v30  ;;  %v1155_v48 = vadd.f32 %v1154_v36, %v1106_v35  ;;  %v4092_v35 = vld [vmem:[#allocation6 + $0x1d4] sm:$0xf0] }
  0xef   :  { %1254 = vmatmul.bf16.gmra.mxu1 %v4648_v26  ;;  %v3484_v45 = vor.u32 %v4092_v35, %v3483_v33  ;;  %v4056_v33 = vld [vmem:[#allocation6 + $0xb4] sm:$0xf0] }
  0xf0   :  { %v1060_v50 = vadd.f32 %v1059_v47, %v1011_v46  ;;  %1205 = vmatmul.bf16.gmra.mxu0 %v4646_v25  ;;  %v1790_v52 = vmax.f32 %v1155_v48, 0.0  ;;  %1303 = vmatmul.bf16.gmra.mxu2 %v4650_v27  ;;  %v3340_v35 = vor.u32 %v4056_v33, %v3339_v32  ;;  %v3707_v32 = vld [vmem:[#allocation6 + $0x388] sm:$0xf]  ;;  %v4148_v33 = vld [vmem:[#allocation6 + $0x394] sm:$0xf0] }
  0xf1   :  { %1352 = vmatmul.bf16.gmra.mxu3 %v4652_v28  ;;  %1428 = vmatpush.bf16.msra.mxu1 %v3484_v45  ;;  %v3467_v45 = vld [vmem:[#allocation6 + $0x1a8] sm:$0xf] }
  0xf2   :  { %v4738_v8 = vpack.c.bf16 %v1790_v52, %v1786_v51  ;;  %1380 = vmatpush.bf16.msra.mxu0 %v3340_v35  ;;  %v3708_v35 = vor.u32 %v4148_v33, %v3707_v32 }
  0xf3   :  { %v1108_v9 = vpop.f32.mrf.mxu2 }
  0xf4   :  { %5391 = vst [vmem:[#allocation21_spill] sm:$0xff] %v4738_v8  ;;  %v1109_v10 = vadd.f32 %v1108_v9, %v1060_v50  ;;  %v1157_v11 = vpop.f32.mrf.mxu3  ;;  %v1061_v12 = vpop.f32.mrf.mxu1  ;;  %v3595_v9 = vld [vmem:[#allocation6 + $0x2a8] sm:$0xf]  ;;  %v4104_v8 = vld [vmem:[#allocation6 + $0x234] sm:$0xf0] }
  0xf5   :  { %v1012_v14 = vpop.f32.mrf.mxu0 }
  0xf6   :  { %v1013_v15 = vadd.f32 %v1012_v14, %v4709_v30  ;;  %v1158_v16 = vadd.f32 %v1157_v11, %v1109_v10  ;;  %v4120_v10 = vld [vmem:[#allocation6 + $0x2b4] sm:$0xf0] }
  0xf7   :  { %v3596_v11 = vor.u32 %v4120_v10, %v3595_v9 }
  0xf8   :  { %v1062_v17 = vadd.f32 %v1061_v12, %v1013_v15  ;;  %v1794_v5 = vmax.f32 %v1158_v16, 0.0 }
  0xf9   :  { %1478 = vmatpush.bf16.msra.mxu2 %v3596_v11  ;;  %v4084_v11 = vld [vmem:[#allocation6 + $0x194] sm:$0xf0] }
  0xfb   :  { %v1110_v36 = vpop.f32.mrf.mxu2 }
  0xfc   :  { %v1111_v46 = vadd.f32 %v1110_v36, %v1062_v17  ;;  %v1159_v47 = vpop.f32.mrf.mxu3  ;;  %v1064_v51 = vpop.f32.mrf.mxu1  ;;  %v4152_v36 = vld [vmem:[#allocation6 + $0x3b4] sm:$0xf0] }
  0xfd   :  { %v1015_v48 = vpop.f32.mrf.mxu0 }
  0xfe   :  { %v1016_v50 = vadd.f32 %v1015_v48, %v4709_v30  ;;  %v1160_v52 = vadd.f32 %v1159_v47, %v1111_v46  ;;  %v3724_v46 = vor.u32 %v4152_v36, %v3723_v34  ;;  %v4088_v47 = vld [vmem:[#allocation6 + $0x1b4] sm:$0xf0] }
  0xff   :  { %1259 = vmatmul.bf16.gmra.mxu1 %v4660_v58  ;;  %v3468_v48 = vor.u32 %v4088_v47, %v3467_v45  ;;  %v4048_v45 = vld [vmem:[#allocation6 + $0x74] sm:$0xf0] }
 0x100   :  { %v1065_v63 = vadd.f32 %v1064_v51, %v1016_v50  ;;  %1210 = vmatmul.bf16.gmra.mxu0 %v4658_v57  ;;  %v1798_v7 = vmax.f32 %v1160_v52, 0.0  ;;  %1308 = vmatmul.bf16.gmra.mxu2 %v4662_v59  ;;  %v3323_v51 = vld [vmem:[#allocation6 + $0x88] sm:$0xf]  ;;  %v4052_v52 = vld [vmem:[#allocation6 + $0x94] sm:$0xf0] }
 0x101   :  { %1357 = vmatmul.bf16.gmra.mxu3 %v4664_v60  ;;  %1429 = vmatpush.bf16.msra.mxu1 %v3468_v48  ;;  %v3324_v10 = vor.u32 %v4052_v52, %v3323_v51  ;;  %v4080_v51 = vld [vmem:[#allocation6 + $0x174] sm:$0xf0]  ;;  %v3563_v52 = vld [vmem:[#allocation6 + $0x268] sm:$0xf] }
 0x102   :  { %v4746_v14 = vpack.c.bf16 %v1798_v7, %v1794_v5  ;;  %1527 = vmatpush.bf16.msra.mxu3 %v3724_v46  ;;  %v3435_v46 = vld [vmem:[#allocation6 + $0x168] sm:$0xf] }
 0x103   :  { %v1113_v15 = vpop.f32.mrf.mxu2  ;;  %1381 = vmatpush.bf16.msra.mxu0 %v3324_v10 }
 0x104   :  { %5392 = vst [vmem:[#allocation22_spill] sm:$0xff] %v4746_v14  ;;  %v1114_v12 = vadd.f32 %v1113_v15, %v1065_v63  ;;  %v1162_v17 = vpop.f32.mrf.mxu3  ;;  %v1066_v16 = vpop.f32.mrf.mxu1  ;;  %v3451_v63 = vld [vmem:[#allocation6 + $0x188] sm:$0xf] }
 0x105   :  { %v1017_v18 = vpop.f32.mrf.mxu0  ;;  %v3579_v15 = vld [vmem:[#allocation6 + $0x288] sm:$0xf] }
 0x106   :  { %v1018_v19 = vadd.f32 %v1017_v18, %v4709_v30  ;;  %v1163_v20 = vadd.f32 %v1162_v17, %v1114_v12  ;;  %v4116_v12 = vld [vmem:[#allocation6 + $0x294] sm:$0xf0]  ;;  %1528 = vmatpush.bf16.msra.mxu3 %v3708_v35 }
 0x108   :  { %v1067_v31 = vadd.f32 %v1066_v16, %v1018_v19  ;;  %v3452_v19 = vor.u32 %v4084_v11, %v3451_v63  ;;  %v3580_v16 = vor.u32 %v4116_v12, %v3579_v15  ;;  %v1802_v47 = vmax.f32 %v1163_v20, 0.0  ;;  %v3291_v12 = vld [vmem:[#allocation6 + $0x48] sm:$0xf] }
 0x109   :  { %v3436_v63 = vor.u32 %v4080_v51, %v3435_v46 }
 0x10a   :  { %1479 = vmatpush.bf16.msra.mxu2 %v3580_v16  ;;  %1430 = vmatpush.bf16.msra.mxu1 %v3452_v19  ;;  %v4076_v19 = vld [vmem:[#allocation6 + $0x154] sm:$0xf0] }
 0x10b   :  { %v1115_v50 = vpop.f32.mrf.mxu2 }
 0x10c   :  { %v1116_v5 = vadd.f32 %v1115_v50, %v1067_v31  ;;  %v1164_v7 = vpop.f32.mrf.mxu3  ;;  %v1069_v18 = vpop.f32.mrf.mxu1  ;;  %v3307_v31 = vld [vmem:[#allocation6 + $0x68] sm:$0xf] }
 0x10d   :  { %v1020_v9 = vpop.f32.mrf.mxu0  ;;  %v3308_v50 = vor.u32 %v4048_v45, %v3307_v31  ;;  %v3547_v31 = vld [vmem:[#allocation6 + $0x248] sm:$0xf]  ;;  %v4108_v45 = vld [vmem:[#allocation6 + $0x254] sm:$0xf0] }
 0x10e   :  { %v1021_v17 = vadd.f32 %v1020_v9, %v4709_v30  ;;  %v1165_v34 = vadd.f32 %v1164_v7, %v1116_v5  ;;  %v4112_v5 = vld [vmem:[#allocation6 + $0x274] sm:$0xf0]  ;;  %v3691_v7 = vld [vmem:[#allocation6 + $0x368] sm:$0xf]  ;;  %1431 = vmatpush.bf16.msra.mxu1 %v3436_v63  ;;  %v3548_v51 = vor.u32 %v4108_v45, %v3547_v31 }
 0x10f   :  { %1264 = vmatmul.bf16.gmra.mxu1 %v4672_v38  ;;  %v4144_v9 = vld [vmem:[#allocation6 + $0x374] sm:$0xf0]  ;;  %1382 = vmatpush.bf16.msra.mxu0 %v3308_v50  ;;  %v3564_v10 = vor.u32 %v4112_v5, %v3563_v52  ;;  %v3659_v63 = vld [vmem:[#allocation6 + $0x328] sm:$0xf] }
 0x110   :  { %v1070_v36 = vadd.f32 %v1069_v18, %v1021_v17  ;;  %1215 = vmatmul.bf16.gmra.mxu0 %v4670_v37  ;;  %v1806_v48 = vmax.f32 %v1165_v34, 0.0  ;;  %1313 = vmatmul.bf16.gmra.mxu2 %v4674_v39  ;;  %v3692_v11 = vor.u32 %v4144_v9, %v3691_v7  ;;  %v4044_v17 = vld [vmem:[#allocation6 + $0x54] sm:$0xf0]  ;;  %v3419_v18 = vld [vmem:[#allocation6 + $0x148] sm:$0xf] }
 0x111   :  { %1362 = vmatmul.bf16.gmra.mxu3 %v4676_v40  ;;  %1480 = vmatpush.bf16.msra.mxu2 %v3564_v10  ;;  %v3292_v34 = vor.u32 %v4044_v17, %v3291_v12  ;;  %v3420_v50 = vor.u32 %v4076_v19, %v3419_v18  ;;  %v3275_v7 = vld [vmem:[#allocation6 + $0x28] sm:$0xf]  ;;  %v4040_v9 = vld [vmem:[#allocation6 + $0x34] sm:$0xf0] }
 0x112   :  { %v4754_v20 = vpack.c.bf16 %v1806_v48, %v1802_v47  ;;  %v3675_v47 = vld [vmem:[#allocation6 + $0x348] sm:$0xf]  ;;  %v4140_v48 = vld [vmem:[#allocation6 + $0x354] sm:$0xf0]  ;;  %1529 = vmatpush.bf16.msra.mxu3 %v3692_v11 }
 0x113   :  { %v1118_v15 = vpop.f32.mrf.mxu2  ;;  %1383 = vmatpush.bf16.msra.mxu0 %v3292_v34  ;;  %v3676_v5 = vor.u32 %v4140_v48, %v3675_v47  ;;  %v3403_v10 = vld [vmem:[#allocation6 + $0x128] sm:$0xf]  ;;  %v4072_v12 = vld [vmem:[#allocation6 + $0x134] sm:$0xf0]  ;;  %1432 = vmatpush.bf16.msra.mxu1 %v3420_v50 }
 0x114   :  { %5393 = vst [vmem:[#allocation23_spill] sm:$0xff] %v4754_v20  ;;  %v1119_v16 = vadd.f32 %v1118_v15, %v1070_v36  ;;  %v1167_v32 = vpop.f32.mrf.mxu3  ;;  %v1071_v35 = vpop.f32.mrf.mxu1  ;;  %v3276_v15 = vor.u32 %v4040_v9, %v3275_v7  ;;  %v3531_v17 = vld [vmem:[#allocation6 + $0x228] sm:$0xf]  ;;  %v4136_v18 = vld [vmem:[#allocation6 + $0x334] sm:$0xf0] }
 0x115   :  { %v1022_v33 = vpop.f32.mrf.mxu0  ;;  %1481 = vmatpush.bf16.msra.mxu2 %v3548_v51  ;;  %v3532_v19 = vor.u32 %v4104_v8, %v3531_v17  ;;  %v4036_v34 = vld [vmem:[#allocation6 + $0x14] sm:$0xf0]  ;;  %v3387_v31 = vld [vmem:[#allocation6 + $0x108] sm:$0xf]  ;;  %v3533_v20 = vld [vmem:[#allocation6 + $0x238] sm:$0xf0] }
 0x116   :  { %v1023_v46 = vadd.f32 %v1022_v33, %v4709_v30  ;;  %v1168_v52 = vadd.f32 %v1167_v32, %v1119_v16  ;;  %v3404_v33 = vor.u32 %v4072_v12, %v3403_v10  ;;  %1530 = vmatpush.bf16.msra.mxu3 %v3676_v5  ;;  %v3660_v16 = vor.u32 %v4136_v18, %v3659_v63  ;;  %v3259_v32 = vld [vmem:[#allocation6 + $0x8] sm:$0xf]  ;;  %v4068_v47 = vld [vmem:[#allocation6 + $0x114] sm:$0xf0] }
 0x117   :  { %1384 = vmatpush.bf16.msra.mxu0 %v3276_v15  ;;  %v3260_v51 = vor.u32 %v4036_v34, %v3259_v32  ;;  %v3515_v48 = vld [vmem:[#allocation6 + $0x208] sm:$0xf]  ;;  %v4100_v50 = vld [vmem:[#allocation6 + $0x214] sm:$0xf0]  ;;  %v3388_v5 = vor.u32 %v4068_v47, %v3387_v31 }
 0x118   :  { %v1072_v36 = vadd.f32 %v1071_v35, %v1023_v46  ;;  %1433 = vmatpush.bf16.msra.mxu1 %v3404_v33  ;;  %v3643_v10 = vld [vmem:[#allocation6 + $0x308] sm:$0xf]  ;;  %v4132_v8 = vld [vmem:[#allocation6 + $0x314] sm:$0xf0]  ;;  %v3516_v12 = vor.u32 %v4100_v50, %v3515_v48  ;;  %v1810_v63 = vmax.f32 %v1168_v52, 0.0 }
 0x119   :  { %1482 = vmatpush.bf16.msra.mxu2 %v3532_v19  ;;  %v3644_v17 = vor.u32 %v4132_v8, %v3643_v10 }
 0x11a   :  { %1531 = vmatpush.bf16.msra.mxu3 %v3660_v16 }
 0x11b   :  { %v1120_v11 = vpop.f32.mrf.mxu2  ;;  %1385 = vmatpush.bf16.msra.mxu0 %v3260_v51 }
 0x11c   :  { %v1121_v45 = vadd.f32 %v1120_v11, %v1072_v36  ;;  %v1169_v46 = vpop.f32.mrf.mxu3  ;;  %v1074_v9 = vpop.f32.mrf.mxu1  ;;  %1434 = vmatpush.bf16.msra.mxu1 %v3388_v5 }
 0x11d   :  { %v1025_v35 = vpop.f32.mrf.mxu0  ;;  %1483 = vmatpush.bf16.msra.mxu2 %v3516_v12 }
 0x11e   :  { %v1026_v7 = vadd.f32 %v1025_v35, %v4709_v30  ;;  %v1170_v15 = vadd.f32 %v1169_v46, %v1121_v45  ;;  %1532 = vmatpush.bf16.msra.mxu3 %v3644_v17 }
 0x11f   :  { %1269 = vmatmul.bf16.gmra.mxu1 %v4684_v61 }
 0x120   :  { %v1075_v36 = vadd.f32 %v1074_v9, %v1026_v7  ;;  %1220 = vmatmul.bf16.gmra.mxu0 %v4682_v49  ;;  %v1814_v18 = vmax.f32 %v1170_v15, 0.0  ;;  %1318 = vmatmul.bf16.gmra.mxu2 %v4686_v62 }
 0x121   :  { %1367 = vmatmul.bf16.gmra.mxu3 %v4688_v6 }
 0x122   :  { %v4762_v33 = vpack.c.bf16 %v1814_v18, %v1810_v63 }
 0x123   :  { %v1123_v19 = vpop.f32.mrf.mxu2 }
 0x124   :  { %v1124_v16 = vadd.f32 %v1123_v19, %v1075_v36  ;;  %v1172_v11 = vpop.f32.mrf.mxu3  ;;  %v1076_v31 = vpop.f32.mrf.mxu1 }
 0x125   :  { %v1027_v32 = vpop.f32.mrf.mxu0 }
 0x126   :  { %v1028_v34 = vadd.f32 %v1027_v32, %v4709_v30  ;;  %v1173_v52 = vadd.f32 %v1172_v11, %v1124_v16  ;;  %v4774_v11 = vperm.slane %v4706_v29, 1 }
 0x128   :  { %v1077_v45 = vadd.f32 %v1076_v31, %v1028_v34  ;;  %v1818_v5 = vmax.f32 %v1173_v52, 0.0 }
 0x12b   :  { %v1125_v46 = vpop.f32.mrf.mxu2 }
 0x12c   :  { %v1126_v35 = vadd.f32 %v1125_v46, %v1077_v45  ;;  %v1174_v51 = vpop.f32.mrf.mxu3  ;;  %v1079_v50 = vpop.f32.mrf.mxu1 }
 0x12d   :  { %v1030_v47 = vpop.f32.mrf.mxu0 }
 0x12e   :  { %v1031_v48 = vadd.f32 %v1030_v47, %v4709_v30  ;;  %v1175_v7 = vadd.f32 %v1174_v51, %v1126_v35 }
 0x12f   :  { %1274 = vmatmul.bf16.gmra.mxu1 %v4696_v22 }
 0x130   :  { %v1080_v9 = vadd.f32 %v1079_v50, %v1031_v48  ;;  %1225 = vmatmul.bf16.gmra.mxu0 %v4694_v21  ;;  %v1822_v10 = vmax.f32 %v1175_v7, 0.0  ;;  %1323 = vmatmul.bf16.gmra.mxu2 %v4698_v23 }
 0x131   :  { %1372 = vmatmul.bf16.gmra.mxu3 %v4700_v24 }
 0x132   :  { %v4770_v8 = vpack.c.bf16 %v1822_v10, %v1818_v5 }
 0x133   :  { %v1128_v15 = vpop.f32.mrf.mxu2 }
 0x134   :  { %v1129_v12 = vadd.f32 %v1128_v15, %v1080_v9  ;;  %v1177_v17 = vpop.f32.mrf.mxu3  ;;  %v1081_v18 = vpop.f32.mrf.mxu1 }
 0x135   :  { %v1032_v36 = vpop.f32.mrf.mxu0 }
 0x136   :  { %v1033_v63 = vadd.f32 %v1032_v36, %v4709_v30  ;;  %v1178_v19 = vadd.f32 %v1177_v17, %v1129_v12 }
 0x138   :  { %v1082_v16 = vadd.f32 %v1081_v18, %v1033_v63  ;;  %v1826_v47 = vmax.f32 %v1178_v19, 0.0 }
 0x13b   :  { %v1130_v32 = vpop.f32.mrf.mxu2 }
 0x13c   :  { %v1131_v34 = vadd.f32 %v1130_v32, %v1082_v16  ;;  %v1179_v31 = vpop.f32.mrf.mxu3  ;;  %v1240_v46 = vpop.f32.mrf.mxu1 }
 0x13d   :  { %v1191_v52 = vpop.f32.mrf.mxu0 }
 0x13e   :  { %v1192_v45 = vadd.f32 %v1191_v52, %v4774_v11  ;;  %v1180_v35 = vadd.f32 %v1179_v31, %v1131_v34 }
 0x13f   :  { %1435 = vmatmul.bf16.vlgmr.msra.gmra.mxu1 %v4612_v42 }
 0x140   :  { %v1241_v51 = vadd.f32 %v1240_v46, %v1192_v45  ;;  %1386 = vmatmul.bf16.vlgmr.msra.gmra.mxu0 %v4610_v41  ;;  %v1830_v48 = vmax.f32 %v1180_v35, 0.0  ;;  %1484 = vmatmul.bf16.vlgmr.msra.gmra.mxu2 %v4614_v43 }
 0x141   :  { %1533 = vmatmul.bf16.vlgmr.msra.gmra.mxu3 %v4616_v44 }
 0x142   :  { %v4781_v29 = vpack.c.bf16 %v1830_v48, %v1826_v47 }
 0x143   :  { %v1289_v30 = vpop.f32.mrf.mxu2 }
 0x144   :  { %v1290_v50 = vadd.f32 %v1289_v30, %v1241_v51  ;;  %v1338_v7 = vpop.f32.mrf.mxu3  ;;  %v1242_v10 = vpop.f32.mrf.mxu1 }
 0x145   :  { %v1193_v9 = vpop.f32.mrf.mxu0 }
 0x146   :  { %v1194_v5 = vadd.f32 %v1193_v9, %v4774_v11  ;;  %v1339_v15 = vadd.f32 %v1338_v7, %v1290_v50 }
 0x148   :  { %v1243_v12 = vadd.f32 %v1242_v10, %v1194_v5  ;;  %v1771_v31 = vmax.f32 %v1339_v15, 0.0 }
 0x14b   :  { %v1291_v17 = vpop.f32.mrf.mxu2 }
 0x14c   :  { %v1292_v36 = vadd.f32 %v1291_v17, %v1243_v12  ;;  %v1340_v63 = vpop.f32.mrf.mxu3  ;;  %v1245_v16 = vpop.f32.mrf.mxu1 }
 0x14d   :  { %v1196_v18 = vpop.f32.mrf.mxu0 }
 0x14e   :  { %v1197_v19 = vadd.f32 %v1196_v18, %v4774_v11  ;;  %v1341_v32 = vadd.f32 %v1340_v63, %v1292_v36 }
 0x14f   :  { %1440 = vmatmul.bf16.gmra.mxu1 %v4624_v54 }
 0x150   :  { %v1246_v34 = vadd.f32 %v1245_v16, %v1197_v19  ;;  %1391 = vmatmul.bf16.gmra.mxu0 %v4622_v53  ;;  %v1775_v52 = vmax.f32 %v1341_v32, 0.0  ;;  %1489 = vmatmul.bf16.gmra.mxu2 %v4626_v55  ;;  %v4126_v16 = vld [vmem:[#allocation6 + $0x2ec] sm:$0xf]  ;;  %v3629_v32 = vld [vmem:[#allocation6 + $0x2f8] sm:$0xf0] }
 0x151   :  { %1538 = vmatmul.bf16.gmra.mxu3 %v4628_v56 }
 0x152   :  { %v4789_v45 = vpack.c.bf16 %v1775_v52, %v1771_v31 }
 0x153   :  { %v1294_v46 = vpop.f32.mrf.mxu2 }
 0x154   :  { %v1295_v35 = vadd.f32 %v1294_v46, %v1246_v34  ;;  %v1343_v51 = vpop.f32.mrf.mxu3  ;;  %v1247_v30 = vpop.f32.mrf.mxu1  ;;  %v3632_v34 = vor.u32 %v4126_v16, %v3629_v32 }
 0x155   :  { %v1198_v47 = vpop.f32.mrf.mxu0 }
 0x156   :  { %v1199_v48 = vadd.f32 %v1198_v47, %v4774_v11  ;;  %v1344_v50 = vadd.f32 %v1343_v51, %v1295_v35  ;;  %1672 = vmatpush.bf16.msrb.mxu2 %v3632_v34 }
 0x158   :  { %v1248_v7 = vadd.f32 %v1247_v30, %v1199_v48  ;;  %v1779_v18 = vmax.f32 %v1344_v50, 0.0 }
 0x15b   :  { %v1296_v9 = vpop.f32.mrf.mxu2 }
 0x15c   :  { %v1297_v5 = vadd.f32 %v1296_v9, %v1248_v7  ;;  %v1345_v10 = vpop.f32.mrf.mxu3  ;;  %v1250_v17 = vpop.f32.mrf.mxu1  ;;  %v4062_v7 = vld [vmem:[#allocation6 + $0xec] sm:$0xf]  ;;  %v3373_v9 = vld [vmem:[#allocation6 + $0xf8] sm:$0xf0] }
 0x15d   :  { %v1201_v15 = vpop.f32.mrf.mxu0 }
 0x15e   :  { %v1202_v12 = vadd.f32 %v1201_v15, %v4774_v11  ;;  %v1346_v36 = vadd.f32 %v1345_v10, %v1297_v5  ;;  %v3376_v5 = vor.u32 %v4062_v7, %v3373_v9  ;;  %v4158_v10 = vld [vmem:[#allocation6 + $0x3ec] sm:$0xf]  ;;  %v3757_v15 = vld [vmem:[#allocation6 + $0x3f8] sm:$0xf0] }
 0x15f   :  { %1445 = vmatmul.bf16.gmra.mxu1 %v4636_v2 }
 0x160   :  { %v1251_v63 = vadd.f32 %v1250_v17, %v1202_v12  ;;  %1396 = vmatmul.bf16.gmra.mxu0 %v4634_v1  ;;  %v1783_v19 = vmax.f32 %v1346_v36, 0.0  ;;  %1494 = vmatmul.bf16.gmra.mxu2 %v4638_v3  ;;  %v4094_v12 = vld [vmem:[#allocation6 + $0x1ec] sm:$0xf]  ;;  %v3760_v17 = vor.u32 %v4158_v10, %v3757_v15  ;;  %v3501_v36 = vld [vmem:[#allocation6 + $0x1f8] sm:$0xf0] }
 0x161   :  { %1543 = vmatmul.bf16.gmra.mxu3 %v4640_v4  ;;  %1574 = vmatpush.bf16.msrb.mxu0 %v3376_v5 }
 0x162   :  { %v4797_v31 = vpack.c.bf16 %v1783_v19, %v1779_v18  ;;  %v3504_v19 = vor.u32 %v4094_v12, %v3501_v36  ;;  %1721 = vmatpush.bf16.msrb.mxu3 %v3760_v17 }
 0x163   :  { %v1299_v52 = vpop.f32.mrf.mxu2 }
 0x164   :  { %5394 = vst [vmem:[#allocation24_spill] sm:$0xff] %v4797_v31  ;;  %v1300_v46 = vadd.f32 %v1299_v52, %v1251_v63  ;;  %v1348_v35 = vpop.f32.mrf.mxu3  ;;  %v1252_v48 = vpop.f32.mrf.mxu1  ;;  %1623 = vmatpush.bf16.msrb.mxu1 %v3504_v19  ;;  %v4058_v19 = vld [vmem:[#allocation6 + $0xcc] sm:$0xf] }
 0x165   :  { %v1203_v51 = vpop.f32.mrf.mxu0 }
 0x166   :  { %v1204_v47 = vadd.f32 %v1203_v51, %v4774_v11  ;;  %v1349_v30 = vadd.f32 %v1348_v35, %v1300_v46 }
 0x168   :  { %v1253_v50 = vadd.f32 %v1252_v48, %v1204_v47  ;;  %v1787_v51 = vmax.f32 %v1349_v30, 0.0  ;;  %v4122_v48 = vld [vmem:[#allocation6 + $0x2cc] sm:$0xf] }
 0x16b   :  { %v1301_v18 = vpop.f32.mrf.mxu2 }
 0x16c   :  { %v1302_v63 = vadd.f32 %v1301_v18, %v1253_v50  ;;  %v1350_v16 = vpop.f32.mrf.mxu3  ;;  %v1255_v52 = vpop.f32.mrf.mxu1  ;;  %v3613_v50 = vld [vmem:[#allocation6 + $0x2d8] sm:$0xf0] }
 0x16d   :  { %v1206_v32 = vpop.f32.mrf.mxu0  ;;  %v3616_v7 = vor.u32 %v4122_v48, %v3613_v50  ;;  %v3485_v48 = vld [vmem:[#allocation6 + $0x1d8] sm:$0xf0] }
 0x16e   :  { %v1207_v34 = vadd.f32 %v1206_v32, %v4774_v11  ;;  %v1351_v46 = vadd.f32 %v1350_v16, %v1302_v63  ;;  %v3357_v63 = vld [vmem:[#allocation6 + $0xd8] sm:$0xf0]  ;;  %v4154_v32 = vld [vmem:[#allocation6 + $0x3cc] sm:$0xf] }
 0x16f   :  { %1450 = vmatmul.bf16.gmra.mxu1 %v4648_v26  ;;  %1673 = vmatpush.bf16.msrb.mxu2 %v3616_v7  ;;  %v3360_v16 = vor.u32 %v4058_v19, %v3357_v63  ;;  %v3597_v19 = vld [vmem:[#allocation6 + $0x2b8] sm:$0xf0] }
 0x170   :  { %v1256_v35 = vadd.f32 %v1255_v52, %v1207_v34  ;;  %1401 = vmatmul.bf16.gmra.mxu0 %v4646_v25  ;;  %v1791_v47 = vmax.f32 %v1351_v46, 0.0  ;;  %1499 = vmatmul.bf16.gmra.mxu2 %v4650_v27  ;;  %v3741_v34 = vld [vmem:[#allocation6 + $0x3d8] sm:$0xf0]  ;;  %v4090_v52 = vld [vmem:[#allocation6 + $0x1cc] sm:$0xf] }
 0x171   :  { %1548 = vmatmul.bf16.gmra.mxu3 %v4652_v28  ;;  %v3744_v46 = vor.u32 %v4154_v32, %v3741_v34  ;;  %1575 = vmatpush.bf16.msrb.mxu0 %v3360_v16 }
 0x172   :  { %v4805_v9 = vpack.c.bf16 %v1791_v47, %v1787_v51  ;;  %v3488_v47 = vor.u32 %v4090_v52, %v3485_v48 }
 0x173   :  { %v1304_v5 = vpop.f32.mrf.mxu2  ;;  %1722 = vmatpush.bf16.msrb.mxu3 %v3744_v46 }
 0x174   :  { %5395 = vst [vmem:[#allocation25_spill] sm:$0xff] %v4805_v9  ;;  %v1305_v10 = vadd.f32 %v1304_v5, %v1256_v35  ;;  %v1353_v15 = vpop.f32.mrf.mxu3  ;;  %v1257_v30 = vpop.f32.mrf.mxu1  ;;  %1624 = vmatpush.bf16.msrb.mxu1 %v3488_v47 }
 0x175   :  { %v1208_v12 = vpop.f32.mrf.mxu0 }
 0x176   :  { %v1209_v17 = vadd.f32 %v1208_v12, %v4774_v11  ;;  %v1354_v36 = vadd.f32 %v1353_v15, %v1305_v10 }
 0x178   :  { %v1258_v18 = vadd.f32 %v1257_v30, %v1209_v17  ;;  %v1795_v17 = vmax.f32 %v1354_v36, 0.0 }
 0x17b   :  { %v1306_v51 = vpop.f32.mrf.mxu2 }
 0x17c   :  { %v1307_v35 = vadd.f32 %v1306_v51, %v1258_v18  ;;  %v1355_v50 = vpop.f32.mrf.mxu3  ;;  %v1260_v12 = vpop.f32.mrf.mxu1  ;;  %v4118_v18 = vld [vmem:[#allocation6 + $0x2ac] sm:$0xf] }
 0x17d   :  { %v1211_v5 = vpop.f32.mrf.mxu0  ;;  %v3600_v63 = vor.u32 %v4118_v18, %v3597_v19  ;;  %v3469_v18 = vld [vmem:[#allocation6 + $0x1b8] sm:$0xf0] }
 0x17e   :  { %v1212_v7 = vadd.f32 %v1211_v5, %v4774_v11  ;;  %v1356_v10 = vadd.f32 %v1355_v50, %v1307_v35  ;;  %v4054_v35 = vld [vmem:[#allocation6 + $0xac] sm:$0xf]  ;;  %v3341_v50 = vld [vmem:[#allocation6 + $0xb8] sm:$0xf0] }
 0x17f   :  { %1455 = vmatmul.bf16.gmra.mxu1 %v4660_v58  ;;  %1674 = vmatpush.bf16.msrb.mxu2 %v3600_v63  ;;  %v4150_v5 = vld [vmem:[#allocation6 + $0x3ac] sm:$0xf]  ;;  %v3325_v19 = vld [vmem:[#allocation6 + $0x98] sm:$0xf0] }
 0x180   :  { %v1261_v15 = vadd.f32 %v1260_v12, %v1212_v7  ;;  %1406 = vmatmul.bf16.gmra.mxu0 %v4658_v57  ;;  %v1799_v30 = vmax.f32 %v1356_v10, 0.0  ;;  %1504 = vmatmul.bf16.gmra.mxu2 %v4662_v59  ;;  %v3344_v7 = vor.u32 %v4054_v35, %v3341_v50  ;;  %v3725_v12 = vld [vmem:[#allocation6 + $0x3b8] sm:$0xf0]  ;;  %v4086_v10 = vld [vmem:[#allocation6 + $0x1ac] sm:$0xf] }
 0x181   :  { %1553 = vmatmul.bf16.gmra.mxu3 %v4664_v60  ;;  %v3728_v9 = vor.u32 %v4150_v5, %v3725_v12  ;;  %v4082_v63 = vld [vmem:[#allocation6 + $0x18c] sm:$0xf] }
 0x182   :  { %v4813_v16 = vpack.c.bf16 %v1799_v30, %v1795_v17  ;;  %1576 = vmatpush.bf16.msrb.mxu0 %v3344_v7  ;;  %v3472_v17 = vor.u32 %v4086_v10, %v3469_v18  ;;  %v4146_v7 = vld [vmem:[#allocation6 + $0x38c] sm:$0xf]  ;;  %v3709_v10 = vld [vmem:[#allocation6 + $0x398] sm:$0xf0] }
 0x183   :  { %v1309_v32 = vpop.f32.mrf.mxu2  ;;  %1723 = vmatpush.bf16.msrb.mxu3 %v3728_v9  ;;  %v3712_v9 = vor.u32 %v4146_v7, %v3709_v10  ;;  %v3293_v7 = vld [vmem:[#allocation6 + $0x58] sm:$0xf0]  ;;  %v4074_v10 = vld [vmem:[#allocation6 + $0x14c] sm:$0xf] }
 0x184   :  { %5396 = vst [vmem:[#allocation26_spill] sm:$0xff] %v4813_v16  ;;  %v1310_v34 = vadd.f32 %v1309_v32, %v1261_v15  ;;  %v1358_v52 = vpop.f32.mrf.mxu3  ;;  %v1262_v36 = vpop.f32.mrf.mxu1  ;;  %v4050_v15 = vld [vmem:[#allocation6 + $0x8c] sm:$0xf]  ;;  %1625 = vmatpush.bf16.msrb.mxu1 %v3472_v17  ;;  %v3309_v17 = vld [vmem:[#allocation6 + $0x78] sm:$0xf0] }
 0x185   :  { %v1213_v46 = vpop.f32.mrf.mxu0 }
 0x186   :  { %v1214_v48 = vadd.f32 %v1213_v46, %v4774_v11  ;;  %v1359_v51 = vadd.f32 %v1358_v52, %v1310_v34  ;;  %v3328_v34 = vor.u32 %v4050_v15, %v3325_v19  ;;  %v3453_v52 = vld [vmem:[#allocation6 + $0x198] sm:$0xf0] }
 0x187   :  { %v3456_v5 = vor.u32 %v4082_v63, %v3453_v52  ;;  %v3437_v63 = vld [vmem:[#allocation6 + $0x178] sm:$0xf0]  ;;  %v4110_v52 = vld [vmem:[#allocation6 + $0x26c] sm:$0xf]  ;;  %1724 = vmatpush.bf16.msrb.mxu3 %v3712_v9 }
 0x188   :  { %v1263_v47 = vadd.f32 %v1262_v36, %v1214_v48  ;;  %v4114_v48 = vld [vmem:[#allocation6 + $0x28c] sm:$0xf]  ;;  %v3581_v36 = vld [vmem:[#allocation6 + $0x298] sm:$0xf0]  ;;  %1577 = vmatpush.bf16.msrb.mxu0 %v3328_v34  ;;  %v1803_v15 = vmax.f32 %v1359_v51, 0.0 }
 0x189   :  { %v3584_v12 = vor.u32 %v4114_v48, %v3581_v36  ;;  %1626 = vmatpush.bf16.msrb.mxu1 %v3456_v5  ;;  %v4142_v34 = vld [vmem:[#allocation6 + $0x36c] sm:$0xf]  ;;  %v3693_v48 = vld [vmem:[#allocation6 + $0x378] sm:$0xf0] }
 0x18a   :  { %v3421_v5 = vld [vmem:[#allocation6 + $0x158] sm:$0xf0] }
 0x18b   :  { %v1311_v30 = vpop.f32.mrf.mxu2  ;;  %1675 = vmatpush.bf16.msrb.mxu2 %v3584_v12  ;;  %v4042_v12 = vld [vmem:[#allocation6 + $0x4c] sm:$0xf] }
 0x18c   :  { %v1312_v32 = vadd.f32 %v1311_v30, %v1263_v47  ;;  %v1360_v46 = vpop.f32.mrf.mxu3  ;;  %v1265_v50 = vpop.f32.mrf.mxu1  ;;  %v4046_v47 = vld [vmem:[#allocation6 + $0x6c] sm:$0xf]  ;;  %v3296_v31 = vor.u32 %v4042_v12, %v3293_v7  ;;  %v3405_v7 = vld [vmem:[#allocation6 + $0x138] sm:$0xf0] }
 0x18d   :  { %v1216_v16 = vpop.f32.mrf.mxu0  ;;  %v4078_v30 = vld [vmem:[#allocation6 + $0x16c] sm:$0xf] }
 0x18e   :  { %v1217_v35 = vadd.f32 %v1216_v16, %v4774_v11  ;;  %v1361_v18 = vadd.f32 %v1360_v46, %v1312_v32  ;;  %v3312_v16 = vor.u32 %v4046_v47, %v3309_v17  ;;  %v3440_v32 = vor.u32 %v4078_v30, %v3437_v63  ;;  %v3565_v46 = vld [vmem:[#allocation6 + $0x278] sm:$0xf0]  ;;  %v4106_v30 = vld [vmem:[#allocation6 + $0x24c] sm:$0xf] }
 0x18f   :  { %1460 = vmatmul.bf16.gmra.mxu1 %v4672_v38  ;;  %v3568_v36 = vor.u32 %v4110_v52, %v3565_v46  ;;  %v3549_v63 = vld [vmem:[#allocation6 + $0x258] sm:$0xf0] }
 0x190   :  { %v1266_v14 = vadd.f32 %v1265_v50, %v1217_v35  ;;  %1411 = vmatmul.bf16.gmra.mxu0 %v4670_v37  ;;  %v1807_v19 = vmax.f32 %v1361_v18, 0.0  ;;  %1509 = vmatmul.bf16.gmra.mxu2 %v4674_v39  ;;  %v3696_v35 = vor.u32 %v4142_v34, %v3693_v48  ;;  %v3552_v52 = vor.u32 %v4106_v30, %v3549_v63  ;;  %v4038_v48 = vld [vmem:[#allocation6 + $0x2c] sm:$0xf] }
 0x191   :  { %1558 = vmatmul.bf16.gmra.mxu3 %v4676_v40  ;;  %1578 = vmatpush.bf16.msrb.mxu0 %v3312_v16  ;;  %v3424_v16 = vor.u32 %v4074_v10, %v3421_v5  ;;  %v3661_v10 = vld [vmem:[#allocation6 + $0x338] sm:$0xf0] }
 0x192   :  { %v4821_v51 = vpack.c.bf16 %v1807_v19, %v1803_v15  ;;  %1676 = vmatpush.bf16.msrb.mxu2 %v3568_v36  ;;  %1627 = vmatpush.bf16.msrb.mxu1 %v3440_v32  ;;  %v4138_v15 = vld [vmem:[#allocation6 + $0x34c] sm:$0xf]  ;;  %v3677_v19 = vld [vmem:[#allocation6 + $0x358] sm:$0xf0] }
 0x193   :  { %v1314_v50 = vpop.f32.mrf.mxu2  ;;  %1725 = vmatpush.bf16.msrb.mxu3 %v3696_v35  ;;  %v3680_v34 = vor.u32 %v4138_v15, %v3677_v19  ;;  %v4070_v36 = vld [vmem:[#allocation6 + $0x12c] sm:$0xf]  ;;  %v3389_v15 = vld [vmem:[#allocation6 + $0x118] sm:$0xf0] }
 0x194   :  { %5397 = vst [vmem:[#allocation27_spill] sm:$0xff] %v4821_v51  ;;  %v1315_v18 = vadd.f32 %v1314_v50, %v1266_v14  ;;  %v1363_v47 = vpop.f32.mrf.mxu3  ;;  %v1267_v9 = vpop.f32.mrf.mxu1  ;;  %v3277_v50 = vld [vmem:[#allocation6 + $0x38] sm:$0xf0]  ;;  %v4102_v51 = vld [vmem:[#allocation6 + $0x22c] sm:$0xf] }
 0x195   :  { %v1218_v17 = vpop.f32.mrf.mxu0  ;;  %1579 = vmatpush.bf16.msrb.mxu0 %v3296_v31  ;;  %v3280_v12 = vor.u32 %v4038_v48, %v3277_v50  ;;  %v4134_v32 = vld [vmem:[#allocation6 + $0x32c] sm:$0xf]  ;;  %v3536_v5 = vor.u32 %v4102_v51, %v3533_v20  ;;  %v3645_v20 = vld [vmem:[#allocation6 + $0x318] sm:$0xf0] }
 0x196   :  { %v1219_v0 = vadd.f32 %v1218_v17, %v4774_v11  ;;  %v1364_v46 = vadd.f32 %v1363_v47, %v1315_v18  ;;  %1677 = vmatpush.bf16.msrb.mxu2 %v3552_v52  ;;  %1628 = vmatpush.bf16.msrb.mxu1 %v3424_v16  ;;  %v3408_v17 = vor.u32 %v4070_v36, %v3405_v7  ;;  %v4034_v31 = vld [vmem:[#allocation6 + $0xc] sm:$0xf]  ;;  %v3261_v47 = vld [vmem:[#allocation6 + $0x18] sm:$0xf0] }
 0x197   :  { %1726 = vmatpush.bf16.msrb.mxu3 %v3680_v34  ;;  %v3664_v18 = vor.u32 %v4134_v32, %v3661_v10  ;;  %v3264_v52 = vor.u32 %v4034_v31, %v3261_v47  ;;  %v4098_v19 = vld [vmem:[#allocation6 + $0x20c] sm:$0xf]  ;;  %v3517_v16 = vld [vmem:[#allocation6 + $0x218] sm:$0xf0] }
 0x198   :  { %v1268_v14 = vadd.f32 %v1267_v9, %v1219_v0  ;;  %v4066_v0 = vld [vmem:[#allocation6 + $0x10c] sm:$0xf]  ;;  %v1811_v32 = vmax.f32 %v1364_v46, 0.0 }
 0x199   :  { %1580 = vmatpush.bf16.msrb.mxu0 %v3280_v12  ;;  %v3392_v34 = vor.u32 %v4066_v0, %v3389_v15  ;;  %v4130_v36 = vld [vmem:[#allocation6 + $0x30c] sm:$0xf]  ;;  %v3520_v12 = vor.u32 %v4098_v19, %v3517_v16 }
 0x19a   :  { %1678 = vmatpush.bf16.msrb.mxu2 %v3536_v5  ;;  %1629 = vmatpush.bf16.msrb.mxu1 %v3408_v17  ;;  %v3648_v7 = vor.u32 %v4130_v36, %v3645_v20 }
 0x19b   :  { %v1316_v35 = vpop.f32.mrf.mxu2  ;;  %1727 = vmatpush.bf16.msrb.mxu3 %v3664_v18 }
 0x19c   :  { %v1317_v30 = vadd.f32 %v1316_v35, %v1268_v14  ;;  %v1365_v63 = vpop.f32.mrf.mxu3  ;;  %v1270_v50 = vpop.f32.mrf.mxu1 }
 0x19d   :  { %v1221_v9 = vpop.f32.mrf.mxu0  ;;  %1581 = vmatpush.bf16.msrb.mxu0 %v3264_v52 }
 0x19e   :  { %v1222_v48 = vadd.f32 %v1221_v9, %v4774_v11  ;;  %v1366_v51 = vadd.f32 %v1365_v63, %v1317_v30  ;;  %1630 = vmatpush.bf16.msrb.mxu1 %v3392_v34  ;;  %1679 = vmatpush.bf16.msrb.mxu2 %v3520_v12 }
 0x19f   :  { %1465 = vmatmul.bf16.gmra.mxu1 %v4684_v61  ;;  %1728 = vmatpush.bf16.msrb.mxu3 %v3648_v7 }
 0x1a0   :  { %v1271_v14 = vadd.f32 %v1270_v50, %v1222_v48  ;;  %1416 = vmatmul.bf16.gmra.mxu0 %v4682_v49  ;;  %v1815_v10 = vmax.f32 %v1366_v51, 0.0  ;;  %1514 = vmatmul.bf16.gmra.mxu2 %v4686_v62 }
 0x1a1   :  { %1563 = vmatmul.bf16.gmra.mxu3 %v4688_v6 }
 0x1a2   :  { %v4829_v17 = vpack.c.bf16 %v1815_v10, %v1811_v32 }
 0x1a3   :  { %v1319_v5 = vpop.f32.mrf.mxu2 }
 0x1a4   :  { %v1320_v18 = vadd.f32 %v1319_v5, %v1271_v14  ;;  %v1368_v35 = vpop.f32.mrf.mxu3  ;;  %v1272_v0 = vpop.f32.mrf.mxu1 }
 0x1a5   :  { %v1223_v31 = vpop.f32.mrf.mxu0 }
 0x1a6   :  { %v1224_v47 = vadd.f32 %v1223_v31, %v4774_v11  ;;  %v1369_v46 = vadd.f32 %v1368_v35, %v1320_v18  ;;  %v4840_v35 = vld [vmem:[#allocation8] sm:$0xf] }
 0x1a7   :  { %v4843_v31 = vperm.slane %v4840_v35, 2 }
 0x1a8   :  { %v1273_v30 = vadd.f32 %v1272_v0, %v1224_v47  ;;  %v1819_v34 = vmax.f32 %v1369_v46, 0.0 }
 0x1ab   :  { %v1321_v63 = vpop.f32.mrf.mxu2 }
 0x1ac   :  { %v1322_v9 = vadd.f32 %v1321_v63, %v1273_v30  ;;  %v1370_v52 = vpop.f32.mrf.mxu3  ;;  %v1275_v16 = vpop.f32.mrf.mxu1 }
 0x1ad   :  { %v1226_v15 = vpop.f32.mrf.mxu0 }
 0x1ae   :  { %v1227_v19 = vadd.f32 %v1226_v15, %v4774_v11  ;;  %v1371_v48 = vadd.f32 %v1370_v52, %v1322_v9 }
 0x1af   :  { %1470 = vmatmul.bf16.gmra.mxu1 %v4696_v22 }
 0x1b0   :  { %v1276_v50 = vadd.f32 %v1275_v16, %v1227_v19  ;;  %1421 = vmatmul.bf16.gmra.mxu0 %v4694_v21  ;;  %v1823_v36 = vmax.f32 %v1371_v48, 0.0  ;;  %1519 = vmatmul.bf16.gmra.mxu2 %v4698_v23 }
 0x1b1   :  { %1568 = vmatmul.bf16.gmra.mxu3 %v4700_v24 }
 0x1b2   :  { %v4837_v20 = vpack.c.bf16 %v1823_v36, %v1819_v34 }
 0x1b3   :  { %v1324_v51 = vpop.f32.mrf.mxu2 }
 0x1b4   :  { %v1325_v12 = vadd.f32 %v1324_v51, %v1276_v50  ;;  %v1373_v7 = vpop.f32.mrf.mxu3  ;;  %v1277_v10 = vpop.f32.mrf.mxu1 }
 0x1b5   :  { %v1228_v14 = vpop.f32.mrf.mxu0 }
 0x1b6   :  { %v1229_v32 = vadd.f32 %v1228_v14, %v4774_v11  ;;  %v1374_v5 = vadd.f32 %v1373_v7, %v1325_v12 }
 0x1b8   :  { %v1278_v18 = vadd.f32 %v1277_v10, %v1229_v32  ;;  %v1827_v11 = vmax.f32 %v1374_v5, 0.0 }
 0x1bb   :  { %v1326_v47 = vpop.f32.mrf.mxu2 }
 0x1bc   :  { %v1327_v0 = vadd.f32 %v1326_v47, %v1278_v18  ;;  %v1375_v46 = vpop.f32.mrf.mxu3  ;;  %v1436_v9 = vpop.f32.mrf.mxu1 }
 0x1bd   :  { %v1387_v30 = vpop.f32.mrf.mxu0 }
 0x1be   :  { %v1388_v63 = vadd.f32 %v1387_v30, %v4843_v31  ;;  %v1376_v52 = vadd.f32 %v1375_v46, %v1327_v0 }
 0x1bf   :  { %1631 = vmatmul.bf16.vlgmr.msrb.gmra.mxu1 %v4612_v42 }
 0x1c0   :  { %v1437_v15 = vadd.f32 %v1436_v9, %v1388_v63  ;;  %1582 = vmatmul.bf16.vlgmr.msrb.gmra.mxu0 %v4610_v41  ;;  %v1831_v19 = vmax.f32 %v1376_v52, 0.0  ;;  %1680 = vmatmul.bf16.vlgmr.msrb.gmra.mxu2 %v4614_v43 }
 0x1c1   :  { %1729 = vmatmul.bf16.vlgmr.msrb.gmra.mxu3 %v4616_v44 }
 0x1c2   :  { %v4850_v16 = vpack.c.bf16 %v1831_v19, %v1827_v11 }
 0x1c3   :  { %v1485_v48 = vpop.f32.mrf.mxu2 }
 0x1c4   :  { %v1486_v50 = vadd.f32 %v1485_v48, %v1437_v15  ;;  %v1534_v34 = vpop.f32.mrf.mxu3  ;;  %v1438_v12 = vpop.f32.mrf.mxu1 }
 0x1c5   :  { %v1389_v36 = vpop.f32.mrf.mxu0 }
 0x1c6   :  { %v1390_v51 = vadd.f32 %v1389_v36, %v4843_v31  ;;  %v1535_v7 = vadd.f32 %v1534_v34, %v1486_v50 }
 0x1c8   :  { %v1439_v14 = vadd.f32 %v1438_v12, %v1390_v51  ;;  %v1772_v47 = vmax.f32 %v1535_v7, 0.0 }
 0x1cb   :  { %v1487_v41 = vpop.f32.mrf.mxu2 }
 0x1cc   :  { %v1488_v32 = vadd.f32 %v1487_v41, %v1439_v14  ;;  %v1536_v10 = vpop.f32.mrf.mxu3  ;;  %v1441_v43 = vpop.f32.mrf.mxu1 }
 0x1cd   :  { %v1392_v5 = vpop.f32.mrf.mxu0 }
 0x1ce   :  { %v1393_v42 = vadd.f32 %v1392_v5, %v4843_v31  ;;  %v1537_v18 = vadd.f32 %v1536_v10, %v1488_v32 }
 0x1cf   :  { %1636 = vmatmul.bf16.gmra.mxu1 %v4624_v54 }
 0x1d0   :  { %v1442_v44 = vadd.f32 %v1441_v43, %v1393_v42  ;;  %1587 = vmatmul.bf16.gmra.mxu0 %v4622_v53  ;;  %v1776_v0 = vmax.f32 %v1537_v18, 0.0  ;;  %1685 = vmatmul.bf16.gmra.mxu2 %v4626_v55  ;;  %v3883_v42 = vld [vmem:[#allocation9 + $0xf0] sm:$0xf]  ;;  %v4192_v43 = vld [vmem:[#allocation9 + $0xf4] sm:$0xf0] }
 0x1d1   :  { %1734 = vmatmul.bf16.gmra.mxu3 %v4628_v56  ;;  %v3947_v18 = vld [vmem:[#allocation9 + $0x170] sm:$0xf] }
 0x1d2   :  { %v4858_v46 = vpack.c.bf16 %v1776_v0, %v1772_v47  ;;  %v3884_v47 = vor.u32 %v4192_v43, %v3883_v42  ;;  %v4208_v0 = vld [vmem:[#allocation9 + $0x174] sm:$0xf0]  ;;  %v3859_v42 = vld [vmem:[#allocation9 + $0xc0] sm:$0xf]  ;;  %v4186_v43 = vld [vmem:[#allocation9 + $0xc4] sm:$0xf0] }
 0x1d3   :  { %v1490_v30 = vpop.f32.mrf.mxu2 }
 0x1d4   :  { %v1491_v63 = vadd.f32 %v1490_v30, %v1442_v44  ;;  %v1539_v9 = vpop.f32.mrf.mxu3  ;;  %v1443_v11 = vpop.f32.mrf.mxu1  ;;  %2305 = vmatpush.bf16.msra.mxu1 %v3884_v47 }
 0x1d5   :  { %v1394_v52 = vpop.f32.mrf.mxu0 }
 0x1d6   :  { %v1395_v15 = vadd.f32 %v1394_v52, %v4843_v31  ;;  %v1540_v19 = vadd.f32 %v1539_v9, %v1491_v63  ;;  %v3939_v52 = vld [vmem:[#allocation9 + $0x160] sm:$0xf] }
 0x1d8   :  { %v1444_v48 = vadd.f32 %v1443_v11, %v1395_v15  ;;  %v1780_v12 = vmax.f32 %v1540_v19, 0.0  ;;  %v4206_v15 = vld [vmem:[#allocation9 + $0x164] sm:$0xf0] }
 0x1d9   :  { %v3940_v11 = vor.u32 %v4206_v15, %v3939_v52  ;;  %v4200_v52 = vld [vmem:[#allocation9 + $0x134] sm:$0xf0] }
 0x1db   :  { %v1492_v53 = vpop.f32.mrf.mxu2 }
 0x1dc   :  { %v1493_v50 = vadd.f32 %v1492_v53, %v1444_v48  ;;  %v1541_v34 = vpop.f32.mrf.mxu3  ;;  %v1446_v55 = vpop.f32.mrf.mxu1 }
 0x1dd   :  { %v1397_v36 = vpop.f32.mrf.mxu0 }
 0x1de   :  { %v1398_v54 = vadd.f32 %v1397_v36, %v4843_v31  ;;  %v1542_v51 = vadd.f32 %v1541_v34, %v1493_v50  ;;  %v3867_v34 = vld [vmem:[#allocation9 + $0xd0] sm:$0xf]  ;;  %v4188_v36 = vld [vmem:[#allocation9 + $0xd4] sm:$0xf0] }
 0x1df   :  { %1641 = vmatmul.bf16.gmra.mxu1 %v4636_v2  ;;  %v3948_v2 = vor.u32 %v4208_v0, %v3947_v18  ;;  %v3860_v18 = vor.u32 %v4186_v43, %v3859_v42  ;;  %v3835_v43 = vld [vmem:[#allocation9 + $0x90] sm:$0xf] }
 0x1e0   :  { %v1447_v56 = vadd.f32 %v1446_v55, %v1398_v54  ;;  %1592 = vmatmul.bf16.gmra.mxu0 %v4634_v1  ;;  %v1784_v7 = vmax.f32 %v1542_v51, 0.0  ;;  %1690 = vmatmul.bf16.gmra.mxu2 %v4638_v3  ;;  %v3875_v3 = vld [vmem:[#allocation9 + $0xe0] sm:$0xf]  ;;  %v3931_v54 = vld [vmem:[#allocation9 + $0x150] sm:$0xf] }
 0x1e1   :  { %1739 = vmatmul.bf16.gmra.mxu3 %v4640_v4  ;;  %2354 = vmatpush.bf16.msra.mxu2 %v3948_v2  ;;  %v4190_v4 = vld [vmem:[#allocation9 + $0xe4] sm:$0xf0] }
 0x1e2   :  { %v4866_v14 = vpack.c.bf16 %v1784_v7, %v1780_v12  ;;  %v3876_v9 = vor.u32 %v4190_v4, %v3875_v3  ;;  %v4204_v12 = vld [vmem:[#allocation9 + $0x154] sm:$0xf0]  ;;  %v3851_v3 = vld [vmem:[#allocation9 + $0xb0] sm:$0xf] }
 0x1e3   :  { %v1495_v41 = vpop.f32.mrf.mxu2  ;;  %v3915_v4 = vld [vmem:[#allocation9 + $0x130] sm:$0xf] }
 0x1e4   :  { %v1496_v32 = vadd.f32 %v1495_v41, %v1447_v56  ;;  %v1544_v10 = vpop.f32.mrf.mxu3  ;;  %v1448_v1 = vpop.f32.mrf.mxu1  ;;  %2306 = vmatpush.bf16.msra.mxu1 %v3876_v9  ;;  %v3868_v56 = vor.u32 %v4188_v36, %v3867_v34  ;;  %v3932_v41 = vor.u32 %v4204_v12, %v3931_v54  ;;  %v4011_v34 = vld [vmem:[#allocation9 + $0x1f0] sm:$0xf]  ;;  %v4224_v36 = vld [vmem:[#allocation9 + $0x1f4] sm:$0xf0]  ;;  %v3843_v54 = vld [vmem:[#allocation9 + $0xa0] sm:$0xf] }
 0x1e5   :  { %v1399_v5 = vpop.f32.mrf.mxu0  ;;  %2355 = vmatpush.bf16.msra.mxu2 %v3940_v11  ;;  %v3916_v11 = vor.u32 %v4200_v52, %v3915_v4  ;;  %v4198_v12 = vld [vmem:[#allocation9 + $0x124] sm:$0xf0]  ;;  %v3827_v52 = vld [vmem:[#allocation9 + $0x80] sm:$0xf] }
 0x1e6   :  { %v1400_v44 = vadd.f32 %v1399_v5, %v4843_v31  ;;  %v1545_v30 = vadd.f32 %v1544_v10, %v1496_v32 }
 0x1e8   :  { %v1449_v63 = vadd.f32 %v1448_v1, %v1400_v44  ;;  %2307 = vmatpush.bf16.msra.mxu1 %v3868_v56  ;;  %v1788_v10 = vmax.f32 %v1545_v30, 0.0  ;;  %v3923_v44 = vld [vmem:[#allocation9 + $0x140] sm:$0xf]  ;;  %v4202_v1 = vld [vmem:[#allocation9 + $0x144] sm:$0xf0] }
 0x1e9   :  { %2356 = vmatpush.bf16.msra.mxu2 %v3932_v41  ;;  %v3924_v47 = vor.u32 %v4202_v1, %v3923_v44  ;;  %v3907_v56 = vld [vmem:[#allocation9 + $0x120] sm:$0xf]  ;;  %v3899_v44 = vld [vmem:[#allocation9 + $0x110] sm:$0xf] }
 0x1eb   :  { %v1497_v19 = vpop.f32.mrf.mxu2 }
 0x1ec   :  { %v1498_v48 = vadd.f32 %v1497_v19, %v1449_v63  ;;  %v1546_v53 = vpop.f32.mrf.mxu3  ;;  %v1451_v51 = vpop.f32.mrf.mxu1  ;;  %2308 = vmatpush.bf16.msra.mxu1 %v3860_v18  ;;  %v4180_v18 = vld [vmem:[#allocation9 + $0x94] sm:$0xf0] }
 0x1ed   :  { %v1402_v50 = vpop.f32.mrf.mxu0  ;;  %2357 = vmatpush.bf16.msra.mxu2 %v3924_v47 }
 0x1ee   :  { %v1403_v55 = vadd.f32 %v1402_v50, %v4843_v31  ;;  %v1547_v7 = vadd.f32 %v1546_v53, %v1498_v48  ;;  %v3819_v48 = vld [vmem:[#allocation9 + $0x70] sm:$0xf]  ;;  %v4176_v53 = vld [vmem:[#allocation9 + $0x74] sm:$0xf0] }
 0x1ef   :  { %1646 = vmatmul.bf16.gmra.mxu1 %v4648_v26  ;;  %v4184_v26 = vld [vmem:[#allocation9 + $0xb4] sm:$0xf0]  ;;  %v3820_v50 = vor.u32 %v4176_v53, %v3819_v48  ;;  %v3891_v48 = vld [vmem:[#allocation9 + $0x100] sm:$0xf]  ;;  %v4194_v53 = vld [vmem:[#allocation9 + $0x104] sm:$0xf0] }
 0x1f0   :  { %v1452_v32 = vadd.f32 %v1451_v51, %v1403_v55  ;;  %1597 = vmatmul.bf16.gmra.mxu0 %v4646_v25  ;;  %v1792_v5 = vmax.f32 %v1547_v7, 0.0  ;;  %1695 = vmatmul.bf16.gmra.mxu2 %v4650_v27  ;;  %v4012_v55 = vor.u32 %v4224_v36, %v4011_v34  ;;  %v4182_v51 = vld [vmem:[#allocation9 + $0xa4] sm:$0xf0]  ;;  %v3892_v34 = vor.u32 %v4194_v53, %v3891_v48  ;;  %v4220_v36 = vld [vmem:[#allocation9 + $0x1d4] sm:$0xf0] }
 0x1f1   :  { %1744 = vmatmul.bf16.gmra.mxu3 %v4652_v28  ;;  %v3852_v28 = vor.u32 %v4184_v26, %v3851_v3  ;;  %2358 = vmatpush.bf16.msra.mxu2 %v3916_v11  ;;  %v3844_v41 = vor.u32 %v4182_v51, %v3843_v54  ;;  %v4178_v11 = vld [vmem:[#allocation9 + $0x84] sm:$0xf0]  ;;  %v4207_v51 = vld [vmem:[#allocation9 + $0x174] sm:$0xf]  ;;  %v3869_v48 = vld [vmem:[#allocation9 + $0xd8] sm:$0xf0] }
 0x1f2   :  { %v4874_v0 = vpack.c.bf16 %v1792_v5, %v1788_v10  ;;  %2256 = vmatpush.bf16.msra.mxu0 %v3820_v50  ;;  %2403 = vmatpush.bf16.msra.mxu3 %v4012_v55  ;;  %v3995_v50 = vld [vmem:[#allocation9 + $0x1d0] sm:$0xf] }
 0x1f3   :  { %v1500_v2 = vpop.f32.mrf.mxu2  ;;  %2309 = vmatpush.bf16.msra.mxu1 %v3852_v28  ;;  %v3996_v55 = vor.u32 %v4220_v36, %v3995_v50  ;;  %v4203_v50 = vld [vmem:[#allocation9 + $0x154] sm:$0xf] }
 0x1f4   :  { %v1501_v25 = vadd.f32 %v1500_v2, %v1452_v32  ;;  %v1549_v30 = vpop.f32.mrf.mxu3  ;;  %v1453_v9 = vpop.f32.mrf.mxu1  ;;  %v3908_v32 = vor.u32 %v4198_v12, %v3907_v56  ;;  %v3836_v2 = vor.u32 %v4180_v18, %v3835_v43  ;;  %v3949_v56 = vld [vmem:[#allocation9 + $0x178] sm:$0xf0]  ;;  %v3811_v12 = vld [vmem:[#allocation9 + $0x60] sm:$0xf] }
 0x1f5   :  { %v1404_v63 = vpop.f32.mrf.mxu0 }
 0x1f6   :  { %v1405_v27 = vadd.f32 %v1404_v63, %v4843_v31  ;;  %v1550_v15 = vadd.f32 %v1549_v30, %v1501_v25  ;;  %2359 = vmatpush.bf16.msra.mxu2 %v3908_v32  ;;  %v4196_v25 = vld [vmem:[#allocation9 + $0x114] sm:$0xf0]  ;;  %v4003_v30 = vld [vmem:[#allocation9 + $0x1e0] sm:$0xf]  ;;  %v4222_v63 = vld [vmem:[#allocation9 + $0x1e4] sm:$0xf0]  ;;  %v3952_v32 = vor.u32 %v4207_v51, %v3949_v56 }
 0x1f7   :  { %2310 = vmatpush.bf16.msra.mxu1 %v3844_v41  ;;  %v3900_v26 = vor.u32 %v4196_v25, %v3899_v44  ;;  %v4004_v4 = vor.u32 %v4222_v63, %v4003_v30  ;;  %v3941_v63 = vld [vmem:[#allocation9 + $0x168] sm:$0xf0]  ;;  %v3971_v56 = vld [vmem:[#allocation9 + $0x1a0] sm:$0xf] }
 0x1f8   :  { %v1454_v19 = vadd.f32 %v1453_v9, %v1405_v27  ;;  %v1796_v9 = vmax.f32 %v1550_v15, 0.0  ;;  %v3885_v15 = vld [vmem:[#allocation9 + $0xf8] sm:$0xf0] }
 0x1f9   :  { %2404 = vmatpush.bf16.msra.mxu3 %v4004_v4 }
 0x1fa   :  { %2360 = vmatpush.bf16.msra.mxu2 %v3900_v26 }
 0x1fb   :  { %v1502_v7 = vpop.f32.mrf.mxu2  ;;  %2311 = vmatpush.bf16.msra.mxu1 %v3836_v2  ;;  %v4205_v2 = vld [vmem:[#allocation9 + $0x164] sm:$0xf] }
 0x1fc   :  { %v1503_v10 = vadd.f32 %v1502_v7, %v1454_v19  ;;  %v1551_v5 = vpop.f32.mrf.mxu3  ;;  %v1456_v47 = vpop.f32.mrf.mxu1  ;;  %v3828_v19 = vor.u32 %v4178_v11, %v3827_v52  ;;  %v3944_v4 = vor.u32 %v4205_v2, %v3941_v63  ;;  %v3979_v52 = vld [vmem:[#allocation9 + $0x1b0] sm:$0xf]  ;;  %v4216_v11 = vld [vmem:[#allocation9 + $0x1b4] sm:$0xf0] }
 0x1fd   :  { %v1407_v42 = vpop.f32.mrf.mxu0  ;;  %2405 = vmatpush.bf16.msra.mxu3 %v3996_v55  ;;  %v3980_v53 = vor.u32 %v4216_v11, %v3979_v52  ;;  %v3787_v2 = vld [vmem:[#allocation9 + $0x30] sm:$0xf]  ;;  %v4199_v11 = vld [vmem:[#allocation9 + $0x134] sm:$0xf] }
 0x1fe   :  { %v1408_v1 = vadd.f32 %v1407_v42, %v4843_v31  ;;  %v1552_v3 = vadd.f32 %v1551_v5, %v1503_v10  ;;  %v4174_v10 = vld [vmem:[#allocation9 + $0x64] sm:$0xf0]  ;;  %v3987_v5 = vld [vmem:[#allocation9 + $0x1c0] sm:$0xf]  ;;  %2361 = vmatpush.bf16.msra.mxu2 %v3892_v34  ;;  %v3933_v34 = vld [vmem:[#allocation9 + $0x158] sm:$0xf0] }
 0x1ff   :  { %1651 = vmatmul.bf16.gmra.mxu1 %v4660_v58  ;;  %v4218_v42 = vld [vmem:[#allocation9 + $0x1c4] sm:$0xf0]  ;;  %v3812_v44 = vor.u32 %v4174_v10, %v3811_v12  ;;  %v3861_v10 = vld [vmem:[#allocation9 + $0xc8] sm:$0xf0] }
 0x200   :  { %v1457_v27 = vadd.f32 %v1456_v47, %v1408_v1  ;;  %1602 = vmatmul.bf16.gmra.mxu0 %v4658_v57  ;;  %v1800_v28 = vmax.f32 %v1552_v3, 0.0  ;;  %1700 = vmatmul.bf16.gmra.mxu2 %v4662_v59  ;;  %v4191_v57 = vld [vmem:[#allocation9 + $0xf4] sm:$0xf]  ;;  %v4189_v1 = vld [vmem:[#allocation9 + $0xe4] sm:$0xf]  ;;  %v3988_v30 = vor.u32 %v4218_v42, %v3987_v5 }
 0x201   :  { %1749 = vmatmul.bf16.gmra.mxu3 %v4664_v60  ;;  %v3888_v59 = vor.u32 %v4191_v57, %v3885_v15  ;;  %2312 = vmatpush.bf16.msra.mxu1 %v3828_v19  ;;  %v3877_v47 = vld [vmem:[#allocation9 + $0xe8] sm:$0xf0]  ;;  %v4187_v19 = vld [vmem:[#allocation9 + $0xd4] sm:$0xf]  ;;  %v3795_v15 = vld [vmem:[#allocation9 + $0x40] sm:$0xf] }
 0x202   :  { %v4882_v54 = vpack.c.bf16 %v1800_v28, %v1796_v9  ;;  %2550 = vmatpush.bf16.msrb.mxu2 %v3952_v32  ;;  %v3880_v26 = vor.u32 %v4189_v1, %v3877_v47  ;;  %v4172_v9 = vld [vmem:[#allocation9 + $0x54] sm:$0xf0]  ;;  %2257 = vmatpush.bf16.msra.mxu0 %v3812_v44  ;;  %v3872_v57 = vor.u32 %v4187_v19, %v3869_v48  ;;  %v4214_v12 = vld [vmem:[#allocation9 + $0x1a4] sm:$0xf0]  ;;  %v4185_v32 = vld [vmem:[#allocation9 + $0xc4] sm:$0xf] }
 0x203   :  { %v1505_v58 = vpop.f32.mrf.mxu2  ;;  %2406 = vmatpush.bf16.msra.mxu3 %v3988_v30  ;;  %v3925_v44 = vld [vmem:[#allocation9 + $0x148] sm:$0xf0]  ;;  %v3864_v47 = vor.u32 %v4185_v32, %v3861_v10  ;;  %v4168_v30 = vld [vmem:[#allocation9 + $0x34] sm:$0xf0]  ;;  %v3917_v19 = vld [vmem:[#allocation9 + $0x138] sm:$0xf0] }
 0x204   :  { %v1506_v60 = vadd.f32 %v1505_v58, %v1457_v27  ;;  %v1554_v7 = vpop.f32.mrf.mxu3  ;;  %v1458_v18 = vpop.f32.mrf.mxu1  ;;  %v3803_v27 = vld [vmem:[#allocation9 + $0x50] sm:$0xf]  ;;  %v4170_v58 = vld [vmem:[#allocation9 + $0x44] sm:$0xf0]  ;;  %v4013_v32 = vld [vmem:[#allocation9 + $0x1f8] sm:$0xf0] }
 0x205   :  { %v1409_v41 = vpop.f32.mrf.mxu0  ;;  %2501 = vmatpush.bf16.msrb.mxu1 %v3888_v59  ;;  %v3804_v28 = vor.u32 %v4172_v9, %v3803_v27  ;;  %v3796_v42 = vor.u32 %v4170_v58, %v3795_v15  ;;  %v4183_v9 = vld [vmem:[#allocation9 + $0xb4] sm:$0xf]  ;;  %v3920_v58 = vor.u32 %v4199_v11, %v3917_v19  ;;  %v4177_v19 = vld [vmem:[#allocation9 + $0x84] sm:$0xf] }
 0x206   :  { %v1410_v43 = vadd.f32 %v1409_v41, %v4843_v31  ;;  %v4885_v25 = vadd.f32 %v1554_v7, %v1506_v60  ;;  %2551 = vmatpush.bf16.msrb.mxu2 %v3944_v4  ;;  %v3936_v41 = vor.u32 %v4203_v50, %v3933_v34  ;;  %v4212_v4 = vld [vmem:[#allocation9 + $0x194] sm:$0xf0] }
 0x207   :  { %2258 = vmatpush.bf16.msra.mxu0 %v3804_v28  ;;  %2407 = vmatpush.bf16.msra.mxu3 %v3980_v53  ;;  %v3853_v28 = vld [vmem:[#allocation9 + $0xb8] sm:$0xf0]  ;;  %v4166_v53 = vld [vmem:[#allocation9 + $0x24] sm:$0xf0] }
 0x208   :  { %v1459_v3 = vadd.f32 %v1458_v18, %v1410_v43  ;;  %v3972_v43 = vor.u32 %v4214_v12, %v3971_v56  ;;  %v4201_v18 = vld [vmem:[#allocation9 + $0x144] sm:$0xf]  ;;  %v1804_v63 = vmax.f32 %v4885_v25, 0.0 }
 0x209   :  { %2502 = vmatpush.bf16.msrb.mxu1 %v3880_v26  ;;  %v3963_v26 = vld [vmem:[#allocation9 + $0x190] sm:$0xf]  ;;  %v3928_v27 = vor.u32 %v4201_v18, %v3925_v44  ;;  %v4179_v44 = vld [vmem:[#allocation9 + $0x94] sm:$0xf] }
 0x20a   :  { %2552 = vmatpush.bf16.msrb.mxu2 %v3936_v41  ;;  %v3964_v52 = vor.u32 %v4212_v4, %v3963_v26  ;;  %v4223_v41 = vld [vmem:[#allocation9 + $0x1f4] sm:$0xf]  ;;  %v4005_v4 = vld [vmem:[#allocation9 + $0x1e8] sm:$0xf0] }
 0x20b   :  { %v1507_v36 = vpop.f32.mrf.mxu2  ;;  %2259 = vmatpush.bf16.msra.mxu0 %v3796_v42  ;;  %2408 = vmatpush.bf16.msra.mxu3 %v3972_v43  ;;  %v3771_v42 = vld [vmem:[#allocation9 + $0x10] sm:$0xf]  ;;  %v4164_v43 = vld [vmem:[#allocation9 + $0x14] sm:$0xf0] }
 0x20c   :  { %v1508_v55 = vadd.f32 %v1507_v36, %v1459_v3  ;;  %v1556_v59 = vpop.f32.mrf.mxu3  ;;  %v1461_v7 = vpop.f32.mrf.mxu1  ;;  %v3955_v36 = vld [vmem:[#allocation9 + $0x180] sm:$0xf] }
 0x20d   :  { %v1412_v51 = vpop.f32.mrf.mxu0  ;;  %2503 = vmatpush.bf16.msrb.mxu1 %v3872_v57  ;;  %v4210_v57 = vld [vmem:[#allocation9 + $0x184] sm:$0xf0] }
 0x20e   :  { %v1413_v60 = vadd.f32 %v1412_v51, %v4843_v31  ;;  %v1557_v5 = vadd.f32 %v1556_v59, %v1508_v55  ;;  %2553 = vmatpush.bf16.msrb.mxu2 %v3928_v27  ;;  %v4181_v55 = vld [vmem:[#allocation9 + $0xa4] sm:$0xf]  ;;  %v3845_v59 = vld [vmem:[#allocation9 + $0xa8] sm:$0xf0]  ;;  %v3763_v27 = vld [vmem:[#allocation9] sm:$0xf] }
 0x20f   :  { %1656 = vmatmul.bf16.gmra.mxu1 %v4672_v38  ;;  %v3856_v38 = vor.u32 %v4183_v9, %v3853_v28  ;;  %v4197_v51 = vld [vmem:[#allocation9 + $0x124] sm:$0xf]  ;;  %2409 = vmatpush.bf16.msra.mxu3 %v3964_v52  ;;  %v3848_v10 = vor.u32 %v4181_v55, %v3845_v59  ;;  %v4162_v9 = vld [vmem:[#allocation9 + $0x4] sm:$0xf0] }
 0x210   :  { %v1462_v1 = vadd.f32 %v1461_v7, %v1413_v60  ;;  %1607 = vmatmul.bf16.gmra.mxu0 %v4670_v37  ;;  %v1808_v3 = vmax.f32 %v1557_v5, 0.0  ;;  %1705 = vmatmul.bf16.gmra.mxu2 %v4674_v39  ;;  %v3788_v37 = vor.u32 %v4168_v30, %v3787_v2  ;;  %v3779_v39 = vld [vmem:[#allocation9 + $0x20] sm:$0xf]  ;;  %v3956_v60 = vor.u32 %v4210_v57, %v3955_v36  ;;  %v3909_v7 = vld [vmem:[#allocation9 + $0x128] sm:$0xf0] }
 0x211   :  { %1754 = vmatmul.bf16.gmra.mxu3 %v4676_v40  ;;  %2504 = vmatpush.bf16.msrb.mxu1 %v3864_v47  ;;  %v3780_v12 = vor.u32 %v4166_v53, %v3779_v39  ;;  %v4016_v5 = vor.u32 %v4223_v41, %v4013_v32  ;;  %v3912_v18 = vor.u32 %v4197_v51, %v3909_v7  ;;  %v4195_v2 = vld [vmem:[#allocation9 + $0x114] sm:$0xf]  ;;  %v3901_v30 = vld [vmem:[#allocation9 + $0x118] sm:$0xf0]  ;;  %v4193_v53 = vld [vmem:[#allocation9 + $0x104] sm:$0xf] }
 0x212   :  { %v4893_v25 = vpack.c.bf16 %v1808_v3, %v1804_v63  ;;  %2260 = vmatpush.bf16.msra.mxu0 %v3788_v37  ;;  %2554 = vmatpush.bf16.msrb.mxu2 %v3920_v58  ;;  %v3772_v47 = vor.u32 %v4164_v43, %v3771_v42  ;;  %v4221_v63 = vld [vmem:[#allocation9 + $0x1e4] sm:$0xf]  ;;  %v3904_v11 = vor.u32 %v4195_v2, %v3901_v30  ;;  %v4219_v36 = vld [vmem:[#allocation9 + $0x1d4] sm:$0xf]  ;;  %v3997_v57 = vld [vmem:[#allocation9 + $0x1d8] sm:$0xf0] }
 0x213   :  { %v1510_v48 = vpop.f32.mrf.mxu2  ;;  %2410 = vmatpush.bf16.msra.mxu3 %v3956_v60  ;;  %v3764_v39 = vor.u32 %v4162_v9, %v3763_v27  ;;  %v4000_v55 = vor.u32 %v4219_v36, %v3997_v57  ;;  %v4217_v51 = vld [vmem:[#allocation9 + $0x1c4] sm:$0xf]  ;;  %v3981_v41 = vld [vmem:[#allocation9 + $0x1b8] sm:$0xf0] }
 0x214   :  { %v1511_v50 = vadd.f32 %v1510_v48, %v1462_v1  ;;  %v1559_v34 = vpop.f32.mrf.mxu3  ;;  %v4897_v15 = vpop.f32.mrf.mxu1  ;;  %v3837_v1 = vld [vmem:[#allocation9 + $0x98] sm:$0xf0]  ;;  %v3829_v48 = vld [vmem:[#allocation9 + $0x88] sm:$0xf0] }
 0x215   :  { %v4895_v40 = vpop.f32.mrf.mxu0  ;;  %2505 = vmatpush.bf16.msrb.mxu1 %v3856_v38  ;;  %v3840_v26 = vor.u32 %v4179_v44, %v3837_v1  ;;  %v4008_v38 = vor.u32 %v4221_v63, %v4005_v4  ;;  %v4211_v1 = vld [vmem:[#allocation9 + $0x194] sm:$0xf]  ;;  %v4209_v63 = vld [vmem:[#allocation9 + $0x184] sm:$0xf] }
 0x216   :  { %v4899_v56 = vadd.f32 %v1559_v34, %v1511_v50  ;;  %2261 = vmatpush.bf16.msra.mxu0 %v3780_v12  ;;  %2555 = vmatpush.bf16.msrb.mxu2 %v3912_v18  ;;  %v3893_v50 = vld [vmem:[#allocation9 + $0x108] sm:$0xf0]  ;;  %v3832_v34 = vor.u32 %v4177_v19, %v3829_v48  ;;  %v4924_v48 = vperm.slane %v4840_v35, 3 }
 0x217   :  { %2599 = vmatpush.bf16.msrb.mxu3 %v4016_v5  ;;  %v3896_v58 = vor.u32 %v4193_v53, %v3893_v50  ;;  %v3973_v5 = vld [vmem:[#allocation9 + $0x1a8] sm:$0xf0] }
 0x219   :  { %2506 = vmatpush.bf16.msrb.mxu1 %v3848_v10  ;;  %v4213_v10 = vld [vmem:[#allocation9 + $0x1a4] sm:$0xf] }
 0x21a   :  { %2262 = vmatpush.bf16.msra.mxu0 %v3772_v47  ;;  %2556 = vmatpush.bf16.msrb.mxu2 %v3904_v11  ;;  %v3976_v44 = vor.u32 %v4213_v10, %v3973_v5  ;;  %v3965_v47 = vld [vmem:[#allocation9 + $0x198] sm:$0xf0] }
 0x21b   :  { %v4901_v3 = vpop.f32.mrf.mxu2  ;;  %2600 = vmatpush.bf16.msrb.mxu3 %v4008_v38  ;;  %v3968_v2 = vor.u32 %v4211_v1, %v3965_v47 }
 0x21c   :  { %v4903_v28 = vpop.f32.mrf.mxu3  ;;  %v4907_v52 = vpop.f32.mrf.mxu1 }
 0x21d   :  { %v4905_v37 = vpop.f32.mrf.mxu0  ;;  %2507 = vmatpush.bf16.msrb.mxu1 %v3840_v26  ;;  %v3957_v26 = vld [vmem:[#allocation9 + $0x188] sm:$0xf0] }
 0x21e   :  { %2263 = vmatpush.bf16.msra.mxu0 %v3764_v39  ;;  %2557 = vmatpush.bf16.msrb.mxu2 %v3896_v58  ;;  %v3960_v11 = vor.u32 %v4209_v63, %v3957_v26  ;;  %v1418_v58 = vadd.f32 %v4905_v37, %v4843_v31  ;;  %v5398_v26 = vld [vmem:[#allocation23_spill] sm:$0xff] }
 0x21f   :  { %1661 = vmatmul.bf16.gmra.mxu1 %v4684_v61  ;;  %2601 = vmatpush.bf16.msrb.mxu3 %v4000_v55 }
 0x220   :  { %1612 = vmatmul.bf16.gmra.mxu0 %v4682_v49  ;;  %1710 = vmatmul.bf16.gmra.mxu2 %v4686_v62  ;;  %v3989_v49 = vld [vmem:[#allocation9 + $0x1c8] sm:$0xf0]  ;;  %v4215_v62 = vld [vmem:[#allocation9 + $0x1b4] sm:$0xf] }
 0x221   :  { %1759 = vmatmul.bf16.gmra.mxu3 %v4688_v6  ;;  %2508 = vmatpush.bf16.msrb.mxu1 %v3832_v34  ;;  %v3992_v61 = vor.u32 %v4217_v51, %v3989_v49  ;;  %v3984_v6 = vor.u32 %v4215_v62, %v3981_v41  ;;  %v1415_v41 = vadd.f32 %v4895_v40, %v4843_v31 }
 0x223   :  { %v4913_v59 = vpop.f32.mrf.mxu2  ;;  %2602 = vmatpush.bf16.msrb.mxu3 %v3992_v61  ;;  %v1464_v63 = vadd.f32 %v4897_v15, %v1415_v41 }
 0x224   :  { %v4915_v12 = vpop.f32.mrf.mxu3  ;;  %v1468_v7 = vpop.f32.mrf.mxu1 }
 0x225   :  { %v1419_v60 = vpop.f32.mrf.mxu0 }
 0x226   :  { %v1420_v36 = vadd.f32 %v1419_v60, %v4843_v31  ;;  %v1467_v60 = vadd.f32 %v4907_v52, %v1418_v58 }
 0x227   :  { %2603 = vmatpush.bf16.msrb.mxu3 %v3984_v6 }
 0x228   :  { %v1469_v6 = vadd.f32 %v1468_v7, %v1420_v36  ;;  %v1516_v7 = vadd.f32 %v4913_v59, %v1467_v60  ;;  %v5403_v59 = vld [vmem:[#allocation26_spill] sm:$0xff]  ;;  %v5404_v36 = vld [vmem:[#allocation21_spill] sm:$0xff] }
 0x22b   :  { %v1517_v32 = vpop.f32.mrf.mxu2  ;;  %2604 = vmatpush.bf16.msrb.mxu3 %v3976_v44 }
 0x22c   :  { %v4917_v42 = vpop.f32.mrf.mxu3  ;;  %v1471_v18 = vpop.f32.mrf.mxu1 }
 0x22d   :  { %v1422_v43 = vpop.f32.mrf.mxu0 }
 0x22e   :  { %v1423_v38 = vadd.f32 %v1422_v43, %v4843_v31  ;;  %v1518_v43 = vadd.f32 %v1517_v32, %v1469_v6 }
 0x22f   :  { %1666 = vmatmul.bf16.gmra.mxu1 %v4696_v22  ;;  %2605 = vmatpush.bf16.msrb.mxu3 %v3968_v2 }
 0x230   :  { %1617 = vmatmul.bf16.gmra.mxu0 %v4694_v21  ;;  %1715 = vmatmul.bf16.gmra.mxu2 %v4698_v23  ;;  %v1472_v55 = vadd.f32 %v1471_v18, %v1423_v38  ;;  %v1567_v32 = vadd.f32 %v4917_v42, %v1518_v43 }
 0x231   :  { %1764 = vmatmul.bf16.gmra.mxu3 %v4700_v24 }
 0x233   :  { %v1520_v30 = vpop.f32.mrf.mxu2  ;;  %2606 = vmatpush.bf16.msrb.mxu3 %v3960_v11 }
 0x234   :  { %v1569_v4 = vpop.f32.mrf.mxu3  ;;  %v1473_v9 = vpop.f32.mrf.mxu1  ;;  %v1521_v10 = vadd.f32 %v1520_v30, %v1472_v55  ;;  %v1513_v30 = vadd.f32 %v4901_v3, %v1464_v63 }
 0x235   :  { %v1424_v27 = vpop.f32.mrf.mxu0 }
 0x236   :  { %v1425_v39 = vadd.f32 %v1424_v27, %v4843_v31  ;;  %v5399_v31 = vld [vmem:[#allocation27_spill] sm:$0xff]  ;;  %v1570_v27 = vadd.f32 %v1569_v4, %v1521_v10  ;;  %v1565_v4 = vadd.f32 %v4915_v12, %v1516_v7  ;;  %v1562_v38 = vadd.f32 %v4903_v28, %v1513_v30 }
 0x238   :  { %v1474_v51 = vadd.f32 %v1473_v9, %v1425_v39  ;;  %v5400_v9 = vld [vmem:[#allocation20_spill] sm:$0xff]  ;;  %v1828_v3 = vmax.f32 %v1570_v27, 0.0  ;;  %v1824_v39 = vmax.f32 %v1567_v32, 0.0  ;;  %v1820_v12 = vmax.f32 %v1565_v4, 0.0 }
 0x23b   :  { %v1522_v21 = vpop.f32.mrf.mxu2 }
 0x23c   :  { %v1571_v19 = vpop.f32.mrf.mxu3  ;;  %v1632_v23 = vpop.f32.mrf.mxu1  ;;  %v1523_v61 = vadd.f32 %v1522_v21, %v1474_v51  ;;  %v1816_v51 = vmax.f32 %v1562_v38, 0.0 }
 0x23d   :  { %v1583_v22 = vpop.f32.mrf.mxu0 }
 0x23e   :  { %v1584_v24 = vadd.f32 %v1583_v22, %v4924_v48  ;;  %v1572_v18 = vadd.f32 %v1571_v19, %v1523_v61  ;;  %v5401_v22 = vld [vmem:[#allocation24_spill] sm:$0xff]  ;;  %v1812_v61 = vmax.f32 %v4899_v56, 0.0 }
 0x23f   :  { %2313 = vmatmul.bf16.vlgmr.msra.gmra.mxu1 %v4789_v45 }
 0x240   :  { %2264 = vmatmul.bf16.vlgmr.msra.gmra.mxu0 %v4722_v13  ;;  %2362 = vmatmul.bf16.vlgmr.msra.gmra.mxu2 %v4858_v46  ;;  %v1633_v53 = vadd.f32 %v1632_v23, %v1584_v24  ;;  %v1832_v11 = vmax.f32 %v1572_v18, 0.0  ;;  %v5402_v23 = vld [vmem:[#allocation22_spill] sm:$0xff] }
 0x241   :  { %3044 = vmatpush.bf16.msra.mxu1 %v4781_v29  ;;  %3057 = vmatpush.bf16.msra.mxu2 %v4850_v16 }
 0x243   :  { %v1681_v35 = vpop.f32.mrf.mxu2 }
 0x244   :  { %v1730_v50 = vpop.f32.mrf.mxu3  ;;  %v1634_v57 = vpop.f32.mrf.mxu1  ;;  %v1682_v62 = vadd.f32 %v1681_v35, %v1633_v53  ;;  %v4961_v35 = vpack.c.bf16 %v1832_v11, %v1828_v3 }
 0x245   :  { %v1585_v34 = vpop.f32.mrf.mxu0  ;;  %3045 = vmatpush.bf16.msra.mxu1 %v4770_v8  ;;  %3058 = vmatpush.bf16.msra.mxu2 %v4837_v20 }
 0x246   :  { %v1586_v49 = vadd.f32 %v1585_v34, %v4924_v48  ;;  %v1731_v44 = vadd.f32 %v1730_v50, %v1682_v62 }
 0x248   :  { %v1635_v5 = vadd.f32 %v1634_v57, %v1586_v49  ;;  %v1773_v21 = vmax.f32 %v1731_v44, 0.0  ;;  %v5405_v57 = vld [vmem:[#allocation25_spill] sm:$0xff]  ;;  %v4968_v49 = vpack.c.bf16 %v1824_v39, %v1820_v12 }
 0x249   :  { %3046 = vmatpush.bf16.msra.mxu1 %v4762_v33  ;;  %3059 = vmatpush.bf16.msra.mxu2 %v4829_v17 }
 0x24b   :  { %v1683_v37 = vpop.f32.mrf.mxu2 }
 0x24c   :  { %v1684_v1 = vadd.f32 %v1683_v37, %v1635_v5  ;;  %v1732_v47 = vpop.f32.mrf.mxu3  ;;  %v1637_v40 = vpop.f32.mrf.mxu1  ;;  %v4974_v5 = vpack.c.bf16 %v1816_v51, %v1812_v61 }
 0x24d   :  { %v1588_v2 = vpop.f32.mrf.mxu0  ;;  %3047 = vmatpush.bf16.msra.mxu1 %v5398_v26  ;;  %3060 = vmatpush.bf16.msra.mxu2 %v5399_v31 }
 0x24e   :  { %v1733_v52 = vadd.f32 %v1732_v47, %v1684_v1  ;;  %v1589_v15 = vadd.f32 %v1588_v2, %v4924_v48 }
 0x24f   :  { %2318 = vmatmul.bf16.gmra.mxu1 %v5401_v22 }
 0x250   :  { %2269 = vmatmul.bf16.gmra.mxu0 %v5400_v9  ;;  %v1777_v19 = vmax.f32 %v1733_v52, 0.0  ;;  %2367 = vmatmul.bf16.gmra.mxu2 %v4866_v14  ;;  %v1638_v53 = vadd.f32 %v1637_v40, %v1589_v15 }
 0x251   :  { %3048 = vmatpush.bf16.msra.mxu1 %v5402_v23  ;;  %3061 = vmatpush.bf16.msra.mxu2 %v5403_v59 }
 0x252   :  { %v4958_v24 = vpack.c.bf16 %v1777_v19, %v1773_v21 }
 0x253   :  { %v1686_v42 = vpop.f32.mrf.mxu2 }
 0x254   :  { %v1735_v50 = vpop.f32.mrf.mxu3  ;;  %2411 = vmatmul.bf16.vlgmr.msra.gmra.mxu3 %v4958_v24  ;;  %v1639_v58 = vpop.f32.mrf.mxu1  ;;  %v1687_v28 = vadd.f32 %v1686_v42, %v1638_v53 }
 0x255   :  { %v1590_v34 = vpop.f32.mrf.mxu0  ;;  %3049 = vmatpush.bf16.msra.mxu1 %v5404_v36  ;;  %3062 = vmatpush.bf16.msra.mxu2 %v5405_v57 }
 0x256   :  { %3070 = vmatpush.bf16.msra.mxu3 %v4961_v35  ;;  %v1591_v55 = vadd.f32 %v1590_v34, %v4924_v48  ;;  %v1736_v6 = vadd.f32 %v1735_v50, %v1687_v28 }
 0x258   :  { %v1640_v62 = vadd.f32 %v1639_v58, %v1591_v55  ;;  %v1781_v56 = vmax.f32 %v1736_v6, 0.0 }
 0x259   :  { %3050 = vmatpush.bf16.msra.mxu1 %v5400_v9  ;;  %3063 = vmatpush.bf16.msra.mxu2 %v5401_v22 }
 0x25a   :  { %3071 = vmatpush.bf16.msra.mxu3 %v4968_v49 }
 0x25b   :  { %v1688_v41 = vpop.f32.mrf.mxu2 }
 0x25c   :  { %v1689_v60 = vadd.f32 %v1688_v41, %v1640_v62  ;;  %v1737_v10 = vpop.f32.mrf.mxu3  ;;  %v1642_v37 = vpop.f32.mrf.mxu1  ;;  %v4175_v62 = vld [vmem:[#allocation9 + $0x74] sm:$0xf]  ;;  %v3821_v41 = vld [vmem:[#allocation9 + $0x78] sm:$0xf0] }
 0x25d   :  { %v1593_v43 = vpop.f32.mrf.mxu0  ;;  %3051 = vmatpush.bf16.msra.mxu1 %v4722_v13  ;;  %3064 = vmatpush.bf16.msra.mxu2 %v4789_v45  ;;  %v3824_v6 = vor.u32 %v4175_v62, %v3821_v41 }
 0x25e   :  { %v1738_v18 = vadd.f32 %v1737_v10, %v1689_v60  ;;  %3072 = vmatpush.bf16.msra.mxu3 %v4974_v5  ;;  %v1594_v1 = vadd.f32 %v1593_v43, %v4924_v48 }
 0x25f   :  { %2323 = vmatmul.bf16.gmra.mxu1 %v5405_v57  ;;  %2452 = vmatpush.bf16.msrb.mxu0 %v3824_v6 }
 0x260   :  { %2274 = vmatmul.bf16.gmra.mxu0 %v5404_v36  ;;  %v1785_v44 = vmax.f32 %v1738_v18, 0.0  ;;  %2372 = vmatmul.bf16.gmra.mxu2 %v4874_v0  ;;  %v1643_v63 = vadd.f32 %v1642_v37, %v1594_v1 }
 0x262   :  { %3073 = vmatpush.bf16.msra.mxu3 %v4893_v25  ;;  %v4984_v47 = vpack.c.bf16 %v1785_v44, %v1781_v56 }
 0x263   :  { %v1691_v2 = vpop.f32.mrf.mxu2 }
 0x264   :  { %v1740_v40 = vpop.f32.mrf.mxu3  ;;  %2416 = vmatmul.bf16.gmra.mxu3 %v4984_v47  ;;  %v1644_v27 = vpop.f32.mrf.mxu1  ;;  %v1692_v30 = vadd.f32 %v1691_v2, %v1643_v63 }
 0x265   :  { %v1595_v7 = vpop.f32.mrf.mxu0 }
 0x266   :  { %3074 = vmatpush.bf16.msra.mxu3 %v4882_v54  ;;  %v1596_v52 = vadd.f32 %v1595_v7, %v4924_v48  ;;  %v1741_v21 = vadd.f32 %v1740_v40, %v1692_v30 }
 0x268   :  { %v1645_v32 = vadd.f32 %v1644_v27, %v1596_v52  ;;  %v1789_v38 = vmax.f32 %v1741_v21, 0.0  ;;  %v3813_v21 = vld [vmem:[#allocation9 + $0x68] sm:$0xf0] }
 0x26a   :  { %3075 = vmatpush.bf16.msra.mxu3 %v4874_v0 }
 0x26b   :  { %v1693_v11 = vpop.f32.mrf.mxu2 }
 0x26c   :  { %v1694_v19 = vadd.f32 %v1693_v11, %v1645_v32  ;;  %v1742_v15 = vpop.f32.mrf.mxu3  ;;  %v1647_v3 = vpop.f32.mrf.mxu1  ;;  %v4173_v11 = vld [vmem:[#allocation9 + $0x64] sm:$0xf] }
 0x26d   :  { %v1598_v4 = vpop.f32.mrf.mxu0 }
 0x26e   :  { %v1743_v42 = vadd.f32 %v1742_v15, %v1694_v19  ;;  %3076 = vmatpush.bf16.msra.mxu3 %v4866_v14  ;;  %v1599_v53 = vadd.f32 %v1598_v4, %v4924_v48  ;;  %v3816_v15 = vor.u32 %v4173_v11, %v3813_v21 }
 0x26f   :  { %2328 = vmatmul.bf16.gmra.mxu1 %v5403_v59 }
 0x270   :  { %2279 = vmatmul.bf16.gmra.mxu0 %v5402_v23  ;;  %v1793_v39 = vmax.f32 %v1743_v42, 0.0  ;;  %2377 = vmatmul.bf16.gmra.mxu2 %v4882_v54  ;;  %v1648_v58 = vadd.f32 %v1647_v3, %v1599_v53  ;;  %v4171_v42 = vld [vmem:[#allocation9 + $0x54] sm:$0xf] }
 0x271   :  { %2453 = vmatpush.bf16.msrb.mxu0 %v3816_v15  ;;  %v3773_v15 = vld [vmem:[#allocation9 + $0x18] sm:$0xf0] }
 0x272   :  { %3077 = vmatpush.bf16.msra.mxu3 %v4858_v46  ;;  %v4996_v50 = vpack.c.bf16 %v1793_v39, %v1789_v38  ;;  %v3805_v38 = vld [vmem:[#allocation9 + $0x58] sm:$0xf0] }
 0x273   :  { %v1696_v34 = vpop.f32.mrf.mxu2  ;;  %v3808_v39 = vor.u32 %v4171_v42, %v3805_v38 }
 0x274   :  { %v1745_v12 = vpop.f32.mrf.mxu3  ;;  %2421 = vmatmul.bf16.gmra.mxu3 %v4996_v50  ;;  %v1649_v51 = vpop.f32.mrf.mxu1  ;;  %v1697_v61 = vadd.f32 %v1696_v34, %v1648_v58 }
 0x275   :  { %v1600_v55 = vpop.f32.mrf.mxu0  ;;  %2454 = vmatpush.bf16.msrb.mxu0 %v3808_v39 }
 0x276   :  { %v1601_v28 = vadd.f32 %v1600_v55, %v4924_v48  ;;  %v1746_v43 = vadd.f32 %v1745_v12, %v1697_v61  ;;  %v3797_v61 = vld [vmem:[#allocation9 + $0x48] sm:$0xf0] }
 0x278   :  { %v1650_v60 = vadd.f32 %v1649_v51, %v1601_v28  ;;  %v1797_v2 = vmax.f32 %v1746_v43, 0.0  ;;  %v4169_v28 = vld [vmem:[#allocation9 + $0x44] sm:$0xf] }
 0x279   :  { %v3800_v41 = vor.u32 %v4169_v28, %v3797_v61 }
 0x27b   :  { %v1698_v10 = vpop.f32.mrf.mxu2  ;;  %2455 = vmatpush.bf16.msrb.mxu0 %v3800_v41 }
 0x27c   :  { %v1699_v37 = vadd.f32 %v1698_v10, %v1650_v60  ;;  %v1747_v18 = vpop.f32.mrf.mxu3  ;;  %v1652_v44 = vpop.f32.mrf.mxu1 }
 0x27d   :  { %v1603_v56 = vpop.f32.mrf.mxu0 }
 0x27e   :  { %v1748_v1 = vadd.f32 %v1747_v18, %v1699_v37  ;;  %v1604_v40 = vadd.f32 %v1603_v56, %v4924_v48  ;;  %v4167_v37 = vld [vmem:[#allocation9 + $0x34] sm:$0xf]  ;;  %v3789_v18 = vld [vmem:[#allocation9 + $0x38] sm:$0xf0] }
 0x27f   :  { %2333 = vmatmul.bf16.gmra.mxu1 %v5399_v31  ;;  %v3792_v56 = vor.u32 %v4167_v37, %v3789_v18 }
 0x280   :  { %2284 = vmatmul.bf16.gmra.mxu0 %v5398_v26  ;;  %v1801_v63 = vmax.f32 %v1748_v1, 0.0  ;;  %2382 = vmatmul.bf16.gmra.mxu2 %v4893_v25  ;;  %v1653_v52 = vadd.f32 %v1652_v44, %v1604_v40 }
 0x281   :  { %2456 = vmatpush.bf16.msrb.mxu0 %v3792_v56 }
 0x282   :  { %v5004_v7 = vpack.c.bf16 %v1801_v63, %v1797_v2 }
 0x283   :  { %v1701_v27 = vpop.f32.mrf.mxu2 }
 0x284   :  { %v1750_v30 = vpop.f32.mrf.mxu3  ;;  %2426 = vmatmul.bf16.gmra.mxu3 %v5004_v7  ;;  %v1654_v19 = vpop.f32.mrf.mxu1  ;;  %v1702_v3 = vadd.f32 %v1701_v27, %v1653_v52  ;;  %v4165_v27 = vld [vmem:[#allocation9 + $0x24] sm:$0xf]  ;;  %v3781_v52 = vld [vmem:[#allocation9 + $0x28] sm:$0xf0] }
 0x285   :  { %v1605_v32 = vpop.f32.mrf.mxu0 }
 0x286   :  { %v1606_v4 = vadd.f32 %v1605_v32, %v4924_v48  ;;  %v1751_v58 = vadd.f32 %v1750_v30, %v1702_v3  ;;  %v3784_v32 = vor.u32 %v4165_v27, %v3781_v52 }
 0x288   :  { %v1655_v53 = vadd.f32 %v1654_v19, %v1606_v4  ;;  %v1805_v60 = vmax.f32 %v1751_v58, 0.0  ;;  %v4163_v19 = vld [vmem:[#allocation9 + $0x14] sm:$0xf]  ;;  %2457 = vmatpush.bf16.msrb.mxu0 %v3784_v32  ;;  %v4161_v58 = vld [vmem:[#allocation9 + $0x4] sm:$0xf] }
 0x289   :  { %v3776_v4 = vor.u32 %v4163_v19, %v3773_v15 }
 0x28b   :  { %v1703_v34 = vpop.f32.mrf.mxu2 }
 0x28c   :  { %v1704_v12 = vadd.f32 %v1703_v34, %v1655_v53  ;;  %v1752_v55 = vpop.f32.mrf.mxu3  ;;  %v1657_v62 = vpop.f32.mrf.mxu1  ;;  %2458 = vmatpush.bf16.msrb.mxu0 %v3776_v4 }
 0x28d   :  { %v1608_v51 = vpop.f32.mrf.mxu0 }
 0x28e   :  { %v1753_v6 = vadd.f32 %v1752_v55, %v1704_v12  ;;  %v1609_v43 = vadd.f32 %v1608_v51, %v4924_v48  ;;  %v3765_v12 = vld [vmem:[#allocation9 + $0x8] sm:$0xf0] }
 0x28f   :  { %2338 = vmatmul.bf16.gmra.mxu1 %v4829_v17  ;;  %v3768_v51 = vor.u32 %v4161_v58, %v3765_v12  ;;  %v5035_v58 = vld [vmem:[%s5375_s4] sm:$0x3] }
 0x290   :  { %2289 = vmatmul.bf16.gmra.mxu0 %v4762_v33  ;;  %v1809_v10 = vmax.f32 %v1753_v6, 0.0  ;;  %2387 = vmatmul.bf16.gmra.mxu2 %v4974_v5  ;;  %v1658_v2 = vadd.f32 %v1657_v62, %v1609_v43 }
 0x291   :  { %2459 = vmatpush.bf16.msrb.mxu0 %v3768_v51 }
 0x292   :  { %v5012_v44 = vpack.c.bf16 %v1809_v10, %v1805_v60 }
 0x293   :  { %v1706_v1 = vpop.f32.mrf.mxu2 }
 0x294   :  { %v1755_v63 = vpop.f32.mrf.mxu3  ;;  %2431 = vmatmul.bf16.gmra.mxu3 %v5012_v44  ;;  %v1659_v30 = vpop.f32.mrf.mxu1  ;;  %v1707_v21 = vadd.f32 %v1706_v1, %v1658_v2 }
 0x295   :  { %v1610_v40 = vpop.f32.mrf.mxu0 }
 0x296   :  { %v1611_v11 = vadd.f32 %v1610_v40, %v4924_v48  ;;  %v1756_v38 = vadd.f32 %v1755_v63, %v1707_v21 }
 0x298   :  { %v1660_v3 = vadd.f32 %v1659_v30, %v1611_v11  ;;  %v1813_v61 = vmax.f32 %v1756_v38, 0.0 }
 0x29b   :  { %v1708_v42 = vpop.f32.mrf.mxu2 }
 0x29c   :  { %v1709_v39 = vadd.f32 %v1708_v42, %v1660_v3  ;;  %v1757_v53 = vpop.f32.mrf.mxu3  ;;  %v1662_v55 = vpop.f32.mrf.mxu1 }
 0x29d   :  { %v1613_v34 = vpop.f32.mrf.mxu0 }
 0x29e   :  { %v1758_v28 = vadd.f32 %v1757_v53, %v1709_v39  ;;  %v1614_v41 = vadd.f32 %v1613_v34, %v4924_v48 }
 0x29f   :  { %2343 = vmatmul.bf16.gmra.mxu1 %v4837_v20 }
 0x2a0   :  { %2294 = vmatmul.bf16.gmra.mxu0 %v4770_v8  ;;  %v1817_v62 = vmax.f32 %v1758_v28, 0.0  ;;  %2392 = vmatmul.bf16.gmra.mxu2 %v4968_v49  ;;  %v1663_v10 = vadd.f32 %v1662_v55, %v1614_v41  ;;  %v5038_v55 = vperm.slane %v5035_v58, 0 }
 0x2a2   :  { %v5020_v6 = vpack.c.bf16 %v1817_v62, %v1813_v61 }
 0x2a3   :  { %v1711_v60 = vpop.f32.mrf.mxu2 }
 0x2a4   :  { %v1760_v43 = vpop.f32.mrf.mxu3  ;;  %2436 = vmatmul.bf16.gmra.mxu3 %v5020_v6  ;;  %v1664_v18 = vpop.f32.mrf.mxu1  ;;  %v1712_v1 = vadd.f32 %v1711_v60, %v1663_v10 }
 0x2a5   :  { %v1615_v37 = vpop.f32.mrf.mxu0 }
 0x2a6   :  { %v1616_v56 = vadd.f32 %v1615_v37, %v4924_v48  ;;  %v1761_v40 = vadd.f32 %v1760_v43, %v1712_v1 }
 0x2a8   :  { %v1665_v2 = vadd.f32 %v1664_v18, %v1616_v56  ;;  %v1821_v21 = vmax.f32 %v1761_v40, 0.0 }
 0x2ab   :  { %v1713_v63 = vpop.f32.mrf.mxu2 }
 0x2ac   :  { %v1714_v27 = vadd.f32 %v1713_v63, %v1665_v2  ;;  %v1762_v52 = vpop.f32.mrf.mxu3  ;;  %v1667_v32 = vpop.f32.mrf.mxu1 }
 0x2ad   :  { %v1618_v30 = vpop.f32.mrf.mxu0 }
 0x2ae   :  { %v1763_v11 = vadd.f32 %v1762_v52, %v1714_v27  ;;  %v1619_v15 = vadd.f32 %v1618_v30, %v4924_v48 }
 0x2af   :  { %2348 = vmatmul.bf16.gmra.mxu1 %v4850_v16 }
 0x2b0   :  { %2299 = vmatmul.bf16.gmra.mxu0 %v4781_v29  ;;  %v1825_v19 = vmax.f32 %v1763_v11, 0.0  ;;  %2397 = vmatmul.bf16.gmra.mxu2 %v4961_v35  ;;  %v1668_v42 = vadd.f32 %v1667_v32, %v1619_v15 }
 0x2b2   :  { %v5028_v4 = vpack.c.bf16 %v1825_v19, %v1821_v21 }
 0x2b3   :  { %v1716_v3 = vpop.f32.mrf.mxu2 }
 0x2b4   :  { %v1765_v38 = vpop.f32.mrf.mxu3  ;;  %2441 = vmatmul.bf16.gmra.mxu3 %v5028_v4  ;;  %v1669_v53 = vpop.f32.mrf.mxu1  ;;  %v1717_v12 = vadd.f32 %v1716_v3, %v1668_v42 }
 0x2b5   :  { %v1620_v39 = vpop.f32.mrf.mxu0 }
 0x2b6   :  { %v1621_v34 = vadd.f32 %v1620_v39, %v4924_v48  ;;  %v1766_v61 = vadd.f32 %v1765_v38, %v1717_v12 }
 0x2b8   :  { %v1670_v51 = vadd.f32 %v1669_v53, %v1621_v34  ;;  %v1829_v18 = vmax.f32 %v1766_v61, 0.0 }
 0x2bb   :  { %v1718_v28 = vpop.f32.mrf.mxu2 }
 0x2bc   :  { %v1719_v62 = vadd.f32 %v1718_v28, %v1670_v51  ;;  %v1767_v60 = vpop.f32.mrf.mxu3  ;;  %v2314_v43 = vpop.f32.mrf.mxu1 }
 0x2bd   :  { %v2265_v41 = vpop.f32.mrf.mxu0 }
 0x2be   :  { %v2266_v10 = vadd.f32 %v2265_v41, %v5038_v55  ;;  %v1768_v37 = vadd.f32 %v1767_v60, %v1719_v62 }
 0x2bf   :  { %2509 = vmatmul.bf16.vlgmr.msrb.gmra.mxu1 %v4789_v45 }
 0x2c0   :  { %v2315_v48 = vadd.f32 %v2314_v43, %v2266_v10  ;;  %2460 = vmatmul.bf16.vlgmr.msrb.gmra.mxu0 %v4722_v13  ;;  %v1833_v56 = vmax.f32 %v1768_v37, 0.0  ;;  %2558 = vmatmul.bf16.vlgmr.msrb.gmra.mxu2 %v4858_v46 }
 0x2c2   :  { %v5044_v1 = vpack.c.bf16 %v1833_v56, %v1829_v18 }
 0x2c3   :  { %v2363_v2 = vpop.f32.mrf.mxu2 }
 0x2c4   :  { %v2364_v63 = vadd.f32 %v2363_v2, %v2315_v48  ;;  %2446 = vmatmul.bf16.gmra.mxu3 %v5044_v1  ;;  %v2316_v52 = vpop.f32.mrf.mxu1 }
 0x2c5   :  { %v2267_v40 = vpop.f32.mrf.mxu0 }
 0x2c6   :  { %v2268_v27 = vadd.f32 %v2267_v40, %v5038_v55 }
 0x2c8   :  { %v2317_v30 = vadd.f32 %v2316_v52, %v2268_v27 }
 0x2cb   :  { %v2365_v32 = vpop.f32.mrf.mxu2 }
 0x2cc   :  { %v2366_v11 = vadd.f32 %v2365_v32, %v2317_v30  ;;  %v2319_v19 = vpop.f32.mrf.mxu1 }
 0x2cd   :  { %v2270_v13 = vpop.f32.mrf.mxu0 }
 0x2ce   :  { %v2271_v21 = vadd.f32 %v2270_v13, %v5038_v55 }
 0x2cf   :  { %2514 = vmatmul.bf16.gmra.mxu1 %v5401_v22 }
 0x2d0   :  { %v2320_v45 = vadd.f32 %v2319_v19, %v2271_v21  ;;  %2465 = vmatmul.bf16.gmra.mxu0 %v5400_v9  ;;  %2563 = vmatmul.bf16.gmra.mxu2 %v4866_v14 }
 0x2d3   :  { %v2368_v46 = vpop.f32.mrf.mxu2 }
 0x2d4   :  { %v2369_v15 = vadd.f32 %v2368_v46, %v2320_v45  ;;  %2607 = vmatmul.bf16.vlgmr.msrb.gmra.mxu3 %v4958_v24  ;;  %v2321_v38 = vpop.f32.mrf.mxu1 }
 0x2d5   :  { %v2272_v3 = vpop.f32.mrf.mxu0 }
 0x2d6   :  { %v2273_v42 = vadd.f32 %v2272_v3, %v5038_v55 }
 0x2d7   :  { %v2412_v53 = vpop.f32.mrf.mxu3 }
 0x2d8   :  { %v2322_v39 = vadd.f32 %v2321_v38, %v2273_v42  ;;  %v5054_v34 = vadd.f32 %v2412_v53, %v2364_v63 }
 0x2db   :  { %v2370_v12 = vpop.f32.mrf.mxu2 }
 0x2dc   :  { %v2371_v51 = vadd.f32 %v2370_v12, %v2322_v39  ;;  %v2324_v22 = vpop.f32.mrf.mxu1 }
 0x2dd   :  { %v2275_v28 = vpop.f32.mrf.mxu0 }
 0x2de   :  { %v2276_v9 = vadd.f32 %v2275_v28, %v5038_v55 }
 0x2df   :  { %v2414_v14 = vpop.f32.mrf.mxu3  ;;  %2519 = vmatmul.bf16.gmra.mxu1 %v5405_v57 }
 0x2e0   :  { %v2325_v61 = vadd.f32 %v2324_v22, %v2276_v9  ;;  %2470 = vmatmul.bf16.gmra.mxu0 %v5404_v36  ;;  %v5058_v62 = vadd.f32 %v2414_v14, %v2366_v11  ;;  %2568 = vmatmul.bf16.gmra.mxu2 %v4874_v0 }
 0x2e3   :  { %v2373_v41 = vpop.f32.mrf.mxu2 }
 0x2e4   :  { %v2374_v60 = vadd.f32 %v2373_v41, %v2325_v61  ;;  %2612 = vmatmul.bf16.gmra.mxu3 %v4984_v47  ;;  %v2326_v37 = vpop.f32.mrf.mxu1 }
 0x2e5   :  { %v2277_v10 = vpop.f32.mrf.mxu0 }
 0x2e6   :  { %v2278_v43 = vadd.f32 %v2277_v10, %v5038_v55 }
 0x2e7   :  { %v2417_v18 = vpop.f32.mrf.mxu3 }
 0x2e8   :  { %v2327_v48 = vadd.f32 %v2326_v37, %v2278_v43  ;;  %v5064_v56 = vadd.f32 %v2417_v18, %v2369_v15 }
 0x2eb   :  { %v2375_v2 = vpop.f32.mrf.mxu2 }
 0x2ec   :  { %v2376_v36 = vadd.f32 %v2375_v2, %v2327_v48  ;;  %v2329_v57 = vpop.f32.mrf.mxu1 }
 0x2ed   :  { %v2280_v63 = vpop.f32.mrf.mxu0 }
 0x2ee   :  { %v2281_v40 = vadd.f32 %v2280_v63, %v5038_v55 }
 0x2ef   :  { %v2419_v0 = vpop.f32.mrf.mxu3  ;;  %2524 = vmatmul.bf16.gmra.mxu1 %v5403_v59 }
 0x2f0   :  { %v2330_v27 = vadd.f32 %v2329_v57, %v2281_v40  ;;  %2475 = vmatmul.bf16.gmra.mxu0 %v5402_v23  ;;  %v5068_v52 = vadd.f32 %v2419_v0, %v2371_v51  ;;  %2573 = vmatmul.bf16.gmra.mxu2 %v4882_v54 }
 0x2f3   :  { %v2378_v30 = vpop.f32.mrf.mxu2 }
 0x2f4   :  { %v2379_v32 = vadd.f32 %v2378_v30, %v2330_v27  ;;  %2617 = vmatmul.bf16.gmra.mxu3 %v4996_v50  ;;  %v2331_v21 = vpop.f32.mrf.mxu1 }
 0x2f5   :  { %v2282_v11 = vpop.f32.mrf.mxu0 }
 0x2f6   :  { %v2283_v13 = vadd.f32 %v2282_v11, %v5038_v55 }
 0x2f7   :  { %v2422_v45 = vpop.f32.mrf.mxu3 }
 0x2f8   :  { %v2332_v19 = vadd.f32 %v2331_v21, %v2283_v13  ;;  %v5074_v46 = vadd.f32 %v2422_v45, %v2374_v60 }
 0x2fb   :  { %v2380_v15 = vpop.f32.mrf.mxu2 }
 0x2fc   :  { %v2381_v23 = vadd.f32 %v2380_v15, %v2332_v19  ;;  %v2334_v59 = vpop.f32.mrf.mxu1 }
 0x2fd   :  { %v2285_v3 = vpop.f32.mrf.mxu0 }
 0x2fe   :  { %v2286_v42 = vadd.f32 %v2285_v3, %v5038_v55 }
 0x2ff   :  { %v2424_v54 = vpop.f32.mrf.mxu3  ;;  %2529 = vmatmul.bf16.gmra.mxu1 %v5399_v31 }
 0x300   :  { %v2335_v38 = vadd.f32 %v2334_v59, %v2286_v42  ;;  %2480 = vmatmul.bf16.gmra.mxu0 %v5398_v26  ;;  %v5078_v39 = vadd.f32 %v2424_v54, %v2376_v36  ;;  %2578 = vmatmul.bf16.gmra.mxu2 %v4893_v25 }
 0x303   :  { %v2383_v53 = vpop.f32.mrf.mxu2 }
 0x304   :  { %v2384_v12 = vadd.f32 %v2383_v53, %v2335_v38  ;;  %2622 = vmatmul.bf16.gmra.mxu3 %v5004_v7  ;;  %v5085_v28 = vpop.f32.mrf.mxu1 }
 0x305   :  { %v5083_v51 = vpop.f32.mrf.mxu0 }
 0x307   :  { %v2427_v9 = vpop.f32.mrf.mxu3 }
 0x308   :  { %v5087_v22 = vadd.f32 %v2427_v9, %v2379_v32 }
 0x30b   :  { %v5089_v61 = vpop.f32.mrf.mxu2 }
 0x30c   :  { %v5093_v14 = vpop.f32.mrf.mxu1 }
 0x30d   :  { %v5091_v26 = vpop.f32.mrf.mxu0 }
 0x30f   :  { %v2429_v31 = vpop.f32.mrf.mxu3  ;;  %2534 = vmatmul.bf16.gmra.mxu1 %v4829_v17 }
 0x310   :  { %2485 = vmatmul.bf16.gmra.mxu0 %v4762_v33  ;;  %v5096_v25 = vadd.f32 %v2429_v31, %v2381_v23  ;;  %2583 = vmatmul.bf16.gmra.mxu2 %v4974_v5 }
 0x313   :  { %v5100_v41 = vpop.f32.mrf.mxu2 }
 0x314   :  { %2627 = vmatmul.bf16.gmra.mxu3 %v5012_v44  ;;  %v2341_v10 = vpop.f32.mrf.mxu1 }
 0x315   :  { %v2292_v60 = vpop.f32.mrf.mxu0 }
 0x316   :  { %v2293_v32 = vadd.f32 %v2292_v60, %v5038_v55 }
 0x317   :  { %v2432_v43 = vpop.f32.mrf.mxu3 }
 0x318   :  { %v5103_v37 = vadd.f32 %v2432_v43, %v2384_v12  ;;  %v2342_v13 = vadd.f32 %v2341_v10, %v2293_v32 }
 0x31b   :  { %v2390_v48 = vpop.f32.mrf.mxu2 }
 0x31c   :  { %v2344_v33 = vpop.f32.mrf.mxu1  ;;  %v2391_v19 = vadd.f32 %v2390_v48, %v2342_v13 }
 0x31d   :  { %v2295_v18 = vpop.f32.mrf.mxu0 }
 0x31e   :  { %v2296_v2 = vadd.f32 %v2295_v18, %v5038_v55 }
 0x31f   :  { %v5106_v63 = vpop.f32.mrf.mxu3  ;;  %2539 = vmatmul.bf16.gmra.mxu1 %v4837_v20 }
 0x320   :  { %v2345_v36 = vadd.f32 %v2344_v33, %v2296_v2  ;;  %2490 = vmatmul.bf16.gmra.mxu0 %v4770_v8  ;;  %2588 = vmatmul.bf16.gmra.mxu2 %v4968_v49 }
 0x323   :  { %v2393_v17 = vpop.f32.mrf.mxu2 }
 0x324   :  { %v2394_v5 = vadd.f32 %v2393_v17, %v2345_v36  ;;  %2632 = vmatmul.bf16.gmra.mxu3 %v5020_v6  ;;  %v2346_v27 = vpop.f32.mrf.mxu1 }
 0x325   :  { %v2297_v40 = vpop.f32.mrf.mxu0 }
 0x326   :  { %v2298_v57 = vadd.f32 %v2297_v40, %v5038_v55 }
 0x327   :  { %v5113_v30 = vpop.f32.mrf.mxu3 }
 0x328   :  { %v2347_v0 = vadd.f32 %v2346_v27, %v2298_v57 }
 0x32b   :  { %v2395_v11 = vpop.f32.mrf.mxu2 }
 0x32c   :  { %v2396_v8 = vadd.f32 %v2395_v11, %v2347_v0  ;;  %v2349_v49 = vpop.f32.mrf.mxu1 }
 0x32d   :  { %v2300_v21 = vpop.f32.mrf.mxu0 }
 0x32e   :  { %v2301_v20 = vadd.f32 %v2300_v21, %v5038_v55 }
 0x32f   :  { %v2439_v15 = vpop.f32.mrf.mxu3  ;;  %2544 = vmatmul.bf16.gmra.mxu1 %v4850_v16 }
 0x330   :  { %v2350_v45 = vadd.f32 %v2349_v49, %v2301_v20  ;;  %2495 = vmatmul.bf16.gmra.mxu0 %v4781_v29  ;;  %v5118_v23 = vadd.f32 %v2439_v15, %v2391_v19  ;;  %2593 = vmatmul.bf16.gmra.mxu2 %v4961_v35  ;;  %v5127_v29 = vperm.slane %v5035_v58, 1 }
 0x333   :  { %v2398_v3 = vpop.f32.mrf.mxu2 }
 0x334   :  { %v2399_v42 = vadd.f32 %v2398_v3, %v2350_v45  ;;  %2637 = vmatmul.bf16.gmra.mxu3 %v5028_v4  ;;  %v2351_v54 = vpop.f32.mrf.mxu1 }
 0x335   :  { %v2302_v59 = vpop.f32.mrf.mxu0 }
 0x336   :  { %v2303_v38 = vadd.f32 %v2302_v59, %v5038_v55 }
 0x337   :  { %v2442_v12 = vpop.f32.mrf.mxu3 }
 0x338   :  { %v2352_v53 = vadd.f32 %v2351_v54, %v2303_v38  ;;  %v5124_v9 = vadd.f32 %v2442_v12, %v2394_v5 }
 0x33b   :  { %v2400_v31 = vpop.f32.mrf.mxu2 }
 0x33c   :  { %v2401_v60 = vadd.f32 %v2400_v31, %v2352_v53  ;;  %v2510_v10 = vpop.f32.mrf.mxu1 }
 0x33d   :  { %v2461_v16 = vpop.f32.mrf.mxu0 }
 0x33e   :  { %v2462_v35 = vadd.f32 %v2461_v16, %v5127_v29 }
 0x33f   :  { %v2444_v48 = vpop.f32.mrf.mxu3 }
 0x340   :  { %v2511_v43 = vadd.f32 %v2510_v10, %v2462_v35  ;;  %v5130_v18 = vadd.f32 %v2444_v48, %v2396_v8 }
 0x343   :  { %v2559_v2 = vpop.f32.mrf.mxu2 }
 0x344   :  { %v2560_v33 = vadd.f32 %v2559_v2, %v2511_v43  ;;  %2642 = vmatmul.bf16.gmra.mxu3 %v5044_v1  ;;  %v2512_v5 = vpop.f32.mrf.mxu1 }
 0x345   :  { %v2463_v36 = vpop.f32.mrf.mxu0 }
 0x346   :  { %v2464_v17 = vadd.f32 %v2463_v36, %v5127_v29 }
 0x347   :  { %v2447_v40 = vpop.f32.mrf.mxu3 }
 0x348   :  { %v2513_v58 = vadd.f32 %v2512_v5, %v2464_v17  ;;  %v5134_v57 = vadd.f32 %v2447_v40, %v2399_v42 }
 0x34b   :  { %v2561_v27 = vpop.f32.mrf.mxu2 }
 0x34c   :  { %v2562_v0 = vadd.f32 %v2561_v27, %v2513_v58  ;;  %v2515_v13 = vpop.f32.mrf.mxu1 }
 0x34d   :  { %v2466_v32 = vpop.f32.mrf.mxu0 }
 0x34e   :  { %v2467_v11 = vadd.f32 %v2466_v32, %v5127_v29 }
 0x34f   :  { %v2449_v21 = vpop.f32.mrf.mxu3 }
 0x350   :  { %v2516_v8 = vadd.f32 %v2515_v13, %v2467_v11  ;;  %v5137_v20 = vadd.f32 %v2449_v21, %v2401_v60 }
 0x353   :  { %v2564_v49 = vpop.f32.mrf.mxu2 }
 0x354   :  { %v2565_v19 = vadd.f32 %v2564_v49, %v2516_v8  ;;  %v2517_v3 = vpop.f32.mrf.mxu1 }
 0x355   :  { %v2468_v45 = vpop.f32.mrf.mxu0 }
 0x356   :  { %v2469_v15 = vadd.f32 %v2468_v45, %v5127_v29 }
 0x357   :  { %v2608_v38 = vpop.f32.mrf.mxu3 }
 0x358   :  { %v2518_v59 = vadd.f32 %v2517_v3, %v2469_v15  ;;  %v2609_v42 = vadd.f32 %v2608_v38, %v2560_v33 }
 0x35a   :  { %v4017_v54 = vmul.f32 -1.442695, %v2609_v42 }
 0x35b   :  { %v2566_v53 = vpop.f32.mrf.mxu2 }
 0x35c   :  { %4240 = vpow2.f32 %v4017_v54  ;;  %v2567_v12 = vadd.f32 %v2566_v53, %v2518_v59  ;;  %v2520_v35 = vpop.f32.mrf.mxu1 }
 0x35d   :  { %v2471_v31 = vpop.f32.mrf.mxu0 }
 0x35e   :  { %v2472_v16 = vadd.f32 %v2471_v31, %v5127_v29 }
 0x35f   :  { %v2610_v60 = vpop.f32.mrf.mxu3 }
 0x360   :  { %v2521_v10 = vadd.f32 %v2520_v35, %v2472_v16  ;;  %v2611_v43 = vadd.f32 %v2610_v60, %v2562_v0 }
 0x362   :  { %v4241_v48 = vpop.eup %4240  ;;  %v4018_v2 = vmul.f32 -1.442695, %v2611_v43 }
 0x363   :  { %v2712_v36 = vadd.f32 1.0, %v4241_v48  ;;  %v2569_v17 = vpop.f32.mrf.mxu2 }
 0x364   :  { %4242 = vpow2.f32 %v4018_v2  ;;  %v2570_v5 = vadd.f32 %v2569_v17, %v2521_v10  ;;  %v2522_v40 = vpop.f32.mrf.mxu1 }
 0x365   :  { %v2473_v58 = vpop.f32.mrf.mxu0  ;;  %4244 = vrcp.f32 %v2712_v36  ;;  %v2737_v35 = vand.u32 2147483647, %v2712_v36  ;;  %vm2733_vm1 = vweird.f32 %v2712_v36 }
 0x366   :  { %v2474_v33 = vadd.f32 %v2473_v58, %v5127_v29 }
 0x367   :  { %v2613_v32 = vpop.f32.mrf.mxu3  ;;  %vm2738_vm3 = vcmp.eq.f32.partialorder %v2737_v35, 8.507059e+37 }
 0x368   :  { %v2523_v27 = vadd.f32 %v2522_v40, %v2474_v33  ;;  %v2614_v11 = vadd.f32 %v2613_v32, %v2565_v19  ;;  %v2739_v19 = vand.u32 2147483648, %v2712_v36 }
 0x36a   :  { %v4243_v13 = vpop.eup %4242  ;;  %v4019_v8 = vmul.f32 -1.442695, %v2614_v11  ;;  %v2740_v58 = vor.u32 1.1754944e-38, %v2739_v19 }
 0x36b   :  { %v4245_v21 = vpop.eup %4244  ;;  %v5142_v49 = vadd.f32 1.0, %v4243_v13  ;;  %v2571_v0 = vpop.f32.mrf.mxu2 }
 0x36c   :  { %v2729_v45 = vmul.f32 %v4245_v21, %v2712_v36  ;;  %4246 = vpow2.f32 %v4019_v8  ;;  %v5144_v15 = vadd.f32 %v2571_v0, %v2523_v27  ;;  %v2525_v38 = vpop.f32.mrf.mxu1  ;;  %vm2734_vm0 = vweird.f32 %v4245_v21 }
 0x36d   :  { %v2476_v3 = vpop.f32.mrf.mxu0  ;;  %4248 = vrcp.f32 %v5142_v49  ;;  %vm2735_vm2 = vmor %vm2733_vm1, %vm2734_vm0  ;;  %vm2748_vm5 = vweird.f32 %v5142_v49 }
 0x36e   :  { %v2477_v59 = vadd.f32 %v2476_v3, %v5127_v29  ;;  %v2730_v42 = vsub.f32 1.0, %v2729_v45  ;;  %4250 = vtanh.f32 %v5054_v34 }
 0x36f   :  { %v2615_v53 = vpop.f32.mrf.mxu3 }
 0x370   :  { %v2526_v54 = vadd.f32 %v2525_v38, %v2477_v59  ;;  %v2616_v31 = vadd.f32 %v2615_v53, %v2567_v12  ;;  %v2731_v16 = vmul.f32 %v4245_v21, %v2730_v42  ;;  %v2754_v38 = vand.u32 2147483648, %v5142_v49 }
 0x371   :  { %v2752_v53 = vand.u32 2147483647, %v5142_v49 }
 0x372   :  { %v4247_v10 = vpop.eup %4246  ;;  %v4020_v60 = vmul.f32 -1.442695, %v2616_v31  ;;  %v2732_v43 = vadd.f32 %v4245_v21, %v2731_v16 }
 0x373   :  { %v4249_v48 = vpop.eup %4248  ;;  %v5149_v2 = vadd.f32 1.0, %v4247_v10  ;;  %v2574_v17 = vpop.f32.mrf.mxu2  ;;  %vm2753_vm7 = vcmp.eq.f32.partialorder %v2752_v53, 8.507059e+37 }
 0x374   :  { %v2744_v33 = vmul.f32 %v4249_v48, %v5142_v49  ;;  %4252 = vpow2.f32 %v4020_v60  ;;  %v5152_v40 = vadd.f32 %v2574_v17, %v2526_v54  ;;  %v2736_v12 = vsel %vm2735_vm2, %v4245_v21, %v2732_v43  ;;  %v2527_v32 = vpop.f32.mrf.mxu1  ;;  %v4251_v36 = vpop.eup %4250 }
 0x375   :  { %v2478_v34 = vpop.f32.mrf.mxu0  ;;  %4254 = vrcp.f32 %v5149_v2  ;;  %v2741_v13 = vsel %vm2738_vm3, %v2740_v58, %v2736_v12  ;;  %vm2749_vm4 = vweird.f32 %v4249_v48  ;;  %v2755_v43 = vor.u32 1.1754944e-38, %v2754_v38 }
 0x376   :  { %v2479_v27 = vadd.f32 %v2478_v34, %v5127_v29  ;;  %v2745_v11 = vsub.f32 1.0, %v2744_v33  ;;  %v5156_v45 = vmul.f32 %v4251_v36, %v2741_v13  ;;  %4256 = vtanh.f32 %v5058_v62  ;;  %vm2750_vm6 = vmor %vm2748_vm5, %vm2749_vm4 }
 0x377   :  { %v2618_v0 = vpop.f32.mrf.mxu3  ;;  %v2767_v13 = vand.u32 2147483647, %v5149_v2  ;;  %vm2763_vm9 = vweird.f32 %v5149_v2 }
 0x378   :  { %v2528_v8 = vadd.f32 %v2527_v32, %v2479_v27  ;;  %v2619_v3 = vadd.f32 %v2618_v0, %v2570_v5  ;;  %v2746_v59 = vmul.f32 %v4249_v48, %v2745_v11  ;;  %v2769_v27 = vand.u32 2147483648, %v5149_v2 }
 0x379   :  { %vm2768_vm11 = vcmp.eq.f32.partialorder %v2767_v13, 8.507059e+37 }
 0x37a   :  { %v4253_v21 = vpop.eup %4252  ;;  %v4021_v42 = vmul.f32 -1.442695, %v2619_v3  ;;  %v2747_v54 = vadd.f32 %v4249_v48, %v2746_v59 }
 0x37b   :  { %v4255_v19 = vpop.eup %4254  ;;  %v5161_v31 = vadd.f32 1.0, %v4253_v21  ;;  %v2576_v16 = vpop.f32.mrf.mxu2 }
 0x37c   :  { %v2759_v35 = vmul.f32 %v4255_v19, %v5149_v2  ;;  %4258 = vpow2.f32 %v4021_v42  ;;  %v5164_v10 = vadd.f32 %v2576_v16, %v2528_v8  ;;  %v2530_v60 = vpop.f32.mrf.mxu1  ;;  %v2751_v58 = vsel %vm2750_vm6, %v4249_v48, %v2747_v54  ;;  %v4257_v33 = vpop.eup %4256 }
 0x37d   :  { %v2481_v5 = vpop.f32.mrf.mxu0  ;;  %4260 = vrcp.f32 %v5161_v31  ;;  %v2756_v32 = vsel %vm2753_vm7, %v2755_v43, %v2751_v58  ;;  %vm2764_vm8 = vweird.f32 %v4255_v19  ;;  %vm2778_vm13 = vweird.f32 %v5161_v31 }
 0x37e   :  { %v2482_v62 = vadd.f32 %v2481_v5, %v5127_v29  ;;  %v2760_v17 = vsub.f32 1.0, %v2759_v35  ;;  %4262 = vtanh.f32 %v5064_v56  ;;  %v5172_v11 = vmul.f32 %v4257_v33, %v2756_v32  ;;  %vm2765_vm10 = vmor %vm2763_vm9, %vm2764_vm8 }
 0x37f   :  { %v2620_v12 = vpop.f32.mrf.mxu3  ;;  %v2782_v32 = vand.u32 2147483647, %v5161_v31 }
 0x380   :  { %v2531_v34 = vadd.f32 %v2530_v60, %v2482_v62  ;;  %v2621_v49 = vadd.f32 %v2620_v12, %v5144_v15  ;;  %v2761_v36 = vmul.f32 %v4255_v19, %v2760_v17  ;;  %v2984_v56 = vpack.c.bf16 %v5172_v11, %v5156_v45 }
 0x381   :  { %v2770_v15 = vor.u32 1.1754944e-38, %v2769_v27  ;;  %vm2783_vm15 = vcmp.eq.f32.partialorder %v2782_v32, 8.507059e+37 }
 0x382   :  { %v4259_v8 = vpop.eup %4258  ;;  %v4022_v0 = vmul.f32 -1.442695, %v2621_v49  ;;  %v2762_v48 = vadd.f32 %v4255_v19, %v2761_v36 }
 0x383   :  { %v4261_v3 = vpop.eup %4260  ;;  %v5178_v59 = vadd.f32 1.0, %v4259_v8  ;;  %v2579_v38 = vpop.f32.mrf.mxu2 }
 0x384   :  { %v2774_v21 = vmul.f32 %v4261_v3, %v5161_v31  ;;  %4264 = vpow2.f32 %v4022_v0  ;;  %v5181_v42 = vadd.f32 %v2579_v38, %v2531_v34  ;;  %v2766_v53 = vsel %vm2765_vm10, %v4255_v19, %v2762_v48  ;;  %v4263_v16 = vpop.eup %4262  ;;  %v2532_v5 = vpop.f32.mrf.mxu1 }
 0x385   :  { %v2483_v54 = vpop.f32.mrf.mxu0  ;;  %4266 = vrcp.f32 %v5178_v59  ;;  %v2771_v62 = vsel %vm2768_vm11, %v2770_v15, %v2766_v53  ;;  %v2784_v19 = vand.u32 2147483648, %v5161_v31  ;;  %vm2779_vm12 = vweird.f32 %v4261_v3 }
 0x386   :  { %v2484_v2 = vadd.f32 %v2483_v54, %v5127_v29  ;;  %v2775_v35 = vsub.f32 1.0, %v2774_v21  ;;  %v5185_v17 = vmul.f32 %v4263_v16, %v2771_v62  ;;  %4268 = vtanh.f32 %v5068_v52  ;;  %vm2780_vm14 = vmor %vm2778_vm13, %vm2779_vm12 }
 0x387   :  { %v2623_v43 = vpop.f32.mrf.mxu3  ;;  %v2785_v52 = vor.u32 1.1754944e-38, %v2784_v19  ;;  %v2799_v21 = vand.u32 2147483648, %v5178_v59  ;;  %v2797_v31 = vand.u32 2147483647, %v5178_v59  ;;  %vm2793_vm1 = vweird.f32 %v5178_v59 }
 0x388   :  { %v2533_v60 = vadd.f32 %v2532_v5, %v2484_v2  ;;  %v2624_v58 = vadd.f32 %v2623_v43, %v5152_v40  ;;  %v2776_v33 = vmul.f32 %v4261_v3, %v2775_v35 }
 0x389   :  { %vm2798_vm3 = vcmp.eq.f32.partialorder %v2797_v31, 8.507059e+37 }
 0x38a   :  { %v4265_v34 = vpop.eup %4264  ;;  %v4023_v12 = vmul.f32 -1.442695, %v2624_v58  ;;  %v2777_v27 = vadd.f32 %v4261_v3, %v2776_v33  ;;  %v2800_v33 = vor.u32 1.1754944e-38, %v2799_v21 }
 0x38b   :  { %v4267_v49 = vpop.eup %4266  ;;  %v5191_v36 = vadd.f32 1.0, %v4265_v34  ;;  %v2581_v13 = vpop.f32.mrf.mxu2 }
 0x38c   :  { %v2789_v8 = vmul.f32 %v4267_v49, %v5178_v59  ;;  %4270 = vpow2.f32 %v4023_v12  ;;  %v5194_v0 = vadd.f32 %v2581_v13, %v2533_v60  ;;  %v2781_v48 = vsel %vm2780_vm14, %v4261_v3, %v2777_v27  ;;  %v4269_v38 = vpop.eup %4268  ;;  %v2535_v32 = vpop.f32.mrf.mxu1 }
 0x38d   :  { %4272 = vrcp.f32 %v5191_v36  ;;  %v2786_v54 = vsel %vm2783_vm15, %v2785_v52, %v2781_v48  ;;  %vm2794_vm0 = vweird.f32 %v4267_v49  ;;  %v2486_v5 = vpop.f32.mrf.mxu0  ;;  %vm2808_vm5 = vweird.f32 %v5191_v36 }
 0x38e   :  { %v2790_v40 = vsub.f32 1.0, %v2789_v8  ;;  %4274 = vtanh.f32 %v5074_v46  ;;  %v5201_v2 = vmul.f32 %v4269_v38, %v2786_v54  ;;  %vm2795_vm2 = vmor %vm2793_vm1, %vm2794_vm0 }
 0x38f   :  { %v2625_v15 = vpop.f32.mrf.mxu3 }
 0x390   :  { %v2626_v53 = vadd.f32 %v2625_v15, %v5164_v10  ;;  %v2791_v16 = vmul.f32 %v4267_v49, %v2790_v40  ;;  %v2985_v46 = vpack.c.bf16 %v5201_v2, %v5185_v17  ;;  %v2814_v40 = vand.u32 2147483648, %v5191_v36 }
 0x391   :  { %v2812_v15 = vand.u32 2147483647, %v5191_v36 }
 0x392   :  { %v4271_v35 = vpop.eup %4270  ;;  %v4024_v62 = vmul.f32 -1.442695, %v2626_v53  ;;  %v2792_v3 = vadd.f32 %v4267_v49, %v2791_v16 }
 0x393   :  { %v4273_v60 = vpop.eup %4272  ;;  %v5207_v43 = vadd.f32 1.0, %v4271_v35  ;;  %v2584_v52 = vpop.f32.mrf.mxu2  ;;  %vm2813_vm7 = vcmp.eq.f32.partialorder %v2812_v15, 8.507059e+37 }
 0x394   :  { %v2804_v10 = vmul.f32 %v4273_v60, %v5191_v36  ;;  %4276 = vpow2.f32 %v4024_v62  ;;  %v2796_v58 = vsel %vm2795_vm2, %v4267_v49, %v2792_v3  ;;  %v4275_v19 = vpop.eup %4274  ;;  %vm2809_vm4 = vweird.f32 %v4273_v60 }
 0x395   :  { %4278 = vrcp.f32 %v5207_v43  ;;  %v2801_v12 = vsel %vm2798_vm3, %v2800_v33, %v2796_v58  ;;  %v2488_v16 = vpop.f32.mrf.mxu0  ;;  %vm2810_vm6 = vmor %vm2808_vm5, %vm2809_vm4  ;;  %v2487_v62 = vadd.f32 %v2486_v5, %v5127_v29  ;;  %vm2823_vm9 = vweird.f32 %v5207_v43 }
 0x396   :  { %v2805_v34 = vsub.f32 1.0, %v2804_v10  ;;  %v5211_v59 = vmul.f32 %v4275_v19, %v2801_v12  ;;  %4280 = vtanh.f32 %v5078_v39  ;;  %v2815_v39 = vor.u32 1.1754944e-38, %v2814_v40 }
 0x397   :  { %v2628_v27 = vpop.f32.mrf.mxu3  ;;  %v2829_v10 = vand.u32 2147483648, %v5207_v43 }
 0x398   :  { %v2629_v13 = vadd.f32 %v2628_v27, %v5181_v42  ;;  %v2806_v8 = vmul.f32 %v4273_v60, %v2805_v34  ;;  %v2827_v34 = vand.u32 2147483647, %v5207_v43 }
 0x39a   :  { %v4277_v49 = vpop.eup %4276  ;;  %v4025_v48 = vmul.f32 -1.442695, %v2629_v13  ;;  %v2807_v38 = vadd.f32 %v4273_v60, %v2806_v8  ;;  %v2536_v8 = vadd.f32 %v2535_v32, %v2487_v62  ;;  %vm2828_vm11 = vcmp.eq.f32.partialorder %v2827_v34, 8.507059e+37 }
 0x39b   :  { %v4279_v21 = vpop.eup %4278  ;;  %v5217_v54 = vadd.f32 1.0, %v4277_v49  ;;  %v2489_v32 = vadd.f32 %v2488_v16, %v5127_v29 }
 0x39c   :  { %v2819_v53 = vmul.f32 %v4279_v21, %v5207_v43  ;;  %4282 = vpow2.f32 %v4025_v48  ;;  %v2811_v31 = vsel %vm2810_vm6, %v4273_v60, %v2807_v38  ;;  %v4281_v35 = vpop.eup %4280  ;;  %vm2824_vm8 = vweird.f32 %v4279_v21  ;;  %v2537_v60 = vpop.f32.mrf.mxu1 }
 0x39d   :  { %4284 = vrcp.f32 %v5217_v54  ;;  %v2816_v58 = vsel %vm2813_vm7, %v2815_v39, %v2811_v31  ;;  %vm2825_vm10 = vmor %vm2823_vm9, %vm2824_vm8  ;;  %v2830_v38 = vor.u32 1.1754944e-38, %v2829_v10  ;;  %v2585_v43 = vadd.f32 %v2584_v52, %v2536_v8  ;;  %v2491_v39 = vpop.f32.mrf.mxu0 }
 0x39e   :  { %v2820_v42 = vsub.f32 1.0, %v2819_v53  ;;  %4286 = vtanh.f32 %v5087_v22  ;;  %v5226_v36 = vmul.f32 %v4281_v35, %v2816_v58  ;;  %vm2838_vm13 = vweird.f32 %v5217_v54 }
 0x39f   :  { %v2630_v3 = vpop.f32.mrf.mxu3 }
 0x3a0   :  { %v2631_v33 = vadd.f32 %v2630_v3, %v5194_v0  ;;  %v2821_v19 = vmul.f32 %v4279_v21, %v2820_v42  ;;  %v2986_v22 = vpack.c.bf16 %v5226_v36, %v5211_v59  ;;  %v2586_v0 = vpop.f32.mrf.mxu2 }
 0x3a2   :  { %v4283_v12 = vpop.eup %4282  ;;  %v4026_v27 = vmul.f32 -1.442695, %v2631_v33  ;;  %v2822_v13 = vadd.f32 %v4279_v21, %v2821_v19  ;;  %v2842_v19 = vand.u32 2147483647, %v5217_v54 }
 0x3a3   :  { %v4285_v5 = vpop.eup %4284  ;;  %v5232_v40 = vadd.f32 1.0, %v4283_v12  ;;  %v2538_v12 = vadd.f32 %v2537_v60, %v2489_v32  ;;  %v2492_v60 = vadd.f32 %v2491_v39, %v5127_v29 }
 0x3a4   :  { %v2834_v49 = vmul.f32 %v4285_v5, %v5217_v54  ;;  %4288 = vpow2.f32 %v4026_v27  ;;  %v2826_v48 = vsel %vm2825_vm10, %v4279_v21, %v2822_v13  ;;  %v4287_v15 = vpop.eup %4286  ;;  %v2844_v21 = vand.u32 2147483648, %v5217_v54  ;;  %v2540_v13 = vpop.f32.mrf.mxu1 }
 0x3a5   :  { %4290 = vrcp.f32 %v5232_v40  ;;  %v2831_v42 = vsel %vm2828_vm11, %v2830_v38, %v2826_v48  ;;  %vm2839_vm12 = vweird.f32 %v4285_v5  ;;  %v2587_v48 = vadd.f32 %v2586_v0, %v2538_v12 }
 0x3a6   :  { %v2835_v53 = vsub.f32 1.0, %v2834_v49  ;;  %v5236_v35 = vmul.f32 %v4287_v15, %v2831_v42  ;;  %4292 = vtanh.f32 %v5096_v25  ;;  %v2288_v25 = vadd.f32 %v5083_v51, %v5038_v55  ;;  %vm2840_vm14 = vmor %vm2838_vm13, %vm2839_vm12  ;;  %v2493_v42 = vpop.f32.mrf.mxu0 }
 0x3a7   :  { %v2633_v31 = vpop.f32.mrf.mxu3  ;;  %v2845_v8 = vor.u32 1.1754944e-38, %v2844_v21  ;;  %vm2843_vm15 = vcmp.eq.f32.partialorder %v2842_v19, 8.507059e+37  ;;  %v2859_v54 = vand.u32 2147483648, %v5232_v40  ;;  %vm2853_vm1 = vweird.f32 %v5232_v40 }
 0x3a8   :  { %v2634_v62 = vadd.f32 %v2633_v31, %v2585_v43  ;;  %v2836_v3 = vmul.f32 %v4285_v5, %v2835_v53  ;;  %v2589_v16 = vpop.f32.mrf.mxu2 }
 0x3a9   :  { %v2860_v12 = vor.u32 1.1754944e-38, %v2859_v54 }
 0x3aa   :  { %v4289_v10 = vpop.eup %4288  ;;  %v4027_v58 = vmul.f32 -1.442695, %v2634_v62  ;;  %v2837_v33 = vadd.f32 %v4285_v5, %v2836_v3  ;;  %v2337_v62 = vadd.f32 %v5085_v28, %v2288_v25 }
 0x3ab   :  { %v4291_v52 = vpop.eup %4290  ;;  %v5242_v34 = vadd.f32 1.0, %v4289_v10 }
 0x3ac   :  { %v2849_v27 = vmul.f32 %v4291_v52, %v5232_v40  ;;  %4294 = vpow2.f32 %v4027_v58  ;;  %v2841_v38 = vsel %vm2840_vm14, %v4285_v5, %v2837_v33  ;;  %v4293_v15 = vpop.eup %4292  ;;  %vm2854_vm0 = vweird.f32 %v4291_v52 }
 0x3ad   :  { %4296 = vrcp.f32 %v5242_v34  ;;  %v2846_v43 = vsel %vm2843_vm15, %v2845_v8, %v2841_v38  ;;  %v2857_v5 = vand.u32 2147483647, %v5232_v40  ;;  %v2386_v10 = vadd.f32 %v5089_v61, %v2337_v62  ;;  %vm2855_vm2 = vmor %vm2853_vm1, %vm2854_vm0 }
 0x3ae   :  { %v2850_v49 = vsub.f32 1.0, %v2849_v27  ;;  %4298 = vtanh.f32 %v5103_v37  ;;  %v5252_v32 = vmul.f32 %v4293_v15, %v2846_v43  ;;  %v2541_v58 = vadd.f32 %v2540_v13, %v2492_v60  ;;  %v2496_v43 = vpop.f32.mrf.mxu0 }
 0x3af   :  { %v2635_v53 = vpop.f32.mrf.mxu3  ;;  %v2435_v25 = vadd.f32 %v5106_v63, %v2386_v10  ;;  %vm2858_vm3 = vcmp.eq.f32.partialorder %v2857_v5, 8.507059e+37  ;;  %v2494_v15 = vadd.f32 %v2493_v42, %v5127_v29  ;;  %v2874_v63 = vand.u32 2147483648, %v5242_v34 }
 0x3b0   :  { %v2636_v51 = vadd.f32 %v2635_v53, %v2587_v48  ;;  %v2851_v31 = vmul.f32 %v4291_v52, %v2850_v49  ;;  %v2987_v37 = vpack.c.bf16 %v5252_v32, %v5236_v35  ;;  %v2590_v8 = vadd.f32 %v2589_v16, %v2541_v58  ;;  %v2542_v49 = vpop.f32.mrf.mxu1  ;;  %v2591_v61 = vpop.f32.mrf.mxu2  ;;  %v2992_v35 = vld [vmem:[%s5376_s5] sm:$0x1] }
 0x3b1   :  { %v2543_v42 = vadd.f32 %v2542_v49, %v2494_v15  ;;  %vm2868_vm5 = vweird.f32 %v5242_v34 }
 0x3b2   :  { %v4295_v0 = vpop.eup %4294  ;;  %v4028_v3 = vmul.f32 -1.442695, %v2636_v51  ;;  %v2852_v21 = vadd.f32 %v4291_v52, %v2851_v31  ;;  %v2872_v31 = vand.u32 2147483647, %v5242_v34 }
 0x3b3   :  { %v4297_v39 = vpop.eup %4296  ;;  %v5260_v33 = vadd.f32 1.0, %v4295_v0 }
 0x3b4   :  { %v2864_v19 = vmul.f32 %v4297_v39, %v5242_v34  ;;  %4300 = vpow2.f32 %v4028_v3  ;;  %v2856_v28 = vsel %vm2855_vm2, %v4291_v52, %v2852_v21  ;;  %v4299_v27 = vpop.eup %4298  ;;  %v2291_v52 = vadd.f32 %v5091_v26, %v5038_v55 }
 0x3b5   :  { %4302 = vrcp.f32 %v5260_v33  ;;  %v2861_v48 = vsel %vm2858_vm3, %v2860_v12, %v2856_v28  ;;  %vm2869_vm4 = vweird.f32 %v4297_v39  ;;  %v2875_v26 = vor.u32 1.1754944e-38, %v2874_v63 }
 0x3b6   :  { %v2865_v40 = vsub.f32 1.0, %v2864_v19  ;;  %v5265_v38 = vmul.f32 %v4299_v27, %v2861_v48  ;;  %4304 = vtanh.f32 %v2435_v25  ;;  %v2340_v55 = vadd.f32 %v5093_v14, %v2291_v52  ;;  %vm2870_vm6 = vmor %vm2868_vm5, %vm2869_vm4 }
 0x3b7   :  { %v2638_v13 = vpop.f32.mrf.mxu3  ;;  %v2592_v21 = vadd.f32 %v2591_v61, %v2543_v42  ;;  %vm2873_vm7 = vcmp.eq.f32.partialorder %v2872_v31, 8.507059e+37  ;;  %v2497_v27 = vadd.f32 %v2496_v43, %v5127_v29  ;;  %vm2883_vm9 = vweird.f32 %v5260_v33 }
 0x3b8   :  { %v2639_v60 = vadd.f32 %v2638_v13, %v2590_v8  ;;  %v2866_v53 = vmul.f32 %v4297_v39, %v2865_v40  ;;  %v2389_v12 = vadd.f32 %v5100_v41, %v2340_v55  ;;  %v2545_v25 = vpop.f32.mrf.mxu1  ;;  %v2594_v14 = vpop.f32.mrf.mxu2 }
 0x3b9   :  { %v2546_v41 = vadd.f32 %v2545_v25, %v2497_v27 }
 0x3ba   :  { %v4301_v54 = vpop.eup %4300  ;;  %v4029_v51 = vmul.f32 -1.442695, %v2639_v60  ;;  %v2867_v16 = vadd.f32 %v4297_v39, %v2866_v53  ;;  %v2438_v48 = vadd.f32 %v5113_v30, %v2389_v12  ;;  %v2498_v53 = vpop.f32.mrf.mxu0 }
 0x3bb   :  { %v5272_v62 = vpop.eup %4302  ;;  %v5274_v5 = vadd.f32 1.0, %v4301_v54  ;;  %v2595_v63 = vadd.f32 %v2594_v14, %v2546_v41  ;;  %v2889_v54 = vand.u32 2147483648, %v5260_v33  ;;  %v2499_v43 = vadd.f32 %v2498_v53, %v5127_v29 }
 0x3bc   :  { %v2879_v0 = vmul.f32 %v5272_v62, %v5260_v33  ;;  %4306 = vpow2.f32 %v4029_v51  ;;  %v2871_v10 = vsel %vm2870_vm6, %v4297_v39, %v2867_v16  ;;  %v4305_v58 = vpop.eup %4304  ;;  %vm2884_vm8 = vweird.f32 %v5272_v62 }
 0x3bd   :  { %4308 = vrcp.f32 %v5274_v5  ;;  %v2876_v28 = vsel %vm2873_vm7, %v2875_v26, %v2871_v10  ;;  %v2887_v16 = vand.u32 2147483647, %v5260_v33  ;;  %v2904_v31 = vand.u32 2147483648, %v5274_v5  ;;  %vm5301_vm10 = vmor %vm2883_vm9, %vm2884_vm8 }
 0x3be   :  { %v2880_v3 = vsub.f32 1.0, %v2879_v0  ;;  %v5283_v34 = vmul.f32 %v4305_v58, %v2876_v28  ;;  %v2902_v26 = vand.u32 2147483647, %v5274_v5  ;;  %v2890_v10 = vor.u32 1.1754944e-38, %v2889_v54 }
 0x3bf   :  { %v2640_v19 = vpop.f32.mrf.mxu3  ;;  %vm2898_vm12 = vweird.f32 %v5274_v5  ;;  %vm2888_vm13 = vcmp.eq.f32.partialorder %v2887_v16, 8.507059e+37  ;;  %v2905_v27 = vor.u32 1.1754944e-38, %v2904_v31 }
 0x3c0   :  { %v2641_v40 = vadd.f32 %v2640_v19, %v2592_v21  ;;  %v2881_v8 = vmul.f32 %v5272_v62, %v2880_v3  ;;  %v2988_v39 = vpack.c.bf16 %v5283_v34, %v5265_v38  ;;  %v2547_v21 = vpop.f32.mrf.mxu1  ;;  %v2596_v28 = vpop.f32.mrf.mxu2  ;;  %vm2903_vm15 = vcmp.eq.f32.partialorder %v2902_v26, 8.507059e+37 }
 0x3c1   :  { %v2548_v19 = vadd.f32 %v2547_v21, %v2499_v43 }
 0x3c2   :  { %v4307_v49 = vpop.eup %4306  ;;  %v4030_v61 = vmul.f32 -1.442695, %v2641_v40  ;;  %v2882_v52 = vadd.f32 %v5272_v62, %v2881_v8 }
 0x3c3   :  { %v4309_v13 = vpop.eup %4308  ;;  %v5289_v15 = vadd.f32 1.0, %v4307_v49 }
 0x3c4   :  { %v2894_v60 = vmul.f32 %v4309_v13, %v5274_v5  ;;  %4310 = vpow2.f32 %v4030_v61  ;;  %vm2899_vm11 = vweird.f32 %v4309_v13  ;;  %v2886_v29 = vsel %vm5301_vm10, %v5272_v62, %v2882_v52 }
 0x3c5   :  { %4312 = vrcp.f32 %v5289_v15  ;;  %vm2900_vm14 = vmor %vm2898_vm12, %vm2899_vm11  ;;  %v2891_v62 = vsel %vm2888_vm13, %v2890_v10, %v2886_v29  ;;  %vm2913_vm1 = vweird.f32 %v5289_v15  ;;  %v2917_v0 = vand.u32 2147483647, %v5289_v15 }
 0x3c6   :  { %4314 = vtanh.f32 %v2438_v48  ;;  %v2895_v30 = vsub.f32 1.0, %v2894_v60  ;;  %v2597_v48 = vadd.f32 %v2596_v28, %v2548_v19 }
 0x3c7   :  { %v2643_v51 = vpop.f32.mrf.mxu3  ;;  %4316 = vtanh.f32 %v5118_v23  ;;  %vm2918_vm5 = vcmp.eq.f32.partialorder %v2917_v0, 8.507059e+37 }
 0x3c8   :  { %v2644_v42 = vadd.f32 %v2643_v51, %v2595_v63  ;;  %v2896_v55 = vmul.f32 %v4309_v13, %v2895_v30 }
 0x3ca   :  { %v4311_v3 = vpop.eup %4310  ;;  %v4031_v33 = vmul.f32 -1.442695, %v2644_v42  ;;  %v2897_v58 = vadd.f32 %v4309_v13, %v2896_v55  ;;  %v2919_v42 = vand.u32 2147483648, %v5289_v15 }
 0x3cb   :  { %v4313_v23 = vpop.eup %4312  ;;  %v2725_v12 = vadd.f32 1.0, %v4311_v3 }
 0x3cc   :  { %v4315_v25 = vpop.eup %4314  ;;  %v2909_v40 = vmul.f32 %v4313_v23, %v5289_v15  ;;  %4318 = vpow2.f32 %v4031_v33  ;;  %v2901_v14 = vsel %vm2900_vm14, %v4309_v13, %v2897_v58  ;;  %vm2914_vm0 = vweird.f32 %v4313_v23 }
 0x3cd   :  { %4320 = vrcp.f32 %v2725_v12  ;;  %v4317_v8 = vpop.eup %4316  ;;  %v2906_v61 = vsel %vm2903_vm15, %v2905_v27, %v2901_v14  ;;  %v5311_v41 = vmul.f32 %v4315_v25, %v2891_v62  ;;  %vm5322_vm2 = vmor %vm2913_vm1, %vm2914_vm0  ;;  %v2934_v26 = vand.u32 2147483648, %v2725_v12 }
 0x3ce   :  { %v2910_v49 = vsub.f32 1.0, %v2909_v40  ;;  %v5313_v60 = vmul.f32 %v4317_v8, %v2906_v61  ;;  %v2932_v21 = vand.u32 2147483647, %v2725_v12  ;;  %v2920_v10 = vor.u32 1.1754944e-38, %v2919_v42 }
 0x3cf   :  { %v2645_v5 = vpop.f32.mrf.mxu3  ;;  %vm2928_vm4 = vweird.f32 %v2725_v12  ;;  %v2935_v27 = vor.u32 1.1754944e-38, %v2934_v26  ;;  %vm3017_vm1 = vcmask 1040384  }
 0x3d0   :  { %v2646_v53 = vadd.f32 %v2645_v5, %v2597_v48  ;;  %v2911_v52 = vmul.f32 %v4313_v23, %v2910_v49  ;;  %v2989_v30 = vpack.c.bf16 %v5313_v60, %v5311_v41  ;;  %vm2933_vm7 = vcmp.eq.f32.partialorder %v2932_v21, 8.507059e+37 }
 0x3d2   :  { %v4319_v63 = vpop.eup %4318  ;;  %v4032_v54 = vmul.f32 -1.442695, %v2646_v53  ;;  %v2912_v16 = vadd.f32 %v4313_v23, %v2911_v52 }
 0x3d3   :  { %v4321_v43 = vpop.eup %4320  ;;  %v2726_v13 = vadd.f32 1.0, %v4319_v63 }
 0x3d4   :  { %v2924_v51 = vmul.f32 %v4321_v43, %v2725_v12  ;;  %4322 = vpow2.f32 %v4032_v54  ;;  %vm2929_vm3 = vweird.f32 %v4321_v43  ;;  %v2916_v3 = vsel %vm5322_vm2, %v4313_v23, %v2912_v16 }
 0x3d5   :  { %4324 = vrcp.f32 %v2726_v13  ;;  %vm2930_vm6 = vmor %vm2928_vm4, %vm2929_vm3  ;;  %v2921_v15 = vsel %vm2918_vm5, %v2920_v10, %v2916_v3  ;;  %v2949_v53 = vand.u32 2147483648, %v2726_v13  ;;  %vm2943_vm9 = vweird.f32 %v2726_v13 }
 0x3d6   :  { %v2925_v31 = vsub.f32 1.0, %v2924_v51  ;;  %4326 = vtanh.f32 %v5124_v9  ;;  %v2947_v63 = vand.u32 2147483647, %v2726_v13  ;;  %v4534_v10 = vmov 0  }
 0x3d7   :  { %4328 = vtanh.f32 %v5130_v18  ;;  %4239 = vset.pattern.permute.xlu0 %v4534_v10 }
 0x3d8   :  { %v2926_v29 = vmul.f32 %v4321_v43, %v2925_v31  ;;  %v2950_v31 = vor.u32 1.1754944e-38, %v2949_v53  ;;  %vm2948_vm13 = vcmp.eq.f32.partialorder %v2947_v63, 8.507059e+37 }
 0x3da   :  { %v4323_v33 = vpop.eup %4322  ;;  %v2927_v9 = vadd.f32 %v4321_v43, %v2926_v29 }
 0x3db   :  { %v4325_v58 = vpop.eup %4324  ;;  %v2727_v19 = vadd.f32 1.0, %v4323_v33  ;;  %v2993_v33 = vld [vmem:[#allocation2] sm:$0x1] }
 0x3dc   :  { %v2939_v18 = vmul.f32 %v4325_v58, %v2726_v13  ;;  %v2931_v28 = vsel %vm2930_vm6, %v4321_v43, %v2927_v9  ;;  %v4327_v25 = vpop.eup %4326  ;;  %vm2944_vm8 = vweird.f32 %v4325_v58  ;;  %2996 = vperm.xlu0 %4239, %v2993_v33   ;;  %vm3188_vm6 = vcmask 8192  }
 0x3dd   :  { %4330 = vrcp.f32 %v2727_v19  ;;  %v4329_v40 = vpop.eup %4328  ;;  %v2936_v14 = vsel %vm2933_vm7, %v2935_v27, %v2931_v28  ;;  %v2980_v23 = vmul.f32 %v4327_v25, %v2921_v15  ;;  %vm2945_vm10 = vmor %vm2943_vm9, %vm2944_vm8  ;;  %v2964_v54 = vand.u32 2147483648, %v2727_v19 }
 0x3de   :  { %v2940_v62 = vsub.f32 1.0, %v2939_v18  ;;  %v2981_v8 = vmul.f32 %v4329_v40, %v2936_v14  ;;  %4332 = vtanh.f32 %v5134_v57  ;;  %v2962_v16 = vand.u32 2147483647, %v2727_v19 }
 0x3df   :  { %4334 = vtanh.f32 %v5137_v20  ;;  %vm2958_vm12 = vweird.f32 %v2727_v19  ;;  %v2965_v55 = vor.u32 1.1754944e-38, %v2964_v54 }
 0x3e0   :  { %v2941_v49 = vmul.f32 %v4325_v58, %v2940_v62  ;;  %v2990_v48 = vpack.c.bf16 %v2981_v8, %v2980_v23  ;;  %vm2963_vm15 = vcmp.eq.f32.partialorder %v2962_v16, 8.507059e+37 }
 0x3e2   :  { %v2942_v5 = vadd.f32 %v4325_v58, %v2941_v49 }
 0x3e3   :  { %v4331_v61 = vpop.eup %4330 }
 0x3e4   :  { %v2954_v12 = vmul.f32 %v4331_v61, %v2727_v19  ;;  %v2946_v51 = vsel %vm2945_vm10, %v4325_v58, %v2942_v5  ;;  %vm2959_vm11 = vweird.f32 %v4331_v61  ;;  %v4333_v29 = vpop.eup %4332 }
 0x3e5   :  { %v2951_v0 = vsel %vm2948_vm13, %v2950_v31, %v2946_v51  ;;  %vm2960_vm14 = vmor %vm2958_vm12, %vm2959_vm11  ;;  %v4335_v26 = vpop.eup %4334 }
 0x3e6   :  { %v2955_v52 = vsub.f32 1.0, %v2954_v12  ;;  %v2982_v3 = vmul.f32 %v4333_v29, %v2951_v0  ;;  %v3097_v12 = vld [vmem:[%s5379_s8] sm:$0x1]  ;;  %s4535_s8 = smov [#allocation13]  }
 0x3e7   :  { %s3230_s6 = sshll.u32 %s4535_s8, 4  ;;  %s3231_s6 = int_to_ptr.vmem [resolvable:$true] %s3230_s6 }
 0x3e8   :  { %v2956_v43 = vmul.f32 %v4331_v61, %v2955_v52 }
 0x3ea   :  { %v2957_v42 = vadd.f32 %v4331_v61, %v2956_v43 }
 0x3ec   :  { %v2961_v57 = vsel %vm2960_vm14, %v4331_v61, %v2957_v42 }
 0x3ed   :  { %v2966_v13 = vsel %vm2963_vm15, %v2965_v55, %v2961_v57 }
 0x3ee   :  { %v2983_v20 = vmul.f32 %v4335_v26, %v2966_v13 }
 0x3f0   :  { %v2991_v21 = vpack.c.bf16 %v2983_v20, %v2982_v3 }
 0x3f2   :  { %3000 = vmatpush.bf16.xpose.msra.mxu0 %v2991_v21 }
 0x3fa   :  { %3001 = vmatpush.bf16.xpose.msra.mxu0 %v2990_v48 }
 0x402   :  { %3002 = vmatpush.bf16.xpose.msra.mxu0 %v2989_v30 }
 0x40a   :  { %3003 = vmatpush.bf16.xpose.msra.mxu0 %v2988_v39 }
 0x412   :  { %3004 = vmatpush.bf16.xpose.msra.mxu0 %v2987_v37 }
 0x41a   :  { %3005 = vmatpush.bf16.xpose.msra.mxu0 %v2986_v22 }
 0x422   :  { %3006 = vmatpush.bf16.xpose.msra.mxu0 %v2985_v46 }
 0x42a   :  { %3007 = vmatpush.bf16.xpose.msra.mxu0 %v2984_v56 }
 0x431   :  { %3008 = vmatmul.bf16.vlgmr.msra.gmra.mxu0 %v2992_v35 }
 0x432   :  { %3083 = vmatpush.bf16.msrb.mxu0 %v5044_v1  ;;  %v3013_v1 = vlaneseq }
 0x434   :  { %v3014_v11 = vand.u32 127, %v3013_v1 }
 0x436   :  { %3084 = vmatpush.bf16.msrb.mxu0 %v5028_v4  ;;  %vm3015_vm0 = vcmp.lt.s32.totalorder %v3014_v11, 64 }
 0x43a   :  { %3085 = vmatpush.bf16.msrb.mxu0 %v5020_v6 }
 0x43e   :  { %3086 = vmatpush.bf16.msrb.mxu0 %v5012_v44 }
 0x442   :  { %3087 = vmatpush.bf16.msrb.mxu0 %v5004_v7 }
 0x446   :  { %3088 = vmatpush.bf16.msrb.mxu0 %v4996_v50 }
 0x44a   :  { %3089 = vmatpush.bf16.msrb.mxu0 %v4984_v47 }
 0x44e   :  { %3090 = vmatpush.bf16.msrb.mxu0 %v4958_v24  ;;  %v2997_v45 = vpop.permute.xlu0 %2996  ;;  %v3096_v24 = vld [vmem:[#allocation11] sm:$0xff] }
 0x44f   :  { %v2999_v56 = vperm.slane %v2997_v45, 0  ;;  %3099 = vst [vmem:[#allocation1] ss:$4 sm:$0xff] %v3096_v24 }
 0x456   :  { %v3100_v36 = vld.sshfl [vmem:[#allocation1] sm:$0xff pattern:$0x73625140]  ;;  %v3101_v15 = vld.sshfl [vmem:[#allocation1 + $0x8] sm:$0xff pattern:$0x73625140] }
 0x457   :  { %3123 = vmatpush.xpose.msrb.mxu1 %v3100_v36  ;;  %v3102_v28 = vld.sshfl [vmem:[#allocation1 + $0x10] sm:$0xff pattern:$0x73625140]  ;;  %3143 = vmatpush.xpose.msrb.mxu2 %v3101_v15  ;;  %v3103_v27 = vld.sshfl [vmem:[#allocation1 + $0x18] sm:$0xff pattern:$0x73625140] }
 0x458   :  { %3163 = vmatpush.xpose.msrb.mxu3 %v3102_v28 }
 0x4ae   :  { %v3009_v17 = vpop.f32.mrf.mxu0 }
 0x4af   :  { %v3010_v4 = vadd.f32 %v3009_v17, %v2999_v56 }
 0x4b1   :  { %v3016_v2 = vsel %vm3015_vm0, %v3010_v4, -inf }
 0x4b2   :  { %v3018_v6 = vsel %vm3017_vm1, %v3016_v2, -inf }
 0x4b3   :  { %3019 = vmax.xlane.f32.xlu0 %v3018_v6 }
 0x4b6   :  { %v3011_v44 = vpop.f32.mrf.mxu0 }
 0x526   :  { %v3020_v46 = vpop.xlane.xlu0 %3019 }
 0x527   :  { %v3021_v7 = vsub.f32 %v3016_v2, %v3020_v46 }
 0x529   :  { %v3022_v59 = vmul.f32 1.442695, %v3021_v7 }
 0x52b   :  { %4336 = vpow2.f32 %v3022_v59 }
 0x531   :  { %v4337_v50 = vpop.eup %4336 }
 0x532   :  { %v3024_v47 = vsel %vm3017_vm1, %v4337_v50, 0.0 }
 0x533   :  { %3025 = vadd.xlane.f32.xlu1 %v3024_v47 }
 0x5a6   :  { %v3026_v22 = vpop.xlane.xlu1 %3025 }
 0x5a7   :  { %4338 = vrcp.f32 %v3026_v22  ;;  %v3038_v34 = vand.u32 2147483648, %v3026_v22  ;;  %v3036_v41 = vand.u32 2147483647, %v3026_v22  ;;  %vm3032_vm3 = vweird.f32 %v3026_v22 }
 0x5a9   :  { %v3039_v30 = vor.u32 1.1754944e-38, %v3038_v34  ;;  %vm3037_vm5 = vcmp.eq.f32.partialorder %v3036_v41, 8.507059e+37 }
 0x5ad   :  { %v4339_v32 = vpop.eup %4338 }
 0x5ae   :  { %v3028_v37 = vmul.f32 %v4339_v32, %v3026_v22  ;;  %vm3033_vm2 = vweird.f32 %v4339_v32 }
 0x5af   :  { %vm3034_vm4 = vmor %vm3032_vm3, %vm3033_vm2 }
 0x5b0   :  { %v3029_v38 = vsub.f32 1.0, %v3028_v37 }
 0x5b2   :  { %v3030_v39 = vmul.f32 %v4339_v32, %v3029_v38 }
 0x5b4   :  { %v3031_v60 = vadd.f32 %v4339_v32, %v3030_v39 }
 0x5b6   :  { %v3035_v9 = vsel %vm3034_vm4, %v4339_v32, %v3031_v60 }
 0x5b7   :  { %v3040_v58 = vsel %vm3037_vm5, %v3039_v30, %v3035_v9 }
 0x5b8   :  { %v3041_v19 = vmul.f32 %v4337_v50, %v3040_v58 }
 0x5ba   :  { %3042 = vst [vmem:[#allocation13] sm:$0x1] %v3041_v19  ;;  %v3043_v18 = vpack.c.bf16 %v3041_v19, %v3041_v19 }
 0x5bb   :  { %3235 = dma.vmem_to_hbm [thread:$0]  %s3231_s6, 16, %s3233_s26, [#allocation14]  }
 0x5bc   :  { %3052 = vmatmul.bf16.vlgmr.msra.gmra.mxu1 %v3043_v18  ;;  %3065 = vmatmul.bf16.vlgmr.msra.gmra.mxu2 %v3043_v18 }
 0x5bd   :  { %3078 = vmatmul.bf16.vlgmr.msra.gmra.mxu3 %v3043_v18  ;;  %3091 = vmatmul.bf16.vlgmr.msrb.gmra.mxu0 %v3043_v18 }
 0x5be   :  { %3183 = vmatpush.xpose.msra.mxu1 %v3103_v27 }
 0x639   :  { %v3053_v25 = vpop.f32.mrf.mxu1 }
 0x63a   :  { %v3092_v40 = vpop.f32.mrf.mxu0  ;;  %3124 = vmatmul.f32.vlgmr.msrb.gmra.mxu1 %v3053_v25 }
 0x63f   :  { %v3066_v62 = vpop.f32.mrf.mxu2 }
 0x640   :  { %v3079_v14 = vpop.f32.mrf.mxu3  ;;  %3144 = vmatmul.f32.vlgmr.msrb.gmra.mxu2 %v3066_v62 }
 0x641   :  { %3164 = vmatmul.f32.vlgmr.msrb.gmra.mxu3 %v3079_v14  ;;  %v3055_v23 = vpop.f32.mrf.mxu1 }
 0x642   :  { %v3094_v8 = vpop.f32.mrf.mxu0  ;;  %3184 = vmatmul.f32.vlgmr.msra.gmra.mxu1 %v3092_v40 }
 0x647   :  { %v3068_v49 = vpop.f32.mrf.mxu2 }
 0x648   :  { %v3081_v48 = vpop.f32.mrf.mxu3 }
 0x6b7   :  { %v3125_v61 = vpop.f32.mrf.mxu1 }
 0x6b8   :  { %v3126_v5 = vadd.f32 %v3125_v61, %v3097_v12 }
 0x6bf   :  { %v3185_v43 = vpop.f32.mrf.mxu1 }
 0x6c3   :  { %v3145_v53 = vpop.f32.mrf.mxu2 }
 0x6c4   :  { %v3146_v52 = vadd.f32 %v3145_v53, %v3126_v5  ;;  %v3165_v63 = vpop.f32.mrf.mxu3 }
 0x6c6   :  { %v3166_v54 = vadd.f32 %v3165_v63, %v3146_v52 }
 0x6c8   :  { %v3186_v51 = vadd.f32 %v3185_v43, %v3166_v54 }
 0x6ca   :  { %v3189_v16 = vsel %vm3188_vm6, %v3186_v51, -inf }
 0x6cb   :  { %3190 = vmax.xlane.f32.xlu1 %v3189_v16 }
 0x73e   :  { %v3191_v31 = vpop.xlane.xlu1 %3190 }
 0x73f   :  { %v3192_v42 = vsub.f32 %v3186_v51, %v3191_v31 }
 0x741   :  { %v3193_v0 = vmul.f32 1.442695, %v3192_v42 }
 0x743   :  { %4340 = vpow2.f32 %v3193_v0 }
 0x749   :  { %v4341_v55 = vpop.eup %4340 }
 0x74a   :  { %v3195_v29 = vsel %vm3188_vm6, %v4341_v55, 0.0 }
 0x74b   :  { %3196 = vadd.xlane.f32.xlu2 %v3195_v29 }
 0x7be   :  { %v3197_v57 = vpop.xlane.xlu2 %3196 }
 0x7bf   :  { %4342 = vrcp.f32 %v3197_v57  ;;  %v3209_v20 = vand.u32 2147483648, %v3197_v57  ;;  %v3207_v33 = vand.u32 2147483647, %v3197_v57  ;;  %vm3203_vm8 = vweird.f32 %v3197_v57 }
 0x7c1   :  { %v3210_v35 = vor.u32 1.1754944e-38, %v3209_v20  ;;  %vm3208_vm10 = vcmp.eq.f32.partialorder %v3207_v33, 8.507059e+37 }
 0x7c5   :  { %v4343_v26 = vpop.eup %4342 }
 0x7c6   :  { %v3199_v13 = vmul.f32 %v4343_v26, %v3197_v57  ;;  %vm3204_vm7 = vweird.f32 %v4343_v26 }
 0x7c7   :  { %vm3205_vm9 = vmor %vm3203_vm8, %vm3204_vm7 }
 0x7c8   :  { %v3200_v3 = vsub.f32 1.0, %v3199_v13 }
 0x7ca   :  { %v3201_v21 = vmul.f32 %v4343_v26, %v3200_v3 }
 0x7cc   :  { %v3202_v10 = vadd.f32 %v4343_v26, %v3201_v21 }
 0x7ce   :  { %v3206_v1 = vsel %vm3205_vm9, %v4343_v26, %v3202_v10 }
 0x7cf   :  { %v3211_v45 = vsel %vm3208_vm10, %v3210_v35, %v3206_v1 }
 0x7d0   :  { %v3212_v11 = vmul.f32 %v4341_v55, %v3211_v45 }
 0x7d2   :  { %3213 = vst.msk [vmem:[#allocation12] sm:$0x1] %vm3188_vm6, %v3212_v11 }
 0x7d3   :  { %3224 = dma.vmem_to_hbm [thread:$0]  %s3220_s1, 16, %s3222_s29, [#allocation5]  }
 0x7d4   :  { %4519 = dma.done.wait [#allocation5], 16  }
 0x7d5   :  { %4520 = vsyncadd [#allocation5], 4294967280 }
 0x7d6   :  { %4521 = dma.done.wait [#allocation14], 16  }
 0x7d7   :  { %4522 = vsyncadd [#allocation14], 4294967280 }
 0x7d8   :  { %3244 = vsyncpa [#allocation4], 1 }
 0x7d9   :  { %3245 = vsyncpa [#allocation7], 1 }
 0x7da   :  { %3246 = vsyncpa [#allocation10], 1 }
 0x7db   :  { %3247 = vsyncpa [#allocation5], 1 }
 0x7dc   :  { %3248 = vsyncpa [#allocation14], 1 }

// kernel: tpu_custom_call.1
= control target key start
LH: loop header
LB: loop body
LE: loop exit
PB: predicated region body
PF: predicated region fallthrough
CT: control target
= control target key end

     0   :  { %s5371_s0 = inlined_call_operand.hbm [shape: f32[1,128,512], index: 0, kind: input, shape index: {}]   ;;  %s5372_s1 = inlined_call_operand.hbm [shape: bf16[512,512], index: 1, kind: input, shape index: {}]   ;;  %s5373_s2 = inlined_call_operand.hbm [shape: f32[1,512], index: 2, kind: input, shape index: {}]   ;;  %s5374_s3 = inlined_call_operand.hbm [shape: bf16[512,256], index: 3, kind: input, shape index: {}]   ;;  %s5375_s4 = inlined_call_operand.vmem [shape: f32[1,256], index: 4, kind: input, shape index: {}]   ;;  %s5376_s5 = inlined_call_operand.vmem [shape: bf16[1,128], index: 5, kind: input, shape index: {}]   ;;  %s5377_s6 = inlined_call_operand.<no memory space> [shape: f32[1,1], index: 6, kind: input, shape index: {}]   ;;  %s5378_s7 = inlined_call_operand.hbm [shape: f32[2,512], index: 7, kind: input, shape index: {}]   ;;  %s5379_s8 = inlined_call_operand.vmem [shape: f32[1,2], index: 8, kind: input, shape index: {}]   ;;  %s5380_s9 = inlined_call_operand.hbm [shape: f32[1,1,2], index: 9, kind: output, shape index: {0}]   ;;  %s5381_s10 = inlined_call_operand.hbm [shape: f32[1,1,128], index: 10, kind: output, shape index: {1}]  }
   0x1   :  { %v16_v0 = vstv %s5377_s6 }
   0x2   :  { %17 = vst [vmem:[#allocation2] sm:$0x1] %v16_v0 }
   0x3   :  { %18 = vsyncpa [#allocation4], 0 }
   0x4   :  { %19 = vsyncpa [#allocation7], 0 }
   0x5   :  { %20 = vsyncpa [#allocation10], 0 }
   0x6   :  { %21 = vsyncpa [#allocation5], 0  ;;  %s40_s17 = sshll.u32 %s5372_s1, 4  ;;  %s41_s17 = int_to_ptr.hbm [resolvable:$true] %s40_s17 }
   0x7   :  { %22 = vsyncpa [#allocation14], 0  ;;  %s4523_s18 = smov [#allocation6]   ;;  %s64_s22 = sshll.u32 %s5374_s3, 4  ;;  %s65_s22 = int_to_ptr.hbm [resolvable:$true] %s64_s22 }
   0x8   :  { %s42_s19 = sshll.u32 %s4523_s18, 4  ;;  %s4524_s23 = smov 256   ;;  %s43_s19 = int_to_ptr.vmem [resolvable:$true] %s42_s19 }
   0x9   :  { %s4525_s6 = smov 16   ;;  %s4526_s24 = smov [#allocation9]  }
   0xa   :  { %48 = dma.hbm_to_vmem [thread:$0]  %s41_s17, 16384, %s43_s19, [#allocation7], %s4524_s23, %s4524_s23, %s4525_s6  }
   0xb   :  { %s66_s25 = sshll.u32 %s4526_s24, 4  ;;  %s4527_s26 = smov 128   ;;  %s67_s25 = int_to_ptr.vmem [resolvable:$true] %s66_s25 }
   0xc   :  { %s4528_s27 = smov 8   ;;  %s27_s29 = sshll.u32 %s5371_s0, 4  ;;  %s28_s29 = int_to_ptr.hbm [resolvable:$true] %s27_s29 }
   0xd   :  { %72 = dma.hbm_to_vmem [thread:$0]  %s65_s22, 8192, %s67_s25, [#allocation10], %s4527_s26, %s4527_s26, %s4528_s27  }
   0xe   :  { %s4529_s30 = smov [#allocation3]   ;;  %s54_s13 = sshll.u32 %s5373_s2, 4  ;;  %s55_s13 = int_to_ptr.hbm [resolvable:$true] %s54_s13 }
   0xf   :  { %s29_s11 = sshll.u32 %s4529_s30, 4  ;;  %s4530_s14 = smov 512   ;;  %s30_s11 = int_to_ptr.vmem [resolvable:$true] %s29_s11 }
  0x10   :  { %s4531_s15 = smov 32   ;;  %s4532_s16 = smov [#allocation8]  }
  0x11   :  { %35 = dma.hbm_to_vmem [thread:$0]  %s28_s29, 8192, %s30_s11, [#allocation4], %s4530_s14, %s4530_s14, %s4531_s15  }
  0x12   :  { %s56_s17 = sshll.u32 %s4532_s16, 4  ;;  %s84_s20 = sshll.u32 %s5378_s7, 4  ;;  %s57_s17 = int_to_ptr.vmem [resolvable:$true] %s56_s17  ;;  %s85_s20 = int_to_ptr.hbm [resolvable:$true] %s84_s20 }
  0x13   :  { %59 = dma.hbm_to_vmem [thread:$0]  %s55_s13, 64, %s57_s17, [#allocation7]  }
  0x14   :  { %s4533_s0 = smov [#allocation11]  }
  0x15   :  { %s86_s21 = sshll.u32 %s4533_s0, 4  ;;  %s87_s21 = int_to_ptr.vmem [resolvable:$true] %s86_s21 }
  0x16   :  { %89 = dma.hbm_to_vmem [thread:$0]  %s85_s20, 128, %s87_s21, [#allocation10]  }
  0x17   :  { %4513 = dma.done.wait [#allocation4], 8192  }
  0x18   :  { %4514 = vsyncadd [#allocation4], 4294959104 }
  0x19   :  { %4515 = dma.done.wait [#allocation7], 16448  }
  0x1a   :  { %4516 = vsyncadd [#allocation7], 4294950848 }
  0x1b   :  { %4517 = dma.done.wait [#allocation10], 8320  }
  0x1c   :  { %4518 = vsyncadd [#allocation10], 4294958976  ;;  %v3363_v1 = vld [vmem:[#allocation6 + $0xe0] sm:$0xf]  ;;  %v4063_v2 = vld [vmem:[#allocation6 + $0xec] sm:$0xf0] }
  0x1d   :  { %v3491_v3 = vld [vmem:[#allocation6 + $0x1e0] sm:$0xf]  ;;  %v3364_v4 = vor.u32 %v4063_v2, %v3363_v1  ;;  %v4095_v5 = vld [vmem:[#allocation6 + $0x1ec] sm:$0xf0]  ;;  %s3232_s26 = sshll.u32 %s5381_s10, 4  ;;  %s4536_s27 = smov [#allocation12]   ;;  %s3233_s26 = int_to_ptr.hbm [resolvable:$true] %s3232_s26 }
  0x1e   :  { %v3619_v6 = vld [vmem:[#allocation6 + $0x2e0] sm:$0xf]  ;;  %v4127_v7 = vld [vmem:[#allocation6 + $0x2ec] sm:$0xf0]  ;;  %v3492_v8 = vor.u32 %v4095_v5, %v3491_v3  ;;  %s3219_s1 = sshll.u32 %s4536_s27, 4  ;;  %s3221_s29 = sshll.u32 %s5380_s9, 4  ;;  %s3220_s1 = int_to_ptr.vmem [resolvable:$true] %s3219_s1  ;;  %s3222_s29 = int_to_ptr.hbm [resolvable:$true] %s3221_s29 }
  0x1f   :  { %v3620_v9 = vor.u32 %v4127_v7, %v3619_v6  ;;  %v3747_v10 = vld [vmem:[#allocation6 + $0x3e0] sm:$0xf]  ;;  %v4159_v11 = vld [vmem:[#allocation6 + $0x3ec] sm:$0xf0]  ;;  %986 = vmatpush.bf16.msra.mxu0 %v3364_v4 }
  0x20   :  { %v3347_v12 = vld [vmem:[#allocation6 + $0xc0] sm:$0xf]  ;;  %v3748_v13 = vor.u32 %v4159_v11, %v3747_v10  ;;  %v4059_v14 = vld [vmem:[#allocation6 + $0xcc] sm:$0xf0]  ;;  %1035 = vmatpush.bf16.msra.mxu1 %v3492_v8 }
  0x21   :  { %v3475_v15 = vld [vmem:[#allocation6 + $0x1c0] sm:$0xf]  ;;  %v4091_v16 = vld [vmem:[#allocation6 + $0x1cc] sm:$0xf0]  ;;  %1084 = vmatpush.bf16.msra.mxu2 %v3620_v9  ;;  %v3348_v17 = vor.u32 %v4059_v14, %v3347_v12 }
  0x22   :  { %v3476_v18 = vor.u32 %v4091_v16, %v3475_v15  ;;  %v3603_v19 = vld [vmem:[#allocation6 + $0x2c0] sm:$0xf]  ;;  %v4123_v20 = vld [vmem:[#allocation6 + $0x2cc] sm:$0xf0]  ;;  %1133 = vmatpush.bf16.msra.mxu3 %v3748_v13 }
  0x23   :  { %v3731_v21 = vld [vmem:[#allocation6 + $0x3c0] sm:$0xf]  ;;  %v3604_v22 = vor.u32 %v4123_v20, %v3603_v19  ;;  %v4155_v23 = vld [vmem:[#allocation6 + $0x3cc] sm:$0xf0]  ;;  %987 = vmatpush.bf16.msra.mxu0 %v3348_v17 }
  0x24   :  { %v3331_v24 = vld [vmem:[#allocation6 + $0xa0] sm:$0xf]  ;;  %v4055_v25 = vld [vmem:[#allocation6 + $0xac] sm:$0xf0]  ;;  %v3732_v26 = vor.u32 %v4155_v23, %v3731_v21  ;;  %1036 = vmatpush.bf16.msra.mxu1 %v3476_v18 }
  0x25   :  { %v3459_v27 = vld [vmem:[#allocation6 + $0x1a0] sm:$0xf]  ;;  %v4087_v28 = vld [vmem:[#allocation6 + $0x1ac] sm:$0xf0]  ;;  %v3332_v30 = vor.u32 %v4055_v25, %v3331_v24  ;;  %1085 = vmatpush.bf16.msra.mxu2 %v3604_v22 }
  0x26   :  { %v3587_v29 = vld [vmem:[#allocation6 + $0x2a0] sm:$0xf]  ;;  %v4119_v31 = vld [vmem:[#allocation6 + $0x2ac] sm:$0xf0]  ;;  %v3460_v34 = vor.u32 %v4087_v28, %v3459_v27  ;;  %1134 = vmatpush.bf16.msra.mxu3 %v3732_v26 }
  0x27   :  { %v3715_v32 = vld [vmem:[#allocation6 + $0x3a0] sm:$0xf]  ;;  %v4151_v33 = vld [vmem:[#allocation6 + $0x3ac] sm:$0xf0]  ;;  %v3588_v35 = vor.u32 %v4119_v31, %v3587_v29  ;;  %988 = vmatpush.bf16.msra.mxu0 %v3332_v30 }
  0x28   :  { %v3315_v36 = vld [vmem:[#allocation6 + $0x80] sm:$0xf]  ;;  %v4051_v37 = vld [vmem:[#allocation6 + $0x8c] sm:$0xf0]  ;;  %v3716_v39 = vor.u32 %v4151_v33, %v3715_v32  ;;  %1037 = vmatpush.bf16.msra.mxu1 %v3460_v34  ;;  %v113_v32 = vld [vmem:[#allocation3 + $0x8] sm:$0xff] }
  0x29   :  { %v3443_v38 = vld [vmem:[#allocation6 + $0x180] sm:$0xf]  ;;  %v4083_v40 = vld [vmem:[#allocation6 + $0x18c] sm:$0xf0]  ;;  %v3316_v45 = vor.u32 %v4051_v37, %v3315_v36  ;;  %1086 = vmatpush.bf16.msra.mxu2 %v3588_v35  ;;  %v117_v35 = vld [vmem:[#allocation3 + $0x28] sm:$0xff] }
  0x2a   :  { %v3571_v41 = vld [vmem:[#allocation6 + $0x280] sm:$0xf]  ;;  %v4115_v42 = vld [vmem:[#allocation6 + $0x28c] sm:$0xf0]  ;;  %v3444_v46 = vor.u32 %v4083_v40, %v3443_v38  ;;  %1135 = vmatpush.bf16.msra.mxu3 %v3716_v39  ;;  %v115_v39 = vld [vmem:[#allocation3 + $0x18] sm:$0xff] }
  0x2b   :  { %v3699_v43 = vld [vmem:[#allocation6 + $0x380] sm:$0xf]  ;;  %v4147_v44 = vld [vmem:[#allocation6 + $0x38c] sm:$0xf0]  ;;  %v3572_v47 = vor.u32 %v4115_v42, %v3571_v41  ;;  %989 = vmatpush.bf16.msra.mxu0 %v3316_v45  ;;  %v119_v40 = vld [vmem:[#allocation3 + $0x38] sm:$0xff]  ;;  %v4612_v42 = vpack.c.bf16 %v117_v35, %v113_v32 }
  0x2c   :  { %v3299_v48 = vld [vmem:[#allocation6 + $0x60] sm:$0xf]  ;;  %v4047_v49 = vld [vmem:[#allocation6 + $0x6c] sm:$0xf0]  ;;  %v3700_v51 = vor.u32 %v4147_v44, %v3699_v43  ;;  %1038 = vmatpush.bf16.msra.mxu1 %v3444_v46  ;;  %v4616_v44 = vpack.c.bf16 %v119_v40, %v115_v39  ;;  %v3733_v35 = vld [vmem:[#allocation6 + $0x3d0] sm:$0xf0] }
  0x2d   :  { %v3427_v50 = vld [vmem:[#allocation6 + $0x160] sm:$0xf]  ;;  %v4079_v52 = vld [vmem:[#allocation6 + $0x16c] sm:$0xf0]  ;;  %v3300_v57 = vor.u32 %v4047_v49, %v3299_v48  ;;  %1087 = vmatpush.bf16.msra.mxu2 %v3572_v47  ;;  %v121_v47 = vld [vmem:[#allocation3 + $0x48] sm:$0xff] }
  0x2e   :  { %v3555_v53 = vld [vmem:[#allocation6 + $0x260] sm:$0xf]  ;;  %v4111_v54 = vld [vmem:[#allocation6 + $0x26c] sm:$0xf0]  ;;  %v3428_v58 = vor.u32 %v4079_v52, %v3427_v50  ;;  %1136 = vmatpush.bf16.msra.mxu3 %v3700_v51  ;;  %v125_v48 = vld [vmem:[#allocation3 + $0x68] sm:$0xff] }
  0x2f   :  { %v3683_v55 = vld [vmem:[#allocation6 + $0x360] sm:$0xf]  ;;  %v4143_v56 = vld [vmem:[#allocation6 + $0x36c] sm:$0xf0]  ;;  %v3556_v59 = vor.u32 %v4111_v54, %v3555_v53  ;;  %990 = vmatpush.bf16.msra.mxu0 %v3300_v57  ;;  %v123_v51 = vld [vmem:[#allocation3 + $0x58] sm:$0xff]  ;;  %v4624_v54 = vpack.c.bf16 %v125_v48, %v121_v47 }
  0x30   :  { %v3283_v60 = vld [vmem:[#allocation6 + $0x40] sm:$0xf]  ;;  %v4043_v61 = vld [vmem:[#allocation6 + $0x4c] sm:$0xf0]  ;;  %v3684_v63 = vor.u32 %v4143_v56, %v3683_v55  ;;  %1039 = vmatpush.bf16.msra.mxu1 %v3428_v58  ;;  %v127_v52 = vld [vmem:[#allocation3 + $0x78] sm:$0xff] }
  0x31   :  { %v3411_v62 = vld [vmem:[#allocation6 + $0x140] sm:$0xf]  ;;  %v4075_v0 = vld [vmem:[#allocation6 + $0x14c] sm:$0xf0]  ;;  %v3284_v5 = vor.u32 %v4043_v61, %v3283_v60  ;;  %1088 = vmatpush.bf16.msra.mxu2 %v3556_v59  ;;  %v4628_v56 = vpack.c.bf16 %v127_v52, %v123_v51  ;;  %v129_v59 = vld [vmem:[#allocation3 + $0x88] sm:$0xff] }
  0x32   :  { %v3539_v1 = vld [vmem:[#allocation6 + $0x240] sm:$0xf]  ;;  %v4107_v2 = vld [vmem:[#allocation6 + $0x24c] sm:$0xf0]  ;;  %v3412_v6 = vor.u32 %v4075_v0, %v3411_v62  ;;  %1137 = vmatpush.bf16.msra.mxu3 %v3684_v63  ;;  %v133_v60 = vld [vmem:[#allocation3 + $0xa8] sm:$0xff] }
  0x33   :  { %v3667_v3 = vld [vmem:[#allocation6 + $0x340] sm:$0xf]  ;;  %v4139_v4 = vld [vmem:[#allocation6 + $0x34c] sm:$0xf0]  ;;  %v3540_v7 = vor.u32 %v4107_v2, %v3539_v1  ;;  %991 = vmatpush.bf16.msra.mxu0 %v3284_v5  ;;  %v131_v63 = vld [vmem:[#allocation3 + $0x98] sm:$0xff]  ;;  %v4636_v2 = vpack.c.bf16 %v133_v60, %v129_v59 }
  0x34   :  { %v3267_v8 = vld [vmem:[#allocation6 + $0x20] sm:$0xf]  ;;  %v4039_v9 = vld [vmem:[#allocation6 + $0x2c] sm:$0xf0]  ;;  %v3668_v11 = vor.u32 %v4139_v4, %v3667_v3  ;;  %1040 = vmatpush.bf16.msra.mxu1 %v3412_v6  ;;  %v135_v0 = vld [vmem:[#allocation3 + $0xb8] sm:$0xff] }
  0x35   :  { %v3395_v10 = vld [vmem:[#allocation6 + $0x120] sm:$0xf]  ;;  %v4071_v12 = vld [vmem:[#allocation6 + $0x12c] sm:$0xf0]  ;;  %v3268_v17 = vor.u32 %v4039_v9, %v3267_v8  ;;  %1089 = vmatpush.bf16.msra.mxu2 %v3540_v7  ;;  %v4640_v4 = vpack.c.bf16 %v135_v0, %v131_v63  ;;  %v4125_v5 = vld [vmem:[#allocation6 + $0x2e4] sm:$0xf] }
  0x36   :  { %v3523_v13 = vld [vmem:[#allocation6 + $0x220] sm:$0xf]  ;;  %v4103_v14 = vld [vmem:[#allocation6 + $0x22c] sm:$0xf0]  ;;  %v3396_v18 = vor.u32 %v4071_v12, %v3395_v10  ;;  %1138 = vmatpush.bf16.msra.mxu3 %v3668_v11  ;;  %v3621_v6 = vld [vmem:[#allocation6 + $0x2f0] sm:$0xf0] }
  0x37   :  { %v3651_v15 = vld [vmem:[#allocation6 + $0x320] sm:$0xf]  ;;  %v4135_v16 = vld [vmem:[#allocation6 + $0x32c] sm:$0xf0]  ;;  %v3524_v19 = vor.u32 %v4103_v14, %v3523_v13  ;;  %992 = vmatpush.bf16.msra.mxu0 %v3268_v17  ;;  %v4061_v7 = vld [vmem:[#allocation6 + $0xe4] sm:$0xf]  ;;  %v3624_v8 = vor.u32 %v4125_v5, %v3621_v6 }
  0x38   :  { %v3251_v20 = vld [vmem:[#allocation6] sm:$0xf]  ;;  %v4035_v21 = vld [vmem:[#allocation6 + $0xc] sm:$0xf0]  ;;  %v3652_v23 = vor.u32 %v4135_v16, %v3651_v15  ;;  %1041 = vmatpush.bf16.msra.mxu1 %v3396_v18  ;;  %v3365_v9 = vld [vmem:[#allocation6 + $0xf0] sm:$0xf0] }
  0x39   :  { %v3379_v22 = vld [vmem:[#allocation6 + $0x100] sm:$0xf]  ;;  %v4067_v24 = vld [vmem:[#allocation6 + $0x10c] sm:$0xf0]  ;;  %v3252_v29 = vor.u32 %v4035_v21, %v3251_v20  ;;  %1090 = vmatpush.bf16.msra.mxu2 %v3524_v19  ;;  %v4157_v10 = vld [vmem:[#allocation6 + $0x3e4] sm:$0xf]  ;;  %v3368_v12 = vor.u32 %v4061_v7, %v3365_v9 }
  0x3a   :  { %v3507_v25 = vld [vmem:[#allocation6 + $0x200] sm:$0xf]  ;;  %v4099_v26 = vld [vmem:[#allocation6 + $0x20c] sm:$0xf0]  ;;  %v3380_v33 = vor.u32 %v4067_v24, %v3379_v22  ;;  %1139 = vmatpush.bf16.msra.mxu3 %v3652_v23  ;;  %v3749_v11 = vld [vmem:[#allocation6 + $0x3f0] sm:$0xf0] }
  0x3b   :  { %v3635_v27 = vld [vmem:[#allocation6 + $0x300] sm:$0xf]  ;;  %v4131_v28 = vld [vmem:[#allocation6 + $0x30c] sm:$0xf0]  ;;  %v3508_v34 = vor.u32 %v4099_v26, %v3507_v25  ;;  %993 = vmatpush.bf16.msra.mxu0 %v3252_v29  ;;  %v3752_v13 = vor.u32 %v4157_v10, %v3749_v11  ;;  %v4093_v14 = vld [vmem:[#allocation6 + $0x1e4] sm:$0xf] }
  0x3c   :  { %v112_v30 = vld [vmem:[#allocation3] sm:$0xff]  ;;  %v114_v36 = vld [vmem:[#allocation3 + $0x10] sm:$0xff]  ;;  %v3636_v38 = vor.u32 %v4131_v28, %v3635_v27  ;;  %1042 = vmatpush.bf16.msra.mxu1 %v3380_v33  ;;  %v137_v19 = vld [vmem:[#allocation3 + $0xc8] sm:$0xff] }
  0x3d   :  { %v116_v31 = vld [vmem:[#allocation3 + $0x20] sm:$0xff]  ;;  %v118_v37 = vld [vmem:[#allocation3 + $0x30] sm:$0xff]  ;;  %1091 = vmatpush.bf16.msra.mxu2 %v3508_v34  ;;  %v141_v20 = vld [vmem:[#allocation3 + $0xe8] sm:$0xff] }
  0x3e   :  { %v4610_v41 = vpack.c.bf16 %v116_v31, %v112_v30  ;;  %v4614_v43 = vpack.c.bf16 %v118_v37, %v114_v36  ;;  %1140 = vmatpush.bf16.msra.mxu3 %v3636_v38  ;;  %v120_v45 = vld [vmem:[#allocation3 + $0x40] sm:$0xff]  ;;  %v122_v49 = vld [vmem:[#allocation3 + $0x50] sm:$0xff]  ;;  %v139_v23 = vld [vmem:[#allocation3 + $0xd8] sm:$0xff]  ;;  %v4648_v26 = vpack.c.bf16 %v141_v20, %v137_v19 }
  0x3f   :  { %1043 = vmatmul.bf16.vlgmr.msra.gmra.mxu1 %v4612_v42  ;;  %v124_v46 = vld [vmem:[#allocation3 + $0x60] sm:$0xff]  ;;  %v126_v50 = vld [vmem:[#allocation3 + $0x70] sm:$0xff]  ;;  %1182 = vmatpush.bf16.msrb.mxu0 %v3368_v12  ;;  %v143_v24 = vld [vmem:[#allocation3 + $0xf8] sm:$0xff] }
  0x40   :  { %994 = vmatmul.bf16.vlgmr.msra.gmra.mxu0 %v4610_v41  ;;  %1092 = vmatmul.bf16.vlgmr.msra.gmra.mxu2 %v4614_v43  ;;  %v4622_v53 = vpack.c.bf16 %v124_v46, %v120_v45  ;;  %v4626_v55 = vpack.c.bf16 %v126_v50, %v122_v49  ;;  %v128_v57 = vld [vmem:[#allocation3 + $0x80] sm:$0xff]  ;;  %v130_v61 = vld [vmem:[#allocation3 + $0x90] sm:$0xff]  ;;  %v4652_v28 = vpack.c.bf16 %v143_v24, %v139_v23  ;;  %v145_v47 = vld [vmem:[#allocation3 + $0x108] sm:$0xff] }
  0x41   :  { %1141 = vmatmul.bf16.vlgmr.msra.gmra.mxu3 %v4616_v44  ;;  %v132_v58 = vld [vmem:[#allocation3 + $0xa0] sm:$0xff]  ;;  %v134_v62 = vld [vmem:[#allocation3 + $0xb0] sm:$0xff]  ;;  %1280 = vmatpush.bf16.msrb.mxu2 %v3624_v8  ;;  %v149_v48 = vld [vmem:[#allocation3 + $0x128] sm:$0xff] }
  0x42   :  { %v4634_v1 = vpack.c.bf16 %v132_v58, %v128_v57  ;;  %v4638_v3 = vpack.c.bf16 %v134_v62, %v130_v61  ;;  %v3493_v15 = vld [vmem:[#allocation6 + $0x1f0] sm:$0xf0]  ;;  %1329 = vmatpush.bf16.msrb.mxu3 %v3752_v13  ;;  %v136_v17 = vld [vmem:[#allocation3 + $0xc0] sm:$0xff]  ;;  %v147_v51 = vld [vmem:[#allocation3 + $0x118] sm:$0xff]  ;;  %v4660_v58 = vpack.c.bf16 %v149_v48, %v145_v47 }
  0x43   :  { %v3496_v16 = vor.u32 %v4093_v14, %v3493_v15  ;;  %v140_v18 = vld [vmem:[#allocation3 + $0xe0] sm:$0xff]  ;;  %v138_v21 = vld [vmem:[#allocation3 + $0xd0] sm:$0xff]  ;;  %v151_v52 = vld [vmem:[#allocation3 + $0x138] sm:$0xff] }
  0x44   :  { %v142_v22 = vld [vmem:[#allocation3 + $0xf0] sm:$0xff]  ;;  %v4646_v25 = vpack.c.bf16 %v140_v18, %v136_v17  ;;  %v4121_v29 = vld [vmem:[#allocation6 + $0x2c4] sm:$0xf]  ;;  %v4664_v60 = vpack.c.bf16 %v151_v52, %v147_v51 }
  0x45   :  { %1231 = vmatpush.bf16.msrb.mxu1 %v3496_v16  ;;  %v4650_v27 = vpack.c.bf16 %v142_v22, %v138_v21  ;;  %v3605_v30 = vld [vmem:[#allocation6 + $0x2d0] sm:$0xf0]  ;;  %v4057_v31 = vld [vmem:[#allocation6 + $0xc4] sm:$0xf] }
  0x46   :  { %v3608_v32 = vor.u32 %v4121_v29, %v3605_v30  ;;  %v3349_v33 = vld [vmem:[#allocation6 + $0xd0] sm:$0xf0]  ;;  %v4153_v34 = vld [vmem:[#allocation6 + $0x3c4] sm:$0xf] }
  0x47   :  { %v3352_v36 = vor.u32 %v4057_v31, %v3349_v33  ;;  %v3736_v37 = vor.u32 %v4153_v34, %v3733_v35  ;;  %v4089_v38 = vld [vmem:[#allocation6 + $0x1c4] sm:$0xf]  ;;  %v3477_v39 = vld [vmem:[#allocation6 + $0x1d0] sm:$0xf0]  ;;  %v153_v31 = vld [vmem:[#allocation3 + $0x148] sm:$0xff] }
  0x48   :  { %1281 = vmatpush.bf16.msrb.mxu2 %v3608_v32  ;;  %v3480_v40 = vor.u32 %v4089_v38, %v3477_v39  ;;  %v144_v45 = vld [vmem:[#allocation3 + $0x100] sm:$0xff]  ;;  %v146_v49 = vld [vmem:[#allocation3 + $0x110] sm:$0xff]  ;;  %v157_v32 = vld [vmem:[#allocation3 + $0x168] sm:$0xff] }
  0x49   :  { %1183 = vmatpush.bf16.msrb.mxu0 %v3352_v36  ;;  %1330 = vmatpush.bf16.msrb.mxu3 %v3736_v37  ;;  %v148_v46 = vld [vmem:[#allocation3 + $0x120] sm:$0xff]  ;;  %v150_v50 = vld [vmem:[#allocation3 + $0x130] sm:$0xff]  ;;  %v155_v35 = vld [vmem:[#allocation3 + $0x158] sm:$0xff]  ;;  %v4672_v38 = vpack.c.bf16 %v157_v32, %v153_v31 }
  0x4a   :  { %1232 = vmatpush.bf16.msrb.mxu1 %v3480_v40  ;;  %v4658_v57 = vpack.c.bf16 %v148_v46, %v144_v45  ;;  %v4662_v59 = vpack.c.bf16 %v150_v50, %v146_v49  ;;  %v4117_v61 = vld [vmem:[#allocation6 + $0x2a4] sm:$0xf]  ;;  %v3589_v62 = vld [vmem:[#allocation6 + $0x2b0] sm:$0xf0]  ;;  %v159_v36 = vld [vmem:[#allocation3 + $0x178] sm:$0xff] }
  0x4b   :  { %v4053_v63 = vld [vmem:[#allocation6 + $0xa4] sm:$0xf]  ;;  %v3592_v0 = vor.u32 %v4117_v61, %v3589_v62  ;;  %v3333_v5 = vld [vmem:[#allocation6 + $0xb0] sm:$0xf0]  ;;  %v4676_v40 = vpack.c.bf16 %v159_v36, %v155_v35  ;;  %v161_v32 = vld [vmem:[#allocation3 + $0x188] sm:$0xff] }
  0x4c   :  { %v4149_v6 = vld [vmem:[#allocation6 + $0x3a4] sm:$0xf]  ;;  %v3717_v7 = vld [vmem:[#allocation6 + $0x3b0] sm:$0xf0]  ;;  %v3336_v8 = vor.u32 %v4053_v63, %v3333_v5  ;;  %v165_v35 = vld [vmem:[#allocation3 + $0x1a8] sm:$0xff] }
  0x4d   :  { %v3720_v9 = vor.u32 %v4149_v6, %v3717_v7  ;;  %v4085_v10 = vld [vmem:[#allocation6 + $0x1a4] sm:$0xf]  ;;  %v3461_v11 = vld [vmem:[#allocation6 + $0x1b0] sm:$0xf0]  ;;  %1282 = vmatpush.bf16.msrb.mxu2 %v3592_v0 }
  0x4e   :  { %v4049_v12 = vld [vmem:[#allocation6 + $0x84] sm:$0xf]  ;;  %v3464_v13 = vor.u32 %v4085_v10, %v3461_v11  ;;  %v3317_v14 = vld [vmem:[#allocation6 + $0x90] sm:$0xf0]  ;;  %1184 = vmatpush.bf16.msrb.mxu0 %v3336_v8 }
  0x4f   :  { %1048 = vmatmul.bf16.gmra.mxu1 %v4624_v54  ;;  %v4081_v15 = vld [vmem:[#allocation6 + $0x184] sm:$0xf]  ;;  %v3445_v16 = vld [vmem:[#allocation6 + $0x190] sm:$0xf0]  ;;  %1331 = vmatpush.bf16.msrb.mxu3 %v3720_v9  ;;  %v3320_v17 = vor.u32 %v4049_v12, %v3317_v14 }
  0x50   :  { %999 = vmatmul.bf16.gmra.mxu0 %v4622_v53  ;;  %1097 = vmatmul.bf16.gmra.mxu2 %v4626_v55  ;;  %v4113_v18 = vld [vmem:[#allocation6 + $0x284] sm:$0xf]  ;;  %v3573_v19 = vld [vmem:[#allocation6 + $0x290] sm:$0xf0]  ;;  %v3448_v21 = vor.u32 %v4081_v15, %v3445_v16 }
  0x51   :  { %1146 = vmatmul.bf16.gmra.mxu3 %v4628_v56  ;;  %v4145_v20 = vld [vmem:[#allocation6 + $0x384] sm:$0xf]  ;;  %1233 = vmatpush.bf16.msrb.mxu1 %v3464_v13  ;;  %v3576_v22 = vor.u32 %v4113_v18, %v3573_v19  ;;  %v3701_v23 = vld [vmem:[#allocation6 + $0x390] sm:$0xf0] }
  0x52   :  { %v3704_v24 = vor.u32 %v4145_v20, %v3701_v23  ;;  %v152_v29 = vld [vmem:[#allocation3 + $0x140] sm:$0xff]  ;;  %v154_v33 = vld [vmem:[#allocation3 + $0x150] sm:$0xff]  ;;  %1185 = vmatpush.bf16.msrb.mxu0 %v3320_v17 }
  0x53   :  { %v156_v30 = vld [vmem:[#allocation3 + $0x160] sm:$0xff]  ;;  %1283 = vmatpush.bf16.msrb.mxu2 %v3576_v22  ;;  %v158_v34 = vld [vmem:[#allocation3 + $0x170] sm:$0xff] }
  0x54   :  { %1332 = vmatpush.bf16.msrb.mxu3 %v3704_v24  ;;  %v4670_v37 = vpack.c.bf16 %v156_v30, %v152_v29  ;;  %v4674_v39 = vpack.c.bf16 %v158_v34, %v154_v33  ;;  %v4045_v45 = vld [vmem:[#allocation6 + $0x64] sm:$0xf]  ;;  %v3301_v46 = vld [vmem:[#allocation6 + $0x70] sm:$0xf0] }
  0x55   :  { %1234 = vmatpush.bf16.msrb.mxu1 %v3448_v21  ;;  %v4077_v47 = vld [vmem:[#allocation6 + $0x164] sm:$0xf]  ;;  %v3304_v48 = vor.u32 %v4045_v45, %v3301_v46  ;;  %v3429_v49 = vld [vmem:[#allocation6 + $0x170] sm:$0xf0] }
  0x56   :  { %v4109_v50 = vld [vmem:[#allocation6 + $0x264] sm:$0xf]  ;;  %v3557_v51 = vld [vmem:[#allocation6 + $0x270] sm:$0xf0]  ;;  %v3432_v52 = vor.u32 %v4077_v47, %v3429_v49  ;;  %v163_v47 = vld [vmem:[#allocation3 + $0x198] sm:$0xff] }
  0x57   :  { %v3560_v61 = vor.u32 %v4109_v50, %v3557_v51  ;;  %v4141_v62 = vld [vmem:[#allocation6 + $0x364] sm:$0xf]  ;;  %v3685_v63 = vld [vmem:[#allocation6 + $0x370] sm:$0xf0]  ;;  %1186 = vmatpush.bf16.msrb.mxu0 %v3304_v48  ;;  %v167_v48 = vld [vmem:[#allocation3 + $0x1b8] sm:$0xff] }
  0x58   :  { %v4041_v0 = vld [vmem:[#allocation6 + $0x44] sm:$0xf]  ;;  %v3688_v5 = vor.u32 %v4141_v62, %v3685_v63  ;;  %v3285_v6 = vld [vmem:[#allocation6 + $0x50] sm:$0xf0] }
  0x59   :  { %v4073_v7 = vld [vmem:[#allocation6 + $0x144] sm:$0xf]  ;;  %v3413_v8 = vld [vmem:[#allocation6 + $0x150] sm:$0xf0]  ;;  %1235 = vmatpush.bf16.msrb.mxu1 %v3432_v52  ;;  %1284 = vmatpush.bf16.msrb.mxu2 %v3560_v61  ;;  %v3288_v9 = vor.u32 %v4041_v0, %v3285_v6  ;;  %v4684_v61 = vpack.c.bf16 %v165_v35, %v161_v32  ;;  %v4688_v6 = vpack.c.bf16 %v167_v48, %v163_v47 }
  0x5a   :  { %v3416_v10 = vor.u32 %v4073_v7, %v3413_v8  ;;  %v4105_v11 = vld [vmem:[#allocation6 + $0x244] sm:$0xf]  ;;  %v3541_v12 = vld [vmem:[#allocation6 + $0x250] sm:$0xf0]  ;;  %1333 = vmatpush.bf16.msrb.mxu3 %v3688_v5 }
  0x5b   :  { %v4137_v13 = vld [vmem:[#allocation6 + $0x344] sm:$0xf]  ;;  %v3544_v14 = vor.u32 %v4105_v11, %v3541_v12  ;;  %v3669_v15 = vld [vmem:[#allocation6 + $0x350] sm:$0xf0]  ;;  %1187 = vmatpush.bf16.msrb.mxu0 %v3288_v9 }
  0x5c   :  { %v4037_v16 = vld [vmem:[#allocation6 + $0x24] sm:$0xf]  ;;  %v3269_v17 = vld [vmem:[#allocation6 + $0x30] sm:$0xf0]  ;;  %v3672_v18 = vor.u32 %v4137_v13, %v3669_v15  ;;  %v169_v15 = vld [vmem:[#allocation3 + $0x1c8] sm:$0xff] }
  0x5d   :  { %v4069_v19 = vld [vmem:[#allocation6 + $0x124] sm:$0xf]  ;;  %v3397_v20 = vld [vmem:[#allocation6 + $0x130] sm:$0xf0]  ;;  %v3272_v22 = vor.u32 %v4037_v16, %v3269_v17  ;;  %1236 = vmatpush.bf16.msrb.mxu1 %v3416_v10  ;;  %1285 = vmatpush.bf16.msrb.mxu2 %v3544_v14  ;;  %v173_v16 = vld [vmem:[#allocation3 + $0x1e8] sm:$0xff] }
  0x5e   :  { %v4101_v21 = vld [vmem:[#allocation6 + $0x224] sm:$0xf]  ;;  %v3525_v23 = vld [vmem:[#allocation6 + $0x230] sm:$0xf0]  ;;  %v3400_v33 = vor.u32 %v4069_v19, %v3397_v20  ;;  %1334 = vmatpush.bf16.msrb.mxu3 %v3672_v18  ;;  %v171_v19 = vld [vmem:[#allocation3 + $0x1d8] sm:$0xff] }
  0x5f   :  { %1053 = vmatmul.bf16.gmra.mxu1 %v4636_v2  ;;  %v4133_v24 = vld [vmem:[#allocation6 + $0x324] sm:$0xf]  ;;  %v3653_v29 = vld [vmem:[#allocation6 + $0x330] sm:$0xf0]  ;;  %v3528_v34 = vor.u32 %v4101_v21, %v3525_v23  ;;  %1188 = vmatpush.bf16.msrb.mxu0 %v3272_v22  ;;  %v175_v20 = vld [vmem:[#allocation3 + $0x1f8] sm:$0xff]  ;;  %v4696_v22 = vpack.c.bf16 %v173_v16, %v169_v15 }
  0x60   :  { %1004 = vmatmul.bf16.gmra.mxu0 %v4634_v1  ;;  %1102 = vmatmul.bf16.gmra.mxu2 %v4638_v3  ;;  %v160_v30 = vld [vmem:[#allocation3 + $0x180] sm:$0xff]  ;;  %v162_v36 = vld [vmem:[#allocation3 + $0x190] sm:$0xff]  ;;  %v3656_v46 = vor.u32 %v4133_v24, %v3653_v29  ;;  %v4700_v24 = vpack.c.bf16 %v175_v20, %v171_v19 }
  0x61   :  { %1151 = vmatmul.bf16.gmra.mxu3 %v4640_v4  ;;  %v164_v31 = vld [vmem:[#allocation3 + $0x1a0] sm:$0xff]  ;;  %v166_v45 = vld [vmem:[#allocation3 + $0x1b0] sm:$0xff]  ;;  %1237 = vmatpush.bf16.msrb.mxu1 %v3400_v33 }
  0x62   :  { %v4682_v49 = vpack.c.bf16 %v164_v31, %v160_v30  ;;  %v4033_v50 = vld [vmem:[#allocation6 + $0x4] sm:$0xf]  ;;  %v3253_v51 = vld [vmem:[#allocation6 + $0x10] sm:$0xf0]  ;;  %v4686_v62 = vpack.c.bf16 %v166_v45, %v162_v36  ;;  %1286 = vmatpush.bf16.msrb.mxu2 %v3528_v34  ;;  %1335 = vmatpush.bf16.msrb.mxu3 %v3656_v46  ;;  %v4706_v29 = vld [vmem:[#allocation8] sm:$0xf] }
  0x63   :  { %v4065_v52 = vld [vmem:[#allocation6 + $0x104] sm:$0xf]  ;;  %v3381_v63 = vld [vmem:[#allocation6 + $0x110] sm:$0xf0]  ;;  %v3256_v7 = vor.u32 %v4033_v50, %v3253_v51  ;;  %v4709_v30 = vperm.slane %v4706_v29, 0 }
  0x64   :  { %v4097_v0 = vld [vmem:[#allocation6 + $0x204] sm:$0xf]  ;;  %v3509_v5 = vld [vmem:[#allocation6 + $0x210] sm:$0xf0]  ;;  %v3384_v10 = vor.u32 %v4065_v52, %v3381_v63 }
  0x65   :  { %v4129_v8 = vld [vmem:[#allocation6 + $0x304] sm:$0xf]  ;;  %v3637_v9 = vld [vmem:[#allocation6 + $0x310] sm:$0xf0]  ;;  %v3512_v11 = vor.u32 %v4097_v0, %v3509_v5  ;;  %1189 = vmatpush.bf16.msrb.mxu0 %v3256_v7 }
  0x66   :  { %v3640_v12 = vor.u32 %v4129_v8, %v3637_v9  ;;  %1238 = vmatpush.bf16.msrb.mxu1 %v3384_v10  ;;  %v168_v13 = vld [vmem:[#allocation3 + $0x1c0] sm:$0xff]  ;;  %v170_v17 = vld [vmem:[#allocation3 + $0x1d0] sm:$0xff] }
  0x67   :  { %1287 = vmatpush.bf16.msrb.mxu2 %v3512_v11  ;;  %v172_v14 = vld [vmem:[#allocation3 + $0x1e0] sm:$0xff]  ;;  %v174_v18 = vld [vmem:[#allocation3 + $0x1f0] sm:$0xff] }
  0x68   :  { %1336 = vmatpush.bf16.msrb.mxu3 %v3640_v12  ;;  %v4694_v21 = vpack.c.bf16 %v172_v14, %v168_v13  ;;  %v4698_v23 = vpack.c.bf16 %v174_v18, %v170_v17 }
  0x6f   :  { %1058 = vmatmul.bf16.gmra.mxu1 %v4648_v26 }
  0x70   :  { %1009 = vmatmul.bf16.gmra.mxu0 %v4646_v25  ;;  %1107 = vmatmul.bf16.gmra.mxu2 %v4650_v27 }
  0x71   :  { %1156 = vmatmul.bf16.gmra.mxu3 %v4652_v28 }
  0x7f   :  { %1063 = vmatmul.bf16.gmra.mxu1 %v4660_v58 }
  0x80   :  { %1014 = vmatmul.bf16.gmra.mxu0 %v4658_v57  ;;  %1112 = vmatmul.bf16.gmra.mxu2 %v4662_v59 }
  0x81   :  { %1161 = vmatmul.bf16.gmra.mxu3 %v4664_v60 }
  0x8f   :  { %1068 = vmatmul.bf16.gmra.mxu1 %v4672_v38 }
  0x90   :  { %1019 = vmatmul.bf16.gmra.mxu0 %v4670_v37  ;;  %1117 = vmatmul.bf16.gmra.mxu2 %v4674_v39 }
  0x91   :  { %1166 = vmatmul.bf16.gmra.mxu3 %v4676_v40 }
  0x9f   :  { %1073 = vmatmul.bf16.gmra.mxu1 %v4684_v61 }
  0xa0   :  { %1024 = vmatmul.bf16.gmra.mxu0 %v4682_v49  ;;  %1122 = vmatmul.bf16.gmra.mxu2 %v4686_v62 }
  0xa1   :  { %1171 = vmatmul.bf16.gmra.mxu3 %v4688_v6 }
  0xaf   :  { %1078 = vmatmul.bf16.gmra.mxu1 %v4696_v22 }
  0xb0   :  { %1029 = vmatmul.bf16.gmra.mxu0 %v4694_v21  ;;  %1127 = vmatmul.bf16.gmra.mxu2 %v4698_v23 }
  0xb1   :  { %1176 = vmatmul.bf16.gmra.mxu3 %v4700_v24 }
  0xbc   :  { %v1044_v33 = vpop.f32.mrf.mxu1 }
  0xbd   :  { %v995_v31 = vpop.f32.mrf.mxu0 }
  0xbe   :  { %v996_v32 = vadd.f32 %v995_v31, %v4709_v30 }
  0xbf   :  { %1239 = vmatmul.bf16.vlgmr.msrb.gmra.mxu1 %v4612_v42 }
  0xc0   :  { %v1045_v34 = vadd.f32 %v1044_v33, %v996_v32  ;;  %1190 = vmatmul.bf16.vlgmr.msrb.gmra.mxu0 %v4610_v41  ;;  %1288 = vmatmul.bf16.vlgmr.msrb.gmra.mxu2 %v4614_v43 }
  0xc1   :  { %1337 = vmatmul.bf16.vlgmr.msrb.gmra.mxu3 %v4616_v44 }
  0xc3   :  { %v1093_v35 = vpop.f32.mrf.mxu2 }
  0xc4   :  { %v1094_v36 = vadd.f32 %v1093_v35, %v1045_v34  ;;  %v1142_v45 = vpop.f32.mrf.mxu3  ;;  %v1046_v48 = vpop.f32.mrf.mxu1 }
  0xc5   :  { %v997_v46 = vpop.f32.mrf.mxu0 }
  0xc6   :  { %v998_v47 = vadd.f32 %v997_v46, %v4709_v30  ;;  %v1143_v50 = vadd.f32 %v1142_v45, %v1094_v36 }
  0xc8   :  { %v1047_v51 = vadd.f32 %v1046_v48, %v998_v47  ;;  %v1770_v11 = vmax.f32 %v1143_v50, 0.0 }
  0xcb   :  { %v1095_v52 = vpop.f32.mrf.mxu2 }
  0xcc   :  { %v1096_v63 = vadd.f32 %v1095_v52, %v1047_v51  ;;  %v1144_v0 = vpop.f32.mrf.mxu3  ;;  %v1049_v8 = vpop.f32.mrf.mxu1  ;;  %v3627_v51 = vld [vmem:[#allocation6 + $0x2e8] sm:$0xf]  ;;  %v4128_v52 = vld [vmem:[#allocation6 + $0x2f4] sm:$0xf0] }
  0xcd   :  { %v1000_v5 = vpop.f32.mrf.mxu0 }
  0xce   :  { %v1001_v7 = vadd.f32 %v1000_v5, %v4709_v30  ;;  %v1145_v9 = vadd.f32 %v1144_v0, %v1096_v63  ;;  %v3628_v63 = vor.u32 %v4128_v52, %v3627_v51 }
  0xcf   :  { %1244 = vmatmul.bf16.gmra.mxu1 %v4624_v54 }
  0xd0   :  { %v1050_v10 = vadd.f32 %v1049_v8, %v1001_v7  ;;  %1195 = vmatmul.bf16.gmra.mxu0 %v4622_v53  ;;  %v1774_v12 = vmax.f32 %v1145_v9, 0.0  ;;  %1293 = vmatmul.bf16.gmra.mxu2 %v4626_v55 }
  0xd1   :  { %1342 = vmatmul.bf16.gmra.mxu3 %v4628_v56  ;;  %1476 = vmatpush.bf16.msra.mxu2 %v3628_v63  ;;  %v3611_v63 = vld [vmem:[#allocation6 + $0x2c8] sm:$0xf] }
  0xd2   :  { %v4722_v13 = vpack.c.bf16 %v1774_v12, %v1770_v11 }
  0xd3   :  { %v1098_v14 = vpop.f32.mrf.mxu2 }
  0xd4   :  { %v1099_v15 = vadd.f32 %v1098_v14, %v1050_v10  ;;  %v1147_v16 = vpop.f32.mrf.mxu3  ;;  %v1051_v19 = vpop.f32.mrf.mxu1 }
  0xd5   :  { %v1002_v17 = vpop.f32.mrf.mxu0 }
  0xd6   :  { %v1003_v18 = vadd.f32 %v1002_v17, %v4709_v30  ;;  %v1148_v20 = vadd.f32 %v1147_v16, %v1099_v15  ;;  %v3371_v15 = vld [vmem:[#allocation6 + $0xe8] sm:$0xf]  ;;  %v4064_v16 = vld [vmem:[#allocation6 + $0xf4] sm:$0xf0] }
  0xd7   :  { %v3372_v17 = vor.u32 %v4064_v16, %v3371_v15 }
  0xd8   :  { %v1052_v31 = vadd.f32 %v1051_v19, %v1003_v18  ;;  %v1778_v48 = vmax.f32 %v1148_v20, 0.0  ;;  %v3755_v18 = vld [vmem:[#allocation6 + $0x3e8] sm:$0xf]  ;;  %v4160_v19 = vld [vmem:[#allocation6 + $0x3f4] sm:$0xf0] }
  0xd9   :  { %v3499_v20 = vld [vmem:[#allocation6 + $0x1e8] sm:$0xf]  ;;  %1378 = vmatpush.bf16.msra.mxu0 %v3372_v17 }
  0xdb   :  { %v1100_v32 = vpop.f32.mrf.mxu2 }
  0xdc   :  { %v1101_v33 = vadd.f32 %v1100_v32, %v1052_v31  ;;  %v1149_v34 = vpop.f32.mrf.mxu3  ;;  %v1054_v45 = vpop.f32.mrf.mxu1  ;;  %v3756_v31 = vor.u32 %v4160_v19, %v3755_v18  ;;  %v4096_v32 = vld [vmem:[#allocation6 + $0x1f4] sm:$0xf0]  ;;  %v3355_v18 = vld [vmem:[#allocation6 + $0xc8] sm:$0xf] }
  0xdd   :  { %v1005_v35 = vpop.f32.mrf.mxu0  ;;  %v4060_v19 = vld [vmem:[#allocation6 + $0xd4] sm:$0xf0] }
  0xde   :  { %v1006_v36 = vadd.f32 %v1005_v35, %v4709_v30  ;;  %v1150_v46 = vadd.f32 %v1149_v34, %v1101_v33  ;;  %v3500_v34 = vor.u32 %v4096_v32, %v3499_v20  ;;  %1525 = vmatpush.bf16.msra.mxu3 %v3756_v31  ;;  %v3356_v20 = vor.u32 %v4060_v19, %v3355_v18  ;;  %v3739_v31 = vld [vmem:[#allocation6 + $0x3c8] sm:$0xf]  ;;  %v4156_v32 = vld [vmem:[#allocation6 + $0x3d4] sm:$0xf0] }
  0xdf   :  { %1249 = vmatmul.bf16.gmra.mxu1 %v4636_v2 }
  0xe0   :  { %v1055_v47 = vadd.f32 %v1054_v45, %v1006_v36  ;;  %1200 = vmatmul.bf16.gmra.mxu0 %v4634_v1  ;;  %v1782_v50 = vmax.f32 %v1150_v46, 0.0  ;;  %1298 = vmatmul.bf16.gmra.mxu2 %v4638_v3 }
  0xe1   :  { %1347 = vmatmul.bf16.gmra.mxu3 %v4640_v4  ;;  %1427 = vmatpush.bf16.msra.mxu1 %v3500_v34  ;;  %v3740_v34 = vor.u32 %v4156_v32, %v3739_v31  ;;  %v3339_v32 = vld [vmem:[#allocation6 + $0xa8] sm:$0xf] }
  0xe2   :  { %v4730_v0 = vpack.c.bf16 %v1782_v50, %v1778_v48  ;;  %1379 = vmatpush.bf16.msra.mxu0 %v3356_v20 }
  0xe3   :  { %v1103_v5 = vpop.f32.mrf.mxu2  ;;  %1526 = vmatpush.bf16.msra.mxu3 %v3740_v34  ;;  %v3723_v34 = vld [vmem:[#allocation6 + $0x3a8] sm:$0xf] }
  0xe4   :  { %5390 = vst [vmem:[#allocation20_spill] sm:$0xff] %v4730_v0  ;;  %v1104_v7 = vadd.f32 %v1103_v5, %v1055_v47  ;;  %v1152_v8 = vpop.f32.mrf.mxu3  ;;  %v1056_v11 = vpop.f32.mrf.mxu1  ;;  %v4124_v5 = vld [vmem:[#allocation6 + $0x2d4] sm:$0xf0] }
  0xe5   :  { %v1007_v9 = vpop.f32.mrf.mxu0 }
  0xe6   :  { %v1008_v10 = vadd.f32 %v1007_v9, %v4709_v30  ;;  %v1153_v12 = vadd.f32 %v1152_v8, %v1104_v7  ;;  %v3612_v7 = vor.u32 %v4124_v5, %v3611_v63 }
  0xe8   :  { %v1057_v14 = vadd.f32 %v1056_v11, %v1008_v10  ;;  %v1786_v51 = vmax.f32 %v1153_v12, 0.0  ;;  %1477 = vmatpush.bf16.msra.mxu2 %v3612_v7 }
  0xeb   :  { %v1105_v33 = vpop.f32.mrf.mxu2 }
  0xec   :  { %v1106_v35 = vadd.f32 %v1105_v33, %v1057_v14  ;;  %v1154_v36 = vpop.f32.mrf.mxu3  ;;  %v1059_v47 = vpop.f32.mrf.mxu1  ;;  %v3483_v33 = vld [vmem:[#allocation6 + $0x1c8] sm:$0xf] }
  0xed   :  { %v1010_v45 = vpop.f32.mrf.mxu0 }
  0xee   :  { %v1011_v46 = vadd.f32 %v1010_v45, %v4709_v30  ;;  %v1155_v48 = vadd.f32 %v1154_v36, %v1106_v35  ;;  %v4092_v35 = vld [vmem:[#allocation6 + $0x1d4] sm:$0xf0] }
  0xef   :  { %1254 = vmatmul.bf16.gmra.mxu1 %v4648_v26  ;;  %v3484_v45 = vor.u32 %v4092_v35, %v3483_v33  ;;  %v4056_v33 = vld [vmem:[#allocation6 + $0xb4] sm:$0xf0] }
  0xf0   :  { %v1060_v50 = vadd.f32 %v1059_v47, %v1011_v46  ;;  %1205 = vmatmul.bf16.gmra.mxu0 %v4646_v25  ;;  %v1790_v52 = vmax.f32 %v1155_v48, 0.0  ;;  %1303 = vmatmul.bf16.gmra.mxu2 %v4650_v27  ;;  %v3340_v35 = vor.u32 %v4056_v33, %v3339_v32  ;;  %v3707_v32 = vld [vmem:[#allocation6 + $0x388] sm:$0xf]  ;;  %v4148_v33 = vld [vmem:[#allocation6 + $0x394] sm:$0xf0] }
  0xf1   :  { %1352 = vmatmul.bf16.gmra.mxu3 %v4652_v28  ;;  %1428 = vmatpush.bf16.msra.mxu1 %v3484_v45  ;;  %v3467_v45 = vld [vmem:[#allocation6 + $0x1a8] sm:$0xf] }
  0xf2   :  { %v4738_v8 = vpack.c.bf16 %v1790_v52, %v1786_v51  ;;  %1380 = vmatpush.bf16.msra.mxu0 %v3340_v35  ;;  %v3708_v35 = vor.u32 %v4148_v33, %v3707_v32 }
  0xf3   :  { %v1108_v9 = vpop.f32.mrf.mxu2 }
  0xf4   :  { %5391 = vst [vmem:[#allocation21_spill] sm:$0xff] %v4738_v8  ;;  %v1109_v10 = vadd.f32 %v1108_v9, %v1060_v50  ;;  %v1157_v11 = vpop.f32.mrf.mxu3  ;;  %v1061_v12 = vpop.f32.mrf.mxu1  ;;  %v3595_v9 = vld [vmem:[#allocation6 + $0x2a8] sm:$0xf]  ;;  %v4104_v8 = vld [vmem:[#allocation6 + $0x234] sm:$0xf0] }
  0xf5   :  { %v1012_v14 = vpop.f32.mrf.mxu0 }
  0xf6   :  { %v1013_v15 = vadd.f32 %v1012_v14, %v4709_v30  ;;  %v1158_v16 = vadd.f32 %v1157_v11, %v1109_v10  ;;  %v4120_v10 = vld [vmem:[#allocation6 + $0x2b4] sm:$0xf0] }
  0xf7   :  { %v3596_v11 = vor.u32 %v4120_v10, %v3595_v9 }
  0xf8   :  { %v1062_v17 = vadd.f32 %v1061_v12, %v1013_v15  ;;  %v1794_v5 = vmax.f32 %v1158_v16, 0.0 }
  0xf9   :  { %1478 = vmatpush.bf16.msra.mxu2 %v3596_v11  ;;  %v4084_v11 = vld [vmem:[#allocation6 + $0x194] sm:$0xf0] }
  0xfb   :  { %v1110_v36 = vpop.f32.mrf.mxu2 }
  0xfc   :  { %v1111_v46 = vadd.f32 %v1110_v36, %v1062_v17  ;;  %v1159_v47 = vpop.f32.mrf.mxu3  ;;  %v1064_v51 = vpop.f32.mrf.mxu1  ;;  %v4152_v36 = vld [vmem:[#allocation6 + $0x3b4] sm:$0xf0] }
  0xfd   :  { %v1015_v48 = vpop.f32.mrf.mxu0 }
  0xfe   :  { %v1016_v50 = vadd.f32 %v1015_v48, %v4709_v30  ;;  %v1160_v52 = vadd.f32 %v1159_v47, %v1111_v46  ;;  %v3724_v46 = vor.u32 %v4152_v36, %v3723_v34  ;;  %v4088_v47 = vld [vmem:[#allocation6 + $0x1b4] sm:$0xf0] }
  0xff   :  { %1259 = vmatmul.bf16.gmra.mxu1 %v4660_v58  ;;  %v3468_v48 = vor.u32 %v4088_v47, %v3467_v45  ;;  %v4048_v45 = vld [vmem:[#allocation6 + $0x74] sm:$0xf0] }
 0x100   :  { %v1065_v63 = vadd.f32 %v1064_v51, %v1016_v50  ;;  %1210 = vmatmul.bf16.gmra.mxu0 %v4658_v57  ;;  %v1798_v7 = vmax.f32 %v1160_v52, 0.0  ;;  %1308 = vmatmul.bf16.gmra.mxu2 %v4662_v59  ;;  %v3323_v51 = vld [vmem:[#allocation6 + $0x88] sm:$0xf]  ;;  %v4052_v52 = vld [vmem:[#allocation6 + $0x94] sm:$0xf0] }
 0x101   :  { %1357 = vmatmul.bf16.gmra.mxu3 %v4664_v60  ;;  %1429 = vmatpush.bf16.msra.mxu1 %v3468_v48  ;;  %v3324_v10 = vor.u32 %v4052_v52, %v3323_v51  ;;  %v4080_v51 = vld [vmem:[#allocation6 + $0x174] sm:$0xf0]  ;;  %v3563_v52 = vld [vmem:[#allocation6 + $0x268] sm:$0xf] }
 0x102   :  { %v4746_v14 = vpack.c.bf16 %v1798_v7, %v1794_v5  ;;  %1527 = vmatpush.bf16.msra.mxu3 %v3724_v46  ;;  %v3435_v46 = vld [vmem:[#allocation6 + $0x168] sm:$0xf] }
 0x103   :  { %v1113_v15 = vpop.f32.mrf.mxu2  ;;  %1381 = vmatpush.bf16.msra.mxu0 %v3324_v10 }
 0x104   :  { %5392 = vst [vmem:[#allocation22_spill] sm:$0xff] %v4746_v14  ;;  %v1114_v12 = vadd.f32 %v1113_v15, %v1065_v63  ;;  %v1162_v17 = vpop.f32.mrf.mxu3  ;;  %v1066_v16 = vpop.f32.mrf.mxu1  ;;  %v3451_v63 = vld [vmem:[#allocation6 + $0x188] sm:$0xf] }
 0x105   :  { %v1017_v18 = vpop.f32.mrf.mxu0  ;;  %v3579_v15 = vld [vmem:[#allocation6 + $0x288] sm:$0xf] }
 0x106   :  { %v1018_v19 = vadd.f32 %v1017_v18, %v4709_v30  ;;  %v1163_v20 = vadd.f32 %v1162_v17, %v1114_v12  ;;  %v4116_v12 = vld [vmem:[#allocation6 + $0x294] sm:$0xf0]  ;;  %1528 = vmatpush.bf16.msra.mxu3 %v3708_v35 }
 0x108   :  { %v1067_v31 = vadd.f32 %v1066_v16, %v1018_v19  ;;  %v3452_v19 = vor.u32 %v4084_v11, %v3451_v63  ;;  %v3580_v16 = vor.u32 %v4116_v12, %v3579_v15  ;;  %v1802_v47 = vmax.f32 %v1163_v20, 0.0  ;;  %v3291_v12 = vld [vmem:[#allocation6 + $0x48] sm:$0xf] }
 0x109   :  { %v3436_v63 = vor.u32 %v4080_v51, %v3435_v46 }
 0x10a   :  { %1479 = vmatpush.bf16.msra.mxu2 %v3580_v16  ;;  %1430 = vmatpush.bf16.msra.mxu1 %v3452_v19  ;;  %v4076_v19 = vld [vmem:[#allocation6 + $0x154] sm:$0xf0] }
 0x10b   :  { %v1115_v50 = vpop.f32.mrf.mxu2 }
 0x10c   :  { %v1116_v5 = vadd.f32 %v1115_v50, %v1067_v31  ;;  %v1164_v7 = vpop.f32.mrf.mxu3  ;;  %v1069_v18 = vpop.f32.mrf.mxu1  ;;  %v3307_v31 = vld [vmem:[#allocation6 + $0x68] sm:$0xf] }
 0x10d   :  { %v1020_v9 = vpop.f32.mrf.mxu0  ;;  %v3308_v50 = vor.u32 %v4048_v45, %v3307_v31  ;;  %v3547_v31 = vld [vmem:[#allocation6 + $0x248] sm:$0xf]  ;;  %v4108_v45 = vld [vmem:[#allocation6 + $0x254] sm:$0xf0] }
 0x10e   :  { %v1021_v17 = vadd.f32 %v1020_v9, %v4709_v30  ;;  %v1165_v34 = vadd.f32 %v1164_v7, %v1116_v5  ;;  %v4112_v5 = vld [vmem:[#allocation6 + $0x274] sm:$0xf0]  ;;  %v3691_v7 = vld [vmem:[#allocation6 + $0x368] sm:$0xf]  ;;  %1431 = vmatpush.bf16.msra.mxu1 %v3436_v63  ;;  %v3548_v51 = vor.u32 %v4108_v45, %v3547_v31 }
 0x10f   :  { %1264 = vmatmul.bf16.gmra.mxu1 %v4672_v38  ;;  %v4144_v9 = vld [vmem:[#allocation6 + $0x374] sm:$0xf0]  ;;  %1382 = vmatpush.bf16.msra.mxu0 %v3308_v50  ;;  %v3564_v10 = vor.u32 %v4112_v5, %v3563_v52  ;;  %v3659_v63 = vld [vmem:[#allocation6 + $0x328] sm:$0xf] }
 0x110   :  { %v1070_v36 = vadd.f32 %v1069_v18, %v1021_v17  ;;  %1215 = vmatmul.bf16.gmra.mxu0 %v4670_v37  ;;  %v1806_v48 = vmax.f32 %v1165_v34, 0.0  ;;  %1313 = vmatmul.bf16.gmra.mxu2 %v4674_v39  ;;  %v3692_v11 = vor.u32 %v4144_v9, %v3691_v7  ;;  %v4044_v17 = vld [vmem:[#allocation6 + $0x54] sm:$0xf0]  ;;  %v3419_v18 = vld [vmem:[#allocation6 + $0x148] sm:$0xf] }
 0x111   :  { %1362 = vmatmul.bf16.gmra.mxu3 %v4676_v40  ;;  %1480 = vmatpush.bf16.msra.mxu2 %v3564_v10  ;;  %v3292_v34 = vor.u32 %v4044_v17, %v3291_v12  ;;  %v3420_v50 = vor.u32 %v4076_v19, %v3419_v18  ;;  %v3275_v7 = vld [vmem:[#allocation6 + $0x28] sm:$0xf]  ;;  %v4040_v9 = vld [vmem:[#allocation6 + $0x34] sm:$0xf0] }
 0x112   :  { %v4754_v20 = vpack.c.bf16 %v1806_v48, %v1802_v47  ;;  %v3675_v47 = vld [vmem:[#allocation6 + $0x348] sm:$0xf]  ;;  %v4140_v48 = vld [vmem:[#allocation6 + $0x354] sm:$0xf0]  ;;  %1529 = vmatpush.bf16.msra.mxu3 %v3692_v11 }
 0x113   :  { %v1118_v15 = vpop.f32.mrf.mxu2  ;;  %1383 = vmatpush.bf16.msra.mxu0 %v3292_v34  ;;  %v3676_v5 = vor.u32 %v4140_v48, %v3675_v47  ;;  %v3403_v10 = vld [vmem:[#allocation6 + $0x128] sm:$0xf]  ;;  %v4072_v12 = vld [vmem:[#allocation6 + $0x134] sm:$0xf0]  ;;  %1432 = vmatpush.bf16.msra.mxu1 %v3420_v50 }
 0x114   :  { %5393 = vst [vmem:[#allocation23_spill] sm:$0xff] %v4754_v20  ;;  %v1119_v16 = vadd.f32 %v1118_v15, %v1070_v36  ;;  %v1167_v32 = vpop.f32.mrf.mxu3  ;;  %v1071_v35 = vpop.f32.mrf.mxu1  ;;  %v3276_v15 = vor.u32 %v4040_v9, %v3275_v7  ;;  %v3531_v17 = vld [vmem:[#allocation6 + $0x228] sm:$0xf]  ;;  %v4136_v18 = vld [vmem:[#allocation6 + $0x334] sm:$0xf0] }
 0x115   :  { %v1022_v33 = vpop.f32.mrf.mxu0  ;;  %1481 = vmatpush.bf16.msra.mxu2 %v3548_v51  ;;  %v3532_v19 = vor.u32 %v4104_v8, %v3531_v17  ;;  %v4036_v34 = vld [vmem:[#allocation6 + $0x14] sm:$0xf0]  ;;  %v3387_v31 = vld [vmem:[#allocation6 + $0x108] sm:$0xf]  ;;  %v3533_v20 = vld [vmem:[#allocation6 + $0x238] sm:$0xf0] }
 0x116   :  { %v1023_v46 = vadd.f32 %v1022_v33, %v4709_v30  ;;  %v1168_v52 = vadd.f32 %v1167_v32, %v1119_v16  ;;  %v3404_v33 = vor.u32 %v4072_v12, %v3403_v10  ;;  %1530 = vmatpush.bf16.msra.mxu3 %v3676_v5  ;;  %v3660_v16 = vor.u32 %v4136_v18, %v3659_v63  ;;  %v3259_v32 = vld [vmem:[#allocation6 + $0x8] sm:$0xf]  ;;  %v4068_v47 = vld [vmem:[#allocation6 + $0x114] sm:$0xf0] }
 0x117   :  { %1384 = vmatpush.bf16.msra.mxu0 %v3276_v15  ;;  %v3260_v51 = vor.u32 %v4036_v34, %v3259_v32  ;;  %v3515_v48 = vld [vmem:[#allocation6 + $0x208] sm:$0xf]  ;;  %v4100_v50 = vld [vmem:[#allocation6 + $0x214] sm:$0xf0]  ;;  %v3388_v5 = vor.u32 %v4068_v47, %v3387_v31 }
 0x118   :  { %v1072_v36 = vadd.f32 %v1071_v35, %v1023_v46  ;;  %1433 = vmatpush.bf16.msra.mxu1 %v3404_v33  ;;  %v3643_v10 = vld [vmem:[#allocation6 + $0x308] sm:$0xf]  ;;  %v4132_v8 = vld [vmem:[#allocation6 + $0x314] sm:$0xf0]  ;;  %v3516_v12 = vor.u32 %v4100_v50, %v3515_v48  ;;  %v1810_v63 = vmax.f32 %v1168_v52, 0.0 }
 0x119   :  { %1482 = vmatpush.bf16.msra.mxu2 %v3532_v19  ;;  %v3644_v17 = vor.u32 %v4132_v8, %v3643_v10 }
 0x11a   :  { %1531 = vmatpush.bf16.msra.mxu3 %v3660_v16 }
 0x11b   :  { %v1120_v11 = vpop.f32.mrf.mxu2  ;;  %1385 = vmatpush.bf16.msra.mxu0 %v3260_v51 }
 0x11c   :  { %v1121_v45 = vadd.f32 %v1120_v11, %v1072_v36  ;;  %v1169_v46 = vpop.f32.mrf.mxu3  ;;  %v1074_v9 = vpop.f32.mrf.mxu1  ;;  %1434 = vmatpush.bf16.msra.mxu1 %v3388_v5 }
 0x11d   :  { %v1025_v35 = vpop.f32.mrf.mxu0  ;;  %1483 = vmatpush.bf16.msra.mxu2 %v3516_v12 }
 0x11e   :  { %v1026_v7 = vadd.f32 %v1025_v35, %v4709_v30  ;;  %v1170_v15 = vadd.f32 %v1169_v46, %v1121_v45  ;;  %1532 = vmatpush.bf16.msra.mxu3 %v3644_v17 }
 0x11f   :  { %1269 = vmatmul.bf16.gmra.mxu1 %v4684_v61 }
 0x120   :  { %v1075_v36 = vadd.f32 %v1074_v9, %v1026_v7  ;;  %1220 = vmatmul.bf16.gmra.mxu0 %v4682_v49  ;;  %v1814_v18 = vmax.f32 %v1170_v15, 0.0  ;;  %1318 = vmatmul.bf16.gmra.mxu2 %v4686_v62 }
 0x121   :  { %1367 = vmatmul.bf16.gmra.mxu3 %v4688_v6 }
 0x122   :  { %v4762_v33 = vpack.c.bf16 %v1814_v18, %v1810_v63 }
 0x123   :  { %v1123_v19 = vpop.f32.mrf.mxu2 }
 0x124   :  { %v1124_v16 = vadd.f32 %v1123_v19, %v1075_v36  ;;  %v1172_v11 = vpop.f32.mrf.mxu3  ;;  %v1076_v31 = vpop.f32.mrf.mxu1 }
 0x125   :  { %v1027_v32 = vpop.f32.mrf.mxu0 }
 0x126   :  { %v1028_v34 = vadd.f32 %v1027_v32, %v4709_v30  ;;  %v1173_v52 = vadd.f32 %v1172_v11, %v1124_v16  ;;  %v4774_v11 = vperm.slane %v4706_v29, 1 }
 0x128   :  { %v1077_v45 = vadd.f32 %v1076_v31, %v1028_v34  ;;  %v1818_v5 = vmax.f32 %v1173_v52, 0.0 }
 0x12b   :  { %v1125_v46 = vpop.f32.mrf.mxu2 }
 0x12c   :  { %v1126_v35 = vadd.f32 %v1125_v46, %v1077_v45  ;;  %v1174_v51 = vpop.f32.mrf.mxu3  ;;  %v1079_v50 = vpop.f32.mrf.mxu1 }
 0x12d   :  { %v1030_v47 = vpop.f32.mrf.mxu0 }
 0x12e   :  { %v1031_v48 = vadd.f32 %v1030_v47, %v4709_v30  ;;  %v1175_v7 = vadd.f32 %v1174_v51, %v1126_v35 }
 0x12f   :  { %1274 = vmatmul.bf16.gmra.mxu1 %v4696_v22 }
 0x130   :  { %v1080_v9 = vadd.f32 %v1079_v50, %v1031_v48  ;;  %1225 = vmatmul.bf16.gmra.mxu0 %v4694_v21  ;;  %v1822_v10 = vmax.f32 %v1175_v7, 0.0  ;;  %1323 = vmatmul.bf16.gmra.mxu2 %v4698_v23 }
 0x131   :  { %1372 = vmatmul.bf16.gmra.mxu3 %v4700_v24 }
 0x132   :  { %v4770_v8 = vpack.c.bf16 %v1822_v10, %v1818_v5 }
 0x133   :  { %v1128_v15 = vpop.f32.mrf.mxu2 }
 0x134   :  { %v1129_v12 = vadd.f32 %v1128_v15, %v1080_v9  ;;  %v1177_v17 = vpop.f32.mrf.mxu3  ;;  %v1081_v18 = vpop.f32.mrf.mxu1 }
 0x135   :  { %v1032_v36 = vpop.f32.mrf.mxu0 }
 0x136   :  { %v1033_v63 = vadd.f32 %v1032_v36, %v4709_v30  ;;  %v1178_v19 = vadd.f32 %v1177_v17, %v1129_v12 }
 0x138   :  { %v1082_v16 = vadd.f32 %v1081_v18, %v1033_v63  ;;  %v1826_v47 = vmax.f32 %v1178_v19, 0.0 }
 0x13b   :  { %v1130_v32 = vpop.f32.mrf.mxu2 }
 0x13c   :  { %v1131_v34 = vadd.f32 %v1130_v32, %v1082_v16  ;;  %v1179_v31 = vpop.f32.mrf.mxu3  ;;  %v1240_v46 = vpop.f32.mrf.mxu1 }
 0x13d   :  { %v1191_v52 = vpop.f32.mrf.mxu0 }
 0x13e   :  { %v1192_v45 = vadd.f32 %v1191_v52, %v4774_v11  ;;  %v1180_v35 = vadd.f32 %v1179_v31, %v1131_v34 }
 0x13f   :  { %1435 = vmatmul.bf16.vlgmr.msra.gmra.mxu1 %v4612_v42 }
 0x140   :  { %v1241_v51 = vadd.f32 %v1240_v46, %v1192_v45  ;;  %1386 = vmatmul.bf16.vlgmr.msra.gmra.mxu0 %v4610_v41  ;;  %v1830_v48 = vmax.f32 %v1180_v35, 0.0  ;;  %1484 = vmatmul.bf16.vlgmr.msra.gmra.mxu2 %v4614_v43 }
 0x141   :  { %1533 = vmatmul.bf16.vlgmr.msra.gmra.mxu3 %v4616_v44 }
 0x142   :  { %v4781_v29 = vpack.c.bf16 %v1830_v48, %v1826_v47 }
 0x143   :  { %v1289_v30 = vpop.f32.mrf.mxu2 }
 0x144   :  { %v1290_v50 = vadd.f32 %v1289_v30, %v1241_v51  ;;  %v1338_v7 = vpop.f32.mrf.mxu3  ;;  %v1242_v10 = vpop.f32.mrf.mxu1 }
 0x145   :  { %v1193_v9 = vpop.f32.mrf.mxu0 }
 0x146   :  { %v1194_v5 = vadd.f32 %v1193_v9, %v4774_v11  ;;  %v1339_v15 = vadd.f32 %v1338_v7, %v1290_v50 }
 0x148   :  { %v1243_v12 = vadd.f32 %v1242_v10, %v1194_v5  ;;  %v1771_v31 = vmax.f32 %v1339_v15, 0.0 }
 0x14b   :  { %v1291_v17 = vpop.f32.mrf.mxu2 }
 0x14c   :  { %v1292_v36 = vadd.f32 %v1291_v17, %v1243_v12  ;;  %v1340_v63 = vpop.f32.mrf.mxu3  ;;  %v1245_v16 = vpop.f32.mrf.mxu1 }
 0x14d   :  { %v1196_v18 = vpop.f32.mrf.mxu0 }
 0x14e   :  { %v1197_v19 = vadd.f32 %v1196_v18, %v4774_v11  ;;  %v1341_v32 = vadd.f32 %v1340_v63, %v1292_v36 }
 0x14f   :  { %1440 = vmatmul.bf16.gmra.mxu1 %v4624_v54 }
 0x150   :  { %v1246_v34 = vadd.f32 %v1245_v16, %v1197_v19  ;;  %1391 = vmatmul.bf16.gmra.mxu0 %v4622_v53  ;;  %v1775_v52 = vmax.f32 %v1341_v32, 0.0  ;;  %1489 = vmatmul.bf16.gmra.mxu2 %v4626_v55  ;;  %v4126_v16 = vld [vmem:[#allocation6 + $0x2ec] sm:$0xf]  ;;  %v3629_v32 = vld [vmem:[#allocation6 + $0x2f8] sm:$0xf0] }
 0x151   :  { %1538 = vmatmul.bf16.gmra.mxu3 %v4628_v56 }
 0x152   :  { %v4789_v45 = vpack.c.bf16 %v1775_v52, %v1771_v31 }
 0x153   :  { %v1294_v46 = vpop.f32.mrf.mxu2 }
 0x154   :  { %v1295_v35 = vadd.f32 %v1294_v46, %v1246_v34  ;;  %v1343_v51 = vpop.f32.mrf.mxu3  ;;  %v1247_v30 = vpop.f32.mrf.mxu1  ;;  %v3632_v34 = vor.u32 %v4126_v16, %v3629_v32 }
 0x155   :  { %v1198_v47 = vpop.f32.mrf.mxu0 }
 0x156   :  { %v1199_v48 = vadd.f32 %v1198_v47, %v4774_v11  ;;  %v1344_v50 = vadd.f32 %v1343_v51, %v1295_v35  ;;  %1672 = vmatpush.bf16.msrb.mxu2 %v3632_v34 }
 0x158   :  { %v1248_v7 = vadd.f32 %v1247_v30, %v1199_v48  ;;  %v1779_v18 = vmax.f32 %v1344_v50, 0.0 }
 0x15b   :  { %v1296_v9 = vpop.f32.mrf.mxu2 }
 0x15c   :  { %v1297_v5 = vadd.f32 %v1296_v9, %v1248_v7  ;;  %v1345_v10 = vpop.f32.mrf.mxu3  ;;  %v1250_v17 = vpop.f32.mrf.mxu1  ;;  %v4062_v7 = vld [vmem:[#allocation6 + $0xec] sm:$0xf]  ;;  %v3373_v9 = vld [vmem:[#allocation6 + $0xf8] sm:$0xf0] }
 0x15d   :  { %v1201_v15 = vpop.f32.mrf.mxu0 }
 0x15e   :  { %v1202_v12 = vadd.f32 %v1201_v15, %v4774_v11  ;;  %v1346_v36 = vadd.f32 %v1345_v10, %v1297_v5  ;;  %v3376_v5 = vor.u32 %v4062_v7, %v3373_v9  ;;  %v4158_v10 = vld [vmem:[#allocation6 + $0x3ec] sm:$0xf]  ;;  %v3757_v15 = vld [vmem:[#allocation6 + $0x3f8] sm:$0xf0] }
 0x15f   :  { %1445 = vmatmul.bf16.gmra.mxu1 %v4636_v2 }
 0x160   :  { %v1251_v63 = vadd.f32 %v1250_v17, %v1202_v12  ;;  %1396 = vmatmul.bf16.gmra.mxu0 %v4634_v1  ;;  %v1783_v19 = vmax.f32 %v1346_v36, 0.0  ;;  %1494 = vmatmul.bf16.gmra.mxu2 %v4638_v3  ;;  %v4094_v12 = vld [vmem:[#allocation6 + $0x1ec] sm:$0xf]  ;;  %v3760_v17 = vor.u32 %v4158_v10, %v3757_v15  ;;  %v3501_v36 = vld [vmem:[#allocation6 + $0x1f8] sm:$0xf0] }
 0x161   :  { %1543 = vmatmul.bf16.gmra.mxu3 %v4640_v4  ;;  %1574 = vmatpush.bf16.msrb.mxu0 %v3376_v5 }
 0x162   :  { %v4797_v31 = vpack.c.bf16 %v1783_v19, %v1779_v18  ;;  %v3504_v19 = vor.u32 %v4094_v12, %v3501_v36  ;;  %1721 = vmatpush.bf16.msrb.mxu3 %v3760_v17 }
 0x163   :  { %v1299_v52 = vpop.f32.mrf.mxu2 }
 0x164   :  { %5394 = vst [vmem:[#allocation24_spill] sm:$0xff] %v4797_v31  ;;  %v1300_v46 = vadd.f32 %v1299_v52, %v1251_v63  ;;  %v1348_v35 = vpop.f32.mrf.mxu3  ;;  %v1252_v48 = vpop.f32.mrf.mxu1  ;;  %1623 = vmatpush.bf16.msrb.mxu1 %v3504_v19  ;;  %v4058_v19 = vld [vmem:[#allocation6 + $0xcc] sm:$0xf] }
 0x165   :  { %v1203_v51 = vpop.f32.mrf.mxu0 }
 0x166   :  { %v1204_v47 = vadd.f32 %v1203_v51, %v4774_v11  ;;  %v1349_v30 = vadd.f32 %v1348_v35, %v1300_v46 }
 0x168   :  { %v1253_v50 = vadd.f32 %v1252_v48, %v1204_v47  ;;  %v1787_v51 = vmax.f32 %v1349_v30, 0.0  ;;  %v4122_v48 = vld [vmem:[#allocation6 + $0x2cc] sm:$0xf] }
 0x16b   :  { %v1301_v18 = vpop.f32.mrf.mxu2 }
 0x16c   :  { %v1302_v63 = vadd.f32 %v1301_v18, %v1253_v50  ;;  %v1350_v16 = vpop.f32.mrf.mxu3  ;;  %v1255_v52 = vpop.f32.mrf.mxu1  ;;  %v3613_v50 = vld [vmem:[#allocation6 + $0x2d8] sm:$0xf0] }
 0x16d   :  { %v1206_v32 = vpop.f32.mrf.mxu0  ;;  %v3616_v7 = vor.u32 %v4122_v48, %v3613_v50  ;;  %v3485_v48 = vld [vmem:[#allocation6 + $0x1d8] sm:$0xf0] }
 0x16e   :  { %v1207_v34 = vadd.f32 %v1206_v32, %v4774_v11  ;;  %v1351_v46 = vadd.f32 %v1350_v16, %v1302_v63  ;;  %v3357_v63 = vld [vmem:[#allocation6 + $0xd8] sm:$0xf0]  ;;  %v4154_v32 = vld [vmem:[#allocation6 + $0x3cc] sm:$0xf] }
 0x16f   :  { %1450 = vmatmul.bf16.gmra.mxu1 %v4648_v26  ;;  %1673 = vmatpush.bf16.msrb.mxu2 %v3616_v7  ;;  %v3360_v16 = vor.u32 %v4058_v19, %v3357_v63  ;;  %v3597_v19 = vld [vmem:[#allocation6 + $0x2b8] sm:$0xf0] }
 0x170   :  { %v1256_v35 = vadd.f32 %v1255_v52, %v1207_v34  ;;  %1401 = vmatmul.bf16.gmra.mxu0 %v4646_v25  ;;  %v1791_v47 = vmax.f32 %v1351_v46, 0.0  ;;  %1499 = vmatmul.bf16.gmra.mxu2 %v4650_v27  ;;  %v3741_v34 = vld [vmem:[#allocation6 + $0x3d8] sm:$0xf0]  ;;  %v4090_v52 = vld [vmem:[#allocation6 + $0x1cc] sm:$0xf] }
 0x171   :  { %1548 = vmatmul.bf16.gmra.mxu3 %v4652_v28  ;;  %v3744_v46 = vor.u32 %v4154_v32, %v3741_v34  ;;  %1575 = vmatpush.bf16.msrb.mxu0 %v3360_v16 }
 0x172   :  { %v4805_v9 = vpack.c.bf16 %v1791_v47, %v1787_v51  ;;  %v3488_v47 = vor.u32 %v4090_v52, %v3485_v48 }
 0x173   :  { %v1304_v5 = vpop.f32.mrf.mxu2  ;;  %1722 = vmatpush.bf16.msrb.mxu3 %v3744_v46 }
 0x174   :  { %5395 = vst [vmem:[#allocation25_spill] sm:$0xff] %v4805_v9  ;;  %v1305_v10 = vadd.f32 %v1304_v5, %v1256_v35  ;;  %v1353_v15 = vpop.f32.mrf.mxu3  ;;  %v1257_v30 = vpop.f32.mrf.mxu1  ;;  %1624 = vmatpush.bf16.msrb.mxu1 %v3488_v47 }
 0x175   :  { %v1208_v12 = vpop.f32.mrf.mxu0 }
 0x176   :  { %v1209_v17 = vadd.f32 %v1208_v12, %v4774_v11  ;;  %v1354_v36 = vadd.f32 %v1353_v15, %v1305_v10 }
 0x178   :  { %v1258_v18 = vadd.f32 %v1257_v30, %v1209_v17  ;;  %v1795_v17 = vmax.f32 %v1354_v36, 0.0 }
 0x17b   :  { %v1306_v51 = vpop.f32.mrf.mxu2 }
 0x17c   :  { %v1307_v35 = vadd.f32 %v1306_v51, %v1258_v18  ;;  %v1355_v50 = vpop.f32.mrf.mxu3  ;;  %v1260_v12 = vpop.f32.mrf.mxu1  ;;  %v4118_v18 = vld [vmem:[#allocation6 + $0x2ac] sm:$0xf] }
 0x17d   :  { %v1211_v5 = vpop.f32.mrf.mxu0  ;;  %v3600_v63 = vor.u32 %v4118_v18, %v3597_v19  ;;  %v3469_v18 = vld [vmem:[#allocation6 + $0x1b8] sm:$0xf0] }
 0x17e   :  { %v1212_v7 = vadd.f32 %v1211_v5, %v4774_v11  ;;  %v1356_v10 = vadd.f32 %v1355_v50, %v1307_v35  ;;  %v4054_v35 = vld [vmem:[#allocation6 + $0xac] sm:$0xf]  ;;  %v3341_v50 = vld [vmem:[#allocation6 + $0xb8] sm:$0xf0] }
 0x17f   :  { %1455 = vmatmul.bf16.gmra.mxu1 %v4660_v58  ;;  %1674 = vmatpush.bf16.msrb.mxu2 %v3600_v63  ;;  %v4150_v5 = vld [vmem:[#allocation6 + $0x3ac] sm:$0xf]  ;;  %v3325_v19 = vld [vmem:[#allocation6 + $0x98] sm:$0xf0] }
 0x180   :  { %v1261_v15 = vadd.f32 %v1260_v12, %v1212_v7  ;;  %1406 = vmatmul.bf16.gmra.mxu0 %v4658_v57  ;;  %v1799_v30 = vmax.f32 %v1356_v10, 0.0  ;;  %1504 = vmatmul.bf16.gmra.mxu2 %v4662_v59  ;;  %v3344_v7 = vor.u32 %v4054_v35, %v3341_v50  ;;  %v3725_v12 = vld [vmem:[#allocation6 + $0x3b8] sm:$0xf0]  ;;  %v4086_v10 = vld [vmem:[#allocation6 + $0x1ac] sm:$0xf] }
 0x181   :  { %1553 = vmatmul.bf16.gmra.mxu3 %v4664_v60  ;;  %v3728_v9 = vor.u32 %v4150_v5, %v3725_v12  ;;  %v4082_v63 = vld [vmem:[#allocation6 + $0x18c] sm:$0xf] }
 0x182   :  { %v4813_v16 = vpack.c.bf16 %v1799_v30, %v1795_v17  ;;  %1576 = vmatpush.bf16.msrb.mxu0 %v3344_v7  ;;  %v3472_v17 = vor.u32 %v4086_v10, %v3469_v18  ;;  %v4146_v7 = vld [vmem:[#allocation6 + $0x38c] sm:$0xf]  ;;  %v3709_v10 = vld [vmem:[#allocation6 + $0x398] sm:$0xf0] }
 0x183   :  { %v1309_v32 = vpop.f32.mrf.mxu2  ;;  %1723 = vmatpush.bf16.msrb.mxu3 %v3728_v9  ;;  %v3712_v9 = vor.u32 %v4146_v7, %v3709_v10  ;;  %v3293_v7 = vld [vmem:[#allocation6 + $0x58] sm:$0xf0]  ;;  %v4074_v10 = vld [vmem:[#allocation6 + $0x14c] sm:$0xf] }
 0x184   :  { %5396 = vst [vmem:[#allocation26_spill] sm:$0xff] %v4813_v16  ;;  %v1310_v34 = vadd.f32 %v1309_v32, %v1261_v15  ;;  %v1358_v52 = vpop.f32.mrf.mxu3  ;;  %v1262_v36 = vpop.f32.mrf.mxu1  ;;  %v4050_v15 = vld [vmem:[#allocation6 + $0x8c] sm:$0xf]  ;;  %1625 = vmatpush.bf16.msrb.mxu1 %v3472_v17  ;;  %v3309_v17 = vld [vmem:[#allocation6 + $0x78] sm:$0xf0] }
 0x185   :  { %v1213_v46 = vpop.f32.mrf.mxu0 }
 0x186   :  { %v1214_v48 = vadd.f32 %v1213_v46, %v4774_v11  ;;  %v1359_v51 = vadd.f32 %v1358_v52, %v1310_v34  ;;  %v3328_v34 = vor.u32 %v4050_v15, %v3325_v19  ;;  %v3453_v52 = vld [vmem:[#allocation6 + $0x198] sm:$0xf0] }
 0x187   :  { %v3456_v5 = vor.u32 %v4082_v63, %v3453_v52  ;;  %v3437_v63 = vld [vmem:[#allocation6 + $0x178] sm:$0xf0]  ;;  %v4110_v52 = vld [vmem:[#allocation6 + $0x26c] sm:$0xf]  ;;  %1724 = vmatpush.bf16.msrb.mxu3 %v3712_v9 }
 0x188   :  { %v1263_v47 = vadd.f32 %v1262_v36, %v1214_v48  ;;  %v4114_v48 = vld [vmem:[#allocation6 + $0x28c] sm:$0xf]  ;;  %v3581_v36 = vld [vmem:[#allocation6 + $0x298] sm:$0xf0]  ;;  %1577 = vmatpush.bf16.msrb.mxu0 %v3328_v34  ;;  %v1803_v15 = vmax.f32 %v1359_v51, 0.0 }
 0x189   :  { %v3584_v12 = vor.u32 %v4114_v48, %v3581_v36  ;;  %1626 = vmatpush.bf16.msrb.mxu1 %v3456_v5  ;;  %v4142_v34 = vld [vmem:[#allocation6 + $0x36c] sm:$0xf]  ;;  %v3693_v48 = vld [vmem:[#allocation6 + $0x378] sm:$0xf0] }
 0x18a   :  { %v3421_v5 = vld [vmem:[#allocation6 + $0x158] sm:$0xf0] }
 0x18b   :  { %v1311_v30 = vpop.f32.mrf.mxu2  ;;  %1675 = vmatpush.bf16.msrb.mxu2 %v3584_v12  ;;  %v4042_v12 = vld [vmem:[#allocation6 + $0x4c] sm:$0xf] }
 0x18c   :  { %v1312_v32 = vadd.f32 %v1311_v30, %v1263_v47  ;;  %v1360_v46 = vpop.f32.mrf.mxu3  ;;  %v1265_v50 = vpop.f32.mrf.mxu1  ;;  %v4046_v47 = vld [vmem:[#allocation6 + $0x6c] sm:$0xf]  ;;  %v3296_v31 = vor.u32 %v4042_v12, %v3293_v7  ;;  %v3405_v7 = vld [vmem:[#allocation6 + $0x138] sm:$0xf0] }
 0x18d   :  { %v1216_v16 = vpop.f32.mrf.mxu0  ;;  %v4078_v30 = vld [vmem:[#allocation6 + $0x16c] sm:$0xf] }
 0x18e   :  { %v1217_v35 = vadd.f32 %v1216_v16, %v4774_v11  ;;  %v1361_v18 = vadd.f32 %v1360_v46, %v1312_v32  ;;  %v3312_v16 = vor.u32 %v4046_v47, %v3309_v17  ;;  %v3440_v32 = vor.u32 %v4078_v30, %v3437_v63  ;;  %v3565_v46 = vld [vmem:[#allocation6 + $0x278] sm:$0xf0]  ;;  %v4106_v30 = vld [vmem:[#allocation6 + $0x24c] sm:$0xf] }
 0x18f   :  { %1460 = vmatmul.bf16.gmra.mxu1 %v4672_v38  ;;  %v3568_v36 = vor.u32 %v4110_v52, %v3565_v46  ;;  %v3549_v63 = vld [vmem:[#allocation6 + $0x258] sm:$0xf0] }
 0x190   :  { %v1266_v14 = vadd.f32 %v1265_v50, %v1217_v35  ;;  %1411 = vmatmul.bf16.gmra.mxu0 %v4670_v37  ;;  %v1807_v19 = vmax.f32 %v1361_v18, 0.0  ;;  %1509 = vmatmul.bf16.gmra.mxu2 %v4674_v39  ;;  %v3696_v35 = vor.u32 %v4142_v34, %v3693_v48  ;;  %v3552_v52 = vor.u32 %v4106_v30, %v3549_v63  ;;  %v4038_v48 = vld [vmem:[#allocation6 + $0x2c] sm:$0xf] }
 0x191   :  { %1558 = vmatmul.bf16.gmra.mxu3 %v4676_v40  ;;  %1578 = vmatpush.bf16.msrb.mxu0 %v3312_v16  ;;  %v3424_v16 = vor.u32 %v4074_v10, %v3421_v5  ;;  %v3661_v10 = vld [vmem:[#allocation6 + $0x338] sm:$0xf0] }
 0x192   :  { %v4821_v51 = vpack.c.bf16 %v1807_v19, %v1803_v15  ;;  %1676 = vmatpush.bf16.msrb.mxu2 %v3568_v36  ;;  %1627 = vmatpush.bf16.msrb.mxu1 %v3440_v32  ;;  %v4138_v15 = vld [vmem:[#allocation6 + $0x34c] sm:$0xf]  ;;  %v3677_v19 = vld [vmem:[#allocation6 + $0x358] sm:$0xf0] }
 0x193   :  { %v1314_v50 = vpop.f32.mrf.mxu2  ;;  %1725 = vmatpush.bf16.msrb.mxu3 %v3696_v35  ;;  %v3680_v34 = vor.u32 %v4138_v15, %v3677_v19  ;;  %v4070_v36 = vld [vmem:[#allocation6 + $0x12c] sm:$0xf]  ;;  %v3389_v15 = vld [vmem:[#allocation6 + $0x118] sm:$0xf0] }
 0x194   :  { %5397 = vst [vmem:[#allocation27_spill] sm:$0xff] %v4821_v51  ;;  %v1315_v18 = vadd.f32 %v1314_v50, %v1266_v14  ;;  %v1363_v47 = vpop.f32.mrf.mxu3  ;;  %v1267_v9 = vpop.f32.mrf.mxu1  ;;  %v3277_v50 = vld [vmem:[#allocation6 + $0x38] sm:$0xf0]  ;;  %v4102_v51 = vld [vmem:[#allocation6 + $0x22c] sm:$0xf] }
 0x195   :  { %v1218_v17 = vpop.f32.mrf.mxu0  ;;  %1579 = vmatpush.bf16.msrb.mxu0 %v3296_v31  ;;  %v3280_v12 = vor.u32 %v4038_v48, %v3277_v50  ;;  %v4134_v32 = vld [vmem:[#allocation6 + $0x32c] sm:$0xf]  ;;  %v3536_v5 = vor.u32 %v4102_v51, %v3533_v20  ;;  %v3645_v20 = vld [vmem:[#allocation6 + $0x318] sm:$0xf0] }
 0x196   :  { %v1219_v0 = vadd.f32 %v1218_v17, %v4774_v11  ;;  %v1364_v46 = vadd.f32 %v1363_v47, %v1315_v18  ;;  %1677 = vmatpush.bf16.msrb.mxu2 %v3552_v52  ;;  %1628 = vmatpush.bf16.msrb.mxu1 %v3424_v16  ;;  %v3408_v17 = vor.u32 %v4070_v36, %v3405_v7  ;;  %v4034_v31 = vld [vmem:[#allocation6 + $0xc] sm:$0xf]  ;;  %v3261_v47 = vld [vmem:[#allocation6 + $0x18] sm:$0xf0] }
 0x197   :  { %1726 = vmatpush.bf16.msrb.mxu3 %v3680_v34  ;;  %v3664_v18 = vor.u32 %v4134_v32, %v3661_v10  ;;  %v3264_v52 = vor.u32 %v4034_v31, %v3261_v47  ;;  %v4098_v19 = vld [vmem:[#allocation6 + $0x20c] sm:$0xf]  ;;  %v3517_v16 = vld [vmem:[#allocation6 + $0x218] sm:$0xf0] }
 0x198   :  { %v1268_v14 = vadd.f32 %v1267_v9, %v1219_v0  ;;  %v4066_v0 = vld [vmem:[#allocation6 + $0x10c] sm:$0xf]  ;;  %v1811_v32 = vmax.f32 %v1364_v46, 0.0 }
 0x199   :  { %1580 = vmatpush.bf16.msrb.mxu0 %v3280_v12  ;;  %v3392_v34 = vor.u32 %v4066_v0, %v3389_v15  ;;  %v4130_v36 = vld [vmem:[#allocation6 + $0x30c] sm:$0xf]  ;;  %v3520_v12 = vor.u32 %v4098_v19, %v3517_v16 }
 0x19a   :  { %1678 = vmatpush.bf16.msrb.mxu2 %v3536_v5  ;;  %1629 = vmatpush.bf16.msrb.mxu1 %v3408_v17  ;;  %v3648_v7 = vor.u32 %v4130_v36, %v3645_v20 }
 0x19b   :  { %v1316_v35 = vpop.f32.mrf.mxu2  ;;  %1727 = vmatpush.bf16.msrb.mxu3 %v3664_v18 }
 0x19c   :  { %v1317_v30 = vadd.f32 %v1316_v35, %v1268_v14  ;;  %v1365_v63 = vpop.f32.mrf.mxu3  ;;  %v1270_v50 = vpop.f32.mrf.mxu1 }
 0x19d   :  { %v1221_v9 = vpop.f32.mrf.mxu0  ;;  %1581 = vmatpush.bf16.msrb.mxu0 %v3264_v52 }
 0x19e   :  { %v1222_v48 = vadd.f32 %v1221_v9, %v4774_v11  ;;  %v1366_v51 = vadd.f32 %v1365_v63, %v1317_v30  ;;  %1630 = vmatpush.bf16.msrb.mxu1 %v3392_v34  ;;  %1679 = vmatpush.bf16.msrb.mxu2 %v3520_v12 }
 0x19f   :  { %1465 = vmatmul.bf16.gmra.mxu1 %v4684_v61  ;;  %1728 = vmatpush.bf16.msrb.mxu3 %v3648_v7 }
 0x1a0   :  { %v1271_v14 = vadd.f32 %v1270_v50, %v1222_v48  ;;  %1416 = vmatmul.bf16.gmra.mxu0 %v4682_v49  ;;  %v1815_v10 = vmax.f32 %v1366_v51, 0.0  ;;  %1514 = vmatmul.bf16.gmra.mxu2 %v4686_v62 }
 0x1a1   :  { %1563 = vmatmul.bf16.gmra.mxu3 %v4688_v6 }
 0x1a2   :  { %v4829_v17 = vpack.c.bf16 %v1815_v10, %v1811_v32 }
 0x1a3   :  { %v1319_v5 = vpop.f32.mrf.mxu2 }
 0x1a4   :  { %v1320_v18 = vadd.f32 %v1319_v5, %v1271_v14  ;;  %v1368_v35 = vpop.f32.mrf.mxu3  ;;  %v1272_v0 = vpop.f32.mrf.mxu1 }
 0x1a5   :  { %v1223_v31 = vpop.f32.mrf.mxu0 }
 0x1a6   :  { %v1224_v47 = vadd.f32 %v1223_v31, %v4774_v11  ;;  %v1369_v46 = vadd.f32 %v1368_v35, %v1320_v18  ;;  %v4840_v35 = vld [vmem:[#allocation8] sm:$0xf] }
 0x1a7   :  { %v4843_v31 = vperm.slane %v4840_v35, 2 }
 0x1a8   :  { %v1273_v30 = vadd.f32 %v1272_v0, %v1224_v47  ;;  %v1819_v34 = vmax.f32 %v1369_v46, 0.0 }
 0x1ab   :  { %v1321_v63 = vpop.f32.mrf.mxu2 }
 0x1ac   :  { %v1322_v9 = vadd.f32 %v1321_v63, %v1273_v30  ;;  %v1370_v52 = vpop.f32.mrf.mxu3  ;;  %v1275_v16 = vpop.f32.mrf.mxu1 }
 0x1ad   :  { %v1226_v15 = vpop.f32.mrf.mxu0 }
 0x1ae   :  { %v1227_v19 = vadd.f32 %v1226_v15, %v4774_v11  ;;  %v1371_v48 = vadd.f32 %v1370_v52, %v1322_v9 }
 0x1af   :  { %1470 = vmatmul.bf16.gmra.mxu1 %v4696_v22 }
 0x1b0   :  { %v1276_v50 = vadd.f32 %v1275_v16, %v1227_v19  ;;  %1421 = vmatmul.bf16.gmra.mxu0 %v4694_v21  ;;  %v1823_v36 = vmax.f32 %v1371_v48, 0.0  ;;  %1519 = vmatmul.bf16.gmra.mxu2 %v4698_v23 }
 0x1b1   :  { %1568 = vmatmul.bf16.gmra.mxu3 %v4700_v24 }
 0x1b2   :  { %v4837_v20 = vpack.c.bf16 %v1823_v36, %v1819_v34 }
 0x1b3   :  { %v1324_v51 = vpop.f32.mrf.mxu2 }
 0x1b4   :  { %v1325_v12 = vadd.f32 %v1324_v51, %v1276_v50  ;;  %v1373_v7 = vpop.f32.mrf.mxu3  ;;  %v1277_v10 = vpop.f32.mrf.mxu1 }
 0x1b5   :  { %v1228_v14 = vpop.f32.mrf.mxu0 }
 0x1b6   :  { %v1229_v32 = vadd.f32 %v1228_v14, %v4774_v11  ;;  %v1374_v5 = vadd.f32 %v1373_v7, %v1325_v12 }
 0x1b8   :  { %v1278_v18 = vadd.f32 %v1277_v10, %v1229_v32  ;;  %v1827_v11 = vmax.f32 %v1374_v5, 0.0 }
 0x1bb   :  { %v1326_v47 = vpop.f32.mrf.mxu2 }
 0x1bc   :  { %v1327_v0 = vadd.f32 %v1326_v47, %v1278_v18  ;;  %v1375_v46 = vpop.f32.mrf.mxu3  ;;  %v1436_v9 = vpop.f32.mrf.mxu1 }
 0x1bd   :  { %v1387_v30 = vpop.f32.mrf.mxu0 }
 0x1be   :  { %v1388_v63 = vadd.f32 %v1387_v30, %v4843_v31  ;;  %v1376_v52 = vadd.f32 %v1375_v46, %v1327_v0 }
 0x1bf   :  { %1631 = vmatmul.bf16.vlgmr.msrb.gmra.mxu1 %v4612_v42 }
 0x1c0   :  { %v1437_v15 = vadd.f32 %v1436_v9, %v1388_v63  ;;  %1582 = vmatmul.bf16.vlgmr.msrb.gmra.mxu0 %v4610_v41  ;;  %v1831_v19 = vmax.f32 %v1376_v52, 0.0  ;;  %1680 = vmatmul.bf16.vlgmr.msrb.gmra.mxu2 %v4614_v43 }
 0x1c1   :  { %1729 = vmatmul.bf16.vlgmr.msrb.gmra.mxu3 %v4616_v44 }
 0x1c2   :  { %v4850_v16 = vpack.c.bf16 %v1831_v19, %v1827_v11 }
 0x1c3   :  { %v1485_v48 = vpop.f32.mrf.mxu2 }
 0x1c4   :  { %v1486_v50 = vadd.f32 %v1485_v48, %v1437_v15  ;;  %v1534_v34 = vpop.f32.mrf.mxu3  ;;  %v1438_v12 = vpop.f32.mrf.mxu1 }
 0x1c5   :  { %v1389_v36 = vpop.f32.mrf.mxu0 }
 0x1c6   :  { %v1390_v51 = vadd.f32 %v1389_v36, %v4843_v31  ;;  %v1535_v7 = vadd.f32 %v1534_v34, %v1486_v50 }
 0x1c8   :  { %v1439_v14 = vadd.f32 %v1438_v12, %v1390_v51  ;;  %v1772_v47 = vmax.f32 %v1535_v7, 0.0 }
 0x1cb   :  { %v1487_v41 = vpop.f32.mrf.mxu2 }
 0x1cc   :  { %v1488_v32 = vadd.f32 %v1487_v41, %v1439_v14  ;;  %v1536_v10 = vpop.f32.mrf.mxu3  ;;  %v1441_v43 = vpop.f32.mrf.mxu1 }
 0x1cd   :  { %v1392_v5 = vpop.f32.mrf.mxu0 }
 0x1ce   :  { %v1393_v42 = vadd.f32 %v1392_v5, %v4843_v31  ;;  %v1537_v18 = vadd.f32 %v1536_v10, %v1488_v32 }
 0x1cf   :  { %1636 = vmatmul.bf16.gmra.mxu1 %v4624_v54 }
 0x1d0   :  { %v1442_v44 = vadd.f32 %v1441_v43, %v1393_v42  ;;  %1587 = vmatmul.bf16.gmra.mxu0 %v4622_v53  ;;  %v1776_v0 = vmax.f32 %v1537_v18, 0.0  ;;  %1685 = vmatmul.bf16.gmra.mxu2 %v4626_v55  ;;  %v3883_v42 = vld [vmem:[#allocation9 + $0xf0] sm:$0xf]  ;;  %v4192_v43 = vld [vmem:[#allocation9 + $0xf4] sm:$0xf0] }
 0x1d1   :  { %1734 = vmatmul.bf16.gmra.mxu3 %v4628_v56  ;;  %v3947_v18 = vld [vmem:[#allocation9 + $0x170] sm:$0xf] }
 0x1d2   :  { %v4858_v46 = vpack.c.bf16 %v1776_v0, %v1772_v47  ;;  %v3884_v47 = vor.u32 %v4192_v43, %v3883_v42  ;;  %v4208_v0 = vld [vmem:[#allocation9 + $0x174] sm:$0xf0]  ;;  %v3859_v42 = vld [vmem:[#allocation9 + $0xc0] sm:$0xf]  ;;  %v4186_v43 = vld [vmem:[#allocation9 + $0xc4] sm:$0xf0] }
 0x1d3   :  { %v1490_v30 = vpop.f32.mrf.mxu2 }
 0x1d4   :  { %v1491_v63 = vadd.f32 %v1490_v30, %v1442_v44  ;;  %v1539_v9 = vpop.f32.mrf.mxu3  ;;  %v1443_v11 = vpop.f32.mrf.mxu1  ;;  %2305 = vmatpush.bf16.msra.mxu1 %v3884_v47 }
 0x1d5   :  { %v1394_v52 = vpop.f32.mrf.mxu0 }
 0x1d6   :  { %v1395_v15 = vadd.f32 %v1394_v52, %v4843_v31  ;;  %v1540_v19 = vadd.f32 %v1539_v9, %v1491_v63  ;;  %v3939_v52 = vld [vmem:[#allocation9 + $0x160] sm:$0xf] }
 0x1d8   :  { %v1444_v48 = vadd.f32 %v1443_v11, %v1395_v15  ;;  %v1780_v12 = vmax.f32 %v1540_v19, 0.0  ;;  %v4206_v15 = vld [vmem:[#allocation9 + $0x164] sm:$0xf0] }
 0x1d9   :  { %v3940_v11 = vor.u32 %v4206_v15, %v3939_v52  ;;  %v4200_v52 = vld [vmem:[#allocation9 + $0x134] sm:$0xf0] }
 0x1db   :  { %v1492_v53 = vpop.f32.mrf.mxu2 }
 0x1dc   :  { %v1493_v50 = vadd.f32 %v1492_v53, %v1444_v48  ;;  %v1541_v34 = vpop.f32.mrf.mxu3  ;;  %v1446_v55 = vpop.f32.mrf.mxu1 }
 0x1dd   :  { %v1397_v36 = vpop.f32.mrf.mxu0 }
 0x1de   :  { %v1398_v54 = vadd.f32 %v1397_v36, %v4843_v31  ;;  %v1542_v51 = vadd.f32 %v1541_v34, %v1493_v50  ;;  %v3867_v34 = vld [vmem:[#allocation9 + $0xd0] sm:$0xf]  ;;  %v4188_v36 = vld [vmem:[#allocation9 + $0xd4] sm:$0xf0] }
 0x1df   :  { %1641 = vmatmul.bf16.gmra.mxu1 %v4636_v2  ;;  %v3948_v2 = vor.u32 %v4208_v0, %v3947_v18  ;;  %v3860_v18 = vor.u32 %v4186_v43, %v3859_v42  ;;  %v3835_v43 = vld [vmem:[#allocation9 + $0x90] sm:$0xf] }
 0x1e0   :  { %v1447_v56 = vadd.f32 %v1446_v55, %v1398_v54  ;;  %1592 = vmatmul.bf16.gmra.mxu0 %v4634_v1  ;;  %v1784_v7 = vmax.f32 %v1542_v51, 0.0  ;;  %1690 = vmatmul.bf16.gmra.mxu2 %v4638_v3  ;;  %v3875_v3 = vld [vmem:[#allocation9 + $0xe0] sm:$0xf]  ;;  %v3931_v54 = vld [vmem:[#allocation9 + $0x150] sm:$0xf] }
 0x1e1   :  { %1739 = vmatmul.bf16.gmra.mxu3 %v4640_v4  ;;  %2354 = vmatpush.bf16.msra.mxu2 %v3948_v2  ;;  %v4190_v4 = vld [vmem:[#allocation9 + $0xe4] sm:$0xf0] }
 0x1e2   :  { %v4866_v14 = vpack.c.bf16 %v1784_v7, %v1780_v12  ;;  %v3876_v9 = vor.u32 %v4190_v4, %v3875_v3  ;;  %v4204_v12 = vld [vmem:[#allocation9 + $0x154] sm:$0xf0]  ;;  %v3851_v3 = vld [vmem:[#allocation9 + $0xb0] sm:$0xf] }
 0x1e3   :  { %v1495_v41 = vpop.f32.mrf.mxu2  ;;  %v3915_v4 = vld [vmem:[#allocation9 + $0x130] sm:$0xf] }
 0x1e4   :  { %v1496_v32 = vadd.f32 %v1495_v41, %v1447_v56  ;;  %v1544_v10 = vpop.f32.mrf.mxu3  ;;  %v1448_v1 = vpop.f32.mrf.mxu1  ;;  %2306 = vmatpush.bf16.msra.mxu1 %v3876_v9  ;;  %v3868_v56 = vor.u32 %v4188_v36, %v3867_v34  ;;  %v3932_v41 = vor.u32 %v4204_v12, %v3931_v54  ;;  %v4011_v34 = vld [vmem:[#allocation9 + $0x1f0] sm:$0xf]  ;;  %v4224_v36 = vld [vmem:[#allocation9 + $0x1f4] sm:$0xf0]  ;;  %v3843_v54 = vld [vmem:[#allocation9 + $0xa0] sm:$0xf] }
 0x1e5   :  { %v1399_v5 = vpop.f32.mrf.mxu0  ;;  %2355 = vmatpush.bf16.msra.mxu2 %v3940_v11  ;;  %v3916_v11 = vor.u32 %v4200_v52, %v3915_v4  ;;  %v4198_v12 = vld [vmem:[#allocation9 + $0x124] sm:$0xf0]  ;;  %v3827_v52 = vld [vmem:[#allocation9 + $0x80] sm:$0xf] }
 0x1e6   :  { %v1400_v44 = vadd.f32 %v1399_v5, %v4843_v31  ;;  %v1545_v30 = vadd.f32 %v1544_v10, %v1496_v32 }
 0x1e8   :  { %v1449_v63 = vadd.f32 %v1448_v1, %v1400_v44  ;;  %2307 = vmatpush.bf16.msra.mxu1 %v3868_v56  ;;  %v1788_v10 = vmax.f32 %v1545_v30, 0.0  ;;  %v3923_v44 = vld [vmem:[#allocation9 + $0x140] sm:$0xf]  ;;  %v4202_v1 = vld [vmem:[#allocation9 + $0x144] sm:$0xf0] }
 0x1e9   :  { %2356 = vmatpush.bf16.msra.mxu2 %v3932_v41  ;;  %v3924_v47 = vor.u32 %v4202_v1, %v3923_v44  ;;  %v3907_v56 = vld [vmem:[#allocation9 + $0x120] sm:$0xf]  ;;  %v3899_v44 = vld [vmem:[#allocation9 + $0x110] sm:$0xf] }
 0x1eb   :  { %v1497_v19 = vpop.f32.mrf.mxu2 }
 0x1ec   :  { %v1498_v48 = vadd.f32 %v1497_v19, %v1449_v63  ;;  %v1546_v53 = vpop.f32.mrf.mxu3  ;;  %v1451_v51 = vpop.f32.mrf.mxu1  ;;  %2308 = vmatpush.bf16.msra.mxu1 %v3860_v18  ;;  %v4180_v18 = vld [vmem:[#allocation9 + $0x94] sm:$0xf0] }
 0x1ed   :  { %v1402_v50 = vpop.f32.mrf.mxu0  ;;  %2357 = vmatpush.bf16.msra.mxu2 %v3924_v47 }
 0x1ee   :  { %v1403_v55 = vadd.f32 %v1402_v50, %v4843_v31  ;;  %v1547_v7 = vadd.f32 %v1546_v53, %v1498_v48  ;;  %v3819_v48 = vld [vmem:[#allocation9 + $0x70] sm:$0xf]  ;;  %v4176_v53 = vld [vmem:[#allocation9 + $0x74] sm:$0xf0] }
 0x1ef   :  { %1646 = vmatmul.bf16.gmra.mxu1 %v4648_v26  ;;  %v4184_v26 = vld [vmem:[#allocation9 + $0xb4] sm:$0xf0]  ;;  %v3820_v50 = vor.u32 %v4176_v53, %v3819_v48  ;;  %v3891_v48 = vld [vmem:[#allocation9 + $0x100] sm:$0xf]  ;;  %v4194_v53 = vld [vmem:[#allocation9 + $0x104] sm:$0xf0] }
 0x1f0   :  { %v1452_v32 = vadd.f32 %v1451_v51, %v1403_v55  ;;  %1597 = vmatmul.bf16.gmra.mxu0 %v4646_v25  ;;  %v1792_v5 = vmax.f32 %v1547_v7, 0.0  ;;  %1695 = vmatmul.bf16.gmra.mxu2 %v4650_v27  ;;  %v4012_v55 = vor.u32 %v4224_v36, %v4011_v34  ;;  %v4182_v51 = vld [vmem:[#allocation9 + $0xa4] sm:$0xf0]  ;;  %v3892_v34 = vor.u32 %v4194_v53, %v3891_v48  ;;  %v4220_v36 = vld [vmem:[#allocation9 + $0x1d4] sm:$0xf0] }
 0x1f1   :  { %1744 = vmatmul.bf16.gmra.mxu3 %v4652_v28  ;;  %v3852_v28 = vor.u32 %v4184_v26, %v3851_v3  ;;  %2358 = vmatpush.bf16.msra.mxu2 %v3916_v11  ;;  %v3844_v41 = vor.u32 %v4182_v51, %v3843_v54  ;;  %v4178_v11 = vld [vmem:[#allocation9 + $0x84] sm:$0xf0]  ;;  %v4207_v51 = vld [vmem:[#allocation9 + $0x174] sm:$0xf]  ;;  %v3869_v48 = vld [vmem:[#allocation9 + $0xd8] sm:$0xf0] }
 0x1f2   :  { %v4874_v0 = vpack.c.bf16 %v1792_v5, %v1788_v10  ;;  %2256 = vmatpush.bf16.msra.mxu0 %v3820_v50  ;;  %2403 = vmatpush.bf16.msra.mxu3 %v4012_v55  ;;  %v3995_v50 = vld [vmem:[#allocation9 + $0x1d0] sm:$0xf] }
 0x1f3   :  { %v1500_v2 = vpop.f32.mrf.mxu2  ;;  %2309 = vmatpush.bf16.msra.mxu1 %v3852_v28  ;;  %v3996_v55 = vor.u32 %v4220_v36, %v3995_v50  ;;  %v4203_v50 = vld [vmem:[#allocation9 + $0x154] sm:$0xf] }
 0x1f4   :  { %v1501_v25 = vadd.f32 %v1500_v2, %v1452_v32  ;;  %v1549_v30 = vpop.f32.mrf.mxu3  ;;  %v1453_v9 = vpop.f32.mrf.mxu1  ;;  %v3908_v32 = vor.u32 %v4198_v12, %v3907_v56  ;;  %v3836_v2 = vor.u32 %v4180_v18, %v3835_v43  ;;  %v3949_v56 = vld [vmem:[#allocation9 + $0x178] sm:$0xf0]  ;;  %v3811_v12 = vld [vmem:[#allocation9 + $0x60] sm:$0xf] }
 0x1f5   :  { %v1404_v63 = vpop.f32.mrf.mxu0 }
 0x1f6   :  { %v1405_v27 = vadd.f32 %v1404_v63, %v4843_v31  ;;  %v1550_v15 = vadd.f32 %v1549_v30, %v1501_v25  ;;  %2359 = vmatpush.bf16.msra.mxu2 %v3908_v32  ;;  %v4196_v25 = vld [vmem:[#allocation9 + $0x114] sm:$0xf0]  ;;  %v4003_v30 = vld [vmem:[#allocation9 + $0x1e0] sm:$0xf]  ;;  %v4222_v63 = vld [vmem:[#allocation9 + $0x1e4] sm:$0xf0]  ;;  %v3952_v32 = vor.u32 %v4207_v51, %v3949_v56 }
 0x1f7   :  { %2310 = vmatpush.bf16.msra.mxu1 %v3844_v41  ;;  %v3900_v26 = vor.u32 %v4196_v25, %v3899_v44  ;;  %v4004_v4 = vor.u32 %v4222_v63, %v4003_v30  ;;  %v3941_v63 = vld [vmem:[#allocation9 + $0x168] sm:$0xf0]  ;;  %v3971_v56 = vld [vmem:[#allocation9 + $0x1a0] sm:$0xf] }
 0x1f8   :  { %v1454_v19 = vadd.f32 %v1453_v9, %v1405_v27  ;;  %v1796_v9 = vmax.f32 %v1550_v15, 0.0  ;;  %v3885_v15 = vld [vmem:[#allocation9 + $0xf8] sm:$0xf0] }
 0x1f9   :  { %2404 = vmatpush.bf16.msra.mxu3 %v4004_v4 }
 0x1fa   :  { %2360 = vmatpush.bf16.msra.mxu2 %v3900_v26 }
 0x1fb   :  { %v1502_v7 = vpop.f32.mrf.mxu2  ;;  %2311 = vmatpush.bf16.msra.mxu1 %v3836_v2  ;;  %v4205_v2 = vld [vmem:[#allocation9 + $0x164] sm:$0xf] }
 0x1fc   :  { %v1503_v10 = vadd.f32 %v1502_v7, %v1454_v19  ;;  %v1551_v5 = vpop.f32.mrf.mxu3  ;;  %v1456_v47 = vpop.f32.mrf.mxu1  ;;  %v3828_v19 = vor.u32 %v4178_v11, %v3827_v52  ;;  %v3944_v4 = vor.u32 %v4205_v2, %v3941_v63  ;;  %v3979_v52 = vld [vmem:[#allocation9 + $0x1b0] sm:$0xf]  ;;  %v4216_v11 = vld [vmem:[#allocation9 + $0x1b4] sm:$0xf0] }
 0x1fd   :  { %v1407_v42 = vpop.f32.mrf.mxu0  ;;  %2405 = vmatpush.bf16.msra.mxu3 %v3996_v55  ;;  %v3980_v53 = vor.u32 %v4216_v11, %v3979_v52  ;;  %v3787_v2 = vld [vmem:[#allocation9 + $0x30] sm:$0xf]  ;;  %v4199_v11 = vld [vmem:[#allocation9 + $0x134] sm:$0xf] }
 0x1fe   :  { %v1408_v1 = vadd.f32 %v1407_v42, %v4843_v31  ;;  %v1552_v3 = vadd.f32 %v1551_v5, %v1503_v10  ;;  %v4174_v10 = vld [vmem:[#allocation9 + $0x64] sm:$0xf0]  ;;  %v3987_v5 = vld [vmem:[#allocation9 + $0x1c0] sm:$0xf]  ;;  %2361 = vmatpush.bf16.msra.mxu2 %v3892_v34  ;;  %v3933_v34 = vld [vmem:[#allocation9 + $0x158] sm:$0xf0] }
 0x1ff   :  { %1651 = vmatmul.bf16.gmra.mxu1 %v4660_v58  ;;  %v4218_v42 = vld [vmem:[#allocation9 + $0x1c4] sm:$0xf0]  ;;  %v3812_v44 = vor.u32 %v4174_v10, %v3811_v12  ;;  %v3861_v10 = vld [vmem:[#allocation9 + $0xc8] sm:$0xf0] }
 0x200   :  { %v1457_v27 = vadd.f32 %v1456_v47, %v1408_v1  ;;  %1602 = vmatmul.bf16.gmra.mxu0 %v4658_v57  ;;  %v1800_v28 = vmax.f32 %v1552_v3, 0.0  ;;  %1700 = vmatmul.bf16.gmra.mxu2 %v4662_v59  ;;  %v4191_v57 = vld [vmem:[#allocation9 + $0xf4] sm:$0xf]  ;;  %v4189_v1 = vld [vmem:[#allocation9 + $0xe4] sm:$0xf]  ;;  %v3988_v30 = vor.u32 %v4218_v42, %v3987_v5 }
 0x201   :  { %1749 = vmatmul.bf16.gmra.mxu3 %v4664_v60  ;;  %v3888_v59 = vor.u32 %v4191_v57, %v3885_v15  ;;  %2312 = vmatpush.bf16.msra.mxu1 %v3828_v19  ;;  %v3877_v47 = vld [vmem:[#allocation9 + $0xe8] sm:$0xf0]  ;;  %v4187_v19 = vld [vmem:[#allocation9 + $0xd4] sm:$0xf]  ;;  %v3795_v15 = vld [vmem:[#allocation9 + $0x40] sm:$0xf] }
 0x202   :  { %v4882_v54 = vpack.c.bf16 %v1800_v28, %v1796_v9  ;;  %2550 = vmatpush.bf16.msrb.mxu2 %v3952_v32  ;;  %v3880_v26 = vor.u32 %v4189_v1, %v3877_v47  ;;  %v4172_v9 = vld [vmem:[#allocation9 + $0x54] sm:$0xf0]  ;;  %2257 = vmatpush.bf16.msra.mxu0 %v3812_v44  ;;  %v3872_v57 = vor.u32 %v4187_v19, %v3869_v48  ;;  %v4214_v12 = vld [vmem:[#allocation9 + $0x1a4] sm:$0xf0]  ;;  %v4185_v32 = vld [vmem:[#allocation9 + $0xc4] sm:$0xf] }
 0x203   :  { %v1505_v58 = vpop.f32.mrf.mxu2  ;;  %2406 = vmatpush.bf16.msra.mxu3 %v3988_v30  ;;  %v3925_v44 = vld [vmem:[#allocation9 + $0x148] sm:$0xf0]  ;;  %v3864_v47 = vor.u32 %v4185_v32, %v3861_v10  ;;  %v4168_v30 = vld [vmem:[#allocation9 + $0x34] sm:$0xf0]  ;;  %v3917_v19 = vld [vmem:[#allocation9 + $0x138] sm:$0xf0] }
 0x204   :  { %v1506_v60 = vadd.f32 %v1505_v58, %v1457_v27  ;;  %v1554_v7 = vpop.f32.mrf.mxu3  ;;  %v1458_v18 = vpop.f32.mrf.mxu1  ;;  %v3803_v27 = vld [vmem:[#allocation9 + $0x50] sm:$0xf]  ;;  %v4170_v58 = vld [vmem:[#allocation9 + $0x44] sm:$0xf0]  ;;  %v4013_v32 = vld [vmem:[#allocation9 + $0x1f8] sm:$0xf0] }
 0x205   :  { %v1409_v41 = vpop.f32.mrf.mxu0  ;;  %2501 = vmatpush.bf16.msrb.mxu1 %v3888_v59  ;;  %v3804_v28 = vor.u32 %v4172_v9, %v3803_v27  ;;  %v3796_v42 = vor.u32 %v4170_v58, %v3795_v15  ;;  %v4183_v9 = vld [vmem:[#allocation9 + $0xb4] sm:$0xf]  ;;  %v3920_v58 = vor.u32 %v4199_v11, %v3917_v19  ;;  %v4177_v19 = vld [vmem:[#allocation9 + $0x84] sm:$0xf] }
 0x206   :  { %v1410_v43 = vadd.f32 %v1409_v41, %v4843_v31  ;;  %v4885_v25 = vadd.f32 %v1554_v7, %v1506_v60  ;;  %2551 = vmatpush.bf16.msrb.mxu2 %v3944_v4  ;;  %v3936_v41 = vor.u32 %v4203_v50, %v3933_v34  ;;  %v4212_v4 = vld [vmem:[#allocation9 + $0x194] sm:$0xf0] }
 0x207   :  { %2258 = vmatpush.bf16.msra.mxu0 %v3804_v28  ;;  %2407 = vmatpush.bf16.msra.mxu3 %v3980_v53  ;;  %v3853_v28 = vld [vmem:[#allocation9 + $0xb8] sm:$0xf0]  ;;  %v4166_v53 = vld [vmem:[#allocation9 + $0x24] sm:$0xf0] }
 0x208   :  { %v1459_v3 = vadd.f32 %v1458_v18, %v1410_v43  ;;  %v3972_v43 = vor.u32 %v4214_v12, %v3971_v56  ;;  %v4201_v18 = vld [vmem:[#allocation9 + $0x144] sm:$0xf]  ;;  %v1804_v63 = vmax.f32 %v4885_v25, 0.0 }
 0x209   :  { %2502 = vmatpush.bf16.msrb.mxu1 %v3880_v26  ;;  %v3963_v26 = vld [vmem:[#allocation9 + $0x190] sm:$0xf]  ;;  %v3928_v27 = vor.u32 %v4201_v18, %v3925_v44  ;;  %v4179_v44 = vld [vmem:[#allocation9 + $0x94] sm:$0xf] }
 0x20a   :  { %2552 = vmatpush.bf16.msrb.mxu2 %v3936_v41  ;;  %v3964_v52 = vor.u32 %v4212_v4, %v3963_v26  ;;  %v4223_v41 = vld [vmem:[#allocation9 + $0x1f4] sm:$0xf]  ;;  %v4005_v4 = vld [vmem:[#allocation9 + $0x1e8] sm:$0xf0] }
 0x20b   :  { %v1507_v36 = vpop.f32.mrf.mxu2  ;;  %2259 = vmatpush.bf16.msra.mxu0 %v3796_v42  ;;  %2408 = vmatpush.bf16.msra.mxu3 %v3972_v43  ;;  %v3771_v42 = vld [vmem:[#allocation9 + $0x10] sm:$0xf]  ;;  %v4164_v43 = vld [vmem:[#allocation9 + $0x14] sm:$0xf0] }
 0x20c   :  { %v1508_v55 = vadd.f32 %v1507_v36, %v1459_v3  ;;  %v1556_v59 = vpop.f32.mrf.mxu3  ;;  %v1461_v7 = vpop.f32.mrf.mxu1  ;;  %v3955_v36 = vld [vmem:[#allocation9 + $0x180] sm:$0xf] }
 0x20d   :  { %v1412_v51 = vpop.f32.mrf.mxu0  ;;  %2503 = vmatpush.bf16.msrb.mxu1 %v3872_v57  ;;  %v4210_v57 = vld [vmem:[#allocation9 + $0x184] sm:$0xf0] }
 0x20e   :  { %v1413_v60 = vadd.f32 %v1412_v51, %v4843_v31  ;;  %v1557_v5 = vadd.f32 %v1556_v59, %v1508_v55  ;;  %2553 = vmatpush.bf16.msrb.mxu2 %v3928_v27  ;;  %v4181_v55 = vld [vmem:[#allocation9 + $0xa4] sm:$0xf]  ;;  %v3845_v59 = vld [vmem:[#allocation9 + $0xa8] sm:$0xf0]  ;;  %v3763_v27 = vld [vmem:[#allocation9] sm:$0xf] }
 0x20f   :  { %1656 = vmatmul.bf16.gmra.mxu1 %v4672_v38  ;;  %v3856_v38 = vor.u32 %v4183_v9, %v3853_v28  ;;  %v4197_v51 = vld [vmem:[#allocation9 + $0x124] sm:$0xf]  ;;  %2409 = vmatpush.bf16.msra.mxu3 %v3964_v52  ;;  %v3848_v10 = vor.u32 %v4181_v55, %v3845_v59  ;;  %v4162_v9 = vld [vmem:[#allocation9 + $0x4] sm:$0xf0] }
 0x210   :  { %v1462_v1 = vadd.f32 %v1461_v7, %v1413_v60  ;;  %1607 = vmatmul.bf16.gmra.mxu0 %v4670_v37  ;;  %v1808_v3 = vmax.f32 %v1557_v5, 0.0  ;;  %1705 = vmatmul.bf16.gmra.mxu2 %v4674_v39  ;;  %v3788_v37 = vor.u32 %v4168_v30, %v3787_v2  ;;  %v3779_v39 = vld [vmem:[#allocation9 + $0x20] sm:$0xf]  ;;  %v3956_v60 = vor.u32 %v4210_v57, %v3955_v36  ;;  %v3909_v7 = vld [vmem:[#allocation9 + $0x128] sm:$0xf0] }
 0x211   :  { %1754 = vmatmul.bf16.gmra.mxu3 %v4676_v40  ;;  %2504 = vmatpush.bf16.msrb.mxu1 %v3864_v47  ;;  %v3780_v12 = vor.u32 %v4166_v53, %v3779_v39  ;;  %v4016_v5 = vor.u32 %v4223_v41, %v4013_v32  ;;  %v3912_v18 = vor.u32 %v4197_v51, %v3909_v7  ;;  %v4195_v2 = vld [vmem:[#allocation9 + $0x114] sm:$0xf]  ;;  %v3901_v30 = vld [vmem:[#allocation9 + $0x118] sm:$0xf0]  ;;  %v4193_v53 = vld [vmem:[#allocation9 + $0x104] sm:$0xf] }
 0x212   :  { %v4893_v25 = vpack.c.bf16 %v1808_v3, %v1804_v63  ;;  %2260 = vmatpush.bf16.msra.mxu0 %v3788_v37  ;;  %2554 = vmatpush.bf16.msrb.mxu2 %v3920_v58  ;;  %v3772_v47 = vor.u32 %v4164_v43, %v3771_v42  ;;  %v4221_v63 = vld [vmem:[#allocation9 + $0x1e4] sm:$0xf]  ;;  %v3904_v11 = vor.u32 %v4195_v2, %v3901_v30  ;;  %v4219_v36 = vld [vmem:[#allocation9 + $0x1d4] sm:$0xf]  ;;  %v3997_v57 = vld [vmem:[#allocation9 + $0x1d8] sm:$0xf0] }
 0x213   :  { %v1510_v48 = vpop.f32.mrf.mxu2  ;;  %2410 = vmatpush.bf16.msra.mxu3 %v3956_v60  ;;  %v3764_v39 = vor.u32 %v4162_v9, %v3763_v27  ;;  %v4000_v55 = vor.u32 %v4219_v36, %v3997_v57  ;;  %v4217_v51 = vld [vmem:[#allocation9 + $0x1c4] sm:$0xf]  ;;  %v3981_v41 = vld [vmem:[#allocation9 + $0x1b8] sm:$0xf0] }
 0x214   :  { %v1511_v50 = vadd.f32 %v1510_v48, %v1462_v1  ;;  %v1559_v34 = vpop.f32.mrf.mxu3  ;;  %v4897_v15 = vpop.f32.mrf.mxu1  ;;  %v3837_v1 = vld [vmem:[#allocation9 + $0x98] sm:$0xf0]  ;;  %v3829_v48 = vld [vmem:[#allocation9 + $0x88] sm:$0xf0] }
 0x215   :  { %v4895_v40 = vpop.f32.mrf.mxu0  ;;  %2505 = vmatpush.bf16.msrb.mxu1 %v3856_v38  ;;  %v3840_v26 = vor.u32 %v4179_v44, %v3837_v1  ;;  %v4008_v38 = vor.u32 %v4221_v63, %v4005_v4  ;;  %v4211_v1 = vld [vmem:[#allocation9 + $0x194] sm:$0xf]  ;;  %v4209_v63 = vld [vmem:[#allocation9 + $0x184] sm:$0xf] }
 0x216   :  { %v4899_v56 = vadd.f32 %v1559_v34, %v1511_v50  ;;  %2261 = vmatpush.bf16.msra.mxu0 %v3780_v12  ;;  %2555 = vmatpush.bf16.msrb.mxu2 %v3912_v18  ;;  %v3893_v50 = vld [vmem:[#allocation9 + $0x108] sm:$0xf0]  ;;  %v3832_v34 = vor.u32 %v4177_v19, %v3829_v48  ;;  %v4924_v48 = vperm.slane %v4840_v35, 3 }
 0x217   :  { %2599 = vmatpush.bf16.msrb.mxu3 %v4016_v5  ;;  %v3896_v58 = vor.u32 %v4193_v53, %v3893_v50  ;;  %v3973_v5 = vld [vmem:[#allocation9 + $0x1a8] sm:$0xf0] }
 0x219   :  { %2506 = vmatpush.bf16.msrb.mxu1 %v3848_v10  ;;  %v4213_v10 = vld [vmem:[#allocation9 + $0x1a4] sm:$0xf] }
 0x21a   :  { %2262 = vmatpush.bf16.msra.mxu0 %v3772_v47  ;;  %2556 = vmatpush.bf16.msrb.mxu2 %v3904_v11  ;;  %v3976_v44 = vor.u32 %v4213_v10, %v3973_v5  ;;  %v3965_v47 = vld [vmem:[#allocation9 + $0x198] sm:$0xf0] }
 0x21b   :  { %v4901_v3 = vpop.f32.mrf.mxu2  ;;  %2600 = vmatpush.bf16.msrb.mxu3 %v4008_v38  ;;  %v3968_v2 = vor.u32 %v4211_v1, %v3965_v47 }
 0x21c   :  { %v4903_v28 = vpop.f32.mrf.mxu3  ;;  %v4907_v52 = vpop.f32.mrf.mxu1 }
 0x21d   :  { %v4905_v37 = vpop.f32.mrf.mxu0  ;;  %2507 = vmatpush.bf16.msrb.mxu1 %v3840_v26  ;;  %v3957_v26 = vld [vmem:[#allocation9 + $0x188] sm:$0xf0] }
 0x21e   :  { %2263 = vmatpush.bf16.msra.mxu0 %v3764_v39  ;;  %2557 = vmatpush.bf16.msrb.mxu2 %v3896_v58  ;;  %v3960_v11 = vor.u32 %v4209_v63, %v3957_v26  ;;  %v1418_v58 = vadd.f32 %v4905_v37, %v4843_v31  ;;  %v5398_v26 = vld [vmem:[#allocation23_spill] sm:$0xff] }
 0x21f   :  { %1661 = vmatmul.bf16.gmra.mxu1 %v4684_v61  ;;  %2601 = vmatpush.bf16.msrb.mxu3 %v4000_v55 }
 0x220   :  { %1612 = vmatmul.bf16.gmra.mxu0 %v4682_v49  ;;  %1710 = vmatmul.bf16.gmra.mxu2 %v4686_v62  ;;  %v3989_v49 = vld [vmem:[#allocation9 + $0x1c8] sm:$0xf0]  ;;  %v4215_v62 = vld [vmem:[#allocation9 + $0x1b4] sm:$0xf] }
 0x221   :  { %1759 = vmatmul.bf16.gmra.mxu3 %v4688_v6  ;;  %2508 = vmatpush.bf16.msrb.mxu1 %v3832_v34  ;;  %v3992_v61 = vor.u32 %v4217_v51, %v3989_v49  ;;  %v3984_v6 = vor.u32 %v4215_v62, %v3981_v41  ;;  %v1415_v41 = vadd.f32 %v4895_v40, %v4843_v31 }
 0x223   :  { %v4913_v59 = vpop.f32.mrf.mxu2  ;;  %2602 = vmatpush.bf16.msrb.mxu3 %v3992_v61  ;;  %v1464_v63 = vadd.f32 %v4897_v15, %v1415_v41 }
 0x224   :  { %v4915_v12 = vpop.f32.mrf.mxu3  ;;  %v1468_v7 = vpop.f32.mrf.mxu1 }
 0x225   :  { %v1419_v60 = vpop.f32.mrf.mxu0 }
 0x226   :  { %v1420_v36 = vadd.f32 %v1419_v60, %v4843_v31  ;;  %v1467_v60 = vadd.f32 %v4907_v52, %v1418_v58 }
 0x227   :  { %2603 = vmatpush.bf16.msrb.mxu3 %v3984_v6 }
 0x228   :  { %v1469_v6 = vadd.f32 %v1468_v7, %v1420_v36  ;;  %v1516_v7 = vadd.f32 %v4913_v59, %v1467_v60  ;;  %v5403_v59 = vld [vmem:[#allocation26_spill] sm:$0xff]  ;;  %v5404_v36 = vld [vmem:[#allocation21_spill] sm:$0xff] }
 0x22b   :  { %v1517_v32 = vpop.f32.mrf.mxu2  ;;  %2604 = vmatpush.bf16.msrb.mxu3 %v3976_v44 }
 0x22c   :  { %v4917_v42 = vpop.f32.mrf.mxu3  ;;  %v1471_v18 = vpop.f32.mrf.mxu1 }
 0x22d   :  { %v1422_v43 = vpop.f32.mrf.mxu0 }
 0x22e   :  { %v1423_v38 = vadd.f32 %v1422_v43, %v4843_v31  ;;  %v1518_v43 = vadd.f32 %v1517_v32, %v1469_v6 }
 0x22f   :  { %1666 = vmatmul.bf16.gmra.mxu1 %v4696_v22  ;;  %2605 = vmatpush.bf16.msrb.mxu3 %v3968_v2 }
 0x230   :  { %1617 = vmatmul.bf16.gmra.mxu0 %v4694_v21  ;;  %1715 = vmatmul.bf16.gmra.mxu2 %v4698_v23  ;;  %v1472_v55 = vadd.f32 %v1471_v18, %v1423_v38  ;;  %v1567_v32 = vadd.f32 %v4917_v42, %v1518_v43 }
 0x231   :  { %1764 = vmatmul.bf16.gmra.mxu3 %v4700_v24 }
 0x233   :  { %v1520_v30 = vpop.f32.mrf.mxu2  ;;  %2606 = vmatpush.bf16.msrb.mxu3 %v3960_v11 }
 0x234   :  { %v1569_v4 = vpop.f32.mrf.mxu3  ;;  %v1473_v9 = vpop.f32.mrf.mxu1  ;;  %v1521_v10 = vadd.f32 %v1520_v30, %v1472_v55  ;;  %v1513_v30 = vadd.f32 %v4901_v3, %v1464_v63 }
 0x235   :  { %v1424_v27 = vpop.f32.mrf.mxu0 }
 0x236   :  { %v1425_v39 = vadd.f32 %v1424_v27, %v4843_v31  ;;  %v5399_v31 = vld [vmem:[#allocation27_spill] sm:$0xff]  ;;  %v1570_v27 = vadd.f32 %v1569_v4, %v1521_v10  ;;  %v1565_v4 = vadd.f32 %v4915_v12, %v1516_v7  ;;  %v1562_v38 = vadd.f32 %v4903_v28, %v1513_v30 }
 0x238   :  { %v1474_v51 = vadd.f32 %v1473_v9, %v1425_v39  ;;  %v5400_v9 = vld [vmem:[#allocation20_spill] sm:$0xff]  ;;  %v1828_v3 = vmax.f32 %v1570_v27, 0.0  ;;  %v1824_v39 = vmax.f32 %v1567_v32, 0.0  ;;  %v1820_v12 = vmax.f32 %v1565_v4, 0.0 }
 0x23b   :  { %v1522_v21 = vpop.f32.mrf.mxu2 }
 0x23c   :  { %v1571_v19 = vpop.f32.mrf.mxu3  ;;  %v1632_v23 = vpop.f32.mrf.mxu1  ;;  %v1523_v61 = vadd.f32 %v1522_v21, %v1474_v51  ;;  %v1816_v51 = vmax.f32 %v1562_v38, 0.0 }
 0x23d   :  { %v1583_v22 = vpop.f32.mrf.mxu0 }
 0x23e   :  { %v1584_v24 = vadd.f32 %v1583_v22, %v4924_v48  ;;  %v1572_v18 = vadd.f32 %v1571_v19, %v1523_v61  ;;  %v5401_v22 = vld [vmem:[#allocation24_spill] sm:$0xff]  ;;  %v1812_v61 = vmax.f32 %v4899_v56, 0.0 }
 0x23f   :  { %2313 = vmatmul.bf16.vlgmr.msra.gmra.mxu1 %v4789_v45 }
 0x240   :  { %2264 = vmatmul.bf16.vlgmr.msra.gmra.mxu0 %v4722_v13  ;;  %2362 = vmatmul.bf16.vlgmr.msra.gmra.mxu2 %v4858_v46  ;;  %v1633_v53 = vadd.f32 %v1632_v23, %v1584_v24  ;;  %v1832_v11 = vmax.f32 %v1572_v18, 0.0  ;;  %v5402_v23 = vld [vmem:[#allocation22_spill] sm:$0xff] }
 0x241   :  { %3044 = vmatpush.bf16.msra.mxu1 %v4781_v29  ;;  %3057 = vmatpush.bf16.msra.mxu2 %v4850_v16 }
 0x243   :  { %v1681_v35 = vpop.f32.mrf.mxu2 }
 0x244   :  { %v1730_v50 = vpop.f32.mrf.mxu3  ;;  %v1634_v57 = vpop.f32.mrf.mxu1  ;;  %v1682_v62 = vadd.f32 %v1681_v35, %v1633_v53  ;;  %v4961_v35 = vpack.c.bf16 %v1832_v11, %v1828_v3 }
 0x245   :  { %v1585_v34 = vpop.f32.mrf.mxu0  ;;  %3045 = vmatpush.bf16.msra.mxu1 %v4770_v8  ;;  %3058 = vmatpush.bf16.msra.mxu2 %v4837_v20 }
 0x246   :  { %v1586_v49 = vadd.f32 %v1585_v34, %v4924_v48  ;;  %v1731_v44 = vadd.f32 %v1730_v50, %v1682_v62 }
 0x248   :  { %v1635_v5 = vadd.f32 %v1634_v57, %v1586_v49  ;;  %v1773_v21 = vmax.f32 %v1731_v44, 0.0  ;;  %v5405_v57 = vld [vmem:[#allocation25_spill] sm:$0xff]  ;;  %v4968_v49 = vpack.c.bf16 %v1824_v39, %v1820_v12 }
 0x249   :  { %3046 = vmatpush.bf16.msra.mxu1 %v4762_v33  ;;  %3059 = vmatpush.bf16.msra.mxu2 %v4829_v17 }
 0x24b   :  { %v1683_v37 = vpop.f32.mrf.mxu2 }
 0x24c   :  { %v1684_v1 = vadd.f32 %v1683_v37, %v1635_v5  ;;  %v1732_v47 = vpop.f32.mrf.mxu3  ;;  %v1637_v40 = vpop.f32.mrf.mxu1  ;;  %v4974_v5 = vpack.c.bf16 %v1816_v51, %v1812_v61 }
 0x24d   :  { %v1588_v2 = vpop.f32.mrf.mxu0  ;;  %3047 = vmatpush.bf16.msra.mxu1 %v5398_v26  ;;  %3060 = vmatpush.bf16.msra.mxu2 %v5399_v31 }
 0x24e   :  { %v1733_v52 = vadd.f32 %v1732_v47, %v1684_v1  ;;  %v1589_v15 = vadd.f32 %v1588_v2, %v4924_v48 }
 0x24f   :  { %2318 = vmatmul.bf16.gmra.mxu1 %v5401_v22 }
 0x250   :  { %2269 = vmatmul.bf16.gmra.mxu0 %v5400_v9  ;;  %v1777_v19 = vmax.f32 %v1733_v52, 0.0  ;;  %2367 = vmatmul.bf16.gmra.mxu2 %v4866_v14  ;;  %v1638_v53 = vadd.f32 %v1637_v40, %v1589_v15 }
 0x251   :  { %3048 = vmatpush.bf16.msra.mxu1 %v5402_v23  ;;  %3061 = vmatpush.bf16.msra.mxu2 %v5403_v59 }
 0x252   :  { %v4958_v24 = vpack.c.bf16 %v1777_v19, %v1773_v21 }
 0x253   :  { %v1686_v42 = vpop.f32.mrf.mxu2 }
 0x254   :  { %v1735_v50 = vpop.f32.mrf.mxu3  ;;  %2411 = vmatmul.bf16.vlgmr.msra.gmra.mxu3 %v4958_v24  ;;  %v1639_v58 = vpop.f32.mrf.mxu1  ;;  %v1687_v28 = vadd.f32 %v1686_v42, %v1638_v53 }
 0x255   :  { %v1590_v34 = vpop.f32.mrf.mxu0  ;;  %3049 = vmatpush.bf16.msra.mxu1 %v5404_v36  ;;  %3062 = vmatpush.bf16.msra.mxu2 %v5405_v57 }
 0x256   :  { %3070 = vmatpush.bf16.msra.mxu3 %v4961_v35  ;;  %v1591_v55 = vadd.f32 %v1590_v34, %v4924_v48  ;;  %v1736_v6 = vadd.f32 %v1735_v50, %v1687_v28 }
 0x258   :  { %v1640_v62 = vadd.f32 %v1639_v58, %v1591_v55  ;;  %v1781_v56 = vmax.f32 %v1736_v6, 0.0 }
 0x259   :  { %3050 = vmatpush.bf16.msra.mxu1 %v5400_v9  ;;  %3063 = vmatpush.bf16.msra.mxu2 %v5401_v22 }
 0x25a   :  { %3071 = vmatpush.bf16.msra.mxu3 %v4968_v49 }
 0x25b   :  { %v1688_v41 = vpop.f32.mrf.mxu2 }
 0x25c   :  { %v1689_v60 = vadd.f32 %v1688_v41, %v1640_v62  ;;  %v1737_v10 = vpop.f32.mrf.mxu3  ;;  %v1642_v37 = vpop.f32.mrf.mxu1  ;;  %v4175_v62 = vld [vmem:[#allocation9 + $0x74] sm:$0xf]  ;;  %v3821_v41 = vld [vmem:[#allocation9 + $0x78] sm:$0xf0] }
 0x25d   :  { %v1593_v43 = vpop.f32.mrf.mxu0  ;;  %3051 = vmatpush.bf16.msra.mxu1 %v4722_v13  ;;  %3064 = vmatpush.bf16.msra.mxu2 %v4789_v45  ;;  %v3824_v6 = vor.u32 %v4175_v62, %v3821_v41 }
 0x25e   :  { %v1738_v18 = vadd.f32 %v1737_v10, %v1689_v60  ;;  %3072 = vmatpush.bf16.msra.mxu3 %v4974_v5  ;;  %v1594_v1 = vadd.f32 %v1593_v43, %v4924_v48 }
 0x25f   :  { %2323 = vmatmul.bf16.gmra.mxu1 %v5405_v57  ;;  %2452 = vmatpush.bf16.msrb.mxu0 %v3824_v6 }
 0x260   :  { %2274 = vmatmul.bf16.gmra.mxu0 %v5404_v36  ;;  %v1785_v44 = vmax.f32 %v1738_v18, 0.0  ;;  %2372 = vmatmul.bf16.gmra.mxu2 %v4874_v0  ;;  %v1643_v63 = vadd.f32 %v1642_v37, %v1594_v1 }
 0x262   :  { %3073 = vmatpush.bf16.msra.mxu3 %v4893_v25  ;;  %v4984_v47 = vpack.c.bf16 %v1785_v44, %v1781_v56 }
 0x263   :  { %v1691_v2 = vpop.f32.mrf.mxu2 }
 0x264   :  { %v1740_v40 = vpop.f32.mrf.mxu3  ;;  %2416 = vmatmul.bf16.gmra.mxu3 %v4984_v47  ;;  %v1644_v27 = vpop.f32.mrf.mxu1  ;;  %v1692_v30 = vadd.f32 %v1691_v2, %v1643_v63 }
 0x265   :  { %v1595_v7 = vpop.f32.mrf.mxu0 }
 0x266   :  { %3074 = vmatpush.bf16.msra.mxu3 %v4882_v54  ;;  %v1596_v52 = vadd.f32 %v1595_v7, %v4924_v48  ;;  %v1741_v21 = vadd.f32 %v1740_v40, %v1692_v30 }
 0x268   :  { %v1645_v32 = vadd.f32 %v1644_v27, %v1596_v52  ;;  %v1789_v38 = vmax.f32 %v1741_v21, 0.0  ;;  %v3813_v21 = vld [vmem:[#allocation9 + $0x68] sm:$0xf0] }
 0x26a   :  { %3075 = vmatpush.bf16.msra.mxu3 %v4874_v0 }
 0x26b   :  { %v1693_v11 = vpop.f32.mrf.mxu2 }
 0x26c   :  { %v1694_v19 = vadd.f32 %v1693_v11, %v1645_v32  ;;  %v1742_v15 = vpop.f32.mrf.mxu3  ;;  %v1647_v3 = vpop.f32.mrf.mxu1  ;;  %v4173_v11 = vld [vmem:[#allocation9 + $0x64] sm:$0xf] }
 0x26d   :  { %v1598_v4 = vpop.f32.mrf.mxu0 }
 0x26e   :  { %v1743_v42 = vadd.f32 %v1742_v15, %v1694_v19  ;;  %3076 = vmatpush.bf16.msra.mxu3 %v4866_v14  ;;  %v1599_v53 = vadd.f32 %v1598_v4, %v4924_v48  ;;  %v3816_v15 = vor.u32 %v4173_v11, %v3813_v21 }
 0x26f   :  { %2328 = vmatmul.bf16.gmra.mxu1 %v5403_v59 }
 0x270   :  { %2279 = vmatmul.bf16.gmra.mxu0 %v5402_v23  ;;  %v1793_v39 = vmax.f32 %v1743_v42, 0.0  ;;  %2377 = vmatmul.bf16.gmra.mxu2 %v4882_v54  ;;  %v1648_v58 = vadd.f32 %v1647_v3, %v1599_v53  ;;  %v4171_v42 = vld [vmem:[#allocation9 + $0x54] sm:$0xf] }
 0x271   :  { %2453 = vmatpush.bf16.msrb.mxu0 %v3816_v15  ;;  %v3773_v15 = vld [vmem:[#allocation9 + $0x18] sm:$0xf0] }
 0x272   :  { %3077 = vmatpush.bf16.msra.mxu3 %v4858_v46  ;;  %v4996_v50 = vpack.c.bf16 %v1793_v39, %v1789_v38  ;;  %v3805_v38 = vld [vmem:[#allocation9 + $0x58] sm:$0xf0] }
 0x273   :  { %v1696_v34 = vpop.f32.mrf.mxu2  ;;  %v3808_v39 = vor.u32 %v4171_v42, %v3805_v38 }
 0x274   :  { %v1745_v12 = vpop.f32.mrf.mxu3  ;;  %2421 = vmatmul.bf16.gmra.mxu3 %v4996_v50  ;;  %v1649_v51 = vpop.f32.mrf.mxu1  ;;  %v1697_v61 = vadd.f32 %v1696_v34, %v1648_v58 }
 0x275   :  { %v1600_v55 = vpop.f32.mrf.mxu0  ;;  %2454 = vmatpush.bf16.msrb.mxu0 %v3808_v39 }
 0x276   :  { %v1601_v28 = vadd.f32 %v1600_v55, %v4924_v48  ;;  %v1746_v43 = vadd.f32 %v1745_v12, %v1697_v61  ;;  %v3797_v61 = vld [vmem:[#allocation9 + $0x48] sm:$0xf0] }
 0x278   :  { %v1650_v60 = vadd.f32 %v1649_v51, %v1601_v28  ;;  %v1797_v2 = vmax.f32 %v1746_v43, 0.0  ;;  %v4169_v28 = vld [vmem:[#allocation9 + $0x44] sm:$0xf] }
 0x279   :  { %v3800_v41 = vor.u32 %v4169_v28, %v3797_v61 }
 0x27b   :  { %v1698_v10 = vpop.f32.mrf.mxu2  ;;  %2455 = vmatpush.bf16.msrb.mxu0 %v3800_v41 }
 0x27c   :  { %v1699_v37 = vadd.f32 %v1698_v10, %v1650_v60  ;;  %v1747_v18 = vpop.f32.mrf.mxu3  ;;  %v1652_v44 = vpop.f32.mrf.mxu1 }
 0x27d   :  { %v1603_v56 = vpop.f32.mrf.mxu0 }
 0x27e   :  { %v1748_v1 = vadd.f32 %v1747_v18, %v1699_v37  ;;  %v1604_v40 = vadd.f32 %v1603_v56, %v4924_v48  ;;  %v4167_v37 = vld [vmem:[#allocation9 + $0x34] sm:$0xf]  ;;  %v3789_v18 = vld [vmem:[#allocation9 + $0x38] sm:$0xf0] }
 0x27f   :  { %2333 = vmatmul.bf16.gmra.mxu1 %v5399_v31  ;;  %v3792_v56 = vor.u32 %v4167_v37, %v3789_v18 }
 0x280   :  { %2284 = vmatmul.bf16.gmra.mxu0 %v5398_v26  ;;  %v1801_v63 = vmax.f32 %v1748_v1, 0.0  ;;  %2382 = vmatmul.bf16.gmra.mxu2 %v4893_v25  ;;  %v1653_v52 = vadd.f32 %v1652_v44, %v1604_v40 }
 0x281   :  { %2456 = vmatpush.bf16.msrb.mxu0 %v3792_v56 }
 0x282   :  { %v5004_v7 = vpack.c.bf16 %v1801_v63, %v1797_v2 }
 0x283   :  { %v1701_v27 = vpop.f32.mrf.mxu2 }
 0x284   :  { %v1750_v30 = vpop.f32.mrf.mxu3  ;;  %2426 = vmatmul.bf16.gmra.mxu3 %v5004_v7  ;;  %v1654_v19 = vpop.f32.mrf.mxu1  ;;  %v1702_v3 = vadd.f32 %v1701_v27, %v1653_v52  ;;  %v4165_v27 = vld [vmem:[#allocation9 + $0x24] sm:$0xf]  ;;  %v3781_v52 = vld [vmem:[#allocation9 + $0x28] sm:$0xf0] }
 0x285   :  { %v1605_v32 = vpop.f32.mrf.mxu0 }
 0x286   :  { %v1606_v4 = vadd.f32 %v1605_v32, %v4924_v48  ;;  %v1751_v58 = vadd.f32 %v1750_v30, %v1702_v3  ;;  %v3784_v32 = vor.u32 %v4165_v27, %v3781_v52 }
 0x288   :  { %v1655_v53 = vadd.f32 %v1654_v19, %v1606_v4  ;;  %v1805_v60 = vmax.f32 %v1751_v58, 0.0  ;;  %v4163_v19 = vld [vmem:[#allocation9 + $0x14] sm:$0xf]  ;;  %2457 = vmatpush.bf16.msrb.mxu0 %v3784_v32  ;;  %v4161_v58 = vld [vmem:[#allocation9 + $0x4] sm:$0xf] }
 0x289   :  { %v3776_v4 = vor.u32 %v4163_v19, %v3773_v15 }
 0x28b   :  { %v1703_v34 = vpop.f32.mrf.mxu2 }
 0x28c   :  { %v1704_v12 = vadd.f32 %v1703_v34, %v1655_v53  ;;  %v1752_v55 = vpop.f32.mrf.mxu3  ;;  %v1657_v62 = vpop.f32.mrf.mxu1  ;;  %2458 = vmatpush.bf16.msrb.mxu0 %v3776_v4 }
 0x28d   :  { %v1608_v51 = vpop.f32.mrf.mxu0 }
 0x28e   :  { %v1753_v6 = vadd.f32 %v1752_v55, %v1704_v12  ;;  %v1609_v43 = vadd.f32 %v1608_v51, %v4924_v48  ;;  %v3765_v12 = vld [vmem:[#allocation9 + $0x8] sm:$0xf0] }
 0x28f   :  { %2338 = vmatmul.bf16.gmra.mxu1 %v4829_v17  ;;  %v3768_v51 = vor.u32 %v4161_v58, %v3765_v12  ;;  %v5035_v58 = vld [vmem:[%s5375_s4] sm:$0x3] }
 0x290   :  { %2289 = vmatmul.bf16.gmra.mxu0 %v4762_v33  ;;  %v1809_v10 = vmax.f32 %v1753_v6, 0.0  ;;  %2387 = vmatmul.bf16.gmra.mxu2 %v4974_v5  ;;  %v1658_v2 = vadd.f32 %v1657_v62, %v1609_v43 }
 0x291   :  { %2459 = vmatpush.bf16.msrb.mxu0 %v3768_v51 }
 0x292   :  { %v5012_v44 = vpack.c.bf16 %v1809_v10, %v1805_v60 }
 0x293   :  { %v1706_v1 = vpop.f32.mrf.mxu2 }
 0x294   :  { %v1755_v63 = vpop.f32.mrf.mxu3  ;;  %2431 = vmatmul.bf16.gmra.mxu3 %v5012_v44  ;;  %v1659_v30 = vpop.f32.mrf.mxu1  ;;  %v1707_v21 = vadd.f32 %v1706_v1, %v1658_v2 }
 0x295   :  { %v1610_v40 = vpop.f32.mrf.mxu0 }
 0x296   :  { %v1611_v11 = vadd.f32 %v1610_v40, %v4924_v48  ;;  %v1756_v38 = vadd.f32 %v1755_v63, %v1707_v21 }
 0x298   :  { %v1660_v3 = vadd.f32 %v1659_v30, %v1611_v11  ;;  %v1813_v61 = vmax.f32 %v1756_v38, 0.0 }
 0x29b   :  { %v1708_v42 = vpop.f32.mrf.mxu2 }
 0x29c   :  { %v1709_v39 = vadd.f32 %v1708_v42, %v1660_v3  ;;  %v1757_v53 = vpop.f32.mrf.mxu3  ;;  %v1662_v55 = vpop.f32.mrf.mxu1 }
 0x29d   :  { %v1613_v34 = vpop.f32.mrf.mxu0 }
 0x29e   :  { %v1758_v28 = vadd.f32 %v1757_v53, %v1709_v39  ;;  %v1614_v41 = vadd.f32 %v1613_v34, %v4924_v48 }
 0x29f   :  { %2343 = vmatmul.bf16.gmra.mxu1 %v4837_v20 }
 0x2a0   :  { %2294 = vmatmul.bf16.gmra.mxu0 %v4770_v8  ;;  %v1817_v62 = vmax.f32 %v1758_v28, 0.0  ;;  %2392 = vmatmul.bf16.gmra.mxu2 %v4968_v49  ;;  %v1663_v10 = vadd.f32 %v1662_v55, %v1614_v41  ;;  %v5038_v55 = vperm.slane %v5035_v58, 0 }
 0x2a2   :  { %v5020_v6 = vpack.c.bf16 %v1817_v62, %v1813_v61 }
 0x2a3   :  { %v1711_v60 = vpop.f32.mrf.mxu2 }
 0x2a4   :  { %v1760_v43 = vpop.f32.mrf.mxu3  ;;  %2436 = vmatmul.bf16.gmra.mxu3 %v5020_v6  ;;  %v1664_v18 = vpop.f32.mrf.mxu1  ;;  %v1712_v1 = vadd.f32 %v1711_v60, %v1663_v10 }
 0x2a5   :  { %v1615_v37 = vpop.f32.mrf.mxu0 }
 0x2a6   :  { %v1616_v56 = vadd.f32 %v1615_v37, %v4924_v48  ;;  %v1761_v40 = vadd.f32 %v1760_v43, %v1712_v1 }
 0x2a8   :  { %v1665_v2 = vadd.f32 %v1664_v18, %v1616_v56  ;;  %v1821_v21 = vmax.f32 %v1761_v40, 0.0 }
 0x2ab   :  { %v1713_v63 = vpop.f32.mrf.mxu2 }
 0x2ac   :  { %v1714_v27 = vadd.f32 %v1713_v63, %v1665_v2  ;;  %v1762_v52 = vpop.f32.mrf.mxu3  ;;  %v1667_v32 = vpop.f32.mrf.mxu1 }
 0x2ad   :  { %v1618_v30 = vpop.f32.mrf.mxu0 }
 0x2ae   :  { %v1763_v11 = vadd.f32 %v1762_v52, %v1714_v27  ;;  %v1619_v15 = vadd.f32 %v1618_v30, %v4924_v48 }
 0x2af   :  { %2348 = vmatmul.bf16.gmra.mxu1 %v4850_v16 }
 0x2b0   :  { %2299 = vmatmul.bf16.gmra.mxu0 %v4781_v29  ;;  %v1825_v19 = vmax.f32 %v1763_v11, 0.0  ;;  %2397 = vmatmul.bf16.gmra.mxu2 %v4961_v35  ;;  %v1668_v42 = vadd.f32 %v1667_v32, %v1619_v15 }
 0x2b2   :  { %v5028_v4 = vpack.c.bf16 %v1825_v19, %v1821_v21 }
 0x2b3   :  { %v1716_v3 = vpop.f32.mrf.mxu2 }
 0x2b4   :  { %v1765_v38 = vpop.f32.mrf.mxu3  ;;  %2441 = vmatmul.bf16.gmra.mxu3 %v5028_v4  ;;  %v1669_v53 = vpop.f32.mrf.mxu1  ;;  %v1717_v12 = vadd.f32 %v1716_v3, %v1668_v42 }
 0x2b5   :  { %v1620_v39 = vpop.f32.mrf.mxu0 }
 0x2b6   :  { %v1621_v34 = vadd.f32 %v1620_v39, %v4924_v48  ;;  %v1766_v61 = vadd.f32 %v1765_v38, %v1717_v12 }
 0x2b8   :  { %v1670_v51 = vadd.f32 %v1669_v53, %v1621_v34  ;;  %v1829_v18 = vmax.f32 %v1766_v61, 0.0 }
 0x2bb   :  { %v1718_v28 = vpop.f32.mrf.mxu2 }
 0x2bc   :  { %v1719_v62 = vadd.f32 %v1718_v28, %v1670_v51  ;;  %v1767_v60 = vpop.f32.mrf.mxu3  ;;  %v2314_v43 = vpop.f32.mrf.mxu1 }
 0x2bd   :  { %v2265_v41 = vpop.f32.mrf.mxu0 }
 0x2be   :  { %v2266_v10 = vadd.f32 %v2265_v41, %v5038_v55  ;;  %v1768_v37 = vadd.f32 %v1767_v60, %v1719_v62 }
 0x2bf   :  { %2509 = vmatmul.bf16.vlgmr.msrb.gmra.mxu1 %v4789_v45 }
 0x2c0   :  { %v2315_v48 = vadd.f32 %v2314_v43, %v2266_v10  ;;  %2460 = vmatmul.bf16.vlgmr.msrb.gmra.mxu0 %v4722_v13  ;;  %v1833_v56 = vmax.f32 %v1768_v37, 0.0  ;;  %2558 = vmatmul.bf16.vlgmr.msrb.gmra.mxu2 %v4858_v46 }
 0x2c2   :  { %v5044_v1 = vpack.c.bf16 %v1833_v56, %v1829_v18 }
 0x2c3   :  { %v2363_v2 = vpop.f32.mrf.mxu2 }
 0x2c4   :  { %v2364_v63 = vadd.f32 %v2363_v2, %v2315_v48  ;;  %2446 = vmatmul.bf16.gmra.mxu3 %v5044_v1  ;;  %v2316_v52 = vpop.f32.mrf.mxu1 }
 0x2c5   :  { %v2267_v40 = vpop.f32.mrf.mxu0 }
 0x2c6   :  { %v2268_v27 = vadd.f32 %v2267_v40, %v5038_v55 }
 0x2c8   :  { %v2317_v30 = vadd.f32 %v2316_v52, %v2268_v27 }
 0x2cb   :  { %v2365_v32 = vpop.f32.mrf.mxu2 }
 0x2cc   :  { %v2366_v11 = vadd.f32 %v2365_v32, %v2317_v30  ;;  %v2319_v19 = vpop.f32.mrf.mxu1 }
 0x2cd   :  { %v2270_v13 = vpop.f32.mrf.mxu0 }
 0x2ce   :  { %v2271_v21 = vadd.f32 %v2270_v13, %v5038_v55 }
 0x2cf   :  { %2514 = vmatmul.bf16.gmra.mxu1 %v5401_v22 }
 0x2d0   :  { %v2320_v45 = vadd.f32 %v2319_v19, %v2271_v21  ;;  %2465 = vmatmul.bf16.gmra.mxu0 %v5400_v9  ;;  %2563 = vmatmul.bf16.gmra.mxu2 %v4866_v14 }
 0x2d3   :  { %v2368_v46 = vpop.f32.mrf.mxu2 }
 0x2d4   :  { %v2369_v15 = vadd.f32 %v2368_v46, %v2320_v45  ;;  %2607 = vmatmul.bf16.vlgmr.msrb.gmra.mxu3 %v4958_v24  ;;  %v2321_v38 = vpop.f32.mrf.mxu1 }
 0x2d5   :  { %v2272_v3 = vpop.f32.mrf.mxu0 }
 0x2d6   :  { %v2273_v42 = vadd.f32 %v2272_v3, %v5038_v55 }
 0x2d7   :  { %v2412_v53 = vpop.f32.mrf.mxu3 }
 0x2d8   :  { %v2322_v39 = vadd.f32 %v2321_v38, %v2273_v42  ;;  %v5054_v34 = vadd.f32 %v2412_v53, %v2364_v63 }
 0x2db   :  { %v2370_v12 = vpop.f32.mrf.mxu2 }
 0x2dc   :  { %v2371_v51 = vadd.f32 %v2370_v12, %v2322_v39  ;;  %v2324_v22 = vpop.f32.mrf.mxu1 }
 0x2dd   :  { %v2275_v28 = vpop.f32.mrf.mxu0 }
 0x2de   :  { %v2276_v9 = vadd.f32 %v2275_v28, %v5038_v55 }
 0x2df   :  { %v2414_v14 = vpop.f32.mrf.mxu3  ;;  %2519 = vmatmul.bf16.gmra.mxu1 %v5405_v57 }
 0x2e0   :  { %v2325_v61 = vadd.f32 %v2324_v22, %v2276_v9  ;;  %2470 = vmatmul.bf16.gmra.mxu0 %v5404_v36  ;;  %v5058_v62 = vadd.f32 %v2414_v14, %v2366_v11  ;;  %2568 = vmatmul.bf16.gmra.mxu2 %v4874_v0 }
 0x2e3   :  { %v2373_v41 = vpop.f32.mrf.mxu2 }
 0x2e4   :  { %v2374_v60 = vadd.f32 %v2373_v41, %v2325_v61  ;;  %2612 = vmatmul.bf16.gmra.mxu3 %v4984_v47  ;;  %v2326_v37 = vpop.f32.mrf.mxu1 }
 0x2e5   :  { %v2277_v10 = vpop.f32.mrf.mxu0 }
 0x2e6   :  { %v2278_v43 = vadd.f32 %v2277_v10, %v5038_v55 }
 0x2e7   :  { %v2417_v18 = vpop.f32.mrf.mxu3 }
 0x2e8   :  { %v2327_v48 = vadd.f32 %v2326_v37, %v2278_v43  ;;  %v5064_v56 = vadd.f32 %v2417_v18, %v2369_v15 }
 0x2eb   :  { %v2375_v2 = vpop.f32.mrf.mxu2 }
 0x2ec   :  { %v2376_v36 = vadd.f32 %v2375_v2, %v2327_v48  ;;  %v2329_v57 = vpop.f32.mrf.mxu1 }
 0x2ed   :  { %v2280_v63 = vpop.f32.mrf.mxu0 }
 0x2ee   :  { %v2281_v40 = vadd.f32 %v2280_v63, %v5038_v55 }
 0x2ef   :  { %v2419_v0 = vpop.f32.mrf.mxu3  ;;  %2524 = vmatmul.bf16.gmra.mxu1 %v5403_v59 }
 0x2f0   :  { %v2330_v27 = vadd.f32 %v2329_v57, %v2281_v40  ;;  %2475 = vmatmul.bf16.gmra.mxu0 %v5402_v23  ;;  %v5068_v52 = vadd.f32 %v2419_v0, %v2371_v51  ;;  %2573 = vmatmul.bf16.gmra.mxu2 %v4882_v54 }
 0x2f3   :  { %v2378_v30 = vpop.f32.mrf.mxu2 }
 0x2f4   :  { %v2379_v32 = vadd.f32 %v2378_v30, %v2330_v27  ;;  %2617 = vmatmul.bf16.gmra.mxu3 %v4996_v50  ;;  %v2331_v21 = vpop.f32.mrf.mxu1 }
 0x2f5   :  { %v2282_v11 = vpop.f32.mrf.mxu0 }
 0x2f6   :  { %v2283_v13 = vadd.f32 %v2282_v11, %v5038_v55 }
 0x2f7   :  { %v2422_v45 = vpop.f32.mrf.mxu3 }
 0x2f8   :  { %v2332_v19 = vadd.f32 %v2331_v21, %v2283_v13  ;;  %v5074_v46 = vadd.f32 %v2422_v45, %v2374_v60 }
 0x2fb   :  { %v2380_v15 = vpop.f32.mrf.mxu2 }
 0x2fc   :  { %v2381_v23 = vadd.f32 %v2380_v15, %v2332_v19  ;;  %v2334_v59 = vpop.f32.mrf.mxu1 }
 0x2fd   :  { %v2285_v3 = vpop.f32.mrf.mxu0 }
 0x2fe   :  { %v2286_v42 = vadd.f32 %v2285_v3, %v5038_v55 }
 0x2ff   :  { %v2424_v54 = vpop.f32.mrf.mxu3  ;;  %2529 = vmatmul.bf16.gmra.mxu1 %v5399_v31 }
 0x300   :  { %v2335_v38 = vadd.f32 %v2334_v59, %v2286_v42  ;;  %2480 = vmatmul.bf16.gmra.mxu0 %v5398_v26  ;;  %v5078_v39 = vadd.f32 %v2424_v54, %v2376_v36  ;;  %2578 = vmatmul.bf16.gmra.mxu2 %v4893_v25 }
 0x303   :  { %v2383_v53 = vpop.f32.mrf.mxu2 }
 0x304   :  { %v2384_v12 = vadd.f32 %v2383_v53, %v2335_v38  ;;  %2622 = vmatmul.bf16.gmra.mxu3 %v5004_v7  ;;  %v5085_v28 = vpop.f32.mrf.mxu1 }
 0x305   :  { %v5083_v51 = vpop.f32.mrf.mxu0 }
 0x307   :  { %v2427_v9 = vpop.f32.mrf.mxu3 }
 0x308   :  { %v5087_v22 = vadd.f32 %v2427_v9, %v2379_v32 }
 0x30b   :  { %v5089_v61 = vpop.f32.mrf.mxu2 }
 0x30c   :  { %v5093_v14 = vpop.f32.mrf.mxu1 }
 0x30d   :  { %v5091_v26 = vpop.f32.mrf.mxu0 }
 0x30f   :  { %v2429_v31 = vpop.f32.mrf.mxu3  ;;  %2534 = vmatmul.bf16.gmra.mxu1 %v4829_v17 }
 0x310   :  { %2485 = vmatmul.bf16.gmra.mxu0 %v4762_v33  ;;  %v5096_v25 = vadd.f32 %v2429_v31, %v2381_v23  ;;  %2583 = vmatmul.bf16.gmra.mxu2 %v4974_v5 }
 0x313   :  { %v5100_v41 = vpop.f32.mrf.mxu2 }
 0x314   :  { %2627 = vmatmul.bf16.gmra.mxu3 %v5012_v44  ;;  %v2341_v10 = vpop.f32.mrf.mxu1 }
 0x315   :  { %v2292_v60 = vpop.f32.mrf.mxu0 }
 0x316   :  { %v2293_v32 = vadd.f32 %v2292_v60, %v5038_v55 }
 0x317   :  { %v2432_v43 = vpop.f32.mrf.mxu3 }
 0x318   :  { %v5103_v37 = vadd.f32 %v2432_v43, %v2384_v12  ;;  %v2342_v13 = vadd.f32 %v2341_v10, %v2293_v32 }
 0x31b   :  { %v2390_v48 = vpop.f32.mrf.mxu2 }
 0x31c   :  { %v2344_v33 = vpop.f32.mrf.mxu1  ;;  %v2391_v19 = vadd.f32 %v2390_v48, %v2342_v13 }
 0x31d   :  { %v2295_v18 = vpop.f32.mrf.mxu0 }
 0x31e   :  { %v2296_v2 = vadd.f32 %v2295_v18, %v5038_v55 }
 0x31f   :  { %v5106_v63 = vpop.f32.mrf.mxu3  ;;  %2539 = vmatmul.bf16.gmra.mxu1 %v4837_v20 }
 0x320   :  { %v2345_v36 = vadd.f32 %v2344_v33, %v2296_v2  ;;  %2490 = vmatmul.bf16.gmra.mxu0 %v4770_v8  ;;  %2588 = vmatmul.bf16.gmra.mxu2 %v4968_v49 }
 0x323   :  { %v2393_v17 = vpop.f32.mrf.mxu2 }
 0x324   :  { %v2394_v5 = vadd.f32 %v2393_v17, %v2345_v36  ;;  %2632 = vmatmul.bf16.gmra.mxu3 %v5020_v6  ;;  %v2346_v27 = vpop.f32.mrf.mxu1 }
 0x325   :  { %v2297_v40 = vpop.f32.mrf.mxu0 }
 0x326   :  { %v2298_v57 = vadd.f32 %v2297_v40, %v5038_v55 }
 0x327   :  { %v5113_v30 = vpop.f32.mrf.mxu3 }
 0x328   :  { %v2347_v0 = vadd.f32 %v2346_v27, %v2298_v57 }
 0x32b   :  { %v2395_v11 = vpop.f32.mrf.mxu2 }
 0x32c   :  { %v2396_v8 = vadd.f32 %v2395_v11, %v2347_v0  ;;  %v2349_v49 = vpop.f32.mrf.mxu1 }
 0x32d   :  { %v2300_v21 = vpop.f32.mrf.mxu0 }
 0x32e   :  { %v2301_v20 = vadd.f32 %v2300_v21, %v5038_v55 }
 0x32f   :  { %v2439_v15 = vpop.f32.mrf.mxu3  ;;  %2544 = vmatmul.bf16.gmra.mxu1 %v4850_v16 }
 0x330   :  { %v2350_v45 = vadd.f32 %v2349_v49, %v2301_v20  ;;  %2495 = vmatmul.bf16.gmra.mxu0 %v4781_v29  ;;  %v5118_v23 = vadd.f32 %v2439_v15, %v2391_v19  ;;  %2593 = vmatmul.bf16.gmra.mxu2 %v4961_v35  ;;  %v5127_v29 = vperm.slane %v5035_v58, 1 }
 0x333   :  { %v2398_v3 = vpop.f32.mrf.mxu2 }
 0x334   :  { %v2399_v42 = vadd.f32 %v2398_v3, %v2350_v45  ;;  %2637 = vmatmul.bf16.gmra.mxu3 %v5028_v4  ;;  %v2351_v54 = vpop.f32.mrf.mxu1 }
 0x335   :  { %v2302_v59 = vpop.f32.mrf.mxu0 }
 0x336   :  { %v2303_v38 = vadd.f32 %v2302_v59, %v5038_v55 }
 0x337   :  { %v2442_v12 = vpop.f32.mrf.mxu3 }
 0x338   :  { %v2352_v53 = vadd.f32 %v2351_v54, %v2303_v38  ;;  %v5124_v9 = vadd.f32 %v2442_v12, %v2394_v5 }
 0x33b   :  { %v2400_v31 = vpop.f32.mrf.mxu2 }
 0x33c   :  { %v2401_v60 = vadd.f32 %v2400_v31, %v2352_v53  ;;  %v2510_v10 = vpop.f32.mrf.mxu1 }
 0x33d   :  { %v2461_v16 = vpop.f32.mrf.mxu0 }
 0x33e   :  { %v2462_v35 = vadd.f32 %v2461_v16, %v5127_v29 }
 0x33f   :  { %v2444_v48 = vpop.f32.mrf.mxu3 }
 0x340   :  { %v2511_v43 = vadd.f32 %v2510_v10, %v2462_v35  ;;  %v5130_v18 = vadd.f32 %v2444_v48, %v2396_v8 }
 0x343   :  { %v2559_v2 = vpop.f32.mrf.mxu2 }
 0x344   :  { %v2560_v33 = vadd.f32 %v2559_v2, %v2511_v43  ;;  %2642 = vmatmul.bf16.gmra.mxu3 %v5044_v1  ;;  %v2512_v5 = vpop.f32.mrf.mxu1 }
 0x345   :  { %v2463_v36 = vpop.f32.mrf.mxu0 }
 0x346   :  { %v2464_v17 = vadd.f32 %v2463_v36, %v5127_v29 }
 0x347   :  { %v2447_v40 = vpop.f32.mrf.mxu3 }
 0x348   :  { %v2513_v58 = vadd.f32 %v2512_v5, %v2464_v17  ;;  %v5134_v57 = vadd.f32 %v2447_v40, %v2399_v42 }
 0x34b   :  { %v2561_v27 = vpop.f32.mrf.mxu2 }
 0x34c   :  { %v2562_v0 = vadd.f32 %v2561_v27, %v2513_v58  ;;  %v2515_v13 = vpop.f32.mrf.mxu1 }
 0x34d   :  { %v2466_v32 = vpop.f32.mrf.mxu0 }
 0x34e   :  { %v2467_v11 = vadd.f32 %v2466_v32, %v5127_v29 }
 0x34f   :  { %v2449_v21 = vpop.f32.mrf.mxu3 }
 0x350   :  { %v2516_v8 = vadd.f32 %v2515_v13, %v2467_v11  ;;  %v5137_v20 = vadd.f32 %v2449_v21, %v2401_v60 }
 0x353   :  { %v2564_v49 = vpop.f32.mrf.mxu2 }
 0x354   :  { %v2565_v19 = vadd.f32 %v2564_v49, %v2516_v8  ;;  %v2517_v3 = vpop.f32.mrf.mxu1 }
 0x355   :  { %v2468_v45 = vpop.f32.mrf.mxu0 }
 0x356   :  { %v2469_v15 = vadd.f32 %v2468_v45, %v5127_v29 }
 0x357   :  { %v2608_v38 = vpop.f32.mrf.mxu3 }
 0x358   :  { %v2518_v59 = vadd.f32 %v2517_v3, %v2469_v15  ;;  %v2609_v42 = vadd.f32 %v2608_v38, %v2560_v33 }
 0x35a   :  { %v4017_v54 = vmul.f32 -1.442695, %v2609_v42 }
 0x35b   :  { %v2566_v53 = vpop.f32.mrf.mxu2 }
 0x35c   :  { %4240 = vpow2.f32 %v4017_v54  ;;  %v2567_v12 = vadd.f32 %v2566_v53, %v2518_v59  ;;  %v2520_v35 = vpop.f32.mrf.mxu1 }
 0x35d   :  { %v2471_v31 = vpop.f32.mrf.mxu0 }
 0x35e   :  { %v2472_v16 = vadd.f32 %v2471_v31, %v5127_v29 }
 0x35f   :  { %v2610_v60 = vpop.f32.mrf.mxu3 }
 0x360   :  { %v2521_v10 = vadd.f32 %v2520_v35, %v2472_v16  ;;  %v2611_v43 = vadd.f32 %v2610_v60, %v2562_v0 }
 0x362   :  { %v4241_v48 = vpop.eup %4240  ;;  %v4018_v2 = vmul.f32 -1.442695, %v2611_v43 }
 0x363   :  { %v2712_v36 = vadd.f32 1.0, %v4241_v48  ;;  %v2569_v17 = vpop.f32.mrf.mxu2 }
 0x364   :  { %4242 = vpow2.f32 %v4018_v2  ;;  %v2570_v5 = vadd.f32 %v2569_v17, %v2521_v10  ;;  %v2522_v40 = vpop.f32.mrf.mxu1 }
 0x365   :  { %v2473_v58 = vpop.f32.mrf.mxu0  ;;  %4244 = vrcp.f32 %v2712_v36  ;;  %v2737_v35 = vand.u32 2147483647, %v2712_v36  ;;  %vm2733_vm1 = vweird.f32 %v2712_v36 }
 0x366   :  { %v2474_v33 = vadd.f32 %v2473_v58, %v5127_v29 }
 0x367   :  { %v2613_v32 = vpop.f32.mrf.mxu3  ;;  %vm2738_vm3 = vcmp.eq.f32.partialorder %v2737_v35, 8.507059e+37 }
 0x368   :  { %v2523_v27 = vadd.f32 %v2522_v40, %v2474_v33  ;;  %v2614_v11 = vadd.f32 %v2613_v32, %v2565_v19  ;;  %v2739_v19 = vand.u32 2147483648, %v2712_v36 }
 0x36a   :  { %v4243_v13 = vpop.eup %4242  ;;  %v4019_v8 = vmul.f32 -1.442695, %v2614_v11  ;;  %v2740_v58 = vor.u32 1.1754944e-38, %v2739_v19 }
 0x36b   :  { %v4245_v21 = vpop.eup %4244  ;;  %v5142_v49 = vadd.f32 1.0, %v4243_v13  ;;  %v2571_v0 = vpop.f32.mrf.mxu2 }
 0x36c   :  { %v2729_v45 = vmul.f32 %v4245_v21, %v2712_v36  ;;  %4246 = vpow2.f32 %v4019_v8  ;;  %v5144_v15 = vadd.f32 %v2571_v0, %v2523_v27  ;;  %v2525_v38 = vpop.f32.mrf.mxu1  ;;  %vm2734_vm0 = vweird.f32 %v4245_v21 }
 0x36d   :  { %v2476_v3 = vpop.f32.mrf.mxu0  ;;  %4248 = vrcp.f32 %v5142_v49  ;;  %vm2735_vm2 = vmor %vm2733_vm1, %vm2734_vm0  ;;  %vm2748_vm5 = vweird.f32 %v5142_v49 }
 0x36e   :  { %v2477_v59 = vadd.f32 %v2476_v3, %v5127_v29  ;;  %v2730_v42 = vsub.f32 1.0, %v2729_v45  ;;  %4250 = vtanh.f32 %v5054_v34 }
 0x36f   :  { %v2615_v53 = vpop.f32.mrf.mxu3 }
 0x370   :  { %v2526_v54 = vadd.f32 %v2525_v38, %v2477_v59  ;;  %v2616_v31 = vadd.f32 %v2615_v53, %v2567_v12  ;;  %v2731_v16 = vmul.f32 %v4245_v21, %v2730_v42  ;;  %v2754_v38 = vand.u32 2147483648, %v5142_v49 }
 0x371   :  { %v2752_v53 = vand.u32 2147483647, %v5142_v49 }
 0x372   :  { %v4247_v10 = vpop.eup %4246  ;;  %v4020_v60 = vmul.f32 -1.442695, %v2616_v31  ;;  %v2732_v43 = vadd.f32 %v4245_v21, %v2731_v16 }
 0x373   :  { %v4249_v48 = vpop.eup %4248  ;;  %v5149_v2 = vadd.f32 1.0, %v4247_v10  ;;  %v2574_v17 = vpop.f32.mrf.mxu2  ;;  %vm2753_vm7 = vcmp.eq.f32.partialorder %v2752_v53, 8.507059e+37 }
 0x374   :  { %v2744_v33 = vmul.f32 %v4249_v48, %v5142_v49  ;;  %4252 = vpow2.f32 %v4020_v60  ;;  %v5152_v40 = vadd.f32 %v2574_v17, %v2526_v54  ;;  %v2736_v12 = vsel %vm2735_vm2, %v4245_v21, %v2732_v43  ;;  %v2527_v32 = vpop.f32.mrf.mxu1  ;;  %v4251_v36 = vpop.eup %4250 }
 0x375   :  { %v2478_v34 = vpop.f32.mrf.mxu0  ;;  %4254 = vrcp.f32 %v5149_v2  ;;  %v2741_v13 = vsel %vm2738_vm3, %v2740_v58, %v2736_v12  ;;  %vm2749_vm4 = vweird.f32 %v4249_v48  ;;  %v2755_v43 = vor.u32 1.1754944e-38, %v2754_v38 }
 0x376   :  { %v2479_v27 = vadd.f32 %v2478_v34, %v5127_v29  ;;  %v2745_v11 = vsub.f32 1.0, %v2744_v33  ;;  %v5156_v45 = vmul.f32 %v4251_v36, %v2741_v13  ;;  %4256 = vtanh.f32 %v5058_v62  ;;  %vm2750_vm6 = vmor %vm2748_vm5, %vm2749_vm4 }
 0x377   :  { %v2618_v0 = vpop.f32.mrf.mxu3  ;;  %v2767_v13 = vand.u32 2147483647, %v5149_v2  ;;  %vm2763_vm9 = vweird.f32 %v5149_v2 }
 0x378   :  { %v2528_v8 = vadd.f32 %v2527_v32, %v2479_v27  ;;  %v2619_v3 = vadd.f32 %v2618_v0, %v2570_v5  ;;  %v2746_v59 = vmul.f32 %v4249_v48, %v2745_v11  ;;  %v2769_v27 = vand.u32 2147483648, %v5149_v2 }
 0x379   :  { %vm2768_vm11 = vcmp.eq.f32.partialorder %v2767_v13, 8.507059e+37 }
 0x37a   :  { %v4253_v21 = vpop.eup %4252  ;;  %v4021_v42 = vmul.f32 -1.442695, %v2619_v3  ;;  %v2747_v54 = vadd.f32 %v4249_v48, %v2746_v59 }
 0x37b   :  { %v4255_v19 = vpop.eup %4254  ;;  %v5161_v31 = vadd.f32 1.0, %v4253_v21  ;;  %v2576_v16 = vpop.f32.mrf.mxu2 }
 0x37c   :  { %v2759_v35 = vmul.f32 %v4255_v19, %v5149_v2  ;;  %4258 = vpow2.f32 %v4021_v42  ;;  %v5164_v10 = vadd.f32 %v2576_v16, %v2528_v8  ;;  %v2530_v60 = vpop.f32.mrf.mxu1  ;;  %v2751_v58 = vsel %vm2750_vm6, %v4249_v48, %v2747_v54  ;;  %v4257_v33 = vpop.eup %4256 }
 0x37d   :  { %v2481_v5 = vpop.f32.mrf.mxu0  ;;  %4260 = vrcp.f32 %v5161_v31  ;;  %v2756_v32 = vsel %vm2753_vm7, %v2755_v43, %v2751_v58  ;;  %vm2764_vm8 = vweird.f32 %v4255_v19  ;;  %vm2778_vm13 = vweird.f32 %v5161_v31 }
 0x37e   :  { %v2482_v62 = vadd.f32 %v2481_v5, %v5127_v29  ;;  %v2760_v17 = vsub.f32 1.0, %v2759_v35  ;;  %4262 = vtanh.f32 %v5064_v56  ;;  %v5172_v11 = vmul.f32 %v4257_v33, %v2756_v32  ;;  %vm2765_vm10 = vmor %vm2763_vm9, %vm2764_vm8 }
 0x37f   :  { %v2620_v12 = vpop.f32.mrf.mxu3  ;;  %v2782_v32 = vand.u32 2147483647, %v5161_v31 }
 0x380   :  { %v2531_v34 = vadd.f32 %v2530_v60, %v2482_v62  ;;  %v2621_v49 = vadd.f32 %v2620_v12, %v5144_v15  ;;  %v2761_v36 = vmul.f32 %v4255_v19, %v2760_v17  ;;  %v2984_v56 = vpack.c.bf16 %v5172_v11, %v5156_v45 }
 0x381   :  { %v2770_v15 = vor.u32 1.1754944e-38, %v2769_v27  ;;  %vm2783_vm15 = vcmp.eq.f32.partialorder %v2782_v32, 8.507059e+37 }
 0x382   :  { %v4259_v8 = vpop.eup %4258  ;;  %v4022_v0 = vmul.f32 -1.442695, %v2621_v49  ;;  %v2762_v48 = vadd.f32 %v4255_v19, %v2761_v36 }
 0x383   :  { %v4261_v3 = vpop.eup %4260  ;;  %v5178_v59 = vadd.f32 1.0, %v4259_v8  ;;  %v2579_v38 = vpop.f32.mrf.mxu2 }
 0x384   :  { %v2774_v21 = vmul.f32 %v4261_v3, %v5161_v31  ;;  %4264 = vpow2.f32 %v4022_v0  ;;  %v5181_v42 = vadd.f32 %v2579_v38, %v2531_v34  ;;  %v2766_v53 = vsel %vm2765_vm10, %v4255_v19, %v2762_v48  ;;  %v4263_v16 = vpop.eup %4262  ;;  %v2532_v5 = vpop.f32.mrf.mxu1 }
 0x385   :  { %v2483_v54 = vpop.f32.mrf.mxu0  ;;  %4266 = vrcp.f32 %v5178_v59  ;;  %v2771_v62 = vsel %vm2768_vm11, %v2770_v15, %v2766_v53  ;;  %v2784_v19 = vand.u32 2147483648, %v5161_v31  ;;  %vm2779_vm12 = vweird.f32 %v4261_v3 }
 0x386   :  { %v2484_v2 = vadd.f32 %v2483_v54, %v5127_v29  ;;  %v2775_v35 = vsub.f32 1.0, %v2774_v21  ;;  %v5185_v17 = vmul.f32 %v4263_v16, %v2771_v62  ;;  %4268 = vtanh.f32 %v5068_v52  ;;  %vm2780_vm14 = vmor %vm2778_vm13, %vm2779_vm12 }
 0x387   :  { %v2623_v43 = vpop.f32.mrf.mxu3  ;;  %v2785_v52 = vor.u32 1.1754944e-38, %v2784_v19  ;;  %v2799_v21 = vand.u32 2147483648, %v5178_v59  ;;  %v2797_v31 = vand.u32 2147483647, %v5178_v59  ;;  %vm2793_vm1 = vweird.f32 %v5178_v59 }
 0x388   :  { %v2533_v60 = vadd.f32 %v2532_v5, %v2484_v2  ;;  %v2624_v58 = vadd.f32 %v2623_v43, %v5152_v40  ;;  %v2776_v33 = vmul.f32 %v4261_v3, %v2775_v35 }
 0x389   :  { %vm2798_vm3 = vcmp.eq.f32.partialorder %v2797_v31, 8.507059e+37 }
 0x38a   :  { %v4265_v34 = vpop.eup %4264  ;;  %v4023_v12 = vmul.f32 -1.442695, %v2624_v58  ;;  %v2777_v27 = vadd.f32 %v4261_v3, %v2776_v33  ;;  %v2800_v33 = vor.u32 1.1754944e-38, %v2799_v21 }
 0x38b   :  { %v4267_v49 = vpop.eup %4266  ;;  %v5191_v36 = vadd.f32 1.0, %v4265_v34  ;;  %v2581_v13 = vpop.f32.mrf.mxu2 }
 0x38c   :  { %v2789_v8 = vmul.f32 %v4267_v49, %v5178_v59  ;;  %4270 = vpow2.f32 %v4023_v12  ;;  %v5194_v0 = vadd.f32 %v2581_v13, %v2533_v60  ;;  %v2781_v48 = vsel %vm2780_vm14, %v4261_v3, %v2777_v27  ;;  %v4269_v38 = vpop.eup %4268  ;;  %v2535_v32 = vpop.f32.mrf.mxu1 }
 0x38d   :  { %4272 = vrcp.f32 %v5191_v36  ;;  %v2786_v54 = vsel %vm2783_vm15, %v2785_v52, %v2781_v48  ;;  %vm2794_vm0 = vweird.f32 %v4267_v49  ;;  %v2486_v5 = vpop.f32.mrf.mxu0  ;;  %vm2808_vm5 = vweird.f32 %v5191_v36 }
 0x38e   :  { %v2790_v40 = vsub.f32 1.0, %v2789_v8  ;;  %4274 = vtanh.f32 %v5074_v46  ;;  %v5201_v2 = vmul.f32 %v4269_v38, %v2786_v54  ;;  %vm2795_vm2 = vmor %vm2793_vm1, %vm2794_vm0 }
 0x38f   :  { %v2625_v15 = vpop.f32.mrf.mxu3 }
 0x390   :  { %v2626_v53 = vadd.f32 %v2625_v15, %v5164_v10  ;;  %v2791_v16 = vmul.f32 %v4267_v49, %v2790_v40  ;;  %v2985_v46 = vpack.c.bf16 %v5201_v2, %v5185_v17  ;;  %v2814_v40 = vand.u32 2147483648, %v5191_v36 }
 0x391   :  { %v2812_v15 = vand.u32 2147483647, %v5191_v36 }
 0x392   :  { %v4271_v35 = vpop.eup %4270  ;;  %v4024_v62 = vmul.f32 -1.442695, %v2626_v53  ;;  %v2792_v3 = vadd.f32 %v4267_v49, %v2791_v16 }
 0x393   :  { %v4273_v60 = vpop.eup %4272  ;;  %v5207_v43 = vadd.f32 1.0, %v4271_v35  ;;  %v2584_v52 = vpop.f32.mrf.mxu2  ;;  %vm2813_vm7 = vcmp.eq.f32.partialorder %v2812_v15, 8.507059e+37 }
 0x394   :  { %v2804_v10 = vmul.f32 %v4273_v60, %v5191_v36  ;;  %4276 = vpow2.f32 %v4024_v62  ;;  %v2796_v58 = vsel %vm2795_vm2, %v4267_v49, %v2792_v3  ;;  %v4275_v19 = vpop.eup %4274  ;;  %vm2809_vm4 = vweird.f32 %v4273_v60 }
 0x395   :  { %4278 = vrcp.f32 %v5207_v43  ;;  %v2801_v12 = vsel %vm2798_vm3, %v2800_v33, %v2796_v58  ;;  %v2488_v16 = vpop.f32.mrf.mxu0  ;;  %vm2810_vm6 = vmor %vm2808_vm5, %vm2809_vm4  ;;  %v2487_v62 = vadd.f32 %v2486_v5, %v5127_v29  ;;  %vm2823_vm9 = vweird.f32 %v5207_v43 }
 0x396   :  { %v2805_v34 = vsub.f32 1.0, %v2804_v10  ;;  %v5211_v59 = vmul.f32 %v4275_v19, %v2801_v12  ;;  %4280 = vtanh.f32 %v5078_v39  ;;  %v2815_v39 = vor.u32 1.1754944e-38, %v2814_v40 }
 0x397   :  { %v2628_v27 = vpop.f32.mrf.mxu3  ;;  %v2829_v10 = vand.u32 2147483648, %v5207_v43 }
 0x398   :  { %v2629_v13 = vadd.f32 %v2628_v27, %v5181_v42  ;;  %v2806_v8 = vmul.f32 %v4273_v60, %v2805_v34  ;;  %v2827_v34 = vand.u32 2147483647, %v5207_v43 }
 0x39a   :  { %v4277_v49 = vpop.eup %4276  ;;  %v4025_v48 = vmul.f32 -1.442695, %v2629_v13  ;;  %v2807_v38 = vadd.f32 %v4273_v60, %v2806_v8  ;;  %v2536_v8 = vadd.f32 %v2535_v32, %v2487_v62  ;;  %vm2828_vm11 = vcmp.eq.f32.partialorder %v2827_v34, 8.507059e+37 }
 0x39b   :  { %v4279_v21 = vpop.eup %4278  ;;  %v5217_v54 = vadd.f32 1.0, %v4277_v49  ;;  %v2489_v32 = vadd.f32 %v2488_v16, %v5127_v29 }
 0x39c   :  { %v2819_v53 = vmul.f32 %v4279_v21, %v5207_v43  ;;  %4282 = vpow2.f32 %v4025_v48  ;;  %v2811_v31 = vsel %vm2810_vm6, %v4273_v60, %v2807_v38  ;;  %v4281_v35 = vpop.eup %4280  ;;  %vm2824_vm8 = vweird.f32 %v4279_v21  ;;  %v2537_v60 = vpop.f32.mrf.mxu1 }
 0x39d   :  { %4284 = vrcp.f32 %v5217_v54  ;;  %v2816_v58 = vsel %vm2813_vm7, %v2815_v39, %v2811_v31  ;;  %vm2825_vm10 = vmor %vm2823_vm9, %vm2824_vm8  ;;  %v2830_v38 = vor.u32 1.1754944e-38, %v2829_v10  ;;  %v2585_v43 = vadd.f32 %v2584_v52, %v2536_v8  ;;  %v2491_v39 = vpop.f32.mrf.mxu0 }
 0x39e   :  { %v2820_v42 = vsub.f32 1.0, %v2819_v53  ;;  %4286 = vtanh.f32 %v5087_v22  ;;  %v5226_v36 = vmul.f32 %v4281_v35, %v2816_v58  ;;  %vm2838_vm13 = vweird.f32 %v5217_v54 }
 0x39f   :  { %v2630_v3 = vpop.f32.mrf.mxu3 }
 0x3a0   :  { %v2631_v33 = vadd.f32 %v2630_v3, %v5194_v0  ;;  %v2821_v19 = vmul.f32 %v4279_v21, %v2820_v42  ;;  %v2986_v22 = vpack.c.bf16 %v5226_v36, %v5211_v59  ;;  %v2586_v0 = vpop.f32.mrf.mxu2 }
 0x3a2   :  { %v4283_v12 = vpop.eup %4282  ;;  %v4026_v27 = vmul.f32 -1.442695, %v2631_v33  ;;  %v2822_v13 = vadd.f32 %v4279_v21, %v2821_v19  ;;  %v2842_v19 = vand.u32 2147483647, %v5217_v54 }
 0x3a3   :  { %v4285_v5 = vpop.eup %4284  ;;  %v5232_v40 = vadd.f32 1.0, %v4283_v12  ;;  %v2538_v12 = vadd.f32 %v2537_v60, %v2489_v32  ;;  %v2492_v60 = vadd.f32 %v2491_v39, %v5127_v29 }
 0x3a4   :  { %v2834_v49 = vmul.f32 %v4285_v5, %v5217_v54  ;;  %4288 = vpow2.f32 %v4026_v27  ;;  %v2826_v48 = vsel %vm2825_vm10, %v4279_v21, %v2822_v13  ;;  %v4287_v15 = vpop.eup %4286  ;;  %v2844_v21 = vand.u32 2147483648, %v5217_v54  ;;  %v2540_v13 = vpop.f32.mrf.mxu1 }
 0x3a5   :  { %4290 = vrcp.f32 %v5232_v40  ;;  %v2831_v42 = vsel %vm2828_vm11, %v2830_v38, %v2826_v48  ;;  %vm2839_vm12 = vweird.f32 %v4285_v5  ;;  %v2587_v48 = vadd.f32 %v2586_v0, %v2538_v12 }
 0x3a6   :  { %v2835_v53 = vsub.f32 1.0, %v2834_v49  ;;  %v5236_v35 = vmul.f32 %v4287_v15, %v2831_v42  ;;  %4292 = vtanh.f32 %v5096_v25  ;;  %v2288_v25 = vadd.f32 %v5083_v51, %v5038_v55  ;;  %vm2840_vm14 = vmor %vm2838_vm13, %vm2839_vm12  ;;  %v2493_v42 = vpop.f32.mrf.mxu0 }
 0x3a7   :  { %v2633_v31 = vpop.f32.mrf.mxu3  ;;  %v2845_v8 = vor.u32 1.1754944e-38, %v2844_v21  ;;  %vm2843_vm15 = vcmp.eq.f32.partialorder %v2842_v19, 8.507059e+37  ;;  %v2859_v54 = vand.u32 2147483648, %v5232_v40  ;;  %vm2853_vm1 = vweird.f32 %v5232_v40 }
 0x3a8   :  { %v2634_v62 = vadd.f32 %v2633_v31, %v2585_v43  ;;  %v2836_v3 = vmul.f32 %v4285_v5, %v2835_v53  ;;  %v2589_v16 = vpop.f32.mrf.mxu2 }
 0x3a9   :  { %v2860_v12 = vor.u32 1.1754944e-38, %v2859_v54 }
 0x3aa   :  { %v4289_v10 = vpop.eup %4288  ;;  %v4027_v58 = vmul.f32 -1.442695, %v2634_v62  ;;  %v2837_v33 = vadd.f32 %v4285_v5, %v2836_v3  ;;  %v2337_v62 = vadd.f32 %v5085_v28, %v2288_v25 }
 0x3ab   :  { %v4291_v52 = vpop.eup %4290  ;;  %v5242_v34 = vadd.f32 1.0, %v4289_v10 }
 0x3ac   :  { %v2849_v27 = vmul.f32 %v4291_v52, %v5232_v40  ;;  %4294 = vpow2.f32 %v4027_v58  ;;  %v2841_v38 = vsel %vm2840_vm14, %v4285_v5, %v2837_v33  ;;  %v4293_v15 = vpop.eup %4292  ;;  %vm2854_vm0 = vweird.f32 %v4291_v52 }
 0x3ad   :  { %4296 = vrcp.f32 %v5242_v34  ;;  %v2846_v43 = vsel %vm2843_vm15, %v2845_v8, %v2841_v38  ;;  %v2857_v5 = vand.u32 2147483647, %v5232_v40  ;;  %v2386_v10 = vadd.f32 %v5089_v61, %v2337_v62  ;;  %vm2855_vm2 = vmor %vm2853_vm1, %vm2854_vm0 }
 0x3ae   :  { %v2850_v49 = vsub.f32 1.0, %v2849_v27  ;;  %4298 = vtanh.f32 %v5103_v37  ;;  %v5252_v32 = vmul.f32 %v4293_v15, %v2846_v43  ;;  %v2541_v58 = vadd.f32 %v2540_v13, %v2492_v60  ;;  %v2496_v43 = vpop.f32.mrf.mxu0 }
 0x3af   :  { %v2635_v53 = vpop.f32.mrf.mxu3  ;;  %v2435_v25 = vadd.f32 %v5106_v63, %v2386_v10  ;;  %vm2858_vm3 = vcmp.eq.f32.partialorder %v2857_v5, 8.507059e+37  ;;  %v2494_v15 = vadd.f32 %v2493_v42, %v5127_v29  ;;  %v2874_v63 = vand.u32 2147483648, %v5242_v34 }
 0x3b0   :  { %v2636_v51 = vadd.f32 %v2635_v53, %v2587_v48  ;;  %v2851_v31 = vmul.f32 %v4291_v52, %v2850_v49  ;;  %v2987_v37 = vpack.c.bf16 %v5252_v32, %v5236_v35  ;;  %v2590_v8 = vadd.f32 %v2589_v16, %v2541_v58  ;;  %v2542_v49 = vpop.f32.mrf.mxu1  ;;  %v2591_v61 = vpop.f32.mrf.mxu2  ;;  %v2992_v35 = vld [vmem:[%s5376_s5] sm:$0x1] }
 0x3b1   :  { %v2543_v42 = vadd.f32 %v2542_v49, %v2494_v15  ;;  %vm2868_vm5 = vweird.f32 %v5242_v34 }
 0x3b2   :  { %v4295_v0 = vpop.eup %4294  ;;  %v4028_v3 = vmul.f32 -1.442695, %v2636_v51  ;;  %v2852_v21 = vadd.f32 %v4291_v52, %v2851_v31  ;;  %v2872_v31 = vand.u32 2147483647, %v5242_v34 }
 0x3b3   :  { %v4297_v39 = vpop.eup %4296  ;;  %v5260_v33 = vadd.f32 1.0, %v4295_v0 }
 0x3b4   :  { %v2864_v19 = vmul.f32 %v4297_v39, %v5242_v34  ;;  %4300 = vpow2.f32 %v4028_v3  ;;  %v2856_v28 = vsel %vm2855_vm2, %v4291_v52, %v2852_v21  ;;  %v4299_v27 = vpop.eup %4298  ;;  %v2291_v52 = vadd.f32 %v5091_v26, %v5038_v55 }
 0x3b5   :  { %4302 = vrcp.f32 %v5260_v33  ;;  %v2861_v48 = vsel %vm2858_vm3, %v2860_v12, %v2856_v28  ;;  %vm2869_vm4 = vweird.f32 %v4297_v39  ;;  %v2875_v26 = vor.u32 1.1754944e-38, %v2874_v63 }
 0x3b6   :  { %v2865_v40 = vsub.f32 1.0, %v2864_v19  ;;  %v5265_v38 = vmul.f32 %v4299_v27, %v2861_v48  ;;  %4304 = vtanh.f32 %v2435_v25  ;;  %v2340_v55 = vadd.f32 %v5093_v14, %v2291_v52  ;;  %vm2870_vm6 = vmor %vm2868_vm5, %vm2869_vm4 }
 0x3b7   :  { %v2638_v13 = vpop.f32.mrf.mxu3  ;;  %v2592_v21 = vadd.f32 %v2591_v61, %v2543_v42  ;;  %vm2873_vm7 = vcmp.eq.f32.partialorder %v2872_v31, 8.507059e+37  ;;  %v2497_v27 = vadd.f32 %v2496_v43, %v5127_v29  ;;  %vm2883_vm9 = vweird.f32 %v5260_v33 }
 0x3b8   :  { %v2639_v60 = vadd.f32 %v2638_v13, %v2590_v8  ;;  %v2866_v53 = vmul.f32 %v4297_v39, %v2865_v40  ;;  %v2389_v12 = vadd.f32 %v5100_v41, %v2340_v55  ;;  %v2545_v25 = vpop.f32.mrf.mxu1  ;;  %v2594_v14 = vpop.f32.mrf.mxu2 }
 0x3b9   :  { %v2546_v41 = vadd.f32 %v2545_v25, %v2497_v27 }
 0x3ba   :  { %v4301_v54 = vpop.eup %4300  ;;  %v4029_v51 = vmul.f32 -1.442695, %v2639_v60  ;;  %v2867_v16 = vadd.f32 %v4297_v39, %v2866_v53  ;;  %v2438_v48 = vadd.f32 %v5113_v30, %v2389_v12  ;;  %v2498_v53 = vpop.f32.mrf.mxu0 }
 0x3bb   :  { %v5272_v62 = vpop.eup %4302  ;;  %v5274_v5 = vadd.f32 1.0, %v4301_v54  ;;  %v2595_v63 = vadd.f32 %v2594_v14, %v2546_v41  ;;  %v2889_v54 = vand.u32 2147483648, %v5260_v33  ;;  %v2499_v43 = vadd.f32 %v2498_v53, %v5127_v29 }
 0x3bc   :  { %v2879_v0 = vmul.f32 %v5272_v62, %v5260_v33  ;;  %4306 = vpow2.f32 %v4029_v51  ;;  %v2871_v10 = vsel %vm2870_vm6, %v4297_v39, %v2867_v16  ;;  %v4305_v58 = vpop.eup %4304  ;;  %vm2884_vm8 = vweird.f32 %v5272_v62 }
 0x3bd   :  { %4308 = vrcp.f32 %v5274_v5  ;;  %v2876_v28 = vsel %vm2873_vm7, %v2875_v26, %v2871_v10  ;;  %v2887_v16 = vand.u32 2147483647, %v5260_v33  ;;  %v2904_v31 = vand.u32 2147483648, %v5274_v5  ;;  %vm5301_vm10 = vmor %vm2883_vm9, %vm2884_vm8 }
 0x3be   :  { %v2880_v3 = vsub.f32 1.0, %v2879_v0  ;;  %v5283_v34 = vmul.f32 %v4305_v58, %v2876_v28  ;;  %v2902_v26 = vand.u32 2147483647, %v5274_v5  ;;  %v2890_v10 = vor.u32 1.1754944e-38, %v2889_v54 }
 0x3bf   :  { %v2640_v19 = vpop.f32.mrf.mxu3  ;;  %vm2898_vm12 = vweird.f32 %v5274_v5  ;;  %vm2888_vm13 = vcmp.eq.f32.partialorder %v2887_v16, 8.507059e+37  ;;  %v2905_v27 = vor.u32 1.1754944e-38, %v2904_v31 }
 0x3c0   :  { %v2641_v40 = vadd.f32 %v2640_v19, %v2592_v21  ;;  %v2881_v8 = vmul.f32 %v5272_v62, %v2880_v3  ;;  %v2988_v39 = vpack.c.bf16 %v5283_v34, %v5265_v38  ;;  %v2547_v21 = vpop.f32.mrf.mxu1  ;;  %v2596_v28 = vpop.f32.mrf.mxu2  ;;  %vm2903_vm15 = vcmp.eq.f32.partialorder %v2902_v26, 8.507059e+37 }
 0x3c1   :  { %v2548_v19 = vadd.f32 %v2547_v21, %v2499_v43 }
 0x3c2   :  { %v4307_v49 = vpop.eup %4306  ;;  %v4030_v61 = vmul.f32 -1.442695, %v2641_v40  ;;  %v2882_v52 = vadd.f32 %v5272_v62, %v2881_v8 }
 0x3c3   :  { %v4309_v13 = vpop.eup %4308  ;;  %v5289_v15 = vadd.f32 1.0, %v4307_v49 }
 0x3c4   :  { %v2894_v60 = vmul.f32 %v4309_v13, %v5274_v5  ;;  %4310 = vpow2.f32 %v4030_v61  ;;  %vm2899_vm11 = vweird.f32 %v4309_v13  ;;  %v2886_v29 = vsel %vm5301_vm10, %v5272_v62, %v2882_v52 }
 0x3c5   :  { %4312 = vrcp.f32 %v5289_v15  ;;  %vm2900_vm14 = vmor %vm2898_vm12, %vm2899_vm11  ;;  %v2891_v62 = vsel %vm2888_vm13, %v2890_v10, %v2886_v29  ;;  %vm2913_vm1 = vweird.f32 %v5289_v15  ;;  %v2917_v0 = vand.u32 2147483647, %v5289_v15 }
 0x3c6   :  { %4314 = vtanh.f32 %v2438_v48  ;;  %v2895_v30 = vsub.f32 1.0, %v2894_v60  ;;  %v2597_v48 = vadd.f32 %v2596_v28, %v2548_v19 }
 0x3c7   :  { %v2643_v51 = vpop.f32.mrf.mxu3  ;;  %4316 = vtanh.f32 %v5118_v23  ;;  %vm2918_vm5 = vcmp.eq.f32.partialorder %v2917_v0, 8.507059e+37 }
 0x3c8   :  { %v2644_v42 = vadd.f32 %v2643_v51, %v2595_v63  ;;  %v2896_v55 = vmul.f32 %v4309_v13, %v2895_v30 }
 0x3ca   :  { %v4311_v3 = vpop.eup %4310  ;;  %v4031_v33 = vmul.f32 -1.442695, %v2644_v42  ;;  %v2897_v58 = vadd.f32 %v4309_v13, %v2896_v55  ;;  %v2919_v42 = vand.u32 2147483648, %v5289_v15 }
 0x3cb   :  { %v4313_v23 = vpop.eup %4312  ;;  %v2725_v12 = vadd.f32 1.0, %v4311_v3 }
 0x3cc   :  { %v4315_v25 = vpop.eup %4314  ;;  %v2909_v40 = vmul.f32 %v4313_v23, %v5289_v15  ;;  %4318 = vpow2.f32 %v4031_v33  ;;  %v2901_v14 = vsel %vm2900_vm14, %v4309_v13, %v2897_v58  ;;  %vm2914_vm0 = vweird.f32 %v4313_v23 }
 0x3cd   :  { %4320 = vrcp.f32 %v2725_v12  ;;  %v4317_v8 = vpop.eup %4316  ;;  %v2906_v61 = vsel %vm2903_vm15, %v2905_v27, %v2901_v14  ;;  %v5311_v41 = vmul.f32 %v4315_v25, %v2891_v62  ;;  %vm5322_vm2 = vmor %vm2913_vm1, %vm2914_vm0  ;;  %v2934_v26 = vand.u32 2147483648, %v2725_v12 }
 0x3ce   :  { %v2910_v49 = vsub.f32 1.0, %v2909_v40  ;;  %v5313_v60 = vmul.f32 %v4317_v8, %v2906_v61  ;;  %v2932_v21 = vand.u32 2147483647, %v2725_v12  ;;  %v2920_v10 = vor.u32 1.1754944e-38, %v2919_v42 }
 0x3cf   :  { %v2645_v5 = vpop.f32.mrf.mxu3  ;;  %vm2928_vm4 = vweird.f32 %v2725_v12  ;;  %v2935_v27 = vor.u32 1.1754944e-38, %v2934_v26  ;;  %vm3017_vm1 = vcmask 1040384  }
 0x3d0   :  { %v2646_v53 = vadd.f32 %v2645_v5, %v2597_v48  ;;  %v2911_v52 = vmul.f32 %v4313_v23, %v2910_v49  ;;  %v2989_v30 = vpack.c.bf16 %v5313_v60, %v5311_v41  ;;  %vm2933_vm7 = vcmp.eq.f32.partialorder %v2932_v21, 8.507059e+37 }
 0x3d2   :  { %v4319_v63 = vpop.eup %4318  ;;  %v4032_v54 = vmul.f32 -1.442695, %v2646_v53  ;;  %v2912_v16 = vadd.f32 %v4313_v23, %v2911_v52 }
 0x3d3   :  { %v4321_v43 = vpop.eup %4320  ;;  %v2726_v13 = vadd.f32 1.0, %v4319_v63 }
 0x3d4   :  { %v2924_v51 = vmul.f32 %v4321_v43, %v2725_v12  ;;  %4322 = vpow2.f32 %v4032_v54  ;;  %vm2929_vm3 = vweird.f32 %v4321_v43  ;;  %v2916_v3 = vsel %vm5322_vm2, %v4313_v23, %v2912_v16 }
 0x3d5   :  { %4324 = vrcp.f32 %v2726_v13  ;;  %vm2930_vm6 = vmor %vm2928_vm4, %vm2929_vm3  ;;  %v2921_v15 = vsel %vm2918_vm5, %v2920_v10, %v2916_v3  ;;  %v2949_v53 = vand.u32 2147483648, %v2726_v13  ;;  %vm2943_vm9 = vweird.f32 %v2726_v13 }
 0x3d6   :  { %v2925_v31 = vsub.f32 1.0, %v2924_v51  ;;  %4326 = vtanh.f32 %v5124_v9  ;;  %v2947_v63 = vand.u32 2147483647, %v2726_v13  ;;  %v4534_v10 = vmov 0  }
 0x3d7   :  { %4328 = vtanh.f32 %v5130_v18  ;;  %4239 = vset.pattern.permute.xlu0 %v4534_v10 }
 0x3d8   :  { %v2926_v29 = vmul.f32 %v4321_v43, %v2925_v31  ;;  %v2950_v31 = vor.u32 1.1754944e-38, %v2949_v53  ;;  %vm2948_vm13 = vcmp.eq.f32.partialorder %v2947_v63, 8.507059e+37 }
 0x3da   :  { %v4323_v33 = vpop.eup %4322  ;;  %v2927_v9 = vadd.f32 %v4321_v43, %v2926_v29 }
 0x3db   :  { %v4325_v58 = vpop.eup %4324  ;;  %v2727_v19 = vadd.f32 1.0, %v4323_v33  ;;  %v2993_v33 = vld [vmem:[#allocation2] sm:$0x1] }
 0x3dc   :  { %v2939_v18 = vmul.f32 %v4325_v58, %v2726_v13  ;;  %v2931_v28 = vsel %vm2930_vm6, %v4321_v43, %v2927_v9  ;;  %v4327_v25 = vpop.eup %4326  ;;  %vm2944_vm8 = vweird.f32 %v4325_v58  ;;  %2996 = vperm.xlu0 %4239, %v2993_v33   ;;  %vm3188_vm6 = vcmask 8192  }
 0x3dd   :  { %4330 = vrcp.f32 %v2727_v19  ;;  %v4329_v40 = vpop.eup %4328  ;;  %v2936_v14 = vsel %vm2933_vm7, %v2935_v27, %v2931_v28  ;;  %v2980_v23 = vmul.f32 %v4327_v25, %v2921_v15  ;;  %vm2945_vm10 = vmor %vm2943_vm9, %vm2944_vm8  ;;  %v2964_v54 = vand.u32 2147483648, %v2727_v19 }
 0x3de   :  { %v2940_v62 = vsub.f32 1.0, %v2939_v18  ;;  %v2981_v8 = vmul.f32 %v4329_v40, %v2936_v14  ;;  %4332 = vtanh.f32 %v5134_v57  ;;  %v2962_v16 = vand.u32 2147483647, %v2727_v19 }
 0x3df   :  { %4334 = vtanh.f32 %v5137_v20  ;;  %vm2958_vm12 = vweird.f32 %v2727_v19  ;;  %v2965_v55 = vor.u32 1.1754944e-38, %v2964_v54 }
 0x3e0   :  { %v2941_v49 = vmul.f32 %v4325_v58, %v2940_v62  ;;  %v2990_v48 = vpack.c.bf16 %v2981_v8, %v2980_v23  ;;  %vm2963_vm15 = vcmp.eq.f32.partialorder %v2962_v16, 8.507059e+37 }
 0x3e2   :  { %v2942_v5 = vadd.f32 %v4325_v58, %v2941_v49 }
 0x3e3   :  { %v4331_v61 = vpop.eup %4330 }
 0x3e4   :  { %v2954_v12 = vmul.f32 %v4331_v61, %v2727_v19  ;;  %v2946_v51 = vsel %vm2945_vm10, %v4325_v58, %v2942_v5  ;;  %vm2959_vm11 = vweird.f32 %v4331_v61  ;;  %v4333_v29 = vpop.eup %4332 }
 0x3e5   :  { %v2951_v0 = vsel %vm2948_vm13, %v2950_v31, %v2946_v51  ;;  %vm2960_vm14 = vmor %vm2958_vm12, %vm2959_vm11  ;;  %v4335_v26 = vpop.eup %4334 }
 0x3e6   :  { %v2955_v52 = vsub.f32 1.0, %v2954_v12  ;;  %v2982_v3 = vmul.f32 %v4333_v29, %v2951_v0  ;;  %v3097_v12 = vld [vmem:[%s5379_s8] sm:$0x1]  ;;  %s4535_s8 = smov [#allocation13]  }
 0x3e7   :  { %s3230_s6 = sshll.u32 %s4535_s8, 4  ;;  %s3231_s6 = int_to_ptr.vmem [resolvable:$true] %s3230_s6 }
 0x3e8   :  { %v2956_v43 = vmul.f32 %v4331_v61, %v2955_v52 }
 0x3ea   :  { %v2957_v42 = vadd.f32 %v4331_v61, %v2956_v43 }
 0x3ec   :  { %v2961_v57 = vsel %vm2960_vm14, %v4331_v61, %v2957_v42 }
 0x3ed   :  { %v2966_v13 = vsel %vm2963_vm15, %v2965_v55, %v2961_v57 }
 0x3ee   :  { %v2983_v20 = vmul.f32 %v4335_v26, %v2966_v13 }
 0x3f0   :  { %v2991_v21 = vpack.c.bf16 %v2983_v20, %v2982_v3 }
 0x3f2   :  { %3000 = vmatpush.bf16.xpose.msra.mxu0 %v2991_v21 }
 0x3fa   :  { %3001 = vmatpush.bf16.xpose.msra.mxu0 %v2990_v48 }
 0x402   :  { %3002 = vmatpush.bf16.xpose.msra.mxu0 %v2989_v30 }
 0x40a   :  { %3003 = vmatpush.bf16.xpose.msra.mxu0 %v2988_v39 }
 0x412   :  { %3004 = vmatpush.bf16.xpose.msra.mxu0 %v2987_v37 }
 0x41a   :  { %3005 = vmatpush.bf16.xpose.msra.mxu0 %v2986_v22 }
 0x422   :  { %3006 = vmatpush.bf16.xpose.msra.mxu0 %v2985_v46 }
 0x42a   :  { %3007 = vmatpush.bf16.xpose.msra.mxu0 %v2984_v56 }
 0x431   :  { %3008 = vmatmul.bf16.vlgmr.msra.gmra.mxu0 %v2992_v35 }
 0x432   :  { %3083 = vmatpush.bf16.msrb.mxu0 %v5044_v1  ;;  %v3013_v1 = vlaneseq }
 0x434   :  { %v3014_v11 = vand.u32 127, %v3013_v1 }
 0x436   :  { %3084 = vmatpush.bf16.msrb.mxu0 %v5028_v4  ;;  %vm3015_vm0 = vcmp.lt.s32.totalorder %v3014_v11, 64 }
 0x43a   :  { %3085 = vmatpush.bf16.msrb.mxu0 %v5020_v6 }
 0x43e   :  { %3086 = vmatpush.bf16.msrb.mxu0 %v5012_v44 }
 0x442   :  { %3087 = vmatpush.bf16.msrb.mxu0 %v5004_v7 }
 0x446   :  { %3088 = vmatpush.bf16.msrb.mxu0 %v4996_v50 }
 0x44a   :  { %3089 = vmatpush.bf16.msrb.mxu0 %v4984_v47 }
 0x44e   :  { %3090 = vmatpush.bf16.msrb.mxu0 %v4958_v24  ;;  %v2997_v45 = vpop.permute.xlu0 %2996  ;;  %v3096_v24 = vld [vmem:[#allocation11] sm:$0xff] }
 0x44f   :  { %v2999_v56 = vperm.slane %v2997_v45, 0  ;;  %3099 = vst [vmem:[#allocation1] ss:$4 sm:$0xff] %v3096_v24 }
 0x456   :  { %v3100_v36 = vld.sshfl [vmem:[#allocation1] sm:$0xff pattern:$0x73625140]  ;;  %v3101_v15 = vld.sshfl [vmem:[#allocation1 + $0x8] sm:$0xff pattern:$0x73625140] }
 0x457   :  { %3123 = vmatpush.xpose.msrb.mxu1 %v3100_v36  ;;  %v3102_v28 = vld.sshfl [vmem:[#allocation1 + $0x10] sm:$0xff pattern:$0x73625140]  ;;  %3143 = vmatpush.xpose.msrb.mxu2 %v3101_v15  ;;  %v3103_v27 = vld.sshfl [vmem:[#allocation1 + $0x18] sm:$0xff pattern:$0x73625140] }
 0x458   :  { %3163 = vmatpush.xpose.msrb.mxu3 %v3102_v28 }
 0x4ae   :  { %v3009_v17 = vpop.f32.mrf.mxu0 }
 0x4af   :  { %v3010_v4 = vadd.f32 %v3009_v17, %v2999_v56 }
 0x4b1   :  { %v3016_v2 = vsel %vm3015_vm0, %v3010_v4, -inf }
 0x4b2   :  { %v3018_v6 = vsel %vm3017_vm1, %v3016_v2, -inf }
 0x4b3   :  { %3019 = vmax.xlane.f32.xlu0 %v3018_v6 }
 0x4b6   :  { %v3011_v44 = vpop.f32.mrf.mxu0 }
 0x526   :  { %v3020_v46 = vpop.xlane.xlu0 %3019 }
 0x527   :  { %v3021_v7 = vsub.f32 %v3016_v2, %v3020_v46 }
 0x529   :  { %v3022_v59 = vmul.f32 1.442695, %v3021_v7 }
 0x52b   :  { %4336 = vpow2.f32 %v3022_v59 }
 0x531   :  { %v4337_v50 = vpop.eup %4336 }
 0x532   :  { %v3024_v47 = vsel %vm3017_vm1, %v4337_v50, 0.0 }
 0x533   :  { %3025 = vadd.xlane.f32.xlu1 %v3024_v47 }
 0x5a6   :  { %v3026_v22 = vpop.xlane.xlu1 %3025 }
 0x5a7   :  { %4338 = vrcp.f32 %v3026_v22  ;;  %v3038_v34 = vand.u32 2147483648, %v3026_v22  ;;  %v3036_v41 = vand.u32 2147483647, %v3026_v22  ;;  %vm3032_vm3 = vweird.f32 %v3026_v22 }
 0x5a9   :  { %v3039_v30 = vor.u32 1.1754944e-38, %v3038_v34  ;;  %vm3037_vm5 = vcmp.eq.f32.partialorder %v3036_v41, 8.507059e+37 }
 0x5ad   :  { %v4339_v32 = vpop.eup %4338 }
 0x5ae   :  { %v3028_v37 = vmul.f32 %v4339_v32, %v3026_v22  ;;  %vm3033_vm2 = vweird.f32 %v4339_v32 }
 0x5af   :  { %vm3034_vm4 = vmor %vm3032_vm3, %vm3033_vm2 }
 0x5b0   :  { %v3029_v38 = vsub.f32 1.0, %v3028_v37 }
 0x5b2   :  { %v3030_v39 = vmul.f32 %v4339_v32, %v3029_v38 }
 0x5b4   :  { %v3031_v60 = vadd.f32 %v4339_v32, %v3030_v39 }
 0x5b6   :  { %v3035_v9 = vsel %vm3034_vm4, %v4339_v32, %v3031_v60 }
 0x5b7   :  { %v3040_v58 = vsel %vm3037_vm5, %v3039_v30, %v3035_v9 }
 0x5b8   :  { %v3041_v19 = vmul.f32 %v4337_v50, %v3040_v58 }
 0x5ba   :  { %3042 = vst [vmem:[#allocation13] sm:$0x1] %v3041_v19  ;;  %v3043_v18 = vpack.c.bf16 %v3041_v19, %v3041_v19 }
 0x5bb   :  { %3235 = dma.vmem_to_hbm [thread:$0]  %s3231_s6, 16, %s3233_s26, [#allocation14]  }
 0x5bc   :  { %3052 = vmatmul.bf16.vlgmr.msra.gmra.mxu1 %v3043_v18  ;;  %3065 = vmatmul.bf16.vlgmr.msra.gmra.mxu2 %v3043_v18 }
 0x5bd   :  { %3078 = vmatmul.bf16.vlgmr.msra.gmra.mxu3 %v3043_v18  ;;  %3091 = vmatmul.bf16.vlgmr.msrb.gmra.mxu0 %v3043_v18 }
 0x5be   :  { %3183 = vmatpush.xpose.msra.mxu1 %v3103_v27 }
 0x639   :  { %v3053_v25 = vpop.f32.mrf.mxu1 }
 0x63a   :  { %v3092_v40 = vpop.f32.mrf.mxu0  ;;  %3124 = vmatmul.f32.vlgmr.msrb.gmra.mxu1 %v3053_v25 }
 0x63f   :  { %v3066_v62 = vpop.f32.mrf.mxu2 }
 0x640   :  { %v3079_v14 = vpop.f32.mrf.mxu3  ;;  %3144 = vmatmul.f32.vlgmr.msrb.gmra.mxu2 %v3066_v62 }
 0x641   :  { %3164 = vmatmul.f32.vlgmr.msrb.gmra.mxu3 %v3079_v14  ;;  %v3055_v23 = vpop.f32.mrf.mxu1 }
 0x642   :  { %v3094_v8 = vpop.f32.mrf.mxu0  ;;  %3184 = vmatmul.f32.vlgmr.msra.gmra.mxu1 %v3092_v40 }
 0x647   :  { %v3068_v49 = vpop.f32.mrf.mxu2 }
 0x648   :  { %v3081_v48 = vpop.f32.mrf.mxu3 }
 0x6b7   :  { %v3125_v61 = vpop.f32.mrf.mxu1 }
 0x6b8   :  { %v3126_v5 = vadd.f32 %v3125_v61, %v3097_v12 }
 0x6bf   :  { %v3185_v43 = vpop.f32.mrf.mxu1 }
 0x6c3   :  { %v3145_v53 = vpop.f32.mrf.mxu2 }
 0x6c4   :  { %v3146_v52 = vadd.f32 %v3145_v53, %v3126_v5  ;;  %v3165_v63 = vpop.f32.mrf.mxu3 }
 0x6c6   :  { %v3166_v54 = vadd.f32 %v3165_v63, %v3146_v52 }
 0x6c8   :  { %v3186_v51 = vadd.f32 %v3185_v43, %v3166_v54 }
 0x6ca   :  { %v3189_v16 = vsel %vm3188_vm6, %v3186_v51, -inf }
 0x6cb   :  { %3190 = vmax.xlane.f32.xlu1 %v3189_v16 }
 0x73e   :  { %v3191_v31 = vpop.xlane.xlu1 %3190 }
 0x73f   :  { %v3192_v42 = vsub.f32 %v3186_v51, %v3191_v31 }
 0x741   :  { %v3193_v0 = vmul.f32 1.442695, %v3192_v42 }
 0x743   :  { %4340 = vpow2.f32 %v3193_v0 }
 0x749   :  { %v4341_v55 = vpop.eup %4340 }
 0x74a   :  { %v3195_v29 = vsel %vm3188_vm6, %v4341_v55, 0.0 }
 0x74b   :  { %3196 = vadd.xlane.f32.xlu2 %v3195_v29 }
 0x7be   :  { %v3197_v57 = vpop.xlane.xlu2 %3196 }
 0x7bf   :  { %4342 = vrcp.f32 %v3197_v57  ;;  %v3209_v20 = vand.u32 2147483648, %v3197_v57  ;;  %v3207_v33 = vand.u32 2147483647, %v3197_v57  ;;  %vm3203_vm8 = vweird.f32 %v3197_v57 }
 0x7c1   :  { %v3210_v35 = vor.u32 1.1754944e-38, %v3209_v20  ;;  %vm3208_vm10 = vcmp.eq.f32.partialorder %v3207_v33, 8.507059e+37 }
 0x7c5   :  { %v4343_v26 = vpop.eup %4342 }
 0x7c6   :  { %v3199_v13 = vmul.f32 %v4343_v26, %v3197_v57  ;;  %vm3204_vm7 = vweird.f32 %v4343_v26 }
 0x7c7   :  { %vm3205_vm9 = vmor %vm3203_vm8, %vm3204_vm7 }
 0x7c8   :  { %v3200_v3 = vsub.f32 1.0, %v3199_v13 }
 0x7ca   :  { %v3201_v21 = vmul.f32 %v4343_v26, %v3200_v3 }
 0x7cc   :  { %v3202_v10 = vadd.f32 %v4343_v26, %v3201_v21 }
 0x7ce   :  { %v3206_v1 = vsel %vm3205_vm9, %v4343_v26, %v3202_v10 }
 0x7cf   :  { %v3211_v45 = vsel %vm3208_vm10, %v3210_v35, %v3206_v1 }
 0x7d0   :  { %v3212_v11 = vmul.f32 %v4341_v55, %v3211_v45 }
 0x7d2   :  { %3213 = vst.msk [vmem:[#allocation12] sm:$0x1] %vm3188_vm6, %v3212_v11 }
 0x7d3   :  { %3224 = dma.vmem_to_hbm [thread:$0]  %s3220_s1, 16, %s3222_s29, [#allocation5]  }
 0x7d4   :  { %4519 = dma.done.wait [#allocation5], 16  }
 0x7d5   :  { %4520 = vsyncadd [#allocation5], 4294967280 }
 0x7d6   :  { %4521 = dma.done.wait [#allocation14], 16  }
 0x7d7   :  { %4522 = vsyncadd [#allocation14], 4294967280 }
 0x7d8   :  { %3244 = vsyncpa [#allocation4], 1 }
 0x7d9   :  { %3245 = vsyncpa [#allocation7], 1 }
 0x7da   :  { %3246 = vsyncpa [#allocation10], 1 }
 0x7db   :  { %3247 = vsyncpa [#allocation5], 1 }
 0x7dc   :  { %3248 = vsyncpa [#allocation14], 1 }

</bundles_post_ra>
